<compile_context>
chip_gen: v7x
topology: tpu7x:2x2x1
jax: 0.10.0
libtpu: 0.0.40
codegen_flags: <defaults>
</compile_context>

<pallas_src>
import numpy as np

import jax
import jax.numpy as jnp
from jax.experimental import pallas as pl
from jax.experimental.pallas import tpu as pltpu


# bf16 is MXU-native on v5e/v6e/v7x; accumulation stays f32.
COMPUTE_DTYPE = jnp.bfloat16


# --------------------------------------------------------------------------
# Fused Pallas kernel (one grid step == TB batch elements)
# --------------------------------------------------------------------------
def _make_fused_kernel(n_pool, c2, dim):
    """n_pool: #spatial positions left after conv2; c2: conv2 out channels;
    dim: embedding dim.  All Python ints (closed over, static)."""
    inv_pool = 1.0 / float(n_pool)

    def kernel(x_ref, a0_ref, b0_ref, a1_ref, b1_ref, a2_ref, b2_ref,
               pw_ref, pb_ref, out_ref):
        f32 = jnp.float32
        cdt = a0_ref.dtype  # bf16 MXU compute dtype

        # conv0 (3x3 s2 p1, 1->32) as ONE matmul: (TB, H*W) @ (H*W, S0*32)
        h = jnp.dot(x_ref[...], a0_ref[...], preferred_element_type=f32)
        h = jnp.maximum(h + b0_ref[...], 0.0).astype(cdt)      # (TB, S0*32)

        # conv1 (32->64): (TB, S0*32) @ (S0*32, S1*64)
        h = jnp.dot(h, a1_ref[...], preferred_element_type=f32)
        h = jnp.maximum(h + b1_ref[...], 0.0).astype(cdt)      # (TB, S1*64)

        # conv2 (64->128): (TB, S1*64) @ (S1*64, S2*128); keep f32 for head.
        h = jnp.dot(h, a2_ref[...], preferred_element_type=f32)
        h = jnp.maximum(h + b2_ref[...], 0.0)                  # (TB, S2*128) f32

        # AdaptiveAvgPool2d(1): mean over the S2 spatial positions
        # (128-lane-aligned slices, no relayout).
        f = h[:, 0:c2]
        for s in range(1, n_pool):                             # unrolled (n_pool=4)
            f = f + h[:, s * c2:(s + 1) * c2]
        f = f * inv_pool                                       # (TB, 128) f32

        # proj + folded reg head on the MXU, then L2-normalize the emb part
        # (F.normalize eps = 1e-12, PyTorch default).
        p = jnp.dot(f.astype(cdt), pw_ref[...],
                    preferred_element_type=f32) + pb_ref[...]  # (TB, dim+128) f32
        e = p[:, :dim]
        norm = jnp.sqrt(jnp.sum(e * e, axis=-1, keepdims=True))
        e = e / jnp.maximum(norm, 1e-12)
        out_ref[...] = jnp.concatenate([e, p[:, dim:]],
                                       axis=-1).astype(out_ref.dtype)

    return kernel


# --------------------------------------------------------------------------
# Host-side (one-time) param packing
# --------------------------------------------------------------------------
def _out_hw(h):
    # Conv2d(k=3, s=2, p=1) output size.
    return (h + 1) // 2


def _gather_struct(hi, wi):
    """(9, S_out, S_in) 0/1 structural matrices for a 3x3 s2 p1 conv; zero
    padding is encoded by all-zero columns."""
    ho, wo = _out_hw(hi), _out_hw(wi)
    g = np.zeros((9, ho * wo, hi * wi), np.float32)
    for di in range(3):
        for dj in range(3):
            t = di * 3 + dj
            for oi in range(ho):
                ii = 2 * oi + di - 1
                if not (0 <= ii < hi):
                    continue
                for oj in range(wo):
                    jj = 2 * oj + dj - 1
                    if not (0 <= jj < wi):
                        continue
                    g[t, oi * wo + oj, ii * wi + jj] = 1.0
    return g


def _conv_to_dense(w_oihw, g):
    """Fold a PyTorch (Cout, Cin, 3, 3) conv weight and its gather structure
    into one exact dense operand A[(p*cin+ci), (s*cout+co)]: every entry is a
    single weight value or 0 (at most one tap maps a given input pixel to a
    given output pixel for stride-2 3x3)."""
    w = jnp.asarray(w_oihw, jnp.float32)
    cout, cin = w.shape[0], w.shape[1]
    w_t = jnp.transpose(w, (2, 3, 1, 0)).reshape(9, cin, cout)   # (t, ci, co)
    gj = jnp.asarray(g)                                          # (t, s, p)
    a = jnp.einsum("tsp,tio->piso", gj, w_t)                     # (p, ci, s, co)
    s_out, s_in = g.shape[1], g.shape[2]
    return a.reshape(s_in * cin, s_out * cout)


def prepare_params(params, input_hw=(16, 16)):
    """One-time packing of PyTorch-layout weights into kernel operands."""
    H, W = input_hw
    h0, w0 = _out_hw(H), _out_hw(W)
    h1, w1 = _out_hw(h0), _out_hw(w0)

    g0 = _gather_struct(H, W)       # (9, S0, H*W)
    g1 = _gather_struct(h0, w0)     # (9, S1, S0)
    g2 = _gather_struct(h1, w1)     # (9, S2, S1)
    s0, s1, s2 = g0.shape[1], g1.shape[1], g2.shape[1]

    a0 = _conv_to_dense(params["conv0_w"], g0).astype(COMPUTE_DTYPE)  # (256, S0*32)
    a1 = _conv_to_dense(params["conv1_w"], g1).astype(COMPUTE_DTYPE)  # (S0*32, S1*64)
    a2 = _conv_to_dense(params["conv2_w"], g2).astype(COMPUTE_DTYPE)  # (S1*64, S2*128)

    b0 = jnp.tile(jnp.asarray(params["conv0_b"], jnp.float32), s0).reshape(1, -1)
    b1 = jnp.tile(jnp.asarray(params["conv1_b"], jnp.float32), s1).reshape(1, -1)
    b2 = jnp.tile(jnp.asarray(params["conv2_b"], jnp.float32), s2).reshape(1, -1)

    c2 = int(params["conv2_w"].shape[0])       # 128
    dim = int(params["proj_w"].shape[0])       # PyTorch Linear weight: (out, in)

    # proj + reg head folded into one lane-dense (128, dim+128) operand:
    # column `dim` carries the reg head, the remaining pad columns are zero.
    pw = jnp.zeros((c2, dim + 128), jnp.float32)
    pw = pw.at[:, :dim].set(jnp.asarray(params["proj_w"], jnp.float32).T)
    pw = pw.at[:, dim].set(jnp.asarray(params["reg_w"], jnp.float32)[0])
    pb = jnp.zeros((1, dim + 128), jnp.float32)
    pb = pb.at[0, :dim].set(jnp.asarray(params["proj_b"], jnp.float32))
    pb = pb.at[0, dim].set(jnp.asarray(params["reg_b"], jnp.float32)[0])

    return {"a0": a0, "b0": b0, "a1": a1, "b1": b1, "a2": a2, "b2": b2,
            "pw": pw.astype(COMPUTE_DTYPE), "pb": pb}


# --------------------------------------------------------------------------
# Forward pass
# --------------------------------------------------------------------------
def _forward(x_nchw, packed, tb=8):
    a0, b0 = packed["a0"], packed["b0"]
    a1, b1 = packed["a1"], packed["b1"]
    a2, b2 = packed["a2"], packed["b2"]
    pw, pb = packed["pw"], packed["pb"]

    B = x_nchw.shape[0]
    feat_in = int(np.prod(x_nchw.shape[1:]))        # Cin(=1) * H * W
    assert feat_in == a0.shape[0], "input size does not match packed params"
    assert tb % 8 == 0, "batch tile must be a multiple of 8 (sublane width)"

    c2 = pw.shape[0]
    npad = pw.shape[1]
    dim = npad - 128
    n_pool = a2.shape[1] // c2
    n0, n1, n2 = a0.shape[1], a1.shape[1], a2.shape[1]

    x = x_nchw.reshape(B, feat_in).astype(COMPUTE_DTYPE)
    nb = pl.cdiv(B, tb)
    b_pad = nb * tb
    if b_pad != B:
        x = jnp.pad(x, ((0, b_pad - B), (0, 0)))

    kernel = _make_fused_kernel(n_pool, c2, dim)

    out = pl.pallas_call(
        kernel,
        out_shape=jax.ShapeDtypeStruct((b_pad, npad), jnp.float32),
        grid_spec=pltpu.PrefetchScalarGridSpec(
            num_scalar_prefetch=0,
            grid=(nb,),
            in_specs=[
                pl.BlockSpec((tb, feat_in), lambda i: (i, 0)),   # x (lane-dense)
                pl.BlockSpec((feat_in, n0), lambda i: (0, 0)),   # conv0 dense op
                pl.BlockSpec((1, n0), lambda i: (0, 0)),         # conv0 bias (tiled)
                pl.BlockSpec((n0, n1), lambda i: (0, 0)),        # conv1 dense op
                pl.BlockSpec((1, n1), lambda i: (0, 0)),         # conv1 bias
                pl.BlockSpec((n1, n2), lambda i: (0, 0)),        # conv2 dense op
                pl.BlockSpec((1, n2), lambda i: (0, 0)),         # conv2 bias
                pl.BlockSpec((c2, npad), lambda i: (0, 0)),      # proj+reg weights
                pl.BlockSpec((1, npad), lambda i: (0, 0)),       # proj+reg bias
            ],
            out_specs=pl.BlockSpec((tb, npad), lambda i: (i, 0)),
        ),
        compiler_params=pltpu.CompilerParams(
            # Megacore-shard the batch-tile axis (no-op on single-TC chips).
            dimension_semantics=("parallel",),
            # ~12 MiB of double-buffered constants; 32 MiB covers v5e's 16 MiB
            # scoped default and matches the v6e/v7x defaults (<= physical).
            vmem_limit_bytes=32 * 1024 * 1024,
        ),
    )(x, a0, b0, a1, b1, a2, b2, pw, pb)

    emb = out[:B, :dim]
    reg = out[:B, dim]
    return emb, reg


vegetation_encoder_forward = jax.jit(_forward, static_argnames=("tb",))


def make_params(key, dim=128):
    ks = jax.random.split(key, 10)
    p = {}
    # PyTorch layouts: Conv2d weight (Cout, Cin, kh, kw); Linear weight (out, in).
    p["conv0_w"] = 0.05 * jax.random.normal(ks[0], (32, 1, 3, 3), jnp.float32)
    p["conv0_b"] = 0.01 * jax.random.normal(ks[1], (32,), jnp.float32)
    p["conv1_w"] = 0.05 * jax.random.normal(ks[2], (64, 32, 3, 3), jnp.float32)
    p["conv1_b"] = 0.01 * jax.random.normal(ks[3], (64,), jnp.float32)
    p["conv2_w"] = 0.05 * jax.random.normal(ks[4], (128, 64, 3, 3), jnp.float32)
    p["conv2_b"] = 0.01 * jax.random.normal(ks[5], (128,), jnp.float32)
    p["proj_w"] = 0.05 * jax.random.normal(ks[6], (dim, 128), jnp.float32)
    p["proj_b"] = 0.01 * jax.random.normal(ks[7], (dim,), jnp.float32)
    p["reg_w"] = 0.05 * jax.random.normal(ks[8], (1, 128), jnp.float32)
    p["reg_b"] = 0.01 * jax.random.normal(ks[9], (1,), jnp.float32)
    return p


# --------------------------------------------------------------------------
# Pure-JAX f32 reference (im2col path) for a correctness check
# --------------------------------------------------------------------------
def _im2col_3x3_s2_p1(x_nhwc):
    B, H, W, C = x_nhwc.shape
    ho, wo = _out_hw(H), _out_hw(W)
    xp = jnp.pad(x_nhwc, ((0, 0), (1, 1), (1, 1), (0, 0)))
    patches = []
    for di in range(3):
        for dj in range(3):
            patches.append(xp[:, di:di + 2 * ho:2, dj:dj + 2 * wo:2, :])
    cols = jnp.stack(patches, axis=3)                  # (B, ho, wo, 9, C)
    return cols.reshape(B * ho * wo, 9 * C), ho, wo


def reference_forward(x_nchw, params):
    B = x_nchw.shape[0]
    h = jnp.transpose(x_nchw, (0, 2, 3, 1)).astype(jnp.float32)
    for i in range(3):
        cols, ho, wo = _im2col_3x3_s2_p1(h)
        w = params[f"conv{i}_w"]                       # (cout, cin, 3, 3)
        wm = jnp.transpose(w, (2, 3, 1, 0)).reshape(-1, w.shape[0])
        out = jnp.maximum(cols @ wm + params[f"conv{i}_b"], 0.0)
        h = out.reshape(B, ho, wo, -1)
    f = jnp.mean(h.reshape(B, -1, h.shape[-1]), axis=1)          # (B, 128)
    p = f @ params["proj_w"].T + params["proj_b"]
    emb = p / jnp.maximum(jnp.linalg.norm(p, axis=-1, keepdims=True), 1e-12)
    reg = (f @ params["reg_w"].T + params["reg_b"])[:, 0]
    return emb, reg


if __name__ == "__main__":
    key = jax.random.PRNGKey(0)
    k_x, k_p = jax.random.split(key)

    # batch=16, 1 input channel (as the module requires), 16x16 spatial, dim=128.
    # TB=8 -> grid of 2 parallel steps (megacore-friendly on v7x).
    B = 16
    x = jax.random.normal(k_x, (B, 1, 16, 16), jnp.float32)
    params = make_params(k_p, dim=128)
    packed = prepare_params(params, input_hw=(16, 16))   # one-time packing

    emb, reg = vegetation_encoder_forward(x, packed, tb=8)
    emb = jax.block_until_ready(emb)
    reg = jax.block_until_ready(reg)

    emb_ref, reg_ref = reference_forward(x, params)
    assert emb.shape == (B, 128) and reg.shape == (B,)
    # Embeddings are L2-normalized.
    assert jnp.allclose(jnp.linalg.norm(emb, axis=-1), 1.0, atol=1e-3)
    # bf16 MXU operands (f32 accumulation) => looser tolerance vs the f32 ref.
    assert jnp.allclose(emb, emb_ref, atol=2e-2, rtol=2e-2)
    assert jnp.allclose(reg, reg_ref, atol=2e-2, rtol=2e-2)

    print("KERNEL_OK")
</pallas_src>

<mosaic_0001>
module attributes {stable_mosaic.version = 11 : i64} {
  func.func @kernel(%arg0: i32, %arg1: memref<8x256xbf16, #tpu.memory_space<vmem>>, %arg2: memref<256x2048xbf16, #tpu.memory_space<vmem>>, %arg3: memref<1x2048xf32, #tpu.memory_space<vmem>>, %arg4: memref<2048x1024xbf16, #tpu.memory_space<vmem>>, %arg5: memref<1x1024xf32, #tpu.memory_space<vmem>>, %arg6: memref<1024x512xbf16, #tpu.memory_space<vmem>>, %arg7: memref<1x512xf32, #tpu.memory_space<vmem>>, %arg8: memref<128x256xbf16, #tpu.memory_space<vmem>>, %arg9: memref<1x256xf32, #tpu.memory_space<vmem>>, %arg10: memref<8x256xf32, #tpu.memory_space<vmem>>) attributes {dimension_semantics = [#tpu.dimension_semantics<parallel>], iteration_bounds = array<i64: 2>, scalar_prefetch = 0 : i64, scratch_operands = 0 : i64, tpu.core_type = #tpu.core_type<tc>, window_params = [{transform_indices = @transform_0, window_bounds = array<i64: 8, 256>}, {pipeline_mode = #tpu.pipeline_mode<synchronous>, transform_indices = @transform_1, window_bounds = array<i64: 256, 2048>}, {pipeline_mode = #tpu.pipeline_mode<synchronous>, transform_indices = @transform_2, window_bounds = array<i64: 1, 2048>}, {pipeline_mode = #tpu.pipeline_mode<synchronous>, transform_indices = @transform_3, window_bounds = array<i64: 2048, 1024>}, {pipeline_mode = #tpu.pipeline_mode<synchronous>, transform_indices = @transform_4, window_bounds = array<i64: 1, 1024>}, {pipeline_mode = #tpu.pipeline_mode<synchronous>, transform_indices = @transform_5, window_bounds = array<i64: 1024, 512>}, {pipeline_mode = #tpu.pipeline_mode<synchronous>, transform_indices = @transform_6, window_bounds = array<i64: 1, 512>}, {pipeline_mode = #tpu.pipeline_mode<synchronous>, transform_indices = @transform_7, window_bounds = array<i64: 128, 256>}, {pipeline_mode = #tpu.pipeline_mode<synchronous>, transform_indices = @transform_8, window_bounds = array<i64: 1, 256>}, {transform_indices = @transform_9, window_bounds = array<i64: 8, 256>}]} {
    %c0 = arith.constant 0 : index
    %c0_0 = arith.constant 0 : index
    %0 = vector.load %arg1[%c0, %c0_0] : memref<8x256xbf16, #tpu.memory_space<vmem>>, vector<8x256xbf16>
    %c0_1 = arith.constant 0 : index
    %c0_2 = arith.constant 0 : index
    %1 = vector.load %arg2[%c0_1, %c0_2] : memref<256x2048xbf16, #tpu.memory_space<vmem>>, vector<256x2048xbf16>
    %cst = arith.constant dense<0.000000e+00> : vector<8x2048xf32>
    %2 = tpu.matmul %0, %1, %cst {dimension_numbers = #tpu.dot_dimension_numbers<[1], [0], [0], [1], [0, 0, 1, 1], [], []>} : vector<8x256xbf16>, vector<256x2048xbf16>, vector<8x2048xf32> -> vector<8x2048xf32>
    %c0_3 = arith.constant 0 : index
    %c0_4 = arith.constant 0 : index
    %3 = vector.load %arg3[%c0_3, %c0_4] : memref<1x2048xf32, #tpu.memory_space<vmem>>, vector<1x2048xf32>
    %4 = vector.broadcast %3 : vector<1x2048xf32> to vector<8x2048xf32>
    %5 = arith.addf %2, %4 : vector<8x2048xf32>
    %cst_5 = arith.constant 0.000000e+00 : f32
    %6 = vector.broadcast %cst_5 : f32 to vector<8x2048xf32>
    %7 = arith.maximumf %5, %6 : vector<8x2048xf32>
    %8 = arith.truncf %7 : vector<8x2048xf32> to vector<8x2048xbf16>
    %c0_6 = arith.constant 0 : index
    %c0_7 = arith.constant 0 : index
    %9 = vector.load %arg4[%c0_6, %c0_7] : memref<2048x1024xbf16, #tpu.memory_space<vmem>>, vector<2048x1024xbf16>
    %cst_8 = arith.constant dense<0.000000e+00> : vector<8x1024xf32>
    %10 = tpu.matmul %8, %9, %cst_8 {dimension_numbers = #tpu.dot_dimension_numbers<[1], [0], [0], [1], [0, 0, 1, 1], [], []>} : vector<8x2048xbf16>, vector<2048x1024xbf16>, vector<8x1024xf32> -> vector<8x1024xf32>
    %c0_9 = arith.constant 0 : index
    %c0_10 = arith.constant 0 : index
    %11 = vector.load %arg5[%c0_9, %c0_10] : memref<1x1024xf32, #tpu.memory_space<vmem>>, vector<1x1024xf32>
    %12 = vector.broadcast %11 : vector<1x1024xf32> to vector<8x1024xf32>
    %13 = arith.addf %10, %12 : vector<8x1024xf32>
    %cst_11 = arith.constant 0.000000e+00 : f32
    %14 = vector.broadcast %cst_11 : f32 to vector<8x1024xf32>
    %15 = arith.maximumf %13, %14 : vector<8x1024xf32>
    %16 = arith.truncf %15 : vector<8x1024xf32> to vector<8x1024xbf16>
    %c0_12 = arith.constant 0 : index
    %c0_13 = arith.constant 0 : index
    %17 = vector.load %arg6[%c0_12, %c0_13] : memref<1024x512xbf16, #tpu.memory_space<vmem>>, vector<1024x512xbf16>
    %cst_14 = arith.constant dense<0.000000e+00> : vector<8x512xf32>
    %18 = tpu.matmul %16, %17, %cst_14 {dimension_numbers = #tpu.dot_dimension_numbers<[1], [0], [0], [1], [0, 0, 1, 1], [], []>} : vector<8x1024xbf16>, vector<1024x512xbf16>, vector<8x512xf32> -> vector<8x512xf32>
    %c0_15 = arith.constant 0 : index
    %c0_16 = arith.constant 0 : index
    %19 = vector.load %arg7[%c0_15, %c0_16] : memref<1x512xf32, #tpu.memory_space<vmem>>, vector<1x512xf32>
    %20 = vector.broadcast %19 : vector<1x512xf32> to vector<8x512xf32>
    %21 = arith.addf %18, %20 : vector<8x512xf32>
    %cst_17 = arith.constant 0.000000e+00 : f32
    %22 = vector.broadcast %cst_17 : f32 to vector<8x512xf32>
    %23 = arith.maximumf %21, %22 : vector<8x512xf32>
    %24 = vector.extract_strided_slice %23 {offsets = [0, 0], sizes = [8, 128], strides = [1, 1]} : vector<8x512xf32> to vector<8x128xf32>
    %25 = vector.extract_strided_slice %23 {offsets = [0, 128], sizes = [8, 128], strides = [1, 1]} : vector<8x512xf32> to vector<8x128xf32>
    %26 = arith.addf %24, %25 : vector<8x128xf32>
    %27 = vector.extract_strided_slice %23 {offsets = [0, 256], sizes = [8, 128], strides = [1, 1]} : vector<8x512xf32> to vector<8x128xf32>
    %28 = arith.addf %26, %27 : vector<8x128xf32>
    %29 = vector.extract_strided_slice %23 {offsets = [0, 384], sizes = [8, 128], strides = [1, 1]} : vector<8x512xf32> to vector<8x128xf32>
    %30 = arith.addf %28, %29 : vector<8x128xf32>
    %cst_18 = arith.constant 2.500000e-01 : f32
    %31 = vector.broadcast %cst_18 : f32 to vector<8x128xf32>
    %32 = arith.mulf %30, %31 : vector<8x128xf32>
    %33 = arith.truncf %32 : vector<8x128xf32> to vector<8x128xbf16>
    %c0_19 = arith.constant 0 : index
    %c0_20 = arith.constant 0 : index
    %34 = vector.load %arg8[%c0_19, %c0_20] : memref<128x256xbf16, #tpu.memory_space<vmem>>, vector<128x256xbf16>
    %cst_21 = arith.constant dense<0.000000e+00> : vector<8x256xf32>
    %35 = tpu.matmul %33, %34, %cst_21 {dimension_numbers = #tpu.dot_dimension_numbers<[1], [0], [0], [1], [0, 0, 1, 1], [], []>} : vector<8x128xbf16>, vector<128x256xbf16>, vector<8x256xf32> -> vector<8x256xf32>
    %c0_22 = arith.constant 0 : index
    %c0_23 = arith.constant 0 : index
    %36 = vector.load %arg9[%c0_22, %c0_23] : memref<1x256xf32, #tpu.memory_space<vmem>>, vector<1x256xf32>
    %37 = vector.broadcast %36 : vector<1x256xf32> to vector<8x256xf32>
    %38 = arith.addf %35, %37 : vector<8x256xf32>
    %39 = vector.extract_strided_slice %38 {offsets = [0, 0], sizes = [8, 128], strides = [1, 1]} : vector<8x256xf32> to vector<8x128xf32>
    %40 = arith.mulf %39, %39 : vector<8x128xf32>
    %cst_24 = arith.constant dense<0.000000e+00> : vector<8xf32>
    %41 = vector.multi_reduction <add>, %40, %cst_24 [1] : vector<8x128xf32> to vector<8xf32>
    %42 = vector.shape_cast %41 : vector<8xf32> to vector<8x1xf32>
    %43 = math.sqrt %42 : vector<8x1xf32>
    %cst_25 = arith.constant 9.99999996E-13 : f32
    %44 = vector.broadcast %cst_25 : f32 to vector<8x1xf32>
    %45 = arith.maximumf %43, %44 : vector<8x1xf32>
    %46 = vector.broadcast %45 : vector<8x1xf32> to vector<8x128xf32>
    %47 = arith.divf %39, %46 : vector<8x128xf32>
    %48 = vector.extract_strided_slice %38 {offsets = [0, 128], sizes = [8, 128], strides = [1, 1]} : vector<8x256xf32> to vector<8x128xf32>
    %49 = tpu.concatenate %47, %48 in 1 : vector<8x128xf32>, vector<8x128xf32> -> vector<8x256xf32>
    %c0_26 = arith.constant 0 : index
    %c0_27 = arith.constant 0 : index
    %50 = vector.load %arg10[%c0_26, %c0_27] : memref<8x256xf32, #tpu.memory_space<vmem>>, vector<8x256xf32>
    tpu.vector_store %arg10[%c0_26, %c0_27], %49 {strides = array<i32>} : memref<8x256xf32, #tpu.memory_space<vmem>>, vector<8x256xf32>,
    return
  }
  func.func @transform_0(%arg0: i32) -> (i32, i32) {
    %c0_i32 = arith.constant 0 : i32
    %c0_i32_0 = arith.constant 0 : i32
    return %arg0, %c0_i32 : i32, i32
  }
  func.func @transform_1(%arg0: i32) -> (i32, i32) {
    %c0_i32 = arith.constant 0 : i32
    %c0_i32_0 = arith.constant 0 : i32
    %c0_i32_1 = arith.constant 0 : i32
    return %c0_i32, %c0_i32_0 : i32, i32
  }
  func.func @transform_2(%arg0: i32) -> (i32, i32) {
    %c0_i32 = arith.constant 0 : i32
    %c0_i32_0 = arith.constant 0 : i32
    %c0_i32_1 = arith.constant 0 : i32
    return %c0_i32, %c0_i32_0 : i32, i32
  }
  func.func @transform_3(%arg0: i32) -> (i32, i32) {
    %c0_i32 = arith.constant 0 : i32
    %c0_i32_0 = arith.constant 0 : i32
    %c0_i32_1 = arith.constant 0 : i32
    return %c0_i32, %c0_i32_0 : i32, i32
  }
  func.func @transform_4(%arg0: i32) -> (i32, i32) {
    %c0_i32 = arith.constant 0 : i32
    %c0_i32_0 = arith.constant 0 : i32
    %c0_i32_1 = arith.constant 0 : i32
    return %c0_i32, %c0_i32_0 : i32, i32
  }
  func.func @transform_5(%arg0: i32) -> (i32, i32) {
    %c0_i32 = arith.constant 0 : i32
    %c0_i32_0 = arith.constant 0 : i32
    %c0_i32_1 = arith.constant 0 : i32
    return %c0_i32, %c0_i32_0 : i32, i32
  }
  func.func @transform_6(%arg0: i32) -> (i32, i32) {
    %c0_i32 = arith.constant 0 : i32
    %c0_i32_0 = arith.constant 0 : i32
    %c0_i32_1 = arith.constant 0 : i32
    return %c0_i32, %c0_i32_0 : i32, i32
  }
  func.func @transform_7(%arg0: i32) -> (i32, i32) {
    %c0_i32 = arith.constant 0 : i32
    %c0_i32_0 = arith.constant 0 : i32
    %c0_i32_1 = arith.constant 0 : i32
    return %c0_i32, %c0_i32_0 : i32, i32
  }
  func.func @transform_8(%arg0: i32) -> (i32, i32) {
    %c0_i32 = arith.constant 0 : i32
    %c0_i32_0 = arith.constant 0 : i32
    %c0_i32_1 = arith.constant 0 : i32
    return %c0_i32, %c0_i32_0 : i32, i32
  }
  func.func @transform_9(%arg0: i32) -> (i32, i32) {
    %c0_i32 = arith.constant 0 : i32
    %c0_i32_0 = arith.constant 0 : i32
    return %arg0, %c0_i32 : i32, i32
  }
}

</mosaic_0001>

<bundles_post_ra>
// kernel: _forward.1
= control target key start
LH: loop header
LB: loop body
LE: loop exit
PB: predicated region body
PF: predicated region fallthrough
CT: control target
= control target key end

     0   :  { %14 = vsyncpa [#allocation3], 0  ;;  %s15212_s0 = inlined_call_operand.vmem [shape: bf16[16,256], index: 0, kind: input, shape index: {}]   ;;  %s15213_s1 = inlined_call_operand.hbm [shape: bf16[256,2048], index: 1, kind: input, shape index: {}]   ;;  %s15214_s2 = inlined_call_operand.hbm [shape: f32[1,2048], index: 2, kind: input, shape index: {}]   ;;  %s15215_s3 = inlined_call_operand.hbm [shape: bf16[2048,1024], index: 3, kind: input, shape index: {}]   ;;  %s15216_s4 = inlined_call_operand.hbm [shape: f32[1,1024], index: 4, kind: input, shape index: {}]   ;;  %s15217_s5 = inlined_call_operand.hbm [shape: bf16[1024,512], index: 5, kind: input, shape index: {}]   ;;  %s15218_s6 = inlined_call_operand.hbm [shape: f32[1,512], index: 6, kind: input, shape index: {}]   ;;  %s15219_s7 = inlined_call_operand.hbm [shape: bf16[128,256], index: 7, kind: input, shape index: {}]   ;;  %s15220_s8 = inlined_call_operand.hbm [shape: f32[1,256], index: 8, kind: input, shape index: {}]   ;;  %s15221_s9 = inlined_call_operand.vmem [shape: f32[16,256], index: 9, kind: output, shape index: {}]  }
   0x1   :  { %15 = vsyncpa [#allocation5], 0 }
   0x2   :  { %16 = vsyncpa [#allocation8], 0 }
   0x3   :  { %17 = vsyncpa [#allocation11], 0 }
   0x4   :  { %18 = vsyncpa [#allocation14], 0  ;;  %s14703_s30 = smov 0  }
   0x5 LB: > { %s14636_s10 = smov [#allocation4]   ;;  %s14709_s12 = sadd.s32 4294967295, %s14634_s30   ;;  %s14634_s30 = sphi %s14703_s30, %s24_s30  }
   0x6   : > { %s275_s11 = sshll.u32 %s14636_s10, 4  ;;  %p12140_p0 = scmp.ge.s32.totalorder %s14634_s30, 1  ;;  %s14714_s11 = int_to_ptr.vmem [resolvable:$true] %s275_s11 }
   0x7   : > { %p249_p1 = scmp.lt.s32.totalorder %s14634_s30, 3  ;;  %p15222_p2 = scmp.eq.s32.totalorder %s14709_s12, 0 }
   0x8   : > { %s14637_s14 = smov [#allocation7]   ;;  %s14638_s16 = smov [#allocation10]  }
   0x9   : > { %p14716_p3 = pnand %p12140_p0, %p249_p1  ;;  %s299_s15 = sshll.u32 %s14637_s14, 4  ;;  %s14722_s15 = int_to_ptr.vmem [resolvable:$true] %s299_s15 }
   0xa   : > { %s323_s17 = sshll.u32 %s14638_s16, 4  ;;  %s14639_s19 = smov [#allocation2]   ;;  %s14730_s17 = int_to_ptr.vmem [resolvable:$true] %s323_s17 }
   0xb   : > { %s15224_s13 = scalar_select %p14716_p3, 1, 0 }
   0xc   : > { %p13901_p4 = pneg %p14716_p3  ;;  %s261_s20 = sshll.u32 %s14639_s19, 4  ;;  %s14732_s20 = int_to_ptr.vmem [resolvable:$true] %s261_s20 }
   0xd   : > { %s14384_s23 = scalar_lea.hbm %s15214_s2, 256 }
   0xe   : > { %p14726_p5 = pnand %p15222_p2, %p13901_p4  ;;  %p14385_p6 = scmp.ne.s32.totalorder %s15214_s2, %s14384_s23 }
   0xf   : > { %p14391_p10 = scmp.lt.u32.totalorder %s14384_s23, %s15214_s2 }
  0x10   : > { %p14742_p7 = pneg %p14726_p5 }
  0x12   : > { %p14387_p8 = pnand %p14742_p7, %p14385_p6 }
  0x14   : > { %p14388_p9 = pneg %p14387_p8 }
  0x16   : > { %p14393_p11 = pnand %p14391_p10, %p14388_p9 }
  0x18   : > { %14396 = shalt.err (!%p14393_p11)
}
  0x19   : > { %s14397_s29 = scalar_lea.vmem %s14714_s11, 256  ;;  %p14405_p1 = scmp.lt.s32.totalorder %s14714_s11, %s14714_s11 }
  0x1a   : > { %p14398_p12 = scmp.ne.s32.totalorder %s14714_s11, %s14397_s29  ;;  %p14406_p4 = scmp.lt.s32.totalorder %s14397_s29, %s14397_s29 }
  0x1c   : > { %p14400_p13 = pnand %p14398_p12, %p14742_p7  ;;  %p14407_p6 = por %p14406_p4, %p14405_p1 }
  0x1e   : > { %p14401_p0 = pneg %p14400_p13 }
  0x20   : > { %p14408_p8 = pnand %p14407_p6, %p14401_p0 }
  0x22   : > { %14411 = shalt.err (!%p14408_p8)
}
  0x23   : > { %13907 = dma.hbm_to_vmem [thread:$0]  (!%p14726_p5), %s15214_s2, 256, %s14714_s11, [#allocation5]  }
  0x24   : > { %s14412_s21 = scalar_lea.hbm %s15216_s4, 128 }
  0x25   : > { %p14413_p9 = scmp.ne.s32.totalorder %s15216_s4, %s14412_s21  ;;  %p14419_p12 = scmp.lt.u32.totalorder %s14412_s21, %s15216_s4 }
  0x27   : > { %p14415_p10 = pnand %p14413_p9, %p14742_p7 }
  0x29   : > { %p14416_p11 = pneg %p14415_p10 }
  0x2b   : > { %p14421_p13 = pnand %p14419_p12, %p14416_p11 }
  0x2d   : > { %14424 = shalt.err (!%p14421_p13)
}
  0x2e   : > { %s14425_s11 = scalar_lea.vmem %s14722_s15, 128  ;;  %p14433_p6 = scmp.lt.s32.totalorder %s14722_s15, %s14722_s15 }
  0x2f   : > { %p14426_p0 = scmp.ne.s32.totalorder %s14722_s15, %s14425_s11  ;;  %p14434_p8 = scmp.lt.s32.totalorder %s14425_s11, %s14425_s11 }
  0x31   : > { %p14428_p1 = pnand %p14426_p0, %p14742_p7  ;;  %p14435_p9 = por %p14434_p8, %p14433_p6 }
  0x33   : > { %p14429_p4 = pneg %p14428_p1 }
  0x35   : > { %p14436_p10 = pnand %p14435_p9, %p14429_p4 }
  0x37   : > { %14439 = shalt.err (!%p14436_p10)
}
  0x38   : > { %13913 = dma.hbm_to_vmem [thread:$0]  (!%p14726_p5), %s15216_s4, 128, %s14722_s15, [#allocation8]  }
  0x39   : > { %s14440_s14 = scalar_lea.hbm %s15218_s6, 64 }
  0x3a   : > { %p14441_p11 = scmp.ne.s32.totalorder %s15218_s6, %s14440_s14  ;;  %p14447_p0 = scmp.lt.u32.totalorder %s14440_s14, %s15218_s6 }
  0x3c   : > { %p14443_p12 = pnand %p14441_p11, %p14742_p7 }
  0x3e   : > { %p14444_p13 = pneg %p14443_p12 }
  0x40   : > { %p14449_p1 = pnand %p14447_p0, %p14444_p13 }
  0x42   : > { %14452 = shalt.err (!%p14449_p1)
}
  0x43   : > { %s14453_s15 = scalar_lea.vmem %s14730_s17, 64  ;;  %p14461_p9 = scmp.lt.s32.totalorder %s14730_s17, %s14730_s17 }
  0x44   : > { %p14454_p4 = scmp.ne.s32.totalorder %s14730_s17, %s14453_s15  ;;  %p14462_p10 = scmp.lt.s32.totalorder %s14453_s15, %s14453_s15 }
  0x46   : > { %p14456_p6 = pnand %p14454_p4, %p14742_p7  ;;  %p14463_p11 = por %p14462_p10, %p14461_p9 }
  0x48   : > { %p14457_p8 = pneg %p14456_p6 }
  0x4a   : > { %p14464_p12 = pnand %p14463_p11, %p14457_p8 }
  0x4c   : > { %14467 = shalt.err (!%p14464_p12)
}
  0x4d   : > { %13919 = dma.hbm_to_vmem [thread:$0]  (!%p14726_p5), %s15218_s6, 64, %s14730_s17, [#allocation11]  }
  0x4e   : > { %s14468_s27 = scalar_lea.hbm %s15213_s1, 32768 }
  0x4f   : > { %p14469_p13 = scmp.ne.s32.totalorder %s15213_s1, %s14468_s27  ;;  %p14475_p4 = scmp.lt.u32.totalorder %s14468_s27, %s15213_s1 }
  0x51   : > { %p14471_p0 = pnand %p14469_p13, %p14742_p7 }
  0x53   : > { %p14472_p1 = pneg %p14471_p0 }
  0x55   : > { %p14477_p6 = pnand %p14475_p4, %p14472_p1 }
  0x57   : > { %14480 = shalt.err (!%p14477_p6)
}
  0x58   : > { %s14481_s17 = scalar_lea.vmem %s14732_s20, 32768  ;;  %p14489_p11 = scmp.lt.s32.totalorder %s14732_s20, %s14732_s20 }
  0x59   : > { %p14482_p8 = scmp.ne.s32.totalorder %s14732_s20, %s14481_s17  ;;  %p14490_p12 = scmp.lt.s32.totalorder %s14481_s17, %s14481_s17 }
  0x5b   : > { %p14484_p9 = pnand %p14482_p8, %p14742_p7  ;;  %p14491_p13 = por %p14490_p12, %p14489_p11 }
  0x5d   : > { %p14485_p10 = pneg %p14484_p9 }
  0x5f   : > { %p14492_p0 = pnand %p14491_p13, %p14485_p10 }
  0x61   : > { %14495 = shalt.err (!%p14492_p0)
}
  0x62   : > { %s14640_s16 = smov 1024   ;;  %s14641_s19 = smov 64  }
  0x63   : > { %13904 = dma.hbm_to_vmem [thread:$0]  (!%p14726_p5), %s15213_s1, 32768, %s14732_s20, [#allocation3], %s14640_s16, %s14640_s16, %s14641_s19  }
  0x64   : > { %s14642_s15 = smov [#allocation6]   ;;  %s14496_s11 = scalar_lea.hbm %s15215_s3, 131072 }
  0x65   : > { %s285_s23 = sshll.u32 %s14642_s15, 4  ;;  %p14497_p1 = scmp.ne.s32.totalorder %s15215_s3, %s14496_s11  ;;  %s286_s23 = int_to_ptr.vmem [resolvable:$true] %s285_s23 }
  0x66   : > { %p14503_p8 = scmp.lt.u32.totalorder %s14496_s11, %s15215_s3 }
  0x67   : > { %p14499_p4 = pnand %p14497_p1, %p14742_p7 }
  0x69   : > { %p14500_p6 = pneg %p14499_p4 }
  0x6b   : > { %p14505_p9 = pnand %p14503_p8, %p14500_p6 }
  0x6d   : > { %14508 = shalt.err (!%p14505_p9)
}
  0x6e   : > { %s14509_s20 = scalar_lea.vmem %s286_s23, 131072  ;;  %p14517_p13 = scmp.lt.s32.totalorder %s286_s23, %s286_s23 }
  0x6f   : > { %p14510_p10 = scmp.ne.s32.totalorder %s286_s23, %s14509_s20  ;;  %p14518_p0 = scmp.lt.s32.totalorder %s14509_s20, %s14509_s20 }
  0x71   : > { %p14512_p11 = pnand %p14510_p10, %p14742_p7  ;;  %p14519_p2 = por %p14518_p0, %p14517_p13 }
  0x73   : > { %p14513_p12 = pneg %p14512_p11 }
  0x75   : > { %p14520_p3 = pnand %p14519_p2, %p14513_p12 }
  0x77   : > { %14523 = shalt.err (!%p14520_p3)
}
  0x78   : > { %s14643_s14 = smov 512   ;;  %s14644_s17 = smov 32  }
  0x79   : > { %13910 = dma.hbm_to_vmem [thread:$0]  (!%p14726_p5), %s15215_s3, 131072, %s286_s23, [#allocation5], %s14643_s14, %s14643_s14, %s14644_s17  }
  0x7a   : > { %s14645_s21 = smov [#allocation9]   ;;  %s14524_s25 = scalar_lea.hbm %s15217_s5, 32768 }
  0x7b   : > { %s309_s22 = sshll.u32 %s14645_s21, 4  ;;  %p14525_p2 = scmp.ne.s32.totalorder %s15217_s5, %s14524_s25  ;;  %s310_s22 = int_to_ptr.vmem [resolvable:$true] %s309_s22 }
  0x7c   : > { %p14531_p4 = scmp.lt.u32.totalorder %s14524_s25, %s15217_s5 }
  0x7d   : > { %p14527_p3 = pnand %p14525_p2, %p14742_p7 }
  0x7f   : > { %p14528_p1 = pneg %p14527_p3 }
  0x81   : > { %p14533_p6 = pnand %p14531_p4, %p14528_p1 }
  0x83   : > { %14536 = shalt.err (!%p14533_p6)
}
  0x84   : > { %s14537_s23 = scalar_lea.vmem %s310_s22, 32768  ;;  %p14545_p11 = scmp.lt.s32.totalorder %s310_s22, %s310_s22 }
  0x85   : > { %p14538_p8 = scmp.ne.s32.totalorder %s310_s22, %s14537_s23  ;;  %p14546_p12 = scmp.lt.s32.totalorder %s14537_s23, %s14537_s23 }
  0x87   : > { %p14540_p9 = pnand %p14538_p8, %p14742_p7  ;;  %p14547_p13 = por %p14546_p12, %p14545_p11 }
  0x89   : > { %p14541_p10 = pneg %p14540_p9 }
  0x8b   : > { %p14548_p0 = pnand %p14547_p13, %p14541_p10 }
  0x8d   : > { %14551 = shalt.err (!%p14548_p0)
}
  0x8e   : > { %s14646_s10 = smov 256   ;;  %s14647_s20 = smov 16  }
  0x8f   : > { %13916 = dma.hbm_to_vmem [thread:$0]  (!%p14726_p5), %s15217_s5, 32768, %s310_s22, [#allocation8], %s14646_s10, %s14646_s10, %s14647_s20  }
  0x90   : > { %s14648_s16 = smov [#allocation12]   ;;  %s14552_s24 = scalar_lea.hbm %s15219_s7, 2048 }
  0x91   : > { %s333_s19 = sshll.u32 %s14648_s16, 4  ;;  %p14553_p2 = scmp.ne.s32.totalorder %s15219_s7, %s14552_s24  ;;  %s334_s19 = int_to_ptr.vmem [resolvable:$true] %s333_s19 }
  0x92   : > { %p14559_p4 = scmp.lt.u32.totalorder %s14552_s24, %s15219_s7 }
  0x93   : > { %p14555_p3 = pnand %p14553_p2, %p14742_p7 }
  0x95   : > { %p14556_p1 = pneg %p14555_p3 }
  0x97   : > { %p14561_p6 = pnand %p14559_p4, %p14556_p1 }
  0x99   : > { %14564 = shalt.err (!%p14561_p6)
}
  0x9a   : > { %s14565_s22 = scalar_lea.vmem %s334_s19, 2048  ;;  %p14573_p11 = scmp.lt.s32.totalorder %s334_s19, %s334_s19 }
  0x9b   : > { %p14566_p8 = scmp.ne.s32.totalorder %s334_s19, %s14565_s22  ;;  %p14574_p12 = scmp.lt.s32.totalorder %s14565_s22, %s14565_s22 }
  0x9d   : > { %p14568_p9 = pnand %p14566_p8, %p14742_p7  ;;  %p14575_p13 = por %p14574_p12, %p14573_p11 }
  0x9f   : > { %p14569_p10 = pneg %p14568_p9 }
  0xa1   : > { %p14576_p0 = pnand %p14575_p13, %p14569_p10 }
  0xa3   : > { %14579 = shalt.err (!%p14576_p0)
}
  0xa4   : > { %s14649_s29 = smov 128   ;;  %s14650_s23 = smov 8  }
  0xa5   : > { %13922 = dma.hbm_to_vmem [thread:$0]  (!%p14726_p5), %s15219_s7, 2048, %s334_s19, [#allocation11], %s14649_s29, %s14649_s29, %s14650_s23  }
  0xa6   : > { %s14651_s14 = smov [#allocation13]   ;;  %s14580_s15 = scalar_lea.hbm %s15220_s8, 32 }
  0xa7   : > { %s347_s17 = sshll.u32 %s14651_s14, 4  ;;  %p14581_p2 = scmp.ne.s32.totalorder %s15220_s8, %s14580_s15  ;;  %s348_s17 = int_to_ptr.vmem [resolvable:$true] %s347_s17 }
  0xa8   : > { %p14587_p4 = scmp.lt.u32.totalorder %s14580_s15, %s15220_s8 }
  0xa9   : > { %p14583_p3 = pnand %p14581_p2, %p14742_p7 }
  0xab   : > { %p14584_p1 = pneg %p14583_p3 }
  0xad   : > { %p14589_p6 = pnand %p14587_p4, %p14584_p1 }
  0xaf   : > { %14592 = shalt.err (!%p14589_p6)
}
  0xb0   : > { %s14593_s19 = scalar_lea.vmem %s348_s17, 32  ;;  %p14601_p11 = scmp.lt.s32.totalorder %s348_s17, %s348_s17 }
  0xb1   : > { %p14594_p8 = scmp.ne.s32.totalorder %s348_s17, %s14593_s19  ;;  %p14602_p12 = scmp.lt.s32.totalorder %s14593_s19, %s14593_s19 }
  0xb3   : > { %p14596_p9 = pnand %p14594_p8, %p14742_p7  ;;  %p14603_p13 = por %p14602_p12, %p14601_p11 }
  0xb5   : > { %p14597_p10 = pneg %p14596_p9 }
  0xb7   : > { %p14604_p0 = pnand %p14603_p13, %p14597_p10 }
  0xb9   : > { %14607 = shalt.err (!%p14604_p0)
}
  0xba   : > { %13925 = dma.hbm_to_vmem [thread:$0]  (!%p14726_p5), %s15220_s8, 32, %s348_s17, [#allocation14]  }
  0xbb   : > { %p15227_p2 = scmp.ne.s32.totalorder %s15224_s13, 0 }
  0xbc   : > { %p15228_p3 = scmp.eq.s32.totalorder (!%p15227_p2), %s14709_s12, 0 }
  0xbd   : > { %368 = sbr.rel (%p15227_p2) target bundleno = 2393 (0x959), region = 56 }
  0xc4   : > { %14613 = dma.done.wait (%p15228_p3), [#allocation3], 32768   ;;  %p15229_p7 = pmov %p15228_p3 }
  0xc5   : > { %p15230_p1 = pmov %p15228_p3 }
  0xc6   : > { %14615 = vsyncadd (%p15229_p7), [#allocation3], 4294934528 }
  0xc7   : > { %14617 = dma.done.wait (%p15230_p1), [#allocation5], 131328   ;;  %p15231_p4 = pmov %p15230_p1 }
  0xc8   : > { %p15232_p6 = pmov %p15230_p1 }
  0xc9   : > { %14619 = vsyncadd (%p15231_p4), [#allocation5], 4294835968 }
  0xca   : > { %14621 = dma.done.wait (%p15232_p6), [#allocation8], 32896   ;;  %p15233_p5 = pmov %p15230_p1 }
  0xcb   : > { %p15234_p8 = pmov %p15230_p1 }
  0xcc   : > { %14623 = vsyncadd (%p15233_p5), [#allocation8], 4294934400 }
  0xcd   : > { %14625 = dma.done.wait (%p15234_p8), [#allocation11], 2112   ;;  %p15235_p9 = pmov %p15230_p1 }
  0xce   : > { %p15236_p10 = pmov %p15230_p1 }
  0xcf   : > { %14627 = vsyncadd (%p15235_p9), [#allocation11], 4294965184 }
  0xd0   : > { %14629 = dma.done.wait (%p15236_p10), [#allocation14], 32   ;;  %p15237_p11 = pmov %p15230_p1 }
  0xd1   : > { %v444_v0 = vld [vmem:[#allocation2] sm:$0xff]  ;;  %v445_v2 = vld [vmem:[#allocation2 + $0x8] sm:$0xff]  ;;  %p432_p12 = scmp.lt.s32.totalorder %s14709_s12, 1 }
  0xd2   : > { %14631 = vsyncadd (%p15237_p11), [#allocation14], 4294967264  ;;  %v452_v1 = vld [vmem:[#allocation2 + $0x40] sm:$0xff]  ;;  %v453_v4 = vld [vmem:[#allocation2 + $0x48] sm:$0xff] }
  0xd3   : > { %v12166_v3 = vcombine.high %v444_v0, %v452_v1  ;;  %v12165_v5 = vcombine.low %v444_v0, %v452_v1  ;;  %v460_v6 = vld [vmem:[#allocation2 + $0x80] sm:$0xff]  ;;  %v12168_v8 = vcombine.high %v445_v2, %v453_v4  ;;  %v12167_v9 = vcombine.low %v445_v2, %v453_v4  ;;  %v461_v11 = vld [vmem:[#allocation2 + $0x88] sm:$0xff]  ;;  %s15239_s12 = smov (!%p432_p12, %s14709_s12), 1 }
  0xd4   : > { %v468_v7 = vld [vmem:[#allocation2 + $0xc0] sm:$0xff]  ;;  %v469_v12 = vld [vmem:[#allocation2 + $0xc8] sm:$0xff]  ;;  %s13719_s13 = sshll.u32 %s15239_s12, 3  ;;  %s13720_s23 = sshll.u32 %s15239_s12, 4 }
  0xd5   : > { %v12182_v10 = vcombine.high %v460_v6, %v468_v7  ;;  %v476_v13 = vld [vmem:[#allocation2 + $0x100] sm:$0xff]  ;;  %2071 = vmatprep.subr.bf16.mxu0 %v12166_v3  ;;  %v12184_v14 = vcombine.high %v461_v11, %v469_v12  ;;  %v477_v16 = vld [vmem:[#allocation2 + $0x108] sm:$0xff]  ;;  %2112 = vmatprep.subr.bf16.mxu1 %v12168_v8  ;;  %v12181_v18 = vcombine.low %v460_v6, %v468_v7  ;;  %s436_s29 = scalar_lea.vmem %s15212_s0, %s13719_s13  ;;  %s441_s14 = scalar_lea.vmem %s15221_s9, %s13720_s23 }
  0xd6   : > { %v484_v15 = vld [vmem:[#allocation2 + $0x140] sm:$0xff]  ;;  %v485_v17 = vld [vmem:[#allocation2 + $0x148] sm:$0xff]  ;;  %2072 = vmatpush1.bf16.msra.mxu0 %v12165_v5  ;;  %2113 = vmatpush1.bf16.msra.mxu1 %v12167_v9  ;;  %v12183_v19 = vcombine.low %v461_v11, %v469_v12 }
  0xd7   : > { %2073 = vmatprep.subr.bf16.mxu0 %v12182_v10  ;;  %v12198_v20 = vcombine.high %v476_v13, %v484_v15  ;;  %2114 = vmatprep.subr.bf16.mxu1 %v12184_v14  ;;  %v12200_v21 = vcombine.high %v477_v16, %v485_v17  ;;  %v492_v22 = vld [vmem:[#allocation2 + $0x180] sm:$0xff]  ;;  %v493_v24 = vld [vmem:[#allocation2 + $0x188] sm:$0xff]  ;;  %v12197_v26 = vcombine.low %v476_v13, %v484_v15 }
  0xd8   : > { %v500_v23 = vld [vmem:[#allocation2 + $0x1c0] sm:$0xff]  ;;  %v501_v25 = vld [vmem:[#allocation2 + $0x1c8] sm:$0xff]  ;;  %v12199_v27 = vcombine.low %v477_v16, %v485_v17 }
  0xd9   : > { %v12214_v28 = vcombine.high %v492_v22, %v500_v23  ;;  %v12216_v29 = vcombine.high %v493_v24, %v501_v25  ;;  %v508_v30 = vld [vmem:[#allocation2 + $0x200] sm:$0xff]  ;;  %v509_v32 = vld [vmem:[#allocation2 + $0x208] sm:$0xff]  ;;  %v12213_v34 = vcombine.low %v492_v22, %v500_v23  ;;  %v12215_v35 = vcombine.low %v493_v24, %v501_v25 }
  0xda   : > { %2074 = vmatpush1.bf16.msra.mxu0 %v12181_v18  ;;  %2115 = vmatpush1.bf16.msra.mxu1 %v12183_v19  ;;  %v516_v31 = vld [vmem:[#allocation2 + $0x240] sm:$0xff]  ;;  %v517_v33 = vld [vmem:[#allocation2 + $0x248] sm:$0xff] }
  0xdb   : > { %2075 = vmatprep.subr.bf16.mxu0 %v12198_v20  ;;  %2116 = vmatprep.subr.bf16.mxu1 %v12200_v21  ;;  %v12230_v36 = vcombine.high %v508_v30, %v516_v31  ;;  %v12232_v37 = vcombine.high %v509_v32, %v517_v33  ;;  %v524_v38 = vld [vmem:[#allocation2 + $0x280] sm:$0xff]  ;;  %v525_v40 = vld [vmem:[#allocation2 + $0x288] sm:$0xff]  ;;  %v12229_v42 = vcombine.low %v508_v30, %v516_v31 }
  0xdc   : > { %v532_v39 = vld [vmem:[#allocation2 + $0x2c0] sm:$0xff]  ;;  %v533_v41 = vld [vmem:[#allocation2 + $0x2c8] sm:$0xff]  ;;  %v12231_v43 = vcombine.low %v509_v32, %v517_v33 }
  0xdd   : > { %v12246_v44 = vcombine.high %v524_v38, %v532_v39  ;;  %v12248_v45 = vcombine.high %v525_v40, %v533_v41  ;;  %v540_v46 = vld [vmem:[#allocation2 + $0x300] sm:$0xff]  ;;  %v541_v48 = vld [vmem:[#allocation2 + $0x308] sm:$0xff]  ;;  %v12245_v50 = vcombine.low %v524_v38, %v532_v39  ;;  %v12247_v51 = vcombine.low %v525_v40, %v533_v41 }
  0xde   : > { %2076 = vmatpush1.bf16.msra.mxu0 %v12197_v26  ;;  %2117 = vmatpush1.bf16.msra.mxu1 %v12199_v27  ;;  %v548_v47 = vld [vmem:[#allocation2 + $0x340] sm:$0xff]  ;;  %v549_v49 = vld [vmem:[#allocation2 + $0x348] sm:$0xff] }
  0xdf   : > { %2077 = vmatprep.subr.bf16.mxu0 %v12214_v28  ;;  %2118 = vmatprep.subr.bf16.mxu1 %v12216_v29  ;;  %v12262_v52 = vcombine.high %v540_v46, %v548_v47  ;;  %v14934_v53 = vld [vmem:[%s436_s29] sm:$0xff]  ;;  %v12264_v54 = vcombine.high %v541_v48, %v549_v49  ;;  %v557_v58 = vld [vmem:[#allocation2 + $0x388] sm:$0xff]  ;;  %v12261_v60 = vcombine.low %v540_v46, %v548_v47 }
  0xe0   : > { %v556_v55 = vld [vmem:[#allocation2 + $0x380] sm:$0xff]  ;;  %v14938_v57 = vcombine.high %v14934_v53, %v14934_v53  ;;  %v565_v59 = vld [vmem:[#allocation2 + $0x3c8] sm:$0xff]  ;;  %v12263_v61 = vcombine.low %v541_v48, %v549_v49 }
  0xe1   : > { %v564_v56 = vld [vmem:[#allocation2 + $0x3c0] sm:$0xff]  ;;  %v12280_v63 = vcombine.high %v557_v58, %v565_v59  ;;  %v573_v2 = vld [vmem:[#allocation2 + $0x408] sm:$0xff]  ;;  %v12279_v5 = vcombine.low %v557_v58, %v565_v59 }
  0xe2   : > { %2078 = vmatpush1.bf16.msra.mxu0 %v12213_v34  ;;  %2119 = vmatpush1.bf16.msra.mxu1 %v12215_v35  ;;  %v12278_v62 = vcombine.high %v556_v55, %v564_v56  ;;  %v572_v0 = vld [vmem:[#allocation2 + $0x400] sm:$0xff]  ;;  %v581_v3 = vld [vmem:[#allocation2 + $0x448] sm:$0xff]  ;;  %v12277_v4 = vcombine.low %v556_v55, %v564_v56 }
  0xe3   : > { %2079 = vmatprep.subr.bf16.mxu0 %v12230_v36  ;;  %2120 = vmatprep.subr.bf16.mxu1 %v12232_v37  ;;  %v580_v1 = vld [vmem:[#allocation2 + $0x440] sm:$0xff]  ;;  %v12296_v7 = vcombine.high %v573_v2, %v581_v3  ;;  %v589_v10 = vld [vmem:[#allocation2 + $0x488] sm:$0xff]  ;;  %v12295_v13 = vcombine.low %v573_v2, %v581_v3  ;;  %v446_v2 = vld [vmem:[#allocation2 + $0x10] sm:$0xff] }
  0xe4   : > { %2103 = vmatprep.mubr.bf16.mxu0 %v14938_v57  ;;  %2144 = vmatprep.mubr.bf16.mxu1 %v14938_v57  ;;  %v12294_v6 = vcombine.high %v572_v0, %v580_v1  ;;  %v588_v8 = vld [vmem:[#allocation2 + $0x480] sm:$0xff]  ;;  %v597_v11 = vld [vmem:[#allocation2 + $0x4c8] sm:$0xff]  ;;  %v12293_v12 = vcombine.low %v572_v0, %v580_v1  ;;  %v454_v3 = vld [vmem:[#allocation2 + $0x50] sm:$0xff] }
  0xe5   : > { %v596_v9 = vld [vmem:[#allocation2 + $0x4c0] sm:$0xff]  ;;  %v12312_v15 = vcombine.high %v589_v10, %v597_v11  ;;  %v605_v18 = vld [vmem:[#allocation2 + $0x508] sm:$0xff]  ;;  %v12311_v21 = vcombine.low %v589_v10, %v597_v11  ;;  %v462_v10 = vld [vmem:[#allocation2 + $0x90] sm:$0xff] }
  0xe6   : > { %2080 = vmatpush1.bf16.msra.mxu0 %v12229_v42  ;;  %2121 = vmatpush1.bf16.msra.mxu1 %v12231_v43  ;;  %v12310_v14 = vcombine.high %v588_v8, %v596_v9  ;;  %v604_v16 = vld [vmem:[#allocation2 + $0x500] sm:$0xff]  ;;  %v613_v19 = vld [vmem:[#allocation2 + $0x548] sm:$0xff]  ;;  %v12309_v20 = vcombine.low %v588_v8, %v596_v9  ;;  %v12170_v8 = vcombine.high %v446_v2, %v454_v3  ;;  %v470_v11 = vld [vmem:[#allocation2 + $0xd0] sm:$0xff] }
  0xe7   : > { %2081 = vmatprep.subr.bf16.mxu0 %v12246_v44  ;;  %2122 = vmatprep.subr.bf16.mxu1 %v12248_v45  ;;  %v612_v17 = vld [vmem:[#allocation2 + $0x540] sm:$0xff]  ;;  %v12328_v23 = vcombine.high %v605_v18, %v613_v19  ;;  %v621_v26 = vld [vmem:[#allocation2 + $0x588] sm:$0xff]  ;;  %v12327_v29 = vcombine.low %v605_v18, %v613_v19  ;;  %v478_v18 = vld [vmem:[#allocation2 + $0x110] sm:$0xff] }
  0xe8   : > { %v12326_v22 = vcombine.high %v604_v16, %v612_v17  ;;  %v620_v24 = vld [vmem:[#allocation2 + $0x580] sm:$0xff]  ;;  %v629_v27 = vld [vmem:[#allocation2 + $0x5c8] sm:$0xff]  ;;  %v12325_v28 = vcombine.low %v604_v16, %v612_v17  ;;  %v12186_v17 = vcombine.high %v462_v10, %v470_v11  ;;  %v486_v19 = vld [vmem:[#allocation2 + $0x150] sm:$0xff] }
  0xe9   : > { %v628_v25 = vld [vmem:[#allocation2 + $0x5c0] sm:$0xff]  ;;  %v12344_v31 = vcombine.high %v621_v26, %v629_v27  ;;  %v637_v34 = vld [vmem:[#allocation2 + $0x608] sm:$0xff]  ;;  %v12343_v37 = vcombine.low %v621_v26, %v629_v27  ;;  %v502_v26 = vld [vmem:[#allocation2 + $0x1d0] sm:$0xff] }
  0xea   : > { %2082 = vmatpush1.bf16.msra.mxu0 %v12245_v50  ;;  %2123 = vmatpush1.bf16.msra.mxu1 %v12247_v51  ;;  %v12342_v30 = vcombine.high %v620_v24, %v628_v25  ;;  %v636_v32 = vld [vmem:[#allocation2 + $0x600] sm:$0xff]  ;;  %v645_v35 = vld [vmem:[#allocation2 + $0x648] sm:$0xff]  ;;  %v12341_v36 = vcombine.low %v620_v24, %v628_v25  ;;  %v12202_v24 = vcombine.high %v478_v18, %v486_v19  ;;  %v494_v25 = vld [vmem:[#allocation2 + $0x190] sm:$0xff] }
  0xeb   : > { %2083 = vmatprep.subr.bf16.mxu0 %v12262_v52  ;;  %2124 = vmatprep.subr.bf16.mxu1 %v12264_v54  ;;  %v644_v33 = vld [vmem:[#allocation2 + $0x640] sm:$0xff]  ;;  %v12360_v39 = vcombine.high %v637_v34, %v645_v35  ;;  %v653_v42 = vld [vmem:[#allocation2 + $0x688] sm:$0xff]  ;;  %v12359_v45 = vcombine.low %v637_v34, %v645_v35  ;;  %v495_v27 = vld [vmem:[#allocation2 + $0x198] sm:$0xff] }
  0xec   : > { %v12358_v38 = vcombine.high %v636_v32, %v644_v33  ;;  %v652_v40 = vld [vmem:[#allocation2 + $0x680] sm:$0xff]  ;;  %v661_v43 = vld [vmem:[#allocation2 + $0x6c8] sm:$0xff]  ;;  %v12357_v44 = vcombine.low %v636_v32, %v644_v33  ;;  %v12218_v32 = vcombine.high %v494_v25, %v502_v26  ;;  %v510_v33 = vld [vmem:[#allocation2 + $0x210] sm:$0xff] }
  0xed   : > { %v660_v41 = vld [vmem:[#allocation2 + $0x6c0] sm:$0xff]  ;;  %v12376_v47 = vcombine.high %v653_v42, %v661_v43  ;;  %v669_v50 = vld [vmem:[#allocation2 + $0x708] sm:$0xff]  ;;  %v12375_v54 = vcombine.low %v653_v42, %v661_v43  ;;  %v518_v34 = vld [vmem:[#allocation2 + $0x250] sm:$0xff] }
  0xee   : > { %2084 = vmatpush1.bf16.msra.mxu0 %v12261_v60  ;;  %2125 = vmatpush1.bf16.msra.mxu1 %v12263_v61  ;;  %v12374_v46 = vcombine.high %v652_v40, %v660_v41  ;;  %v668_v48 = vld [vmem:[#allocation2 + $0x700] sm:$0xff]  ;;  %v677_v51 = vld [vmem:[#allocation2 + $0x748] sm:$0xff]  ;;  %v12373_v52 = vcombine.low %v652_v40, %v660_v41  ;;  %v511_v35 = vld [vmem:[#allocation2 + $0x218] sm:$0xff]  ;;  %v12234_v40 = vcombine.high %v510_v33, %v518_v34 }
  0xef   : > { %2085 = vmatprep.subr.bf16.mxu0 %v12278_v62  ;;  %2126 = vmatprep.subr.bf16.mxu1 %v12280_v63  ;;  %v676_v49 = vld [vmem:[#allocation2 + $0x740] sm:$0xff]  ;;  %v12392_v56 = vcombine.high %v669_v50, %v677_v51  ;;  %v685_v60 = vld [vmem:[#allocation2 + $0x788] sm:$0xff]  ;;  %v12391_v63 = vcombine.low %v669_v50, %v677_v51  ;;  %v526_v41 = vld [vmem:[#allocation2 + $0x290] sm:$0xff] }
  0xf0   : > { %v12390_v55 = vcombine.high %v668_v48, %v676_v49  ;;  %v684_v58 = vld [vmem:[#allocation2 + $0x780] sm:$0xff]  ;;  %v693_v61 = vld [vmem:[#allocation2 + $0x7c8] sm:$0xff]  ;;  %v12389_v62 = vcombine.low %v668_v48, %v676_v49  ;;  %v534_v42 = vld [vmem:[#allocation2 + $0x2d0] sm:$0xff] }
  0xf1   : > { %v692_v59 = vld [vmem:[#allocation2 + $0x7c0] sm:$0xff]  ;;  %v12408_v1 = vcombine.high %v685_v60, %v693_v61  ;;  %v527_v43 = vld [vmem:[#allocation2 + $0x298] sm:$0xff]  ;;  %v12250_v48 = vcombine.high %v526_v41, %v534_v42  ;;  %v542_v49 = vld [vmem:[#allocation2 + $0x310] sm:$0xff] }
  0xf2   : > { %2086 = vmatpush1.bf16.msra.mxu0 %v12277_v4  ;;  %2127 = vmatpush1.bf16.msra.mxu1 %v12279_v5  ;;  %v12406_v0 = vcombine.high %v684_v58, %v692_v59  ;;  %v447_v4 = vld [vmem:[#allocation2 + $0x18] sm:$0xff]  ;;  %v550_v50 = vld [vmem:[#allocation2 + $0x350] sm:$0xff] }
  0xf3   : > { %2087 = vmatprep.subr.bf16.mxu0 %v12294_v6  ;;  %2128 = vmatprep.subr.bf16.mxu1 %v12296_v7  ;;  %v455_v5 = vld [vmem:[#allocation2 + $0x58] sm:$0xff]  ;;  %v12405_v6 = vcombine.low %v684_v58, %v692_v59  ;;  %v12407_v7 = vcombine.low %v685_v60, %v693_v61  ;;  %v12266_v58 = vcombine.high %v542_v49, %v550_v50  ;;  %v558_v59 = vld [vmem:[#allocation2 + $0x390] sm:$0xff] }
  0xf4   : > { %v12172_v9 = vcombine.high %v447_v4, %v455_v5  ;;  %v12171_v16 = vcombine.low %v447_v4, %v455_v5  ;;  %v543_v51 = vld [vmem:[#allocation2 + $0x318] sm:$0xff]  ;;  %v566_v60 = vld [vmem:[#allocation2 + $0x3d0] sm:$0xff] }
  0xf5   : > { %v559_v61 = vld [vmem:[#allocation2 + $0x398] sm:$0xff]  ;;  %v582_v4 = vld [vmem:[#allocation2 + $0x450] sm:$0xff] }
  0xf6   : > { %2088 = vmatpush1.bf16.msra.mxu0 %v12293_v12  ;;  %2129 = vmatpush1.bf16.msra.mxu1 %v12295_v13  ;;  %v14944_v12 = vcombine.low %v14934_v53, %v14934_v53  ;;  %v463_v13 = vld [vmem:[#allocation2 + $0x98] sm:$0xff]  ;;  %v12185_v53 = vcombine.low %v462_v10, %v470_v11  ;;  %v590_v11 = vld [vmem:[#allocation2 + $0x490] sm:$0xff] }
  0xf7   : > { %2089 = vmatprep.subr.bf16.mxu0 %v12310_v14  ;;  %2130 = vmatprep.subr.bf16.mxu1 %v12312_v15  ;;  %v471_v14 = vld [vmem:[#allocation2 + $0xd8] sm:$0xff]  ;;  %v12169_v15 = vcombine.low %v446_v2, %v454_v3  ;;  %v12282_v2 = vcombine.high %v558_v59, %v566_v60  ;;  %v574_v3 = vld [vmem:[#allocation2 + $0x410] sm:$0xff] }
  0xf8   : > { %v575_v5 = vld [vmem:[#allocation2 + $0x418] sm:$0xff]  ;;  %v12298_v10 = vcombine.high %v574_v3, %v582_v4 }
  0xfa   : > { %2090 = vmatpush1.bf16.msra.mxu0 %v12309_v20  ;;  %2131 = vmatpush1.bf16.msra.mxu1 %v12311_v21  ;;  %v479_v20 = vld [vmem:[#allocation2 + $0x118] sm:$0xff]  ;;  %v12188_v21 = vcombine.high %v463_v13, %v471_v14 }
  0xfb   : > { %2091 = vmatprep.subr.bf16.mxu0 %v12326_v22  ;;  %2132 = vmatprep.subr.bf16.mxu1 %v12328_v23  ;;  %v487_v22 = vld [vmem:[#allocation2 + $0x158] sm:$0xff]  ;;  %v12187_v23 = vcombine.low %v463_v13, %v471_v14  ;;  %v598_v13 = vld [vmem:[#allocation2 + $0x4d0] sm:$0xff] }
  0xfc   : > { %v591_v14 = vld [vmem:[#allocation2 + $0x498] sm:$0xff] }
  0xfe   : > { %2092 = vmatpush1.bf16.msra.mxu0 %v12325_v28  ;;  %2133 = vmatpush1.bf16.msra.mxu1 %v12327_v29  ;;  %v12204_v28 = vcombine.high %v479_v20, %v487_v22  ;;  %v503_v29 = vld [vmem:[#allocation2 + $0x1d8] sm:$0xff] }
  0xff   : > { %2093 = vmatprep.subr.bf16.mxu0 %v12342_v30  ;;  %2134 = vmatprep.subr.bf16.mxu1 %v12344_v31  ;;  %v12201_v30 = vcombine.low %v478_v18, %v486_v19  ;;  %v12203_v31 = vcombine.low %v479_v20, %v487_v22  ;;  %v12314_v19 = vcombine.high %v590_v11, %v598_v13  ;;  %v606_v20 = vld [vmem:[#allocation2 + $0x510] sm:$0xff]  ;;  %v607_v22 = vld [vmem:[#allocation2 + $0x518] sm:$0xff] }
 0x102   : > { %2094 = vmatpush1.bf16.msra.mxu0 %v12341_v36  ;;  %2135 = vmatpush1.bf16.msra.mxu1 %v12343_v37  ;;  %v12220_v36 = vcombine.high %v495_v27, %v503_v29  ;;  %v519_v37 = vld [vmem:[#allocation2 + $0x258] sm:$0xff] }
 0x103   : > { %2095 = vmatprep.subr.bf16.mxu0 %v12358_v38  ;;  %2136 = vmatprep.subr.bf16.mxu1 %v12360_v39  ;;  %v12217_v38 = vcombine.low %v494_v25, %v502_v26  ;;  %v12219_v39 = vcombine.low %v495_v27, %v503_v29  ;;  %v622_v27 = vld [vmem:[#allocation2 + $0x590] sm:$0xff]  ;;  %v623_v29 = vld [vmem:[#allocation2 + $0x598] sm:$0xff] }
 0x106   : > { %2096 = vmatpush1.bf16.msra.mxu0 %v12357_v44  ;;  %2137 = vmatpush1.bf16.msra.mxu1 %v12359_v45  ;;  %v12236_v44 = vcombine.high %v511_v35, %v519_v37  ;;  %v535_v45 = vld [vmem:[#allocation2 + $0x2d8] sm:$0xff] }
 0x107   : > { %2097 = vmatprep.subr.bf16.mxu0 %v12374_v46  ;;  %2138 = vmatprep.subr.bf16.mxu1 %v12376_v47  ;;  %v12233_v46 = vcombine.low %v510_v33, %v518_v34  ;;  %v12235_v47 = vcombine.low %v511_v35, %v519_v37  ;;  %v638_v35 = vld [vmem:[#allocation2 + $0x610] sm:$0xff]  ;;  %v639_v37 = vld [vmem:[#allocation2 + $0x618] sm:$0xff] }
 0x10a   : > { %2098 = vmatpush1.bf16.msra.mxu0 %v12373_v52  ;;  %2139 = vmatpush1.bf16.msra.mxu1 %v12375_v54  ;;  %v12252_v52 = vcombine.high %v527_v43, %v535_v45  ;;  %v551_v54 = vld [vmem:[#allocation2 + $0x358] sm:$0xff] }
 0x10b   : > { %2099 = vmatprep.subr.bf16.mxu0 %v12390_v55  ;;  %2140 = vmatprep.subr.bf16.mxu1 %v12392_v56  ;;  %v12249_v55 = vcombine.low %v526_v41, %v534_v42  ;;  %v12251_v56 = vcombine.low %v527_v43, %v535_v45  ;;  %v654_v43 = vld [vmem:[#allocation2 + $0x690] sm:$0xff]  ;;  %v655_v45 = vld [vmem:[#allocation2 + $0x698] sm:$0xff] }
 0x10e   : > { %2100 = vmatpush1.bf16.msra.mxu0 %v12389_v62  ;;  %2141 = vmatpush1.bf16.msra.mxu1 %v12391_v63  ;;  %v12268_v62 = vcombine.high %v543_v51, %v551_v54  ;;  %v567_v63 = vld [vmem:[#allocation2 + $0x3d8] sm:$0xff] }
 0x10f   : > { %2101 = vmatprep.subr.bf16.mxu0 %v12406_v0  ;;  %2142 = vmatprep.subr.bf16.mxu1 %v12408_v1  ;;  %v12265_v0 = vcombine.low %v542_v49, %v550_v50  ;;  %v12267_v1 = vcombine.low %v543_v51, %v551_v54  ;;  %v670_v51 = vld [vmem:[#allocation2 + $0x710] sm:$0xff]  ;;  %v671_v54 = vld [vmem:[#allocation2 + $0x718] sm:$0xff] }
 0x112   : > { %2102 = vmatpush1.bf16.msra.mxu0 %v12405_v6  ;;  %2143 = vmatpush1.bf16.msra.mxu1 %v12407_v7  ;;  %v12284_v6 = vcombine.high %v559_v61, %v567_v63  ;;  %v583_v7 = vld [vmem:[#allocation2 + $0x458] sm:$0xff] }
 0x113   : > { %2153 = vmatprep.subr.bf16.mxu0 %v12170_v8  ;;  %2194 = vmatprep.subr.bf16.mxu1 %v12172_v9  ;;  %v12281_v8 = vcombine.low %v558_v59, %v566_v60  ;;  %v12283_v9 = vcombine.low %v559_v61, %v567_v63  ;;  %v12299_v18 = vcombine.low %v575_v5, %v583_v7  ;;  %v686_v61 = vld [vmem:[#allocation2 + $0x790] sm:$0xff]  ;;  %v687_v63 = vld [vmem:[#allocation2 + $0x798] sm:$0xff] }
 0x115   : > { %2104 = vmatmul.mubr.bf16.vlgmr.msra.gmra.mrb[0].mxu0 %v14944_v12  ;;  %2145 = vmatmul.mubr.bf16.vlgmr.msra.gmra.mrb[0].mxu1 %v14944_v12 }
 0x116   : > { %2154 = vmatpush1.bf16.msra.mxu0 %v12169_v15  ;;  %2195 = vmatpush1.bf16.msra.mxu1 %v12171_v16  ;;  %v12300_v15 = vcombine.high %v575_v5, %v583_v7  ;;  %v599_v16 = vld [vmem:[#allocation2 + $0x4d8] sm:$0xff]  ;;  %v448_v5 = vld [vmem:[#allocation2 + $0x20] sm:$0xff]  ;;  %v449_v7 = vld [vmem:[#allocation2 + $0x28] sm:$0xff] }
 0x117   : > { %2155 = vmatprep.subr.bf16.mxu0 %v12186_v17  ;;  %2196 = vmatprep.subr.bf16.mxu1 %v12188_v21  ;;  %v12297_v17 = vcombine.low %v574_v3, %v582_v4  ;;  %v614_v21 = vld [vmem:[#allocation2 + $0x550] sm:$0xff]  ;;  %v12315_v25 = vcombine.low %v591_v14, %v599_v16 }
 0x118   : > { %2185 = vmatprep.mubr.bf16.mxu0 %v14938_v57  ;;  %2226 = vmatprep.mubr.bf16.mxu1 %v14938_v57  ;;  %v12330_v26 = vcombine.high %v606_v20, %v614_v21 }
 0x11a   : > { %2156 = vmatpush1.bf16.msra.mxu0 %v12185_v53  ;;  %2197 = vmatpush1.bf16.msra.mxu1 %v12187_v23  ;;  %v12316_v53 = vcombine.high %v591_v14, %v599_v16  ;;  %v615_v23 = vld [vmem:[#allocation2 + $0x558] sm:$0xff]  ;;  %v464_v14 = vld [vmem:[#allocation2 + $0xa0] sm:$0xff]  ;;  %v465_v16 = vld [vmem:[#allocation2 + $0xa8] sm:$0xff] }
 0x11b   : > { %2157 = vmatprep.subr.bf16.mxu0 %v12202_v24  ;;  %2198 = vmatprep.subr.bf16.mxu1 %v12204_v28  ;;  %v12313_v24 = vcombine.low %v590_v11, %v598_v13  ;;  %v630_v28 = vld [vmem:[#allocation2 + $0x5d0] sm:$0xff]  ;;  %v12331_v33 = vcombine.low %v607_v22, %v615_v23 }
 0x11c   : > { %v12346_v34 = vcombine.high %v622_v27, %v630_v28 }
 0x11e   : > { %2158 = vmatpush1.bf16.msra.mxu0 %v12201_v30  ;;  %2199 = vmatpush1.bf16.msra.mxu1 %v12203_v31  ;;  %v12332_v30 = vcombine.high %v607_v22, %v615_v23  ;;  %v631_v31 = vld [vmem:[#allocation2 + $0x5d8] sm:$0xff]  ;;  %v480_v22 = vld [vmem:[#allocation2 + $0x120] sm:$0xff]  ;;  %v481_v23 = vld [vmem:[#allocation2 + $0x128] sm:$0xff] }
 0x11f   : > { %2159 = vmatprep.subr.bf16.mxu0 %v12218_v32  ;;  %2200 = vmatprep.subr.bf16.mxu1 %v12220_v36  ;;  %v12329_v32 = vcombine.low %v606_v20, %v614_v21  ;;  %v646_v36 = vld [vmem:[#allocation2 + $0x650] sm:$0xff]  ;;  %v12347_v41 = vcombine.low %v623_v29, %v631_v31 }
 0x120   : > { %v12362_v42 = vcombine.high %v638_v35, %v646_v36 }
 0x122   : > { %2160 = vmatpush1.bf16.msra.mxu0 %v12217_v38  ;;  %2201 = vmatpush1.bf16.msra.mxu1 %v12219_v39  ;;  %v12348_v38 = vcombine.high %v623_v29, %v631_v31  ;;  %v647_v39 = vld [vmem:[#allocation2 + $0x658] sm:$0xff]  ;;  %v496_v29 = vld [vmem:[#allocation2 + $0x1a0] sm:$0xff]  ;;  %v497_v31 = vld [vmem:[#allocation2 + $0x1a8] sm:$0xff] }
 0x123   : > { %2161 = vmatprep.subr.bf16.mxu0 %v12234_v40  ;;  %2202 = vmatprep.subr.bf16.mxu1 %v12236_v44  ;;  %v12345_v40 = vcombine.low %v622_v27, %v630_v28  ;;  %v662_v44 = vld [vmem:[#allocation2 + $0x6d0] sm:$0xff]  ;;  %v12363_v49 = vcombine.low %v639_v37, %v647_v39 }
 0x124   : > { %v12378_v50 = vcombine.high %v654_v43, %v662_v44 }
 0x126   : > { %2162 = vmatpush1.bf16.msra.mxu0 %v12233_v46  ;;  %2203 = vmatpush1.bf16.msra.mxu1 %v12235_v47  ;;  %v12364_v46 = vcombine.high %v639_v37, %v647_v39  ;;  %v663_v47 = vld [vmem:[#allocation2 + $0x6d8] sm:$0xff]  ;;  %v512_v37 = vld [vmem:[#allocation2 + $0x220] sm:$0xff]  ;;  %v513_v39 = vld [vmem:[#allocation2 + $0x228] sm:$0xff] }
 0x127   : > { %2163 = vmatprep.subr.bf16.mxu0 %v12250_v48  ;;  %2204 = vmatprep.subr.bf16.mxu1 %v12252_v52  ;;  %v12361_v48 = vcombine.low %v638_v35, %v646_v36  ;;  %v678_v52 = vld [vmem:[#allocation2 + $0x750] sm:$0xff]  ;;  %v12379_v59 = vcombine.low %v655_v45, %v663_v47 }
 0x128   : > { %v12394_v60 = vcombine.high %v670_v51, %v678_v52 }
 0x12a   : > { %2164 = vmatpush1.bf16.msra.mxu0 %v12249_v55  ;;  %2205 = vmatpush1.bf16.msra.mxu1 %v12251_v56  ;;  %v12380_v55 = vcombine.high %v655_v45, %v663_v47  ;;  %v679_v56 = vld [vmem:[#allocation2 + $0x758] sm:$0xff]  ;;  %v528_v45 = vld [vmem:[#allocation2 + $0x2a0] sm:$0xff]  ;;  %v529_v47 = vld [vmem:[#allocation2 + $0x2a8] sm:$0xff] }
 0x12b   : > { %2165 = vmatprep.subr.bf16.mxu0 %v12266_v58  ;;  %2206 = vmatprep.subr.bf16.mxu1 %v12268_v62  ;;  %v12377_v58 = vcombine.low %v654_v43, %v662_v44  ;;  %v694_v62 = vld [vmem:[#allocation2 + $0x7d0] sm:$0xff]  ;;  %v12395_v3 = vcombine.low %v671_v54, %v679_v56 }
 0x12c   : > { %v12410_v4 = vcombine.high %v686_v61, %v694_v62 }
 0x12e   : > { %2166 = vmatpush1.bf16.msra.mxu0 %v12265_v0  ;;  %2207 = vmatpush1.bf16.msra.mxu1 %v12267_v1  ;;  %v12396_v0 = vcombine.high %v671_v54, %v679_v56  ;;  %v695_v1 = vld [vmem:[#allocation2 + $0x7d8] sm:$0xff]  ;;  %v544_v54 = vld [vmem:[#allocation2 + $0x320] sm:$0xff]  ;;  %v545_v56 = vld [vmem:[#allocation2 + $0x328] sm:$0xff] }
 0x12f   : > { %2167 = vmatprep.subr.bf16.mxu0 %v12282_v2  ;;  %2208 = vmatprep.subr.bf16.mxu1 %v12284_v6  ;;  %v12393_v2 = vcombine.low %v670_v51, %v678_v52  ;;  %v456_v6 = vld [vmem:[#allocation2 + $0x60] sm:$0xff]  ;;  %v12411_v11 = vcombine.low %v687_v63, %v695_v1 }
 0x130   : > { %v12174_v13 = vcombine.high %v448_v5, %v456_v6 }
 0x132   : > { %2168 = vmatpush1.bf16.msra.mxu0 %v12281_v8  ;;  %2209 = vmatpush1.bf16.msra.mxu1 %v12283_v9  ;;  %v12412_v8 = vcombine.high %v687_v63, %v695_v1  ;;  %v457_v9 = vld [vmem:[#allocation2 + $0x68] sm:$0xff]  ;;  %v560_v63 = vld [vmem:[#allocation2 + $0x3a0] sm:$0xff] }
 0x133   : > { %2169 = vmatprep.subr.bf16.mxu0 %v12298_v10  ;;  %2210 = vmatprep.subr.bf16.mxu1 %v12300_v15  ;;  %v12409_v10 = vcombine.low %v686_v61, %v694_v62  ;;  %v472_v15 = vld [vmem:[#allocation2 + $0xe0] sm:$0xff]  ;;  %v12175_v20 = vcombine.low %v449_v7, %v457_v9 }
 0x134   : > { %v12190_v21 = vcombine.high %v464_v14, %v472_v15 }
 0x136   : > { %2170 = vmatpush1.bf16.msra.mxu0 %v12297_v17  ;;  %2211 = vmatpush1.bf16.msra.mxu1 %v12299_v18  ;;  %v12176_v17 = vcombine.high %v449_v7, %v457_v9  ;;  %v473_v18 = vld [vmem:[#allocation2 + $0xe8] sm:$0xff]  ;;  %v576_v7 = vld [vmem:[#allocation2 + $0x420] sm:$0xff] }
 0x137   : > { %2171 = vmatprep.subr.bf16.mxu0 %v12314_v19  ;;  %2212 = vmatprep.subr.bf16.mxu1 %v12316_v53  ;;  %v12173_v19 = vcombine.low %v448_v5, %v456_v6  ;;  %v488_v53 = vld [vmem:[#allocation2 + $0x160] sm:$0xff]  ;;  %v12191_v27 = vcombine.low %v465_v16, %v473_v18  ;;  %v577_v9 = vld [vmem:[#allocation2 + $0x428] sm:$0xff] }
 0x138   : > { %v12206_v28 = vcombine.high %v480_v22, %v488_v53 }
 0x13a   : > { %2172 = vmatpush1.bf16.msra.mxu0 %v12313_v24  ;;  %2213 = vmatpush1.bf16.msra.mxu1 %v12315_v25  ;;  %v12192_v24 = vcombine.high %v465_v16, %v473_v18  ;;  %v489_v25 = vld [vmem:[#allocation2 + $0x168] sm:$0xff]  ;;  %v592_v16 = vld [vmem:[#allocation2 + $0x4a0] sm:$0xff] }
 0x13b   : > { %2173 = vmatprep.subr.bf16.mxu0 %v12330_v26  ;;  %2214 = vmatprep.subr.bf16.mxu1 %v12332_v30  ;;  %v12189_v26 = vcombine.low %v464_v14, %v472_v15  ;;  %v504_v30 = vld [vmem:[#allocation2 + $0x1e0] sm:$0xff]  ;;  %v12207_v35 = vcombine.low %v481_v23, %v489_v25  ;;  %v593_v18 = vld [vmem:[#allocation2 + $0x4a8] sm:$0xff] }
 0x13c   : > { %v12222_v36 = vcombine.high %v496_v29, %v504_v30 }
 0x13e   : > { %2174 = vmatpush1.bf16.msra.mxu0 %v12329_v32  ;;  %2215 = vmatpush1.bf16.msra.mxu1 %v12331_v33  ;;  %v12208_v32 = vcombine.high %v481_v23, %v489_v25  ;;  %v505_v33 = vld [vmem:[#allocation2 + $0x1e8] sm:$0xff]  ;;  %v608_v23 = vld [vmem:[#allocation2 + $0x520] sm:$0xff] }
 0x13f   : > { %2175 = vmatprep.subr.bf16.mxu0 %v12346_v34  ;;  %2216 = vmatprep.subr.bf16.mxu1 %v12348_v38  ;;  %v12205_v34 = vcombine.low %v480_v22, %v488_v53  ;;  %v520_v38 = vld [vmem:[#allocation2 + $0x260] sm:$0xff]  ;;  %v12223_v43 = vcombine.low %v497_v31, %v505_v33  ;;  %v609_v25 = vld [vmem:[#allocation2 + $0x528] sm:$0xff] }
 0x140   : > { %v12238_v44 = vcombine.high %v512_v37, %v520_v38 }
 0x142   : > { %2176 = vmatpush1.bf16.msra.mxu0 %v12345_v40  ;;  %2217 = vmatpush1.bf16.msra.mxu1 %v12347_v41  ;;  %v12224_v40 = vcombine.high %v497_v31, %v505_v33  ;;  %v521_v41 = vld [vmem:[#allocation2 + $0x268] sm:$0xff]  ;;  %v624_v31 = vld [vmem:[#allocation2 + $0x5a0] sm:$0xff] }
 0x143   : > { %2177 = vmatprep.subr.bf16.mxu0 %v12362_v42  ;;  %2218 = vmatprep.subr.bf16.mxu1 %v12364_v46  ;;  %v12221_v42 = vcombine.low %v496_v29, %v504_v30  ;;  %v536_v46 = vld [vmem:[#allocation2 + $0x2e0] sm:$0xff]  ;;  %v12239_v51 = vcombine.low %v513_v39, %v521_v41  ;;  %v625_v33 = vld [vmem:[#allocation2 + $0x5a8] sm:$0xff] }
 0x144   : > { %v12254_v52 = vcombine.high %v528_v45, %v536_v46 }
 0x146   : > { %2178 = vmatpush1.bf16.msra.mxu0 %v12361_v48  ;;  %2219 = vmatpush1.bf16.msra.mxu1 %v12363_v49  ;;  %v12240_v48 = vcombine.high %v513_v39, %v521_v41  ;;  %v537_v49 = vld [vmem:[#allocation2 + $0x2e8] sm:$0xff]  ;;  %v640_v39 = vld [vmem:[#allocation2 + $0x620] sm:$0xff] }
 0x147   : > { %2179 = vmatprep.subr.bf16.mxu0 %v12378_v50  ;;  %2220 = vmatprep.subr.bf16.mxu1 %v12380_v55  ;;  %v12237_v50 = vcombine.low %v512_v37, %v520_v38  ;;  %v552_v55 = vld [vmem:[#allocation2 + $0x360] sm:$0xff]  ;;  %v12255_v61 = vcombine.low %v529_v47, %v537_v49  ;;  %v641_v41 = vld [vmem:[#allocation2 + $0x628] sm:$0xff] }
 0x148   : > { %v12270_v62 = vcombine.high %v544_v54, %v552_v55 }
 0x14a   : > { %2180 = vmatpush1.bf16.msra.mxu0 %v12377_v58  ;;  %2221 = vmatpush1.bf16.msra.mxu1 %v12379_v59  ;;  %v12256_v58 = vcombine.high %v529_v47, %v537_v49  ;;  %v553_v59 = vld [vmem:[#allocation2 + $0x368] sm:$0xff]  ;;  %v656_v47 = vld [vmem:[#allocation2 + $0x6a0] sm:$0xff] }
 0x14b   : > { %2181 = vmatprep.subr.bf16.mxu0 %v12394_v60  ;;  %2222 = vmatprep.subr.bf16.mxu1 %v12396_v0  ;;  %v12253_v60 = vcombine.low %v528_v45, %v536_v46  ;;  %v568_v0 = vld [vmem:[#allocation2 + $0x3e0] sm:$0xff]  ;;  %v12272_v1 = vcombine.high %v545_v56, %v553_v59  ;;  %v12271_v5 = vcombine.low %v545_v56, %v553_v59  ;;  %v657_v49 = vld [vmem:[#allocation2 + $0x6a8] sm:$0xff] }
 0x14c   : > { %v12286_v6 = vcombine.high %v560_v63, %v568_v0  ;;  %v672_v56 = vld [vmem:[#allocation2 + $0x720] sm:$0xff]  ;;  %v673_v59 = vld [vmem:[#allocation2 + $0x728] sm:$0xff] }
 0x14e   : > { %2182 = vmatpush1.bf16.msra.mxu0 %v12393_v2  ;;  %2223 = vmatpush1.bf16.msra.mxu1 %v12395_v3  ;;  %v561_v2 = vld [vmem:[#allocation2 + $0x3a8] sm:$0xff] }
 0x14f   : > { %2183 = vmatprep.subr.bf16.mxu0 %v12410_v4  ;;  %2224 = vmatprep.subr.bf16.mxu1 %v12412_v8  ;;  %v569_v3 = vld [vmem:[#allocation2 + $0x3e8] sm:$0xff]  ;;  %v12269_v4 = vcombine.low %v544_v54, %v552_v55  ;;  %v584_v8 = vld [vmem:[#allocation2 + $0x460] sm:$0xff] }
 0x150   : > { %v12287_v14 = vcombine.low %v561_v2, %v569_v3  ;;  %v12302_v15 = vcombine.high %v576_v7, %v584_v8 }
 0x152   : > { %2184 = vmatpush1.bf16.msra.mxu0 %v12409_v10  ;;  %2225 = vmatpush1.bf16.msra.mxu1 %v12411_v11  ;;  %v12288_v10 = vcombine.high %v561_v2, %v569_v3  ;;  %v585_v11 = vld [vmem:[#allocation2 + $0x468] sm:$0xff]  ;;  %v696_v2 = vld [vmem:[#allocation2 + $0x7e0] sm:$0xff] }
 0x153   : > { %2235 = vmatprep.subr.bf16.mxu0 %v12174_v13  ;;  %2276 = vmatprep.subr.bf16.mxu1 %v12176_v17  ;;  %v12285_v13 = vcombine.low %v560_v63, %v568_v0  ;;  %v600_v17 = vld [vmem:[#allocation2 + $0x4e0] sm:$0xff]  ;;  %v12303_v22 = vcombine.low %v577_v9, %v585_v11  ;;  %v689_v3 = vld [vmem:[#allocation2 + $0x7a8] sm:$0xff] }
 0x154   : > { %v12318_v53 = vcombine.high %v592_v16, %v600_v17 }
 0x155   : > { %2186 = vmatmul.mubr.bf16.vlgmr.msra.gmra.mrb[4].mxu0 %v14944_v12  ;;  %2227 = vmatmul.mubr.bf16.vlgmr.msra.gmra.mrb[4].mxu1 %v14944_v12 }
 0x156   : > { %2236 = vmatpush1.bf16.msra.mxu0 %v12173_v19  ;;  %2277 = vmatpush1.bf16.msra.mxu1 %v12175_v20  ;;  %v12304_v19 = vcombine.high %v577_v9, %v585_v11  ;;  %v601_v20 = vld [vmem:[#allocation2 + $0x4e8] sm:$0xff]  ;;  %v450_v9 = vld [vmem:[#allocation2 + $0x30] sm:$0xff]  ;;  %v451_v11 = vld [vmem:[#allocation2 + $0x38] sm:$0xff] }
 0x157   : > { %2237 = vmatprep.subr.bf16.mxu0 %v12190_v21  ;;  %2278 = vmatprep.subr.bf16.mxu1 %v12192_v24  ;;  %v12301_v21 = vcombine.low %v576_v7, %v584_v8  ;;  %v616_v24 = vld [vmem:[#allocation2 + $0x560] sm:$0xff]  ;;  %v12319_v29 = vcombine.low %v593_v18, %v601_v20 }
 0x158   : > { %2267 = vmatprep.mubr.bf16.mxu0 %v14938_v57  ;;  %2308 = vmatprep.mubr.bf16.mxu1 %v14938_v57  ;;  %v12334_v30 = vcombine.high %v608_v23, %v616_v24 }
 0x15a   : > { %2238 = vmatpush1.bf16.msra.mxu0 %v12189_v26  ;;  %2279 = vmatpush1.bf16.msra.mxu1 %v12191_v27  ;;  %v12320_v26 = vcombine.high %v593_v18, %v601_v20  ;;  %v617_v27 = vld [vmem:[#allocation2 + $0x568] sm:$0xff]  ;;  %v466_v18 = vld [vmem:[#allocation2 + $0xb0] sm:$0xff]  ;;  %v467_v20 = vld [vmem:[#allocation2 + $0xb8] sm:$0xff] }
 0x15b   : > { %2239 = vmatprep.subr.bf16.mxu0 %v12206_v28  ;;  %2280 = vmatprep.subr.bf16.mxu1 %v12208_v32  ;;  %v12317_v28 = vcombine.low %v592_v16, %v600_v17  ;;  %v632_v32 = vld [vmem:[#allocation2 + $0x5e0] sm:$0xff]  ;;  %v12335_v37 = vcombine.low %v609_v25, %v617_v27 }
 0x15c   : > { %v12350_v38 = vcombine.high %v624_v31, %v632_v32 }
 0x15e   : > { %2240 = vmatpush1.bf16.msra.mxu0 %v12205_v34  ;;  %2281 = vmatpush1.bf16.msra.mxu1 %v12207_v35  ;;  %v12336_v34 = vcombine.high %v609_v25, %v617_v27  ;;  %v633_v35 = vld [vmem:[#allocation2 + $0x5e8] sm:$0xff]  ;;  %v482_v25 = vld [vmem:[#allocation2 + $0x130] sm:$0xff]  ;;  %v483_v27 = vld [vmem:[#allocation2 + $0x138] sm:$0xff] }
 0x15f   : > { %2241 = vmatprep.subr.bf16.mxu0 %v12222_v36  ;;  %2282 = vmatprep.subr.bf16.mxu1 %v12224_v40  ;;  %v12333_v36 = vcombine.low %v608_v23, %v616_v24  ;;  %v648_v40 = vld [vmem:[#allocation2 + $0x660] sm:$0xff]  ;;  %v12351_v45 = vcombine.low %v625_v33, %v633_v35 }
 0x160   : > { %v12366_v46 = vcombine.high %v640_v39, %v648_v40 }
 0x162   : > { %2242 = vmatpush1.bf16.msra.mxu0 %v12221_v42  ;;  %2283 = vmatpush1.bf16.msra.mxu1 %v12223_v43  ;;  %v12352_v42 = vcombine.high %v625_v33, %v633_v35  ;;  %v649_v43 = vld [vmem:[#allocation2 + $0x668] sm:$0xff]  ;;  %v506_v35 = vld [vmem:[#allocation2 + $0x1f0] sm:$0xff] }
 0x163   : > { %2243 = vmatprep.subr.bf16.mxu0 %v12238_v44  ;;  %2284 = vmatprep.subr.bf16.mxu1 %v12240_v48  ;;  %v12349_v44 = vcombine.low %v624_v31, %v632_v32  ;;  %v664_v48 = vld [vmem:[#allocation2 + $0x6e0] sm:$0xff]  ;;  %v12367_v54 = vcombine.low %v641_v41, %v649_v43 }
 0x164   : > { %v12382_v55 = vcombine.high %v656_v47, %v664_v48 }
 0x166   : > { %2244 = vmatpush1.bf16.msra.mxu0 %v12237_v50  ;;  %2285 = vmatpush1.bf16.msra.mxu1 %v12239_v51  ;;  %v12368_v50 = vcombine.high %v641_v41, %v649_v43  ;;  %v665_v51 = vld [vmem:[#allocation2 + $0x6e8] sm:$0xff]  ;;  %v522_v43 = vld [vmem:[#allocation2 + $0x270] sm:$0xff] }
 0x167   : > { %2245 = vmatprep.subr.bf16.mxu0 %v12254_v52  ;;  %2286 = vmatprep.subr.bf16.mxu1 %v12256_v58  ;;  %v12365_v52 = vcombine.low %v640_v39, %v648_v40  ;;  %v680_v58 = vld [vmem:[#allocation2 + $0x760] sm:$0xff]  ;;  %v12383_v63 = vcombine.low %v657_v49, %v665_v51 }
 0x168   : > { %v12398_v0 = vcombine.high %v672_v56, %v680_v58 }
 0x16a   : > { %2246 = vmatpush1.bf16.msra.mxu0 %v12253_v60  ;;  %2287 = vmatpush1.bf16.msra.mxu1 %v12255_v61  ;;  %v12384_v60 = vcombine.high %v657_v49, %v665_v51  ;;  %v681_v61 = vld [vmem:[#allocation2 + $0x768] sm:$0xff]  ;;  %v530_v49 = vld [vmem:[#allocation2 + $0x2b0] sm:$0xff]  ;;  %v531_v51 = vld [vmem:[#allocation2 + $0x2b8] sm:$0xff] }
 0x16b   : > { %2247 = vmatprep.subr.bf16.mxu0 %v12270_v62  ;;  %2288 = vmatprep.subr.bf16.mxu1 %v12272_v1  ;;  %v12381_v62 = vcombine.low %v656_v47, %v664_v48  ;;  %v688_v1 = vld [vmem:[#allocation2 + $0x7a0] sm:$0xff]  ;;  %v12399_v7 = vcombine.low %v673_v59, %v681_v61 }
 0x16c   : > { %v12414_v8 = vcombine.high %v688_v1, %v696_v2 }
 0x16e   : > { %2248 = vmatpush1.bf16.msra.mxu0 %v12269_v4  ;;  %2289 = vmatpush1.bf16.msra.mxu1 %v12271_v5  ;;  %v12400_v4 = vcombine.high %v673_v59, %v681_v61  ;;  %v697_v5 = vld [vmem:[#allocation2 + $0x7e8] sm:$0xff]  ;;  %v546_v59 = vld [vmem:[#allocation2 + $0x330] sm:$0xff]  ;;  %v547_v61 = vld [vmem:[#allocation2 + $0x338] sm:$0xff] }
 0x16f   : > { %2249 = vmatprep.subr.bf16.mxu0 %v12286_v6  ;;  %2290 = vmatprep.subr.bf16.mxu1 %v12288_v10  ;;  %v12397_v6 = vcombine.low %v672_v56, %v680_v58  ;;  %v458_v10 = vld [vmem:[#allocation2 + $0x70] sm:$0xff]  ;;  %v12415_v16 = vcombine.low %v689_v3, %v697_v5 }
 0x170   : > { %v12178_v17 = vcombine.high %v450_v9, %v458_v10 }
 0x172   : > { %2250 = vmatpush1.bf16.msra.mxu0 %v12285_v13  ;;  %2291 = vmatpush1.bf16.msra.mxu1 %v12287_v14  ;;  %v12416_v13 = vcombine.high %v689_v3, %v697_v5  ;;  %v459_v14 = vld [vmem:[#allocation2 + $0x78] sm:$0xff]  ;;  %v562_v3 = vld [vmem:[#allocation2 + $0x3b0] sm:$0xff] }
 0x173   : > { %2251 = vmatprep.subr.bf16.mxu0 %v12302_v15  ;;  %2292 = vmatprep.subr.bf16.mxu1 %v12304_v19  ;;  %v12413_v15 = vcombine.low %v688_v1, %v696_v2  ;;  %v474_v19 = vld [vmem:[#allocation2 + $0xf0] sm:$0xff]  ;;  %v12179_v23 = vcombine.low %v451_v11, %v459_v14  ;;  %v563_v5 = vld [vmem:[#allocation2 + $0x3b8] sm:$0xff] }
 0x174   : > { %v12194_v24 = vcombine.high %v466_v18, %v474_v19 }
 0x176   : > { %2252 = vmatpush1.bf16.msra.mxu0 %v12301_v21  ;;  %2293 = vmatpush1.bf16.msra.mxu1 %v12303_v22  ;;  %v12180_v21 = vcombine.high %v451_v11, %v459_v14  ;;  %v475_v22 = vld [vmem:[#allocation2 + $0xf8] sm:$0xff]  ;;  %v578_v11 = vld [vmem:[#allocation2 + $0x430] sm:$0xff] }
 0x177   : > { %2253 = vmatprep.subr.bf16.mxu0 %v12318_v53  ;;  %2294 = vmatprep.subr.bf16.mxu1 %v12320_v26  ;;  %v12177_v53 = vcombine.low %v450_v9, %v458_v10  ;;  %v490_v26 = vld [vmem:[#allocation2 + $0x170] sm:$0xff]  ;;  %v12195_v31 = vcombine.low %v467_v20, %v475_v22  ;;  %v579_v14 = vld [vmem:[#allocation2 + $0x438] sm:$0xff] }
 0x178   : > { %v12210_v32 = vcombine.high %v482_v25, %v490_v26 }
 0x17a   : > { %2254 = vmatpush1.bf16.msra.mxu0 %v12317_v28  ;;  %2295 = vmatpush1.bf16.msra.mxu1 %v12319_v29  ;;  %v12196_v28 = vcombine.high %v467_v20, %v475_v22  ;;  %v491_v29 = vld [vmem:[#allocation2 + $0x178] sm:$0xff]  ;;  %v594_v20 = vld [vmem:[#allocation2 + $0x4b0] sm:$0xff] }
 0x17b   : > { %2255 = vmatprep.subr.bf16.mxu0 %v12334_v30  ;;  %2296 = vmatprep.subr.bf16.mxu1 %v12336_v34  ;;  %v12193_v30 = vcombine.low %v466_v18, %v474_v19  ;;  %v12212_v33 = vcombine.high %v483_v27, %v491_v29  ;;  %v498_v34 = vld [vmem:[#allocation2 + $0x1b0] sm:$0xff]  ;;  %v12211_v39 = vcombine.low %v483_v27, %v491_v29  ;;  %v595_v22 = vld [vmem:[#allocation2 + $0x4b8] sm:$0xff] }
 0x17c   : > { %v12226_v40 = vcombine.high %v498_v34, %v506_v35  ;;  %v610_v27 = vld [vmem:[#allocation2 + $0x530] sm:$0xff]  ;;  %v611_v29 = vld [vmem:[#allocation2 + $0x538] sm:$0xff] }
 0x17e   : > { %2256 = vmatpush1.bf16.msra.mxu0 %v12333_v36  ;;  %2297 = vmatpush1.bf16.msra.mxu1 %v12335_v37  ;;  %v499_v36 = vld [vmem:[#allocation2 + $0x1b8] sm:$0xff] }
 0x17f   : > { %2257 = vmatprep.subr.bf16.mxu0 %v12350_v38  ;;  %2298 = vmatprep.subr.bf16.mxu1 %v12352_v42  ;;  %v507_v37 = vld [vmem:[#allocation2 + $0x1f8] sm:$0xff]  ;;  %v12209_v38 = vcombine.low %v482_v25, %v490_v26  ;;  %v514_v42 = vld [vmem:[#allocation2 + $0x230] sm:$0xff] }
 0x180   : > { %v12228_v41 = vcombine.high %v499_v36, %v507_v37  ;;  %v12227_v47 = vcombine.low %v499_v36, %v507_v37  ;;  %v12242_v48 = vcombine.high %v514_v42, %v522_v43  ;;  %v634_v36 = vld [vmem:[#allocation2 + $0x5f0] sm:$0xff]  ;;  %v627_v37 = vld [vmem:[#allocation2 + $0x5b8] sm:$0xff] }
 0x182   : > { %2258 = vmatpush1.bf16.msra.mxu0 %v12349_v44  ;;  %2299 = vmatpush1.bf16.msra.mxu1 %v12351_v45  ;;  %v515_v44 = vld [vmem:[#allocation2 + $0x238] sm:$0xff] }
 0x183   : > { %2259 = vmatprep.subr.bf16.mxu0 %v12366_v46  ;;  %2300 = vmatprep.subr.bf16.mxu1 %v12368_v50  ;;  %v523_v45 = vld [vmem:[#allocation2 + $0x278] sm:$0xff]  ;;  %v12225_v46 = vcombine.low %v498_v34, %v506_v35  ;;  %v538_v50 = vld [vmem:[#allocation2 + $0x2f0] sm:$0xff] }
 0x184   : > { %v12258_v56 = vcombine.high %v530_v49, %v538_v50  ;;  %v626_v35 = vld [vmem:[#allocation2 + $0x5b0] sm:$0xff] }
 0x186   : > { %2260 = vmatpush1.bf16.msra.mxu0 %v12365_v52  ;;  %2301 = vmatpush1.bf16.msra.mxu1 %v12367_v54  ;;  %v539_v52 = vld [vmem:[#allocation2 + $0x2f8] sm:$0xff]  ;;  %v12241_v54 = vcombine.low %v514_v42, %v522_v43  ;;  %v642_v43 = vld [vmem:[#allocation2 + $0x630] sm:$0xff] }
 0x187   : > { %2261 = vmatprep.subr.bf16.mxu0 %v12382_v55  ;;  %2302 = vmatprep.subr.bf16.mxu1 %v12384_v60  ;;  %v12243_v55 = vcombine.low %v515_v44, %v523_v45  ;;  %v12260_v58 = vcombine.high %v531_v51, %v539_v52  ;;  %v554_v60 = vld [vmem:[#allocation2 + $0x370] sm:$0xff] }
 0x188   : > { %v12274_v1 = vcombine.high %v546_v59, %v554_v60 }
 0x18a   : > { %2262 = vmatpush1.bf16.msra.mxu0 %v12381_v62  ;;  %2303 = vmatpush1.bf16.msra.mxu1 %v12383_v63  ;;  %v555_v62 = vld [vmem:[#allocation2 + $0x378] sm:$0xff]  ;;  %v12257_v63 = vcombine.low %v530_v49, %v538_v50  ;;  %v658_v50 = vld [vmem:[#allocation2 + $0x6b0] sm:$0xff] }
 0x18b   : > { %2263 = vmatprep.subr.bf16.mxu0 %v12398_v0  ;;  %2304 = vmatprep.subr.bf16.mxu1 %v12400_v4  ;;  %v12259_v0 = vcombine.low %v531_v51, %v539_v52  ;;  %v12276_v2 = vcombine.high %v547_v61, %v555_v62  ;;  %v570_v4 = vld [vmem:[#allocation2 + $0x3f0] sm:$0xff]  ;;  %v659_v52 = vld [vmem:[#allocation2 + $0x6b8] sm:$0xff] }
 0x18c   : > { %v12290_v9 = vcombine.high %v562_v3, %v570_v4  ;;  %v666_v51 = vld [vmem:[#allocation2 + $0x6f0] sm:$0xff] }
 0x18e   : > { %2264 = vmatpush1.bf16.msra.mxu0 %v12397_v6  ;;  %2305 = vmatpush1.bf16.msra.mxu1 %v12399_v7  ;;  %v571_v6 = vld [vmem:[#allocation2 + $0x3f8] sm:$0xff]  ;;  %v12273_v7 = vcombine.low %v546_v59, %v554_v60  ;;  %v674_v60 = vld [vmem:[#allocation2 + $0x730] sm:$0xff] }
 0x18f   : > { %2265 = vmatprep.subr.bf16.mxu0 %v12414_v8  ;;  %2306 = vmatprep.subr.bf16.mxu1 %v12416_v13  ;;  %v12275_v8 = vcombine.low %v547_v61, %v555_v62  ;;  %v12292_v10 = vcombine.high %v563_v5, %v571_v6  ;;  %v586_v13 = vld [vmem:[#allocation2 + $0x470] sm:$0xff]  ;;  %v675_v62 = vld [vmem:[#allocation2 + $0x738] sm:$0xff] }
 0x190   : > { %v12306_v18 = vcombine.high %v578_v11, %v586_v13  ;;  %v682_v61 = vld [vmem:[#allocation2 + $0x770] sm:$0xff] }
 0x192   : > { %2266 = vmatpush1.bf16.msra.mxu0 %v12413_v15  ;;  %2307 = vmatpush1.bf16.msra.mxu1 %v12415_v16  ;;  %v587_v15 = vld [vmem:[#allocation2 + $0x478] sm:$0xff]  ;;  %v12289_v16 = vcombine.low %v562_v3, %v570_v4  ;;  %v690_v4 = vld [vmem:[#allocation2 + $0x7b0] sm:$0xff] }
 0x193   : > { %2317 = vmatprep.subr.bf16.mxu0 %v12178_v17  ;;  %2358 = vmatprep.subr.bf16.mxu1 %v12180_v21  ;;  %v12291_v17 = vcombine.low %v563_v5, %v571_v6  ;;  %v12308_v19 = vcombine.high %v579_v14, %v587_v15  ;;  %v602_v21 = vld [vmem:[#allocation2 + $0x4f0] sm:$0xff]  ;;  %v691_v6 = vld [vmem:[#allocation2 + $0x7b8] sm:$0xff] }
 0x194   : > { %v12322_v25 = vcombine.high %v594_v20, %v602_v21  ;;  %v698_v5 = vld [vmem:[#allocation2 + $0x7f0] sm:$0xff] }
 0x195   : > { %2268 = vmatmul.mubr.bf16.vlgmr.msra.gmra.mrb[8].mxu0 %v14944_v12  ;;  %2309 = vmatmul.mubr.bf16.vlgmr.msra.gmra.mrb[8].mxu1 %v14944_v12 }
 0x196   : > { %2318 = vmatpush1.bf16.msra.mxu0 %v12177_v53  ;;  %2359 = vmatpush1.bf16.msra.mxu1 %v12179_v23  ;;  %v603_v53 = vld [vmem:[#allocation2 + $0x4f8] sm:$0xff]  ;;  %v12305_v23 = vcombine.low %v578_v11, %v586_v13  ;;  %v2431_v13 = vld [vmem:[#allocation6] sm:$0xff] }
 0x197   : > { %2319 = vmatprep.subr.bf16.mxu0 %v12194_v24  ;;  %2360 = vmatprep.subr.bf16.mxu1 %v12196_v28  ;;  %v12307_v24 = vcombine.low %v579_v14, %v587_v15  ;;  %v12324_v26 = vcombine.high %v595_v22, %v603_v53  ;;  %v618_v28 = vld [vmem:[#allocation2 + $0x570] sm:$0xff]  ;;  %v2432_v15 = vld [vmem:[#allocation6 + $0x8] sm:$0xff] }
 0x198   : > { %2349 = vmatprep.mubr.bf16.mxu0 %v14938_v57  ;;  %2390 = vmatprep.mubr.bf16.mxu1 %v14938_v57  ;;  %v12244_v57 = vcombine.high %v515_v44, %v523_v45  ;;  %v650_v44 = vld [vmem:[#allocation2 + $0x670] sm:$0xff]  ;;  %v643_v45 = vld [vmem:[#allocation2 + $0x638] sm:$0xff] }
 0x199   : > { %v2435_v14 = vld [vmem:[#allocation6 + $0x20] sm:$0xff] }
 0x19a   : > { %2320 = vmatpush1.bf16.msra.mxu0 %v12193_v30  ;;  %2361 = vmatpush1.bf16.msra.mxu1 %v12195_v31  ;;  %v619_v30 = vld [vmem:[#allocation2 + $0x578] sm:$0xff]  ;;  %v12321_v31 = vcombine.low %v594_v20, %v602_v21  ;;  %v2439_v21 = vld [vmem:[#allocation6 + $0x40] sm:$0xff] }
 0x19b   : > { %2321 = vmatprep.subr.bf16.mxu0 %v12210_v32  ;;  %2362 = vmatprep.subr.bf16.mxu1 %v12212_v33  ;;  %v12323_v32 = vcombine.low %v595_v22, %v603_v53  ;;  %v12338_v33 = vcombine.high %v610_v27, %v618_v28  ;;  %v12340_v34 = vcombine.high %v611_v29, %v619_v30  ;;  %v2443_v22 = vld [vmem:[#allocation6 + $0x60] sm:$0xff]  ;;  %v2440_v53 = vld [vmem:[#allocation6 + $0x48] sm:$0xff] }
 0x19e   : > { %2322 = vmatpush1.bf16.msra.mxu0 %v12209_v38  ;;  %2363 = vmatpush1.bf16.msra.mxu1 %v12211_v39  ;;  %v635_v38 = vld [vmem:[#allocation2 + $0x5f8] sm:$0xff]  ;;  %v12337_v39 = vcombine.low %v610_v27, %v618_v28  ;;  %v2447_v28 = vld [vmem:[#allocation6 + $0x80] sm:$0xff] }
 0x19f   : > { %2323 = vmatprep.subr.bf16.mxu0 %v12226_v40  ;;  %2364 = vmatprep.subr.bf16.mxu1 %v12228_v41  ;;  %v12339_v40 = vcombine.low %v611_v29, %v619_v30  ;;  %v12354_v41 = vcombine.high %v626_v35, %v634_v36  ;;  %v12356_v42 = vcombine.high %v627_v37, %v635_v38  ;;  %v2451_v29 = vld [vmem:[#allocation6 + $0xa0] sm:$0xff]  ;;  %v2448_v30 = vld [vmem:[#allocation6 + $0x88] sm:$0xff] }
 0x1a2   : > { %2324 = vmatpush1.bf16.msra.mxu0 %v12225_v46  ;;  %2365 = vmatpush1.bf16.msra.mxu1 %v12227_v47  ;;  %v651_v46 = vld [vmem:[#allocation2 + $0x678] sm:$0xff]  ;;  %v12353_v47 = vcombine.low %v626_v35, %v634_v36  ;;  %v2455_v36 = vld [vmem:[#allocation6 + $0xc0] sm:$0xff] }
 0x1a3   : > { %2325 = vmatprep.subr.bf16.mxu0 %v12242_v48  ;;  %2366 = vmatprep.subr.bf16.mxu1 %v12244_v57  ;;  %v12355_v48 = vcombine.low %v627_v37, %v635_v38  ;;  %v12370_v57 = vcombine.high %v642_v43, %v650_v44  ;;  %v12372_v49 = vcombine.high %v643_v45, %v651_v46  ;;  %v2459_v37 = vld [vmem:[#allocation6 + $0xe0] sm:$0xff]  ;;  %v2456_v38 = vld [vmem:[#allocation6 + $0xc8] sm:$0xff] }
 0x1a6   : > { %2326 = vmatpush1.bf16.msra.mxu0 %v12241_v54  ;;  %2367 = vmatpush1.bf16.msra.mxu1 %v12243_v55  ;;  %v667_v54 = vld [vmem:[#allocation2 + $0x6f8] sm:$0xff]  ;;  %v12369_v55 = vcombine.low %v642_v43, %v650_v44  ;;  %v12446_v43 = vcombine.high %v2455_v36, %v2459_v37  ;;  %v2463_v44 = vld [vmem:[#allocation6 + $0x100] sm:$0xff] }
 0x1a7   : > { %2327 = vmatprep.subr.bf16.mxu0 %v12258_v56  ;;  %2368 = vmatprep.subr.bf16.mxu1 %v12260_v58  ;;  %v12371_v56 = vcombine.low %v643_v45, %v651_v46  ;;  %v12386_v58 = vcombine.high %v658_v50, %v666_v51  ;;  %v12388_v59 = vcombine.high %v659_v52, %v667_v54  ;;  %v2467_v45 = vld [vmem:[#allocation6 + $0x120] sm:$0xff]  ;;  %v2464_v46 = vld [vmem:[#allocation6 + $0x108] sm:$0xff] }
 0x1aa   : > { %2328 = vmatpush1.bf16.msra.mxu0 %v12257_v63  ;;  %2369 = vmatpush1.bf16.msra.mxu1 %v12259_v0  ;;  %v683_v63 = vld [vmem:[#allocation2 + $0x778] sm:$0xff]  ;;  %v12385_v0 = vcombine.low %v658_v50, %v666_v51  ;;  %v12454_v50 = vcombine.high %v2463_v44, %v2467_v45 }
 0x1ab   : > { %2329 = vmatprep.subr.bf16.mxu0 %v12274_v1  ;;  %2370 = vmatprep.subr.bf16.mxu1 %v12276_v2  ;;  %v12387_v1 = vcombine.low %v659_v52, %v667_v54  ;;  %v12402_v2 = vcombine.high %v674_v60, %v682_v61  ;;  %v12404_v3 = vcombine.high %v675_v62, %v683_v63  ;;  %v2471_v52 = vld [vmem:[#allocation6 + $0x140] sm:$0xff] }
 0x1ac   : > { %v2475_v54 = vld [vmem:[#allocation6 + $0x160] sm:$0xff] }
 0x1ae   : > { %2330 = vmatpush1.bf16.msra.mxu0 %v12273_v7  ;;  %2371 = vmatpush1.bf16.msra.mxu1 %v12275_v8  ;;  %v699_v7 = vld [vmem:[#allocation2 + $0x7f8] sm:$0xff]  ;;  %v12401_v8 = vcombine.low %v674_v60, %v682_v61  ;;  %v14965_v61 = vld [vmem:[#allocation4] sm:$0xff] }
 0x1af   : > { %2331 = vmatprep.subr.bf16.mxu0 %v12290_v9  ;;  %2372 = vmatprep.subr.bf16.mxu1 %v12292_v10  ;;  %v12403_v9 = vcombine.low %v675_v62, %v683_v63  ;;  %v12418_v10 = vcombine.high %v690_v4, %v698_v5  ;;  %v12420_v11 = vcombine.high %v691_v6, %v699_v7 }
 0x1b0   : > { %v12462_v62 = vcombine.high %v2471_v52, %v2475_v54 }
 0x1b2   : > { %2332 = vmatpush1.bf16.msra.mxu0 %v12289_v16  ;;  %2373 = vmatpush1.bf16.msra.mxu1 %v12291_v17  ;;  %v2436_v16 = vld [vmem:[#allocation6 + $0x28] sm:$0xff]  ;;  %v12417_v17 = vcombine.low %v690_v4, %v698_v5  ;;  %v12461_v5 = vcombine.low %v2471_v52, %v2475_v54  ;;  %v2523_v52 = vld [vmem:[#allocation6 + $0x2e0] sm:$0xff] }
 0x1b3   : > { %2333 = vmatprep.subr.bf16.mxu0 %v12306_v18  ;;  %2374 = vmatprep.subr.bf16.mxu1 %v12308_v19  ;;  %v12419_v18 = vcombine.low %v691_v6, %v699_v7  ;;  %v12422_v19 = vcombine.high %v2431_v13, %v2435_v14  ;;  %v12424_v20 = vcombine.high %v2432_v15, %v2436_v16  ;;  %v2520_v54 = vld [vmem:[#allocation6 + $0x2c8] sm:$0xff] }
 0x1b6   : > { %2334 = vmatpush1.bf16.msra.mxu0 %v12305_v23  ;;  %2375 = vmatpush1.bf16.msra.mxu1 %v12307_v24  ;;  %v2444_v23 = vld [vmem:[#allocation6 + $0x68] sm:$0xff]  ;;  %v12421_v24 = vcombine.low %v2431_v13, %v2435_v14 }
 0x1b7   : > { %2335 = vmatprep.subr.bf16.mxu0 %v12322_v25  ;;  %2376 = vmatprep.subr.bf16.mxu1 %v12324_v26  ;;  %v12423_v25 = vcombine.low %v2432_v15, %v2436_v16  ;;  %v12430_v26 = vcombine.high %v2439_v21, %v2443_v22  ;;  %v12432_v27 = vcombine.high %v2440_v53, %v2444_v23 }
 0x1ba   : > { %2336 = vmatpush1.bf16.msra.mxu0 %v12321_v31  ;;  %2377 = vmatpush1.bf16.msra.mxu1 %v12323_v32  ;;  %v2452_v31 = vld [vmem:[#allocation6 + $0xa8] sm:$0xff]  ;;  %v12429_v32 = vcombine.low %v2439_v21, %v2443_v22 }
 0x1bb   : > { %2337 = vmatprep.subr.bf16.mxu0 %v12338_v33  ;;  %2378 = vmatprep.subr.bf16.mxu1 %v12340_v34  ;;  %v12431_v33 = vcombine.low %v2440_v53, %v2444_v23  ;;  %v12438_v34 = vcombine.high %v2447_v28, %v2451_v29  ;;  %v12440_v35 = vcombine.high %v2448_v30, %v2452_v31 }
 0x1be   : > { %2338 = vmatpush1.bf16.msra.mxu0 %v12337_v39  ;;  %2379 = vmatpush1.bf16.msra.mxu1 %v12339_v40  ;;  %v2460_v39 = vld [vmem:[#allocation6 + $0xe8] sm:$0xff]  ;;  %v12437_v40 = vcombine.low %v2447_v28, %v2451_v29 }
 0x1bf   : > { %2339 = vmatprep.subr.bf16.mxu0 %v12354_v41  ;;  %2380 = vmatprep.subr.bf16.mxu1 %v12356_v42  ;;  %v704_v41 = vlaneseq  ;;  %v12439_v42 = vcombine.low %v2448_v30, %v2452_v31  ;;  %v2496_v29 = vld [vmem:[#allocation6 + $0x208] sm:$0xff] }
 0x1c0   : > { %v2500_v30 = vld [vmem:[#allocation6 + $0x228] sm:$0xff] }
 0x1c2   : > { %2340 = vmatpush1.bf16.msra.mxu0 %v12353_v47  ;;  %2381 = vmatpush1.bf16.msra.mxu1 %v12355_v48  ;;  %v2468_v47 = vld [vmem:[#allocation6 + $0x128] sm:$0xff]  ;;  %v12445_v48 = vcombine.low %v2455_v36, %v2459_v37  ;;  %v2503_v36 = vld [vmem:[#allocation6 + $0x240] sm:$0xff] }
 0x1c3   : > { %2341 = vmatprep.subr.bf16.mxu0 %v12370_v57  ;;  %2382 = vmatprep.subr.bf16.mxu1 %v12372_v49  ;;  %v14960_v57 = vshrl.u32 %v704_v41, 7  ;;  %v12447_v49 = vcombine.low %v2456_v38, %v2460_v39  ;;  %v12456_v51 = vcombine.high %v2464_v46, %v2468_v47  ;;  %v12455_v60 = vcombine.low %v2464_v46, %v2468_v47  ;;  %v2507_v37 = vld [vmem:[#allocation6 + $0x260] sm:$0xff]  ;;  %v2516_v46 = vld [vmem:[#allocation6 + $0x2a8] sm:$0xff] }
 0x1c4   : > { %v12487_v41 = vcombine.low %v2496_v29, %v2500_v30  ;;  %v12493_v47 = vcombine.low %v2503_v36, %v2507_v37 }
 0x1c6   : > { %2342 = vmatpush1.bf16.msra.mxu0 %v12369_v55  ;;  %2383 = vmatpush1.bf16.msra.mxu1 %v12371_v56  ;;  %v2472_v55 = vld [vmem:[#allocation6 + $0x148] sm:$0xff] }
 0x1c7   : > { %2343 = vmatprep.subr.bf16.mxu0 %v12386_v58  ;;  %2384 = vmatprep.subr.bf16.mxu1 %v12388_v59  ;;  %v2476_v56 = vld [vmem:[#allocation6 + $0x168] sm:$0xff]  ;;  %v12453_v58 = vcombine.low %v2463_v44, %v2467_v45  ;;  %v14963_v59 = vsub.s32 1, %v14960_v57  ;;  %v2515_v44 = vld [vmem:[#allocation6 + $0x2a0] sm:$0xff] }
 0x1c8   : > { %v12464_v63 = vcombine.high %v2472_v55, %v2476_v56  ;;  %v12463_v6 = vcombine.low %v2472_v55, %v2476_v56  ;;  %v2512_v45 = vld [vmem:[#allocation6 + $0x288] sm:$0xff] }
 0x1c9   : > { %v711_v4 = vrot.slane %v14965_v61, %v14963_v59  ;;  %v2524_v55 = vld [vmem:[#allocation6 + $0x2e8] sm:$0xff] }
 0x1ca   : > { %2344 = vmatpush1.bf16.msra.mxu0 %v12385_v0  ;;  %2385 = vmatpush1.bf16.msra.mxu1 %v12387_v1  ;;  %v2479_v0 = vld [vmem:[#allocation6 + $0x180] sm:$0xff] }
 0x1cb   : > { %2345 = vmatprep.subr.bf16.mxu0 %v12402_v2  ;;  %2386 = vmatprep.subr.bf16.mxu1 %v12404_v3  ;;  %v2483_v1 = vld [vmem:[#allocation6 + $0x1a0] sm:$0xff]  ;;  %v2480_v2 = vld [vmem:[#allocation6 + $0x188] sm:$0xff] }
 0x1cc   : > { %v2484_v3 = vld [vmem:[#allocation6 + $0x1a8] sm:$0xff]  ;;  %v12470_v7 = vcombine.high %v2479_v0, %v2483_v1 }
 0x1cd   : > { %v12471_v22 = vcombine.low %v2480_v2, %v2484_v3 }
 0x1ce   : > { %2346 = vmatpush1.bf16.msra.mxu0 %v12401_v8  ;;  %2387 = vmatpush1.bf16.msra.mxu1 %v12403_v9  ;;  %v12472_v9 = vcombine.high %v2480_v2, %v2484_v3  ;;  %v2532_v2 = vld [vmem:[#allocation6 + $0x328] sm:$0xff] }
 0x1cf   : > { %2347 = vmatprep.subr.bf16.mxu0 %v12418_v10  ;;  %2388 = vmatprep.subr.bf16.mxu1 %v12420_v11  ;;  %v2487_v10 = vld [vmem:[#allocation6 + $0x1c0] sm:$0xff] }
 0x1d0   : > { %v2491_v11 = vld [vmem:[#allocation6 + $0x1e0] sm:$0xff] }
 0x1d1   : > { %v12478_v53 = vcombine.high %v2487_v10, %v2491_v11 }
 0x1d2   : > { %2348 = vmatpush1.bf16.msra.mxu0 %v12417_v17  ;;  %2389 = vmatpush1.bf16.msra.mxu1 %v12419_v18  ;;  %v12469_v17 = vcombine.low %v2479_v0, %v2483_v1  ;;  %v2488_v18 = vld [vmem:[#allocation6 + $0x1c8] sm:$0xff]  ;;  %v2531_v0 = vld [vmem:[#allocation6 + $0x320] sm:$0xff] }
 0x1d3   : > { %8617 = vmatprep.subr.bf16.mxu0 %v12422_v19  ;;  %8945 = vmatprep.subr.bf16.mxu1 %v12424_v20  ;;  %v2492_v19 = vld [vmem:[#allocation6 + $0x1e8] sm:$0xff] }
 0x1d4   : > { %v12480_v28 = vcombine.high %v2488_v18, %v2492_v19  ;;  %v2528_v1 = vld [vmem:[#allocation6 + $0x308] sm:$0xff] }
 0x1d5   : > { %2350 = vmatmul.mubr.bf16.vlgmr.msra.gmra.mrb[12].mxu0 %v14944_v12  ;;  %2391 = vmatmul.mubr.bf16.vlgmr.msra.gmra.mrb[12].mxu1 %v14944_v12  ;;  %v12448_v12 = vcombine.high %v2456_v38, %v2460_v39  ;;  %v2504_v38 = vld [vmem:[#allocation6 + $0x248] sm:$0xff] }
 0x1d6   : > { %8618 = vmatpush1.bf16.msra.mxu0 %v12421_v24  ;;  %8946 = vmatpush1.bf16.msra.mxu1 %v12423_v25  ;;  %v2495_v25 = vld [vmem:[#allocation6 + $0x200] sm:$0xff]  ;;  %v2508_v39 = vld [vmem:[#allocation6 + $0x268] sm:$0xff] }
 0x1d7   : > { %8619 = vmatprep.subr.bf16.mxu0 %v12430_v26  ;;  %8947 = vmatprep.subr.bf16.mxu1 %v12432_v27  ;;  %v2499_v26 = vld [vmem:[#allocation6 + $0x220] sm:$0xff] }
 0x1da   : > { %8620 = vmatpush1.bf16.msra.mxu0 %v12429_v32  ;;  %8948 = vmatpush1.bf16.msra.mxu1 %v12431_v33  ;;  %v12477_v32 = vcombine.low %v2487_v10, %v2491_v11  ;;  %v12479_v33 = vcombine.low %v2488_v18, %v2492_v19  ;;  %v2536_v10 = vld [vmem:[#allocation6 + $0x348] sm:$0xff]  ;;  %v2543_v19 = vld [vmem:[#allocation6 + $0x380] sm:$0xff] }
 0x1db   : > { %8621 = vmatprep.subr.bf16.mxu0 %v12438_v34  ;;  %8949 = vmatprep.subr.bf16.mxu1 %v12440_v35  ;;  %v12486_v34 = vcombine.high %v2495_v25, %v2499_v26  ;;  %v12488_v35 = vcombine.high %v2496_v29, %v2500_v30  ;;  %v2540_v11 = vld [vmem:[#allocation6 + $0x368] sm:$0xff]  ;;  %v2551_v29 = vld [vmem:[#allocation6 + $0x3c0] sm:$0xff] }
 0x1dc   : > { %v12528_v18 = vcombine.high %v2536_v10, %v2540_v11  ;;  %v2555_v30 = vld [vmem:[#allocation6 + $0x3e0] sm:$0xff] }
 0x1de   : > { %8622 = vmatpush1.bf16.msra.mxu0 %v12437_v40  ;;  %8950 = vmatpush1.bf16.msra.mxu1 %v12439_v42  ;;  %v12485_v40 = vcombine.low %v2495_v25, %v2499_v26  ;;  %v12494_v42 = vcombine.high %v2503_v36, %v2507_v37  ;;  %v12527_v26 = vcombine.low %v2536_v10, %v2540_v11  ;;  %v2588_v10 = vld [vmem:[#allocation6 + $0x4e8] sm:$0xff] }
 0x1df   : > { %8623 = vmatprep.subr.bf16.mxu0 %v12446_v43  ;;  %8951 = vmatprep.subr.bf16.mxu1 %v12448_v12  ;;  %v12496_v43 = vcombine.high %v2504_v38, %v2508_v39  ;;  %v2511_v12 = vld [vmem:[#allocation6 + $0x280] sm:$0xff] }
 0x1e0   : > { %v12501_v56 = vcombine.low %v2511_v12, %v2515_v44 }
 0x1e2   : > { %8624 = vmatpush1.bf16.msra.mxu0 %v12445_v48  ;;  %8952 = vmatpush1.bf16.msra.mxu1 %v12447_v49  ;;  %v12495_v48 = vcombine.low %v2504_v38, %v2508_v39  ;;  %v12502_v49 = vcombine.high %v2511_v12, %v2515_v44  ;;  %v12542_v38 = vcombine.high %v2551_v29, %v2555_v30  ;;  %v2564_v12 = vld [vmem:[#allocation6 + $0x428] sm:$0xff] }
 0x1e3   : > { %8625 = vmatprep.subr.bf16.mxu0 %v12454_v50  ;;  %8953 = vmatprep.subr.bf16.mxu1 %v12456_v51  ;;  %v12504_v50 = vcombine.high %v2512_v45, %v2516_v46  ;;  %v2519_v51 = vld [vmem:[#allocation6 + $0x2c0] sm:$0xff]  ;;  %v12541_v44 = vcombine.low %v2551_v29, %v2555_v30  ;;  %v2600_v29 = vld [vmem:[#allocation6 + $0x548] sm:$0xff] }
 0x1e4   : > { %v12509_v3 = vcombine.low %v2519_v51, %v2523_v52  ;;  %v2604_v30 = vld [vmem:[#allocation6 + $0x568] sm:$0xff] }
 0x1e6   : > { %8626 = vmatpush1.bf16.msra.mxu0 %v12453_v58  ;;  %8954 = vmatpush1.bf16.msra.mxu1 %v12455_v60  ;;  %v12503_v58 = vcombine.low %v2512_v45, %v2516_v46  ;;  %v12510_v60 = vcombine.high %v2519_v51, %v2523_v52  ;;  %v2568_v52 = vld [vmem:[#allocation6 + $0x448] sm:$0xff] }
 0x1e7   : > { %8627 = vmatprep.subr.bf16.mxu0 %v12462_v62  ;;  %8955 = vmatprep.subr.bf16.mxu1 %v12464_v63  ;;  %v12512_v62 = vcombine.high %v2520_v54, %v2524_v55  ;;  %v2527_v63 = vld [vmem:[#allocation6 + $0x300] sm:$0xff] }
 0x1e8   : > { %v14969_v8 = vpop.f32.mrb[0].mxu0  ;;  %v14971_v14 = vpop.f32.mrb[0].mxu1 }
 0x1e9   : > { %v2107_v13 = vpop.f32.mrb[1].mxu0  ;;  %v14973_v20 = vpop.f32.mrb[1].mxu1 }
 0x1ea   : > { %v2108_v15 = vadd.f32 %v2107_v13, %v711_v4  ;;  %v2109_v16 = vpop.f32.mrb[2].mxu0  ;;  %8628 = vmatpush1.bf16.msra.mxu0 %v12461_v5  ;;  %8956 = vmatpush1.bf16.msra.mxu1 %v12463_v6  ;;  %v2150_v23 = vpop.f32.mrb[2].mxu1  ;;  %v12511_v4 = vcombine.low %v2520_v54, %v2524_v55  ;;  %v12518_v5 = vcombine.high %v2527_v63, %v2531_v0  ;;  %v2572_v54 = vld [vmem:[#allocation6 + $0x468] sm:$0xff] }
 0x1eb   : > { %v2110_v21 = vpop.f32.mrb[3].mxu0  ;;  %8629 = vmatprep.subr.bf16.mxu0 %v12470_v7  ;;  %8957 = vmatprep.subr.bf16.mxu1 %v12472_v9  ;;  %v2151_v27 = vpop.f32.mrb[3].mxu1  ;;  %v12520_v6 = vcombine.high %v2528_v1, %v2532_v2  ;;  %v2535_v7 = vld [vmem:[#allocation6 + $0x340] sm:$0xff]  ;;  %v12517_v13 = vcombine.low %v2527_v63, %v2531_v0  ;;  %v12519_v16 = vcombine.low %v2528_v1, %v2532_v2  ;;  %v2548_v23 = vld [vmem:[#allocation6 + $0x3a8] sm:$0xff] }
 0x1ec   : > { %v2400_v24 = vmax.f32 %v2108_v15, 0.0  ;;  %v2539_v9 = vld [vmem:[#allocation6 + $0x360] sm:$0xff]  ;;  %v14980_v15 = vsub.s32 0, %v14960_v57  ;;  %v12560_v63 = vcombine.high %v2568_v52, %v2572_v54  ;;  %v2576_v0 = vld [vmem:[#allocation6 + $0x488] sm:$0xff] }
 0x1ed   : > { %v2547_v21 = vld [vmem:[#allocation6 + $0x3a0] sm:$0xff]  ;;  %v2580_v1 = vld [vmem:[#allocation6 + $0x4a8] sm:$0xff] }
 0x1ee   : > { %v14975_v31 = vpack.c.bf16 %v2400_v24, %v2400_v24  ;;  %8630 = vmatpush1.bf16.msra.mxu0 %v12469_v17  ;;  %8958 = vmatpush1.bf16.msra.mxu1 %v12471_v22  ;;  %v12526_v17 = vcombine.high %v2535_v7, %v2539_v9  ;;  %v14983_v22 = vsub.s32 3, %v14960_v57  ;;  %v12525_v24 = vcombine.low %v2535_v7, %v2539_v9  ;;  %v2587_v7 = vld [vmem:[#allocation6 + $0x4e0] sm:$0xff]  ;;  %v2584_v9 = vld [vmem:[#allocation6 + $0x4c8] sm:$0xff] }
 0x1ef   : > { %8631 = vmatprep.subr.bf16.mxu0 %v12478_v53  ;;  %8959 = vmatprep.subr.bf16.mxu1 %v12480_v28  ;;  %v2544_v53 = vld [vmem:[#allocation6 + $0x388] sm:$0xff]  ;;  %v707_v25 = vrot.slane %v14965_v61, %v14980_v15  ;;  %v12534_v27 = vcombine.high %v2543_v19, %v2547_v21 }
 0x1f0   : > { %8649 = vmatprep.mubr.bf16.mxu0 %v14975_v31  ;;  %8977 = vmatprep.mubr.bf16.mxu1 %v14975_v31  ;;  %v12536_v28 = vcombine.high %v2544_v53, %v2548_v23  ;;  %v12535_v37 = vcombine.low %v2544_v53, %v2548_v23  ;;  %v2596_v53 = vld [vmem:[#allocation6 + $0x528] sm:$0xff] }
 0x1f1   : > { %v2106_v36 = vadd.f32 %v14969_v8, %v707_v25 }
 0x1f2   : > { %8632 = vmatpush1.bf16.msra.mxu0 %v12477_v32  ;;  %8960 = vmatpush1.bf16.msra.mxu1 %v12479_v33  ;;  %v719_v32 = vrot.slane %v14965_v61, %v14983_v22  ;;  %v2552_v33 = vld [vmem:[#allocation6 + $0x3c8] sm:$0xff] }
 0x1f3   : > { %8633 = vmatprep.subr.bf16.mxu0 %v12486_v34  ;;  %8961 = vmatprep.subr.bf16.mxu1 %v12488_v35  ;;  %v2556_v34 = vld [vmem:[#allocation6 + $0x3e8] sm:$0xff]  ;;  %v12533_v35 = vcombine.low %v2543_v19, %v2547_v21  ;;  %v2399_v45 = vmax.f32 %v2106_v36, 0.0  ;;  %v2595_v19 = vld [vmem:[#allocation6 + $0x520] sm:$0xff] }
 0x1f4   : > { %v12544_v39 = vcombine.high %v2552_v33, %v2556_v34  ;;  %v12543_v46 = vcombine.low %v2552_v33, %v2556_v34  ;;  %v2592_v21 = vld [vmem:[#allocation6 + $0x508] sm:$0xff]  ;;  %v2607_v36 = vld [vmem:[#allocation6 + $0x580] sm:$0xff] }
 0x1f5   : > { %v14991_v55 = vpack.c.bf16 %v2399_v45, %v2399_v45  ;;  %v12583_v33 = vcombine.low %v2592_v21, %v2596_v53  ;;  %v2619_v45 = vld [vmem:[#allocation6 + $0x5e0] sm:$0xff] }
 0x1f6   : > { %8634 = vmatpush1.bf16.msra.mxu0 %v12485_v40  ;;  %8962 = vmatpush1.bf16.msra.mxu1 %v12487_v41  ;;  %v2559_v40 = vld [vmem:[#allocation6 + $0x400] sm:$0xff] }
 0x1f7   : > { %8635 = vmatprep.subr.bf16.mxu0 %v12494_v42  ;;  %8963 = vmatprep.subr.bf16.mxu1 %v12496_v43  ;;  %v2563_v41 = vld [vmem:[#allocation6 + $0x420] sm:$0xff]  ;;  %v2149_v42 = vadd.f32 %v14973_v20, %v719_v32  ;;  %v2560_v43 = vld [vmem:[#allocation6 + $0x408] sm:$0xff] }
 0x1f8   : > { %v12552_v8 = vcombine.high %v2560_v43, %v2564_v12  ;;  %v12549_v51 = vcombine.low %v2559_v40, %v2563_v41  ;;  %v12551_v20 = vcombine.low %v2560_v43, %v2564_v12 }
 0x1fa   : > { %8636 = vmatpush1.bf16.msra.mxu0 %v12493_v47  ;;  %8964 = vmatpush1.bf16.msra.mxu1 %v12495_v48  ;;  %v12550_v47 = vcombine.high %v2559_v40, %v2563_v41  ;;  %v2402_v48 = vmax.f32 %v2149_v42, 0.0  ;;  %v12591_v41 = vcombine.low %v2600_v29, %v2604_v30 }
 0x1fb   : > { %8637 = vmatprep.subr.bf16.mxu0 %v12502_v49  ;;  %8965 = vmatprep.subr.bf16.mxu1 %v12504_v50  ;;  %v2567_v49 = vld [vmem:[#allocation6 + $0x440] sm:$0xff] }
 0x1fc   : > { %v2571_v50 = vld [vmem:[#allocation6 + $0x460] sm:$0xff] }
 0x1fd   : > { %v12557_v2 = vcombine.low %v2567_v49, %v2571_v50 }
 0x1fe   : > { %8638 = vmatpush1.bf16.msra.mxu0 %v12501_v56  ;;  %8966 = vmatpush1.bf16.msra.mxu1 %v12503_v58  ;;  %v12558_v56 = vcombine.high %v2567_v49, %v2571_v50  ;;  %v2575_v58 = vld [vmem:[#allocation6 + $0x480] sm:$0xff] }
 0x1ff   : > { %8639 = vmatprep.subr.bf16.mxu0 %v12510_v60  ;;  %8967 = vmatprep.subr.bf16.mxu1 %v12512_v62  ;;  %v2579_v60 = vld [vmem:[#allocation6 + $0x4a0] sm:$0xff]  ;;  %v14993_v62 = vpack.c.bf16 %v2402_v48, %v2402_v48 }
 0x200   : > { %v12565_v11 = vcombine.low %v2575_v58, %v2579_v60 }
 0x202   : > { %8640 = vmatpush1.bf16.msra.mxu0 %v12509_v3  ;;  %8968 = vmatpush1.bf16.msra.mxu1 %v12511_v4  ;;  %v12559_v3 = vcombine.low %v2568_v52, %v2572_v54  ;;  %v12566_v4 = vcombine.high %v2575_v58, %v2579_v60  ;;  %v2623_v60 = vld [vmem:[#allocation6 + $0x600] sm:$0xff] }
 0x203   : > { %8641 = vmatprep.subr.bf16.mxu0 %v12518_v5  ;;  %8969 = vmatprep.subr.bf16.mxu1 %v12520_v6  ;;  %v12568_v5 = vcombine.high %v2576_v0, %v2580_v1  ;;  %v2583_v6 = vld [vmem:[#allocation6 + $0x4c0] sm:$0xff] }
 0x204   : > { %v12573_v23 = vcombine.low %v2583_v6, %v2587_v7 }
 0x206   : > { %8642 = vmatpush1.bf16.msra.mxu0 %v12517_v13  ;;  %8970 = vmatpush1.bf16.msra.mxu1 %v12519_v16  ;;  %v12567_v13 = vcombine.low %v2576_v0, %v2580_v1  ;;  %v12574_v16 = vcombine.high %v2583_v6, %v2587_v7  ;;  %v2624_v1 = vld [vmem:[#allocation6 + $0x608] sm:$0xff]  ;;  %v2631_v7 = vld [vmem:[#allocation6 + $0x640] sm:$0xff] }
 0x207   : > { %8643 = vmatprep.subr.bf16.mxu0 %v12526_v17  ;;  %8971 = vmatprep.subr.bf16.mxu1 %v12528_v18  ;;  %v12576_v17 = vcombine.high %v2584_v9, %v2588_v10  ;;  %v2591_v18 = vld [vmem:[#allocation6 + $0x500] sm:$0xff] }
 0x208   : > { %v12582_v25 = vcombine.high %v2591_v18, %v2595_v19  ;;  %v12581_v32 = vcombine.low %v2591_v18, %v2595_v19  ;;  %v2639_v19 = vld [vmem:[#allocation6 + $0x680] sm:$0xff] }
 0x20a   : > { %8644 = vmatpush1.bf16.msra.mxu0 %v12525_v24  ;;  %8972 = vmatpush1.bf16.msra.mxu1 %v12527_v26  ;;  %v12575_v24 = vcombine.low %v2584_v9, %v2588_v10  ;;  %v12584_v26 = vcombine.high %v2592_v21, %v2596_v53  ;;  %v2635_v9 = vld [vmem:[#allocation6 + $0x660] sm:$0xff]  ;;  %v2632_v10 = vld [vmem:[#allocation6 + $0x648] sm:$0xff] }
 0x20b   : > { %8645 = vmatprep.subr.bf16.mxu0 %v12534_v27  ;;  %8973 = vmatprep.subr.bf16.mxu1 %v12536_v28  ;;  %v2599_v27 = vld [vmem:[#allocation6 + $0x540] sm:$0xff]  ;;  %v2640_v53 = vld [vmem:[#allocation6 + $0x688] sm:$0xff] }
 0x20c   : > { %v2603_v28 = vld [vmem:[#allocation6 + $0x560] sm:$0xff] }
 0x20d   : > { %v12590_v34 = vcombine.high %v2599_v27, %v2603_v28  ;;  %v12589_v40 = vcombine.low %v2599_v27, %v2603_v28  ;;  %v2643_v21 = vld [vmem:[#allocation6 + $0x6a0] sm:$0xff] }
 0x20e   : > { %8646 = vmatpush1.bf16.msra.mxu0 %v12533_v35  ;;  %8974 = vmatpush1.bf16.msra.mxu1 %v12535_v37  ;;  %v12592_v35 = vcombine.high %v2600_v29, %v2604_v30  ;;  %v2611_v37 = vld [vmem:[#allocation6 + $0x5a0] sm:$0xff]  ;;  %v2648_v30 = vld [vmem:[#allocation6 + $0x6c8] sm:$0xff] }
 0x20f   : > { %8647 = vmatprep.subr.bf16.mxu0 %v12542_v38  ;;  %8975 = vmatprep.subr.bf16.mxu1 %v12544_v39  ;;  %v2608_v38 = vld [vmem:[#allocation6 + $0x588] sm:$0xff]  ;;  %v12598_v42 = vcombine.high %v2607_v36, %v2611_v37  ;;  %v12597_v50 = vcombine.low %v2607_v36, %v2611_v37  ;;  %v2647_v28 = vld [vmem:[#allocation6 + $0x6c0] sm:$0xff] }
 0x210   : > { %v2612_v39 = vld [vmem:[#allocation6 + $0x5a8] sm:$0xff]  ;;  %v2651_v29 = vld [vmem:[#allocation6 + $0x6e0] sm:$0xff] }
 0x211   : > { %v12600_v12 = vcombine.high %v2608_v38, %v2612_v39  ;;  %v12599_v54 = vcombine.low %v2608_v38, %v2612_v39  ;;  %v2655_v37 = vld [vmem:[#allocation6 + $0x700] sm:$0xff]  ;;  %v2656_v39 = vld [vmem:[#allocation6 + $0x708] sm:$0xff] }
 0x212   : > { %8648 = vmatpush1.bf16.msra.mxu0 %v12541_v44  ;;  %8976 = vmatpush1.bf16.msra.mxu1 %v12543_v46  ;;  %v2615_v44 = vld [vmem:[#allocation6 + $0x5c0] sm:$0xff] }
 0x213   : > { %8658 = vmatprep.subr.bf16.mxu0 %v12550_v47  ;;  %8986 = vmatprep.subr.bf16.mxu1 %v12552_v8  ;;  %v2616_v47 = vld [vmem:[#allocation6 + $0x5c8] sm:$0xff]  ;;  %v2659_v38 = vld [vmem:[#allocation6 + $0x720] sm:$0xff] }
 0x214   : > { %v2620_v8 = vld [vmem:[#allocation6 + $0x5e8] sm:$0xff] }
 0x215   : > { %8650 = vmatmul.mubr.bf16.vlgmr.msra.gmra.mrb[16].mxu0 %v14991_v55  ;;  %8978 = vmatmul.mubr.bf16.vlgmr.msra.gmra.mrb[16].mxu1 %v14991_v55  ;;  %v12608_v58 = vcombine.high %v2616_v47, %v2620_v8 }
 0x216   : > { %8659 = vmatpush1.bf16.msra.mxu0 %v12549_v51  ;;  %8690 = vmatprep.mubr.bf16.mxu0 %v14993_v62 }
 0x217   : > { %8987 = vmatpush1.bf16.msra.mxu1 %v12551_v20  ;;  %9018 = vmatprep.mubr.bf16.mxu1 %v14993_v62  ;;  %v12606_v20 = vcombine.high %v2615_v44, %v2619_v45 }
 0x218   : > { %8660 = vmatprep.subr.bf16.mxu0 %v12558_v56  ;;  %8988 = vmatprep.subr.bf16.mxu1 %v12560_v63  ;;  %v2627_v63 = vld [vmem:[#allocation6 + $0x620] sm:$0xff] }
 0x21a   : > { %8661 = vmatpush1.bf16.msra.mxu0 %v12557_v2  ;;  %v2628_v2 = vld [vmem:[#allocation6 + $0x628] sm:$0xff] }
 0x21b   : > { %8989 = vmatpush1.bf16.msra.mxu1 %v12559_v3  ;;  %8662 = vmatprep.subr.bf16.mxu0 %v12566_v4  ;;  %v12605_v3 = vcombine.low %v2615_v44, %v2619_v45  ;;  %v12607_v4 = vcombine.low %v2616_v47, %v2620_v8  ;;  %v12616_v6 = vcombine.high %v2624_v1, %v2628_v2  ;;  %v2663_v45 = vld [vmem:[#allocation6 + $0x740] sm:$0xff]  ;;  %v2664_v8 = vld [vmem:[#allocation6 + $0x748] sm:$0xff] }
 0x21c   : > { %8990 = vmatprep.subr.bf16.mxu1 %v12568_v5  ;;  %v12614_v5 = vcombine.high %v2623_v60, %v2627_v63  ;;  %v2667_v47 = vld [vmem:[#allocation6 + $0x760] sm:$0xff] }
 0x21e   : > { %8663 = vmatpush1.bf16.msra.mxu0 %v12565_v11  ;;  %v2636_v11 = vld [vmem:[#allocation6 + $0x668] sm:$0xff] }
 0x21f   : > { %8991 = vmatpush1.bf16.msra.mxu1 %v12567_v13  ;;  %8664 = vmatprep.subr.bf16.mxu0 %v12574_v16  ;;  %v12613_v13 = vcombine.low %v2623_v60, %v2627_v63  ;;  %v12615_v16 = vcombine.low %v2624_v1, %v2628_v2  ;;  %v12624_v18 = vcombine.high %v2632_v10, %v2636_v11  ;;  %v2675_v60 = vld [vmem:[#allocation6 + $0x7a0] sm:$0xff]  ;;  %v15011_v63 = vsub.s32 5, %v14960_v57  ;;  %v2676_v1 = vld [vmem:[#allocation6 + $0x7a8] sm:$0xff] }
 0x220   : > { %8992 = vmatprep.subr.bf16.mxu1 %v12576_v17  ;;  %v12622_v17 = vcombine.high %v2631_v7, %v2635_v9  ;;  %v12653_v2 = vcombine.low %v2663_v45, %v2667_v47 }
 0x222   : > { %8665 = vmatpush1.bf16.msra.mxu0 %v12573_v23  ;;  %v2644_v23 = vld [vmem:[#allocation6 + $0x6a8] sm:$0xff] }
 0x223   : > { %8993 = vmatpush1.bf16.msra.mxu1 %v12575_v24  ;;  %8666 = vmatprep.subr.bf16.mxu0 %v12582_v25  ;;  %v12621_v24 = vcombine.low %v2631_v7, %v2635_v9  ;;  %v12623_v25 = vcombine.low %v2632_v10, %v2636_v11  ;;  %v12632_v27 = vcombine.high %v2640_v53, %v2644_v23  ;;  %v2679_v7 = vld [vmem:[#allocation6 + $0x7c0] sm:$0xff]  ;;  %v2680_v11 = vld [vmem:[#allocation6 + $0x7c8] sm:$0xff] }
 0x224   : > { %8994 = vmatprep.subr.bf16.mxu1 %v12584_v26  ;;  %v12630_v26 = vcombine.high %v2639_v19, %v2643_v21  ;;  %v2683_v9 = vld [vmem:[#allocation6 + $0x7e0] sm:$0xff]  ;;  %v727_v10 = vrot.slane %v14965_v61, %v15011_v63 }
 0x226   : > { %8667 = vmatpush1.bf16.msra.mxu0 %v12581_v32  ;;  %v2652_v32 = vld [vmem:[#allocation6 + $0x6e8] sm:$0xff] }
 0x227   : > { %8995 = vmatpush1.bf16.msra.mxu1 %v12583_v33  ;;  %8668 = vmatprep.subr.bf16.mxu0 %v12590_v34  ;;  %v12629_v33 = vcombine.low %v2639_v19, %v2643_v21  ;;  %v12631_v34 = vcombine.low %v2640_v53, %v2644_v23  ;;  %v12640_v36 = vcombine.high %v2648_v30, %v2652_v32  ;;  %v2687_v53 = vld [vmem:[#allocation6 + $0x800] sm:$0xff] }
 0x228   : > { %v14999_v43 = vpop.f32.mrb[4].mxu0  ;;  %8996 = vmatprep.subr.bf16.mxu1 %v12592_v35  ;;  %v15003_v48 = vpop.f32.mrb[4].mxu1  ;;  %v12638_v35 = vcombine.high %v2647_v28, %v2651_v29  ;;  %v12670_v19 = vcombine.high %v2679_v7, %v2683_v9  ;;  %v2691_v23 = vld [vmem:[#allocation6 + $0x820] sm:$0xff] }
 0x229   : > { %v15001_v46 = vpop.f32.mrb[5].mxu0  ;;  %v15005_v51 = vpop.f32.mrb[5].mxu1 }
 0x22a   : > { %v2191_v49 = vpop.f32.mrb[6].mxu0  ;;  %8669 = vmatpush1.bf16.msra.mxu0 %v12589_v40  ;;  %v2232_v56 = vpop.f32.mrb[6].mxu1  ;;  %v2660_v40 = vld [vmem:[#allocation6 + $0x728] sm:$0xff] }
 0x22b   : > { %8997 = vmatpush1.bf16.msra.mxu1 %v12591_v41  ;;  %v2192_v52 = vpop.f32.mrb[7].mxu0  ;;  %8670 = vmatprep.subr.bf16.mxu0 %v12598_v42  ;;  %v2233_v0 = vpop.f32.mrb[7].mxu1  ;;  %v12637_v41 = vcombine.low %v2647_v28, %v2651_v29  ;;  %v12639_v42 = vcombine.low %v2648_v30, %v2652_v32  ;;  %v12648_v44 = vcombine.high %v2656_v39, %v2660_v40  ;;  %v2668_v49 = vld [vmem:[#allocation6 + $0x768] sm:$0xff]  ;;  %v2695_v32 = vld [vmem:[#allocation6 + $0x840] sm:$0xff] }
 0x22c   : > { %8998 = vmatprep.subr.bf16.mxu1 %v12600_v12  ;;  %v12646_v12 = vcombine.high %v2655_v37, %v2659_v38  ;;  %v15008_v52 = vsub.s32 2, %v14960_v57  ;;  %v12656_v56 = vcombine.high %v2664_v8, %v2668_v49  ;;  %v2672_v0 = vld [vmem:[#allocation6 + $0x788] sm:$0xff]  ;;  %v12678_v29 = vcombine.high %v2687_v53, %v2691_v23 }
 0x22e   : > { %8671 = vmatpush1.bf16.msra.mxu0 %v12597_v50  ;;  %v12645_v50 = vcombine.low %v2655_v37, %v2659_v38 }
 0x22f   : > { %8999 = vmatpush1.bf16.msra.mxu1 %v12599_v54  ;;  %8672 = vmatprep.subr.bf16.mxu0 %v12606_v20  ;;  %v12647_v54 = vcombine.low %v2656_v39, %v2660_v40  ;;  %v12654_v20 = vcombine.high %v2663_v45, %v2667_v47  ;;  %v2703_v39 = vld [vmem:[#allocation6 + $0x880] sm:$0xff] }
 0x230   : > { %9000 = vmatprep.subr.bf16.mxu1 %v12608_v58  ;;  %v2671_v58 = vld [vmem:[#allocation6 + $0x780] sm:$0xff] }
 0x231   : > { %v2707_v40 = vld [vmem:[#allocation6 + $0x8a0] sm:$0xff] }
 0x232   : > { %8673 = vmatpush1.bf16.msra.mxu0 %v12605_v3  ;;  %v715_v3 = vrot.slane %v14965_v61, %v15008_v52  ;;  %v12669_v61 = vcombine.low %v2679_v7, %v2683_v9 }
 0x233   : > { %9001 = vmatpush1.bf16.msra.mxu1 %v12607_v4  ;;  %8674 = vmatprep.subr.bf16.mxu0 %v12614_v5  ;;  %v12655_v4 = vcombine.low %v2664_v8, %v2668_v49  ;;  %v12662_v5 = vcombine.high %v2671_v58, %v2675_v60  ;;  %v12694_v8 = vcombine.high %v2703_v39, %v2707_v40 }
 0x234   : > { %9002 = vmatprep.subr.bf16.mxu1 %v12616_v6  ;;  %v12664_v6 = vcombine.high %v2672_v0, %v2676_v1 }
 0x236   : > { %8675 = vmatpush1.bf16.msra.mxu0 %v12613_v13  ;;  %v2684_v13 = vld [vmem:[#allocation6 + $0x7e8] sm:$0xff] }
 0x237   : > { %9003 = vmatpush1.bf16.msra.mxu1 %v12615_v16  ;;  %8676 = vmatprep.subr.bf16.mxu0 %v12622_v17  ;;  %v12661_v16 = vcombine.low %v2671_v58, %v2675_v60  ;;  %v2147_v17 = vadd.f32 %v14971_v14, %v715_v3  ;;  %v12672_v21 = vcombine.high %v2680_v11, %v2684_v13  ;;  %v2723_v3 = vld [vmem:[#allocation6 + $0x920] sm:$0xff] }
 0x238   : > { %9004 = vmatprep.subr.bf16.mxu1 %v12624_v18  ;;  %v12663_v18 = vcombine.low %v2672_v0, %v2676_v1  ;;  %v12671_v28 = vcombine.low %v2680_v11, %v2684_v13  ;;  %v12693_v58 = vcombine.low %v2703_v39, %v2707_v40  ;;  %v2727_v11 = vld [vmem:[#allocation6 + $0x940] sm:$0xff] }
 0x239   : > { %v2731_v13 = vld [vmem:[#allocation6 + $0x960] sm:$0xff] }
 0x23a   : > { %8677 = vmatpush1.bf16.msra.mxu0 %v12621_v24  ;;  %v2190_v24 = vadd.f32 %v15001_v46, %v727_v10 }
 0x23b   : > { %9005 = vmatpush1.bf16.msra.mxu1 %v12623_v25  ;;  %8678 = vmatprep.subr.bf16.mxu0 %v12630_v26  ;;  %v2688_v25 = vld [vmem:[#allocation6 + $0x808] sm:$0xff] }
 0x23c   : > { %9006 = vmatprep.subr.bf16.mxu1 %v12632_v27  ;;  %v2692_v26 = vld [vmem:[#allocation6 + $0x828] sm:$0xff]  ;;  %v2401_v27 = vmax.f32 %v2147_v17, 0.0  ;;  %v2404_v30 = vmax.f32 %v2190_v24, 0.0  ;;  %v2739_v24 = vld [vmem:[#allocation6 + $0x9a0] sm:$0xff] }
 0x23d   : > { %v12680_v14 = vcombine.high %v2688_v25, %v2692_v26  ;;  %v12679_v46 = vcombine.low %v2688_v25, %v2692_v26  ;;  %v2732_v17 = vld [vmem:[#allocation6 + $0x968] sm:$0xff] }
 0x23e   : > { %8679 = vmatpush1.bf16.msra.mxu0 %v12629_v33  ;;  %v2699_v33 = vld [vmem:[#allocation6 + $0x860] sm:$0xff]  ;;  %v15019_v37 = vpack.c.bf16 %v2401_v27, %v2401_v27  ;;  %v2736_v25 = vld [vmem:[#allocation6 + $0x988] sm:$0xff] }
 0x23f   : > { %9007 = vmatpush1.bf16.msra.mxu1 %v12631_v34  ;;  %8680 = vmatprep.subr.bf16.mxu0 %v12638_v35  ;;  %v12677_v34 = vcombine.low %v2687_v53, %v2691_v23  ;;  %v2696_v35 = vld [vmem:[#allocation6 + $0x848] sm:$0xff]  ;;  %v12686_v38 = vcombine.high %v2695_v32, %v2699_v33  ;;  %v12685_v45 = vcombine.low %v2695_v32, %v2699_v33  ;;  %v2735_v23 = vld [vmem:[#allocation6 + $0x980] sm:$0xff] }
 0x240   : > { %9008 = vmatprep.subr.bf16.mxu1 %v12640_v36  ;;  %v2700_v36 = vld [vmem:[#allocation6 + $0x868] sm:$0xff]  ;;  %v2747_v32 = vld [vmem:[#allocation6 + $0x9e0] sm:$0xff] }
 0x241   : > { %v12687_v47 = vcombine.low %v2696_v35, %v2700_v36  ;;  %v2740_v26 = vld [vmem:[#allocation6 + $0x9a8] sm:$0xff] }
 0x242   : > { %8681 = vmatpush1.bf16.msra.mxu0 %v12637_v41  ;;  %v15021_v41 = vpack.c.bf16 %v2404_v30, %v2404_v30  ;;  %v2743_v30 = vld [vmem:[#allocation6 + $0x9c0] sm:$0xff] }
 0x243   : > { %9009 = vmatpush1.bf16.msra.mxu1 %v12639_v42  ;;  %8682 = vmatprep.subr.bf16.mxu0 %v12646_v12  ;;  %v12688_v42 = vcombine.high %v2696_v35, %v2700_v36  ;;  %v2704_v12 = vld [vmem:[#allocation6 + $0x888] sm:$0xff] }
 0x244   : > { %9010 = vmatprep.subr.bf16.mxu1 %v12648_v44  ;;  %v2708_v44 = vld [vmem:[#allocation6 + $0x8a8] sm:$0xff] }
 0x245   : > { %v12696_v49 = vcombine.high %v2704_v12, %v2708_v44  ;;  %v12695_v60 = vcombine.low %v2704_v12, %v2708_v44  ;;  %v2748_v35 = vld [vmem:[#allocation6 + $0x9e8] sm:$0xff]  ;;  %v12734_v12 = vcombine.high %v2743_v30, %v2747_v32 }
 0x246   : > { %8683 = vmatpush1.bf16.msra.mxu0 %v12645_v50  ;;  %v2711_v50 = vld [vmem:[#allocation6 + $0x8c0] sm:$0xff] }
 0x247   : > { %9011 = vmatpush1.bf16.msra.mxu1 %v12647_v54  ;;  %8684 = vmatprep.subr.bf16.mxu0 %v12654_v20  ;;  %v2715_v54 = vld [vmem:[#allocation6 + $0x8e0] sm:$0xff]  ;;  %v2712_v20 = vld [vmem:[#allocation6 + $0x8c8] sm:$0xff] }
 0x248   : > { %9012 = vmatprep.subr.bf16.mxu1 %v12656_v56  ;;  %v2716_v56 = vld [vmem:[#allocation6 + $0x8e8] sm:$0xff]  ;;  %v12702_v0 = vcombine.high %v2711_v50, %v2715_v54 }
 0x249   : > { %v12704_v1 = vcombine.high %v2712_v20, %v2716_v56  ;;  %v12703_v7 = vcombine.low %v2712_v20, %v2716_v56  ;;  %v12733_v20 = vcombine.low %v2743_v30, %v2747_v32  ;;  %v2784_v30 = vld [vmem:[#allocation6 + $0xb08] sm:$0xff] }
 0x24a   : > { %8685 = vmatpush1.bf16.msra.mxu0 %v12653_v2  ;;  %v2719_v2 = vld [vmem:[#allocation6 + $0x900] sm:$0xff]  ;;  %v2788_v32 = vld [vmem:[#allocation6 + $0xb28] sm:$0xff] }
 0x24b   : > { %9013 = vmatpush1.bf16.msra.mxu1 %v12655_v4  ;;  %8686 = vmatprep.subr.bf16.mxu0 %v12662_v5  ;;  %v2720_v4 = vld [vmem:[#allocation6 + $0x908] sm:$0xff]  ;;  %v12710_v9 = vcombine.high %v2719_v2, %v2723_v3 }
 0x24c   : > { %9014 = vmatprep.subr.bf16.mxu1 %v12664_v6  ;;  %v2724_v5 = vld [vmem:[#allocation6 + $0x928] sm:$0xff]  ;;  %v12701_v6 = vcombine.low %v2711_v50, %v2715_v54 }
 0x24d   : > { %v12712_v10 = vcombine.high %v2720_v4, %v2724_v5  ;;  %v2752_v50 = vld [vmem:[#allocation6 + $0xa08] sm:$0xff] }
 0x24e   : > { %8687 = vmatpush1.bf16.msra.mxu0 %v12661_v16  ;;  %v2728_v16 = vld [vmem:[#allocation6 + $0x948] sm:$0xff] }
 0x24f   : > { %9015 = vmatpush1.bf16.msra.mxu1 %v12663_v18  ;;  %8688 = vmatprep.subr.bf16.mxu0 %v12670_v19  ;;  %v12709_v18 = vcombine.low %v2719_v2, %v2723_v3  ;;  %v12711_v19 = vcombine.low %v2720_v4, %v2724_v5  ;;  %v12720_v53 = vcombine.high %v2728_v16, %v2732_v17  ;;  %v2756_v54 = vld [vmem:[#allocation6 + $0xa28] sm:$0xff] }
 0x250   : > { %9016 = vmatprep.subr.bf16.mxu1 %v12672_v21  ;;  %v12718_v21 = vcombine.high %v2727_v11, %v2731_v13  ;;  %v12719_v27 = vcombine.low %v2728_v16, %v2732_v17  ;;  %v2760_v2 = vld [vmem:[#allocation6 + $0xa48] sm:$0xff]  ;;  %v12743_v5 = vcombine.low %v2752_v50, %v2756_v54 }
 0x251   : > { %v2764_v3 = vld [vmem:[#allocation6 + $0xa68] sm:$0xff] }
 0x252   : > { %8689 = vmatpush1.bf16.msra.mxu0 %v12669_v61  ;;  %v12717_v61 = vcombine.low %v2727_v11, %v2731_v13  ;;  %v2768_v11 = vld [vmem:[#allocation6 + $0xa88] sm:$0xff]  ;;  %v12751_v17 = vcombine.low %v2760_v2, %v2764_v3 }
 0x253   : > { %9017 = vmatpush1.bf16.msra.mxu1 %v12671_v28  ;;  %8699 = vmatprep.subr.bf16.mxu0 %v12678_v29  ;;  %v12726_v28 = vcombine.high %v2735_v23, %v2739_v24  ;;  %v2772_v13 = vld [vmem:[#allocation6 + $0xaa8] sm:$0xff] }
 0x254   : > { %9027 = vmatprep.subr.bf16.mxu1 %v12680_v14  ;;  %v12728_v14 = vcombine.high %v2736_v25, %v2740_v26 }
 0x255   : > { %8691 = vmatmul.mubr.bf16.vlgmr.msra.gmra.mrb[16].mxu0 %v15019_v37 }
 0x256   : > { %9019 = vmatmul.mubr.bf16.vlgmr.msra.gmra.mrb[16].mxu1 %v15019_v37  ;;  %8700 = vmatpush1.bf16.msra.mxu0 %v12677_v34  ;;  %v2744_v34 = vld [vmem:[#allocation6 + $0x9c8] sm:$0xff] }
 0x257   : > { %8731 = vmatprep.mubr.bf16.mxu0 %v15021_v41  ;;  %9028 = vmatpush1.bf16.msra.mxu1 %v12679_v46  ;;  %v12735_v56 = vcombine.low %v2744_v34, %v2748_v35 }
 0x258   : > { %9059 = vmatprep.mubr.bf16.mxu1 %v15021_v41  ;;  %8701 = vmatprep.subr.bf16.mxu0 %v12686_v38  ;;  %v12725_v38 = vcombine.low %v2735_v23, %v2739_v24  ;;  %v2776_v23 = vld [vmem:[#allocation6 + $0xac8] sm:$0xff] }
 0x259   : > { %9029 = vmatprep.subr.bf16.mxu1 %v12688_v42  ;;  %v12727_v42 = vcombine.low %v2736_v25, %v2740_v26  ;;  %v2780_v24 = vld [vmem:[#allocation6 + $0xae8] sm:$0xff]  ;;  %v12759_v26 = vcombine.low %v2768_v11, %v2772_v13 }
 0x25a   : > { %8702 = vmatpush1.bf16.msra.mxu0 %v12685_v45  ;;  %v12736_v45 = vcombine.high %v2744_v34, %v2748_v35  ;;  %v12767_v35 = vcombine.low %v2776_v23, %v2780_v24 }
 0x25b   : > { %9030 = vmatpush1.bf16.msra.mxu1 %v12687_v47  ;;  %8703 = vmatprep.subr.bf16.mxu0 %v12694_v8  ;;  %v2751_v47 = vld [vmem:[#allocation6 + $0xa00] sm:$0xff] }
 0x25c   : > { %9031 = vmatprep.subr.bf16.mxu1 %v12696_v49  ;;  %v2755_v8 = vld [vmem:[#allocation6 + $0xa20] sm:$0xff] }
 0x25d   : > { %v12741_v4 = vcombine.low %v2751_v47, %v2755_v8 }
 0x25e   : > { %8704 = vmatpush1.bf16.msra.mxu0 %v12693_v58  ;;  %v12742_v58 = vcombine.high %v2751_v47, %v2755_v8  ;;  %v15036_v47 = vsub.s32 4, %v14960_v57  ;;  %v12775_v8 = vcombine.low %v2784_v30, %v2788_v32 }
 0x25f   : > { %9032 = vmatpush1.bf16.msra.mxu1 %v12695_v60  ;;  %8705 = vmatprep.subr.bf16.mxu0 %v12702_v0  ;;  %v12744_v60 = vcombine.high %v2752_v50, %v2756_v54  ;;  %v2759_v0 = vld [vmem:[#allocation6 + $0xa40] sm:$0xff] }
 0x260   : > { %9033 = vmatprep.subr.bf16.mxu1 %v12704_v1  ;;  %v2763_v1 = vld [vmem:[#allocation6 + $0xa60] sm:$0xff] }
 0x261   : > { %v12749_v16 = vcombine.low %v2759_v0, %v2763_v1  ;;  %v2799_v54 = vld [vmem:[#allocation6 + $0xb80] sm:$0xff] }
 0x262   : > { %8706 = vmatpush1.bf16.msra.mxu0 %v12701_v6  ;;  %v12750_v6 = vcombine.high %v2759_v0, %v2763_v1  ;;  %v15041_v1 = vld [vmem:[#allocation4] sm:$0xff] }
 0x263   : > { %9034 = vmatpush1.bf16.msra.mxu1 %v12703_v7  ;;  %8707 = vmatprep.subr.bf16.mxu0 %v12710_v9  ;;  %v12752_v7 = vcombine.high %v2760_v2, %v2764_v3  ;;  %v2767_v9 = vld [vmem:[#allocation6 + $0xa80] sm:$0xff]  ;;  %v723_v2 = vrot.slane %v15041_v1, %v15036_v47 }
 0x264   : > { %9035 = vmatprep.subr.bf16.mxu1 %v12712_v10  ;;  %v2771_v10 = vld [vmem:[#allocation6 + $0xaa0] sm:$0xff] }
 0x265   : > { %v12757_v25 = vcombine.low %v2767_v9, %v2771_v10 }
 0x266   : > { %8708 = vmatpush1.bf16.msra.mxu0 %v12709_v18  ;;  %v12758_v18 = vcombine.high %v2767_v9, %v2771_v10  ;;  %v2808_v10 = vld [vmem:[#allocation6 + $0xbc8] sm:$0xff] }
 0x267   : > { %9036 = vmatpush1.bf16.msra.mxu1 %v12711_v19  ;;  %8709 = vmatprep.subr.bf16.mxu0 %v12718_v21  ;;  %v12760_v19 = vcombine.high %v2768_v11, %v2772_v13  ;;  %v2775_v21 = vld [vmem:[#allocation6 + $0xac0] sm:$0xff]  ;;  %v2812_v11 = vld [vmem:[#allocation6 + $0xbe8] sm:$0xff] }
 0x268   : > { %v15027_v29 = vpop.f32.mrb[8].mxu0  ;;  %9037 = vmatprep.subr.bf16.mxu1 %v12720_v53  ;;  %v15031_v36 = vpop.f32.mrb[8].mxu1  ;;  %v2779_v53 = vld [vmem:[#allocation6 + $0xae0] sm:$0xff] }
 0x269   : > { %v15029_v33 = vpop.f32.mrb[9].mxu0  ;;  %v15033_v39 = vpop.f32.mrb[9].mxu1  ;;  %v12765_v34 = vcombine.low %v2775_v21, %v2779_v53 }
 0x26a   : > { %v2273_v46 = vpop.f32.mrb[10].mxu0  ;;  %8710 = vmatpush1.bf16.msra.mxu0 %v12717_v61  ;;  %v2314_v44 = vpop.f32.mrb[10].mxu1  ;;  %v12766_v61 = vcombine.high %v2775_v21, %v2779_v53  ;;  %v2815_v21 = vld [vmem:[#allocation6 + $0xc00] sm:$0xff] }
 0x26b   : > { %9038 = vmatpush1.bf16.msra.mxu1 %v12719_v27  ;;  %v2274_v40 = vpop.f32.mrb[11].mxu0  ;;  %8711 = vmatprep.subr.bf16.mxu0 %v12726_v28  ;;  %v2315_v49 = vpop.f32.mrb[11].mxu1  ;;  %v12768_v27 = vcombine.high %v2776_v23, %v2780_v24  ;;  %v2783_v28 = vld [vmem:[#allocation6 + $0xb00] sm:$0xff]  ;;  %v2796_v44 = vld [vmem:[#allocation6 + $0xb68] sm:$0xff] }
 0x26c   : > { %9039 = vmatprep.subr.bf16.mxu1 %v12728_v14  ;;  %v2787_v14 = vld [vmem:[#allocation6 + $0xb20] sm:$0xff]  ;;  %v2816_v24 = vld [vmem:[#allocation6 + $0xc08] sm:$0xff] }
 0x26d   : > { %v12774_v46 = vcombine.high %v2783_v28, %v2787_v14  ;;  %v2791_v40 = vld [vmem:[#allocation6 + $0xb40] sm:$0xff] }
 0x26e   : > { %8712 = vmatpush1.bf16.msra.mxu0 %v12725_v38  ;;  %v12776_v38 = vcombine.high %v2784_v30, %v2788_v32  ;;  %v2819_v53 = vld [vmem:[#allocation6 + $0xc20] sm:$0xff] }
 0x26f   : > { %9040 = vmatpush1.bf16.msra.mxu1 %v12727_v42  ;;  %8713 = vmatprep.subr.bf16.mxu0 %v12734_v12  ;;  %v2795_v42 = vld [vmem:[#allocation6 + $0xb60] sm:$0xff]  ;;  %v2792_v12 = vld [vmem:[#allocation6 + $0xb48] sm:$0xff] }
 0x270   : > { %9041 = vmatprep.subr.bf16.mxu1 %v12736_v45  ;;  %v12773_v45 = vcombine.low %v2783_v28, %v2787_v14  ;;  %v12782_v49 = vcombine.high %v2791_v40, %v2795_v42  ;;  %v12784_v50 = vcombine.high %v2792_v12, %v2796_v44  ;;  %v12781_v0 = vcombine.low %v2791_v40, %v2795_v42  ;;  %v2823_v30 = vld [vmem:[#allocation6 + $0xc40] sm:$0xff] }
 0x271   : > { %v12783_v3 = vcombine.low %v2792_v12, %v2796_v44  ;;  %v12806_v28 = vcombine.high %v2815_v21, %v2819_v53  ;;  %v2827_v32 = vld [vmem:[#allocation6 + $0xc60] sm:$0xff] }
 0x272   : > { %8714 = vmatpush1.bf16.msra.mxu0 %v12733_v20  ;;  %v2803_v20 = vld [vmem:[#allocation6 + $0xba0] sm:$0xff]  ;;  %v12814_v40 = vcombine.high %v2823_v30, %v2827_v32 }
 0x273   : > { %9042 = vmatpush1.bf16.msra.mxu1 %v12735_v56  ;;  %8715 = vmatprep.subr.bf16.mxu0 %v12742_v58  ;;  %v15039_v56 = vsub.s32 7, %v14960_v57  ;;  %v2800_v58 = vld [vmem:[#allocation6 + $0xb88] sm:$0xff]  ;;  %v12789_v13 = vcombine.low %v2799_v54, %v2803_v20  ;;  %v2831_v42 = vld [vmem:[#allocation6 + $0xc80] sm:$0xff] }
 0x274   : > { %9043 = vmatprep.subr.bf16.mxu1 %v12744_v60  ;;  %v2804_v60 = vld [vmem:[#allocation6 + $0xba8] sm:$0xff]  ;;  %v2835_v12 = vld [vmem:[#allocation6 + $0xca0] sm:$0xff] }
 0x275   : > { %v735_v9 = vrot.slane %v15041_v1, %v15039_v56 }
 0x276   : > { %8716 = vmatpush1.bf16.msra.mxu0 %v12741_v4  ;;  %v12790_v4 = vcombine.high %v2799_v54, %v2803_v20  ;;  %v12822_v20 = vcombine.high %v2831_v42, %v2835_v12 }
 0x277   : > { %9044 = vmatpush1.bf16.msra.mxu1 %v12743_v5  ;;  %8717 = vmatprep.subr.bf16.mxu0 %v12750_v6  ;;  %v12792_v5 = vcombine.high %v2800_v58, %v2804_v60  ;;  %v2807_v6 = vld [vmem:[#allocation6 + $0xbc0] sm:$0xff]  ;;  %v2231_v23 = vadd.f32 %v15005_v51, %v735_v9 }
 0x278   : > { %9045 = vmatprep.subr.bf16.mxu1 %v12752_v7  ;;  %v2811_v7 = vld [vmem:[#allocation6 + $0xbe0] sm:$0xff] }
 0x279   : > { %v2406_v14 = vmax.f32 %v2231_v23, 0.0  ;;  %v2847_v9 = vld [vmem:[#allocation6 + $0xd00] sm:$0xff]  ;;  %v2856_v23 = vld [vmem:[#allocation6 + $0xd48] sm:$0xff] }
 0x27a   : > { %8718 = vmatpush1.bf16.msra.mxu0 %v12749_v16  ;;  %v2188_v16 = vadd.f32 %v14999_v43, %v723_v2  ;;  %v2840_v2 = vld [vmem:[#allocation6 + $0xcc8] sm:$0xff] }
 0x27b   : > { %9046 = vmatpush1.bf16.msra.mxu1 %v12751_v17  ;;  %8719 = vmatprep.subr.bf16.mxu0 %v12758_v18  ;;  %v12791_v17 = vcombine.low %v2800_v58, %v2804_v60  ;;  %v12798_v18 = vcombine.high %v2807_v6, %v2811_v7  ;;  %v15051_v44 = vpack.c.bf16 %v2406_v14, %v2406_v14  ;;  %v2839_v60 = vld [vmem:[#allocation6 + $0xcc0] sm:$0xff]  ;;  %v2864_v14 = vld [vmem:[#allocation6 + $0xd88] sm:$0xff] }
 0x27c   : > { %9047 = vmatprep.subr.bf16.mxu1 %v12760_v19  ;;  %v12800_v19 = vcombine.high %v2808_v10, %v2812_v11 }
 0x27e   : > { %8720 = vmatpush1.bf16.msra.mxu0 %v12757_v25  ;;  %v2820_v25 = vld [vmem:[#allocation6 + $0xc28] sm:$0xff] }
 0x27f   : > { %9048 = vmatpush1.bf16.msra.mxu1 %v12759_v26  ;;  %8721 = vmatprep.subr.bf16.mxu0 %v12766_v61  ;;  %v12797_v26 = vcombine.low %v2807_v6, %v2811_v7  ;;  %v2403_v61 = vmax.f32 %v2188_v16, 0.0  ;;  %v12808_v43 = vcombine.high %v2816_v24, %v2820_v25  ;;  %v12807_v51 = vcombine.low %v2816_v24, %v2820_v25  ;;  %v2860_v24 = vld [vmem:[#allocation6 + $0xd68] sm:$0xff] }
 0x280   : > { %9049 = vmatprep.subr.bf16.mxu1 %v12768_v27  ;;  %v12799_v27 = vcombine.low %v2808_v10, %v2812_v11  ;;  %v2851_v10 = vld [vmem:[#allocation6 + $0xd20] sm:$0xff]  ;;  %v2848_v11 = vld [vmem:[#allocation6 + $0xd08] sm:$0xff] }
 0x281   : > { %v12837_v25 = vcombine.low %v2847_v9, %v2851_v10 }
 0x282   : > { %8722 = vmatpush1.bf16.msra.mxu0 %v12765_v34  ;;  %v12805_v34 = vcombine.low %v2815_v21, %v2819_v53  ;;  %v2855_v21 = vld [vmem:[#allocation6 + $0xd40] sm:$0xff] }
 0x283   : > { %9050 = vmatpush1.bf16.msra.mxu1 %v12767_v35  ;;  %8723 = vmatprep.subr.bf16.mxu0 %v12774_v46  ;;  %v2824_v35 = vld [vmem:[#allocation6 + $0xc48] sm:$0xff]  ;;  %v2859_v53 = vld [vmem:[#allocation6 + $0xd60] sm:$0xff] }
 0x284   : > { %9051 = vmatprep.subr.bf16.mxu1 %v12776_v38  ;;  %v2828_v46 = vld [vmem:[#allocation6 + $0xc68] sm:$0xff]  ;;  %v15049_v38 = vpack.c.bf16 %v2403_v61, %v2403_v61  ;;  %v12846_v61 = vcombine.high %v2855_v21, %v2859_v53 }
 0x285   : > { %v12815_v54 = vcombine.low %v2824_v35, %v2828_v46 }
 0x286   : > { %8724 = vmatpush1.bf16.msra.mxu0 %v12773_v45  ;;  %v12816_v45 = vcombine.high %v2824_v35, %v2828_v46 }
 0x287   : > { %9052 = vmatpush1.bf16.msra.mxu1 %v12775_v8  ;;  %8725 = vmatprep.subr.bf16.mxu0 %v12782_v49  ;;  %v2832_v8 = vld [vmem:[#allocation6 + $0xc88] sm:$0xff] }
 0x288   : > { %9053 = vmatprep.subr.bf16.mxu1 %v12784_v50  ;;  %v2836_v49 = vld [vmem:[#allocation6 + $0xca8] sm:$0xff]  ;;  %v12813_v50 = vcombine.low %v2823_v30, %v2827_v32  ;;  %v12845_v32 = vcombine.low %v2855_v21, %v2859_v53 }
 0x289   : > { %v12824_v58 = vcombine.high %v2832_v8, %v2836_v49  ;;  %v2868_v30 = vld [vmem:[#allocation6 + $0xda8] sm:$0xff] }
 0x28a   : > { %8726 = vmatpush1.bf16.msra.mxu0 %v12781_v0  ;;  %v2843_v0 = vld [vmem:[#allocation6 + $0xce0] sm:$0xff]  ;;  %v2892_v21 = vld [vmem:[#allocation6 + $0xe68] sm:$0xff] }
 0x28b   : > { %9054 = vmatpush1.bf16.msra.mxu1 %v12783_v3  ;;  %8727 = vmatprep.subr.bf16.mxu0 %v12790_v4  ;;  %v2844_v3 = vld [vmem:[#allocation6 + $0xce8] sm:$0xff]  ;;  %v12821_v4 = vcombine.low %v2831_v42, %v2835_v12  ;;  %v12830_v6 = vcombine.high %v2839_v60, %v2843_v0  ;;  %v12829_v16 = vcombine.low %v2839_v60, %v2843_v0  ;;  %v2875_v42 = vld [vmem:[#allocation6 + $0xde0] sm:$0xff] }
 0x28c   : > { %9055 = vmatprep.subr.bf16.mxu1 %v12792_v5  ;;  %v12823_v5 = vcombine.low %v2832_v8, %v2836_v49  ;;  %v12832_v7 = vcombine.high %v2840_v2, %v2844_v3  ;;  %v2876_v8 = vld [vmem:[#allocation6 + $0xde8] sm:$0xff]  ;;  %v12855_v60 = vcombine.low %v2864_v14, %v2868_v30 }
 0x28e   : > { %8728 = vmatpush1.bf16.msra.mxu0 %v12789_v13  ;;  %v2852_v13 = vld [vmem:[#allocation6 + $0xd28] sm:$0xff] }
 0x28f   : > { %9056 = vmatpush1.bf16.msra.mxu1 %v12791_v17  ;;  %8729 = vmatprep.subr.bf16.mxu0 %v12798_v18  ;;  %v12831_v17 = vcombine.low %v2840_v2, %v2844_v3  ;;  %v12838_v18 = vcombine.high %v2847_v9, %v2851_v10  ;;  %v2884_v9 = vld [vmem:[#allocation6 + $0xe28] sm:$0xff] }
 0x290   : > { %9057 = vmatprep.subr.bf16.mxu1 %v12800_v19  ;;  %v12840_v19 = vcombine.high %v2848_v11, %v2852_v13 }
 0x292   : > { %8730 = vmatpush1.bf16.msra.mxu0 %v12797_v26  ;;  %v12839_v26 = vcombine.low %v2848_v11, %v2852_v13 }
 0x293   : > { %9058 = vmatpush1.bf16.msra.mxu1 %v12799_v27  ;;  %8740 = vmatprep.subr.bf16.mxu0 %v12806_v28  ;;  %v12848_v27 = vcombine.high %v2856_v23, %v2860_v24  ;;  %v2863_v28 = vld [vmem:[#allocation6 + $0xd80] sm:$0xff] }
 0x294   : > { %9068 = vmatprep.subr.bf16.mxu1 %v12808_v43  ;;  %v2867_v43 = vld [vmem:[#allocation6 + $0xda0] sm:$0xff] }
 0x295   : > { %8732 = vmatmul.mubr.bf16.vlgmr.msra.gmra.mrb[16].mxu0 %v15049_v38  ;;  %v12854_v35 = vcombine.high %v2863_v28, %v2867_v43 }
 0x296   : > { %9060 = vmatmul.mubr.bf16.vlgmr.msra.gmra.mrb[16].mxu1 %v15049_v38  ;;  %8741 = vmatpush1.bf16.msra.mxu0 %v12805_v34  ;;  %v12847_v34 = vcombine.low %v2856_v23, %v2860_v24 }
 0x297   : > { %8772 = vmatprep.mubr.bf16.mxu0 %v15051_v44  ;;  %9069 = vmatpush1.bf16.msra.mxu1 %v12807_v51  ;;  %v12856_v51 = vcombine.high %v2864_v14, %v2868_v30 }
 0x298   : > { %9100 = vmatprep.mubr.bf16.mxu1 %v15051_v44  ;;  %8742 = vmatprep.subr.bf16.mxu0 %v12814_v40  ;;  %v2871_v40 = vld [vmem:[#allocation6 + $0xdc0] sm:$0xff] }
 0x299   : > { %9070 = vmatprep.subr.bf16.mxu1 %v12816_v45  ;;  %v2872_v45 = vld [vmem:[#allocation6 + $0xdc8] sm:$0xff]  ;;  %v12862_v0 = vcombine.high %v2871_v40, %v2875_v42  ;;  %v12861_v10 = vcombine.low %v2871_v40, %v2875_v42 }
 0x29a   : > { %8743 = vmatpush1.bf16.msra.mxu0 %v12813_v50  ;;  %v12864_v3 = vcombine.high %v2872_v45, %v2876_v8  ;;  %v12863_v11 = vcombine.low %v2872_v45, %v2876_v8  ;;  %v2908_v40 = vld [vmem:[#allocation6 + $0xee8] sm:$0xff] }
 0x29b   : > { %9071 = vmatpush1.bf16.msra.mxu1 %v12815_v54  ;;  %8744 = vmatprep.subr.bf16.mxu0 %v12822_v20  ;;  %v12853_v54 = vcombine.low %v2863_v28, %v2867_v43  ;;  %v2900_v28 = vld [vmem:[#allocation6 + $0xea8] sm:$0xff] }
 0x29c   : > { %9072 = vmatprep.subr.bf16.mxu1 %v12824_v58 }
 0x29e   : > { %8745 = vmatpush1.bf16.msra.mxu0 %v12821_v4  ;;  %v2879_v4 = vld [vmem:[#allocation6 + $0xe00] sm:$0xff] }
 0x29f   : > { %9073 = vmatpush1.bf16.msra.mxu1 %v12823_v5  ;;  %8746 = vmatprep.subr.bf16.mxu0 %v12830_v6  ;;  %v2883_v5 = vld [vmem:[#allocation6 + $0xe20] sm:$0xff] }
 0x2a0   : > { %9074 = vmatprep.subr.bf16.mxu1 %v12832_v7  ;;  %v2880_v7 = vld [vmem:[#allocation6 + $0xe08] sm:$0xff]  ;;  %v12870_v13 = vcombine.high %v2879_v4, %v2883_v5  ;;  %v12869_v53 = vcombine.low %v2879_v4, %v2883_v5 }
 0x2a1   : > { %v12871_v23 = vcombine.low %v2880_v7, %v2884_v9 }
 0x2a2   : > { %8747 = vmatpush1.bf16.msra.mxu0 %v12829_v16  ;;  %v12872_v16 = vcombine.high %v2880_v7, %v2884_v9  ;;  %v2923_v7 = vld [vmem:[#allocation6 + $0xf60] sm:$0xff]  ;;  %v2920_v9 = vld [vmem:[#allocation6 + $0xf48] sm:$0xff] }
 0x2a3   : > { %9075 = vmatpush1.bf16.msra.mxu1 %v12831_v17  ;;  %8748 = vmatprep.subr.bf16.mxu0 %v12838_v18  ;;  %v2887_v17 = vld [vmem:[#allocation6 + $0xe40] sm:$0xff] }
 0x2a4   : > { %9076 = vmatprep.subr.bf16.mxu1 %v12840_v19  ;;  %v2891_v18 = vld [vmem:[#allocation6 + $0xe60] sm:$0xff]  ;;  %v2888_v19 = vld [vmem:[#allocation6 + $0xe48] sm:$0xff] }
 0x2a5   : > { %v12878_v24 = vcombine.high %v2887_v17, %v2891_v18  ;;  %v12877_v43 = vcombine.low %v2887_v17, %v2891_v18  ;;  %v12879_v14 = vcombine.low %v2888_v19, %v2892_v21 }
 0x2a6   : > { %8749 = vmatpush1.bf16.msra.mxu0 %v12837_v25  ;;  %v12880_v25 = vcombine.high %v2888_v19, %v2892_v21  ;;  %v2927_v19 = vld [vmem:[#allocation6 + $0xf80] sm:$0xff] }
 0x2a7   : > { %9077 = vmatpush1.bf16.msra.mxu1 %v12839_v26  ;;  %8750 = vmatprep.subr.bf16.mxu0 %v12846_v61  ;;  %v2895_v26 = vld [vmem:[#allocation6 + $0xe80] sm:$0xff] }
 0x2a8   : > { %v15057_v46 = vpop.f32.mrb[12].mxu0  ;;  %9078 = vmatprep.subr.bf16.mxu1 %v12848_v27  ;;  %v15061_v49 = vpop.f32.mrb[12].mxu1  ;;  %v2899_v61 = vld [vmem:[#allocation6 + $0xea0] sm:$0xff]  ;;  %v2896_v27 = vld [vmem:[#allocation6 + $0xe88] sm:$0xff] }
 0x2a9   : > { %v15059_v12 = vpop.f32.mrb[13].mxu0  ;;  %v15063_v20 = vpop.f32.mrb[13].mxu1  ;;  %v12886_v30 = vcombine.high %v2895_v26, %v2899_v61  ;;  %v12885_v42 = vcombine.low %v2895_v26, %v2899_v61  ;;  %v12887_v45 = vcombine.low %v2896_v27, %v2900_v28  ;;  %v2931_v21 = vld [vmem:[#allocation6 + $0xfa0] sm:$0xff] }
 0x2aa   : > { %v2355_v50 = vpop.f32.mrb[14].mxu0  ;;  %8751 = vmatpush1.bf16.msra.mxu0 %v12845_v32  ;;  %v2396_v2 = vpop.f32.mrb[14].mxu1  ;;  %v12888_v32 = vcombine.high %v2896_v27, %v2900_v28  ;;  %v12918_v61 = vcombine.high %v2927_v19, %v2931_v21  ;;  %v2935_v28 = vld [vmem:[#allocation6 + $0xfc0] sm:$0xff] }
 0x2ab   : > { %9079 = vmatpush1.bf16.msra.mxu1 %v12847_v34  ;;  %v2356_v58 = vpop.f32.mrb[15].mxu0  ;;  %8752 = vmatprep.subr.bf16.mxu0 %v12854_v35  ;;  %v2397_v6 = vpop.f32.mrb[15].mxu1  ;;  %v2903_v34 = vld [vmem:[#allocation6 + $0xec0] sm:$0xff] }
 0x2ac   : > { %9080 = vmatprep.subr.bf16.mxu1 %v12856_v51  ;;  %v2907_v35 = vld [vmem:[#allocation6 + $0xee0] sm:$0xff]  ;;  %v2904_v51 = vld [vmem:[#allocation6 + $0xec8] sm:$0xff] }
 0x2ad   : > { %v12894_v8 = vcombine.high %v2903_v34, %v2907_v35  ;;  %v12896_v50 = vcombine.high %v2904_v51, %v2908_v40  ;;  %v2915_v58 = vld [vmem:[#allocation6 + $0xf20] sm:$0xff]  ;;  %v12893_v2 = vcombine.low %v2903_v34, %v2907_v35  ;;  %v12917_v34 = vcombine.low %v2927_v19, %v2931_v21  ;;  %v2960_v21 = vld [vmem:[#allocation6 + $0x1088] sm:$0xff] }
 0x2ae   : > { %8753 = vmatpush1.bf16.msra.mxu0 %v12853_v54  ;;  %v2911_v54 = vld [vmem:[#allocation6 + $0xf00] sm:$0xff] }
 0x2af   : > { %9081 = vmatpush1.bf16.msra.mxu1 %v12855_v60  ;;  %8754 = vmatprep.subr.bf16.mxu0 %v12862_v0  ;;  %v2912_v60 = vld [vmem:[#allocation6 + $0xf08] sm:$0xff]  ;;  %v12902_v4 = vcombine.high %v2911_v54, %v2915_v58  ;;  %v2919_v6 = vld [vmem:[#allocation6 + $0xf40] sm:$0xff] }
 0x2b0   : > { %9082 = vmatprep.subr.bf16.mxu1 %v12864_v3  ;;  %v2916_v0 = vld [vmem:[#allocation6 + $0xf28] sm:$0xff]  ;;  %v12895_v3 = vcombine.low %v2904_v51, %v2908_v40  ;;  %v12910_v17 = vcombine.high %v2919_v6, %v2923_v7 }
 0x2b1   : > { %v12904_v5 = vcombine.high %v2912_v60, %v2916_v0 }
 0x2b2   : > { %8755 = vmatpush1.bf16.msra.mxu0 %v12861_v10  ;;  %v2924_v10 = vld [vmem:[#allocation6 + $0xf68] sm:$0xff] }
 0x2b3   : > { %9083 = vmatpush1.bf16.msra.mxu1 %v12863_v11  ;;  %8756 = vmatprep.subr.bf16.mxu0 %v12870_v13  ;;  %v12901_v11 = vcombine.low %v2911_v54, %v2915_v58  ;;  %v15066_v13 = vsub.s32 6, %v14960_v57  ;;  %v12912_v18 = vcombine.high %v2920_v9, %v2924_v10  ;;  %v12911_v57 = vcombine.low %v2920_v9, %v2924_v10  ;;  %v2948_v54 = vld [vmem:[#allocation6 + $0x1028] sm:$0xff] }
 0x2b4   : > { %9084 = vmatprep.subr.bf16.mxu1 %v12872_v16  ;;  %v12903_v16 = vcombine.low %v2912_v60, %v2916_v0  ;;  %v2956_v9 = vld [vmem:[#allocation6 + $0x1068] sm:$0xff] }
 0x2b5   : > { %v731_v26 = vrot.slane %v15041_v1, %v15066_v13 }
 0x2b6   : > { %8757 = vmatpush1.bf16.msra.mxu0 %v12869_v53  ;;  %v2928_v53 = vld [vmem:[#allocation6 + $0xf88] sm:$0xff] }
 0x2b7   : > { %9085 = vmatpush1.bf16.msra.mxu1 %v12871_v23  ;;  %8758 = vmatprep.subr.bf16.mxu0 %v12878_v24  ;;  %v2932_v23 = vld [vmem:[#allocation6 + $0xfa8] sm:$0xff]  ;;  %v15068_v24 = vld [vmem:[#allocation4 + $0x8] sm:$0xff]  ;;  %v2229_v35 = vadd.f32 %v15003_v48, %v731_v26 }
 0x2b8   : > { %9086 = vmatprep.subr.bf16.mxu1 %v12880_v25  ;;  %v12909_v25 = vcombine.low %v2919_v6, %v2923_v7  ;;  %v12920_v27 = vcombine.high %v2928_v53, %v2932_v23  ;;  %v12919_v1 = vcombine.low %v2928_v53, %v2932_v23  ;;  %v2952_v7 = vld [vmem:[#allocation6 + $0x1048] sm:$0xff] }
 0x2b9   : > { %v2405_v60 = vmax.f32 %v2229_v35, 0.0  ;;  %v12944_v19 = vcombine.high %v2952_v7, %v2956_v9  ;;  %v2964_v53 = vld [vmem:[#allocation6 + $0x10a8] sm:$0xff]  ;;  %v2975_v35 = vld [vmem:[#allocation6 + $0x1100] sm:$0xff] }
 0x2ba   : > { %8759 = vmatpush1.bf16.msra.mxu0 %v12877_v43  ;;  %v2939_v43 = vld [vmem:[#allocation6 + $0xfe0] sm:$0xff] }
 0x2bb   : > { %9087 = vmatpush1.bf16.msra.mxu1 %v12879_v14  ;;  %8760 = vmatprep.subr.bf16.mxu0 %v12886_v30  ;;  %v743_v14 = vrot.slane %v15068_v24, %v14963_v59  ;;  %v2936_v30 = vld [vmem:[#allocation6 + $0xfc8] sm:$0xff]  ;;  %v12926_v51 = vcombine.high %v2935_v28, %v2939_v43  ;;  %v12925_v58 = vcombine.low %v2935_v28, %v2939_v43 }
 0x2bc   : > { %9088 = vmatprep.subr.bf16.mxu1 %v12888_v32  ;;  %v2940_v32 = vld [vmem:[#allocation6 + $0xfe8] sm:$0xff]  ;;  %v15076_v10 = vpack.c.bf16 %v2405_v60, %v2405_v60 }
 0x2bd   : > { %v12928_v40 = vcombine.high %v2936_v30, %v2940_v32  ;;  %v12927_v0 = vcombine.low %v2936_v30, %v2940_v32  ;;  %v2968_v28 = vld [vmem:[#allocation6 + $0x10c8] sm:$0xff]  ;;  %v12951_v30 = vcombine.low %v2960_v21, %v2964_v53 }
 0x2be   : > { %8761 = vmatpush1.bf16.msra.mxu0 %v12885_v42  ;;  %v2943_v42 = vld [vmem:[#allocation6 + $0x1000] sm:$0xff]  ;;  %v2972_v43 = vld [vmem:[#allocation6 + $0x10e8] sm:$0xff] }
 0x2bf   : > { %9089 = vmatpush1.bf16.msra.mxu1 %v12887_v45  ;;  %8762 = vmatprep.subr.bf16.mxu0 %v12894_v8  ;;  %v2947_v45 = vld [vmem:[#allocation6 + $0x1020] sm:$0xff]  ;;  %v2272_v8 = vadd.f32 %v15029_v33, %v743_v14  ;;  %v2984_v60 = vld [vmem:[#allocation6 + $0x1148] sm:$0xff] }
 0x2c0   : > { %9090 = vmatprep.subr.bf16.mxu1 %v12896_v50  ;;  %v2944_v50 = vld [vmem:[#allocation6 + $0x1008] sm:$0xff]  ;;  %v12933_v6 = vcombine.low %v2943_v42, %v2947_v45 }
 0x2c1   : > { %v12936_v48 = vcombine.high %v2944_v50, %v2948_v54  ;;  %v12935_v33 = vcombine.low %v2944_v50, %v2948_v54  ;;  %v2983_v54 = vld [vmem:[#allocation6 + $0x1140] sm:$0xff] }
 0x2c2   : > { %8763 = vmatpush1.bf16.msra.mxu0 %v12893_v2  ;;  %v12934_v2 = vcombine.high %v2943_v42, %v2947_v45  ;;  %v12959_v45 = vcombine.low %v2968_v28, %v2972_v43 }
 0x2c3   : > { %9091 = vmatpush1.bf16.msra.mxu1 %v12895_v3  ;;  %8764 = vmatprep.subr.bf16.mxu0 %v12902_v4  ;;  %v2408_v3 = vmax.f32 %v2272_v8, 0.0  ;;  %v2951_v4 = vld [vmem:[#allocation6 + $0x1040] sm:$0xff] }
 0x2c4   : > { %9092 = vmatprep.subr.bf16.mxu1 %v12904_v5  ;;  %v2955_v5 = vld [vmem:[#allocation6 + $0x1060] sm:$0xff] }
 0x2c5   : > { %v12941_v23 = vcombine.low %v2951_v4, %v2955_v5 }
 0x2c6   : > { %8765 = vmatpush1.bf16.msra.mxu0 %v12901_v11  ;;  %v12942_v11 = vcombine.high %v2951_v4, %v2955_v5  ;;  %v2991_v5 = vld [vmem:[#allocation6 + $0x1180] sm:$0xff] }
 0x2c7   : > { %9093 = vmatpush1.bf16.msra.mxu1 %v12903_v16  ;;  %8766 = vmatprep.subr.bf16.mxu0 %v12910_v17  ;;  %v2959_v16 = vld [vmem:[#allocation6 + $0x1080] sm:$0xff] }
 0x2c8   : > { %9094 = vmatprep.subr.bf16.mxu1 %v12912_v18  ;;  %v2963_v17 = vld [vmem:[#allocation6 + $0x10a0] sm:$0xff]  ;;  %v15078_v18 = vpack.c.bf16 %v2408_v3, %v2408_v3 }
 0x2c9   : > { %v12950_v26 = vcombine.high %v2959_v16, %v2963_v17  ;;  %v12949_v14 = vcombine.low %v2959_v16, %v2963_v17 }
 0x2ca   : > { %8767 = vmatpush1.bf16.msra.mxu0 %v12909_v25  ;;  %v12943_v25 = vcombine.low %v2952_v7, %v2956_v9  ;;  %v2992_v7 = vld [vmem:[#allocation6 + $0x1188] sm:$0xff] }
 0x2cb   : > { %9095 = vmatpush1.bf16.msra.mxu1 %v12911_v57  ;;  %8768 = vmatprep.subr.bf16.mxu0 %v12918_v61  ;;  %v12952_v57 = vcombine.high %v2960_v21, %v2964_v53  ;;  %v2967_v61 = vld [vmem:[#allocation6 + $0x10c0] sm:$0xff]  ;;  %v2996_v9 = vld [vmem:[#allocation6 + $0x11a8] sm:$0xff] }
 0x2cc   : > { %9096 = vmatprep.subr.bf16.mxu1 %v12920_v27  ;;  %v2971_v27 = vld [vmem:[#allocation6 + $0x10e0] sm:$0xff]  ;;  %v12984_v17 = vcombine.high %v2992_v7, %v2996_v9  ;;  %v3000_v53 = vld [vmem:[#allocation6 + $0x11c8] sm:$0xff] }
 0x2cd   : > { %v12958_v32 = vcombine.high %v2967_v61, %v2971_v27  ;;  %v12957_v42 = vcombine.low %v2967_v61, %v2971_v27  ;;  %v3003_v21 = vld [vmem:[#allocation6 + $0x11e0] sm:$0xff] }
 0x2ce   : > { %8769 = vmatpush1.bf16.msra.mxu0 %v12917_v34  ;;  %v12960_v34 = vcombine.high %v2968_v28, %v2972_v43  ;;  %v3007_v27 = vld [vmem:[#allocation6 + $0x1200] sm:$0xff]  ;;  %v3008_v43 = vld [vmem:[#allocation6 + $0x1208] sm:$0xff] }
 0x2cf   : > { %9097 = vmatpush1.bf16.msra.mxu1 %v12919_v1  ;;  %8770 = vmatprep.subr.bf16.mxu0 %v12926_v51  ;;  %v2979_v1 = vld [vmem:[#allocation6 + $0x1120] sm:$0xff]  ;;  %v2976_v51 = vld [vmem:[#allocation6 + $0x1108] sm:$0xff] }
 0x2d0   : > { %9098 = vmatprep.subr.bf16.mxu1 %v12928_v40  ;;  %v2980_v40 = vld [vmem:[#allocation6 + $0x1128] sm:$0xff]  ;;  %v12966_v8 = vcombine.high %v2975_v35, %v2979_v1  ;;  %v3011_v28 = vld [vmem:[#allocation6 + $0x1220] sm:$0xff] }
 0x2d1   : > { %v12968_v50 = vcombine.high %v2976_v51, %v2980_v40 }
 0x2d2   : > { %8771 = vmatpush1.bf16.msra.mxu0 %v12925_v58  ;;  %v2987_v58 = vld [vmem:[#allocation6 + $0x1160] sm:$0xff] }
 0x2d3   : > { %9099 = vmatpush1.bf16.msra.mxu1 %v12927_v0  ;;  %8781 = vmatprep.subr.bf16.mxu0 %v12934_v2  ;;  %v2988_v0 = vld [vmem:[#allocation6 + $0x1168] sm:$0xff]  ;;  %v12965_v2 = vcombine.low %v2975_v35, %v2979_v1  ;;  %v12974_v3 = vcombine.high %v2983_v54, %v2987_v58  ;;  %v3015_v1 = vld [vmem:[#allocation6 + $0x1240] sm:$0xff] }
 0x2d4   : > { %9109 = vmatprep.subr.bf16.mxu1 %v12936_v48  ;;  %v12967_v48 = vcombine.low %v2976_v51, %v2980_v40  ;;  %v12976_v4 = vcombine.high %v2984_v60, %v2988_v0  ;;  %v3019_v51 = vld [vmem:[#allocation6 + $0x1260] sm:$0xff]  ;;  %v3016_v40 = vld [vmem:[#allocation6 + $0x1248] sm:$0xff] }
 0x2d5   : > { %8773 = vmatmul.mubr.bf16.vlgmr.msra.gmra.mrb[16].mxu0 %v15076_v10 }
 0x2d6   : > { %9101 = vmatmul.mubr.bf16.vlgmr.msra.gmra.mrb[16].mxu1 %v15076_v10  ;;  %8782 = vmatpush1.bf16.msra.mxu0 %v12933_v6  ;;  %v2995_v6 = vld [vmem:[#allocation6 + $0x11a0] sm:$0xff] }
 0x2d7   : > { %8813 = vmatprep.mubr.bf16.mxu0 %v15078_v18  ;;  %9110 = vmatpush1.bf16.msra.mxu1 %v12935_v33  ;;  %v12973_v33 = vcombine.low %v2983_v54, %v2987_v58  ;;  %v12982_v16 = vcombine.high %v2991_v5, %v2995_v6  ;;  %v3023_v58 = vld [vmem:[#allocation6 + $0x1280] sm:$0xff] }
 0x2d8   : > { %9141 = vmatprep.mubr.bf16.mxu1 %v15078_v18  ;;  %8783 = vmatprep.subr.bf16.mxu0 %v12942_v11  ;;  %v12975_v11 = vcombine.low %v2984_v60, %v2988_v0  ;;  %v3027_v60 = vld [vmem:[#allocation6 + $0x12a0] sm:$0xff]  ;;  %v3024_v0 = vld [vmem:[#allocation6 + $0x1288] sm:$0xff] }
 0x2d9   : > { %9111 = vmatprep.subr.bf16.mxu1 %v12944_v19  ;;  %v2999_v19 = vld [vmem:[#allocation6 + $0x11c0] sm:$0xff] }
 0x2da   : > { %8784 = vmatpush1.bf16.msra.mxu0 %v12941_v23  ;;  %v3004_v23 = vld [vmem:[#allocation6 + $0x11e8] sm:$0xff] }
 0x2db   : > { %9112 = vmatpush1.bf16.msra.mxu1 %v12943_v25  ;;  %8785 = vmatprep.subr.bf16.mxu0 %v12950_v26  ;;  %v12981_v25 = vcombine.low %v2991_v5, %v2995_v6  ;;  %v12983_v26 = vcombine.low %v2992_v7, %v2996_v9  ;;  %v12992_v61 = vcombine.high %v3000_v53, %v3004_v23  ;;  %v3031_v6 = vld [vmem:[#allocation6 + $0x12c0] sm:$0xff]  ;;  %v3032_v9 = vld [vmem:[#allocation6 + $0x12c8] sm:$0xff] }
 0x2dc   : > { %9113 = vmatprep.subr.bf16.mxu1 %v12952_v57  ;;  %v12990_v57 = vcombine.high %v2999_v19, %v3003_v21  ;;  %v3035_v7 = vld [vmem:[#allocation6 + $0x12e0] sm:$0xff] }
 0x2de   : > { %8786 = vmatpush1.bf16.msra.mxu0 %v12949_v14  ;;  %v3012_v14 = vld [vmem:[#allocation6 + $0x1228] sm:$0xff] }
 0x2df   : > { %9114 = vmatpush1.bf16.msra.mxu1 %v12951_v30  ;;  %8787 = vmatprep.subr.bf16.mxu0 %v12958_v32  ;;  %v12989_v30 = vcombine.low %v2999_v19, %v3003_v21  ;;  %v12991_v32 = vcombine.low %v3000_v53, %v3004_v23  ;;  %v13000_v35 = vcombine.high %v3008_v43, %v3012_v14  ;;  %v3039_v21 = vld [vmem:[#allocation6 + $0x1300] sm:$0xff]  ;;  %v3040_v23 = vld [vmem:[#allocation6 + $0x1308] sm:$0xff] }
 0x2e0   : > { %9115 = vmatprep.subr.bf16.mxu1 %v12960_v34  ;;  %v12998_v34 = vcombine.high %v3007_v27, %v3011_v28  ;;  %v3043_v53 = vld [vmem:[#allocation6 + $0x1320] sm:$0xff] }
 0x2e2   : > { %8788 = vmatpush1.bf16.msra.mxu0 %v12957_v42  ;;  %v3020_v42 = vld [vmem:[#allocation6 + $0x1268] sm:$0xff] }
 0x2e3   : > { %9116 = vmatpush1.bf16.msra.mxu1 %v12959_v45  ;;  %8789 = vmatprep.subr.bf16.mxu0 %v12966_v8  ;;  %v12997_v45 = vcombine.low %v3007_v27, %v3011_v28  ;;  %v12999_v8 = vcombine.low %v3008_v43, %v3012_v14  ;;  %v13008_v54 = vcombine.high %v3016_v40, %v3020_v42  ;;  %v3047_v28 = vld [vmem:[#allocation6 + $0x1340] sm:$0xff]  ;;  %v3048_v14 = vld [vmem:[#allocation6 + $0x1348] sm:$0xff] }
 0x2e4   : > { %9117 = vmatprep.subr.bf16.mxu1 %v12968_v50  ;;  %v13006_v50 = vcombine.high %v3015_v1, %v3019_v51  ;;  %v3051_v43 = vld [vmem:[#allocation6 + $0x1360] sm:$0xff] }
 0x2e6   : > { %8790 = vmatpush1.bf16.msra.mxu0 %v12965_v2  ;;  %v3028_v2 = vld [vmem:[#allocation6 + $0x12a8] sm:$0xff] }
 0x2e7   : > { %9118 = vmatpush1.bf16.msra.mxu1 %v12967_v48  ;;  %8791 = vmatprep.subr.bf16.mxu0 %v12974_v3  ;;  %v13005_v48 = vcombine.low %v3015_v1, %v3019_v51  ;;  %v13007_v3 = vcombine.low %v3016_v40, %v3020_v42  ;;  %v13016_v5 = vcombine.high %v3024_v0, %v3028_v2  ;;  %v3055_v51 = vld [vmem:[#allocation6 + $0x1380] sm:$0xff]  ;;  %v3056_v42 = vld [vmem:[#allocation6 + $0x1388] sm:$0xff] }
 0x2e8   : > { %9119 = vmatprep.subr.bf16.mxu1 %v12976_v4  ;;  %v13014_v4 = vcombine.high %v3023_v58, %v3027_v60  ;;  %v3059_v40 = vld [vmem:[#allocation6 + $0x13a0] sm:$0xff] }
 0x2ea   : > { %8792 = vmatpush1.bf16.msra.mxu0 %v12973_v33  ;;  %v3036_v33 = vld [vmem:[#allocation6 + $0x12e8] sm:$0xff] }
 0x2eb   : > { %9120 = vmatpush1.bf16.msra.mxu1 %v12975_v11  ;;  %8793 = vmatprep.subr.bf16.mxu0 %v12982_v16  ;;  %v13013_v11 = vcombine.low %v3023_v58, %v3027_v60  ;;  %v13015_v16 = vcombine.low %v3024_v0, %v3028_v2  ;;  %v13024_v19 = vcombine.high %v3032_v9, %v3036_v33  ;;  %v3063_v0 = vld [vmem:[#allocation6 + $0x13c0] sm:$0xff] }
 0x2ec   : > { %9121 = vmatprep.subr.bf16.mxu1 %v12984_v17  ;;  %v13022_v17 = vcombine.high %v3031_v6, %v3035_v7  ;;  %v13046_v58 = vcombine.high %v3055_v51, %v3059_v40  ;;  %v3067_v2 = vld [vmem:[#allocation6 + $0x13e0] sm:$0xff] }
 0x2ee   : > { %8794 = vmatpush1.bf16.msra.mxu0 %v12981_v25  ;;  %v3044_v25 = vld [vmem:[#allocation6 + $0x1328] sm:$0xff] }
 0x2ef   : > { %9122 = vmatpush1.bf16.msra.mxu1 %v12983_v26  ;;  %8795 = vmatprep.subr.bf16.mxu0 %v12990_v57  ;;  %v13021_v26 = vcombine.low %v3031_v6, %v3035_v7  ;;  %v13023_v57 = vcombine.low %v3032_v9, %v3036_v33  ;;  %v13032_v27 = vcombine.high %v3040_v23, %v3044_v25 }
 0x2f0   : > { %9123 = vmatprep.subr.bf16.mxu1 %v12992_v61  ;;  %v13030_v61 = vcombine.high %v3039_v21, %v3043_v53  ;;  %v13054_v9 = vcombine.high %v3063_v0, %v3067_v2 }
 0x2f2   : > { %8796 = vmatpush1.bf16.msra.mxu0 %v12989_v30  ;;  %v3052_v30 = vld [vmem:[#allocation6 + $0x1368] sm:$0xff] }
 0x2f3   : > { %9124 = vmatpush1.bf16.msra.mxu1 %v12991_v32  ;;  %8797 = vmatprep.subr.bf16.mxu0 %v12998_v34  ;;  %v13029_v32 = vcombine.low %v3039_v21, %v3043_v53  ;;  %v13031_v34 = vcombine.low %v3040_v23, %v3044_v25  ;;  %v13040_v1 = vcombine.high %v3048_v14, %v3052_v30  ;;  %v3076_v21 = vld [vmem:[#allocation6 + $0x1428] sm:$0xff] }
 0x2f4   : > { %9125 = vmatprep.subr.bf16.mxu1 %v13000_v35  ;;  %v13038_v35 = vcombine.high %v3047_v28, %v3051_v43  ;;  %v13053_v53 = vcombine.low %v3063_v0, %v3067_v2  ;;  %v3096_v0 = vld [vmem:[#allocation6 + $0x14c8] sm:$0xff] }
 0x2f5   : > { %v3100_v2 = vld [vmem:[#allocation6 + $0x14e8] sm:$0xff] }
 0x2f6   : > { %8798 = vmatpush1.bf16.msra.mxu0 %v12997_v45  ;;  %v3060_v45 = vld [vmem:[#allocation6 + $0x13a8] sm:$0xff] }
 0x2f7   : > { %9126 = vmatpush1.bf16.msra.mxu1 %v12999_v8  ;;  %8799 = vmatprep.subr.bf16.mxu0 %v13006_v50  ;;  %v13037_v8 = vcombine.low %v3047_v28, %v3051_v43  ;;  %v739_v50 = vrot.slane %v15068_v24, %v14980_v15  ;;  %v13048_v60 = vcombine.high %v3056_v42, %v3060_v45  ;;  %v3080_v43 = vld [vmem:[#allocation6 + $0x1448] sm:$0xff] }
 0x2f8   : > { %9127 = vmatprep.subr.bf16.mxu1 %v13008_v54  ;;  %v13039_v54 = vcombine.low %v3048_v14, %v3052_v30  ;;  %v13047_v7 = vcombine.low %v3056_v42, %v3060_v45  ;;  %v3084_v14 = vld [vmem:[#allocation6 + $0x1468] sm:$0xff] }
 0x2f9   : > { %v2270_v6 = vadd.f32 %v15027_v29, %v739_v50  ;;  %v3092_v42 = vld [vmem:[#allocation6 + $0x14a8] sm:$0xff] }
 0x2fa   : > { %8800 = vmatpush1.bf16.msra.mxu0 %v13005_v48  ;;  %v751_v48 = vrot.slane %v15068_v24, %v14983_v22 }
 0x2fb   : > { %9128 = vmatpush1.bf16.msra.mxu1 %v13007_v3  ;;  %8801 = vmatprep.subr.bf16.mxu0 %v13014_v4  ;;  %v3064_v3 = vld [vmem:[#allocation6 + $0x13c8] sm:$0xff]  ;;  %v2407_v23 = vmax.f32 %v2270_v6, 0.0  ;;  %v3103_v6 = vld [vmem:[#allocation6 + $0x1500] sm:$0xff] }
 0x2fc   : > { %9129 = vmatprep.subr.bf16.mxu1 %v13016_v5  ;;  %v3068_v4 = vld [vmem:[#allocation6 + $0x13e8] sm:$0xff]  ;;  %v13045_v5 = vcombine.low %v3055_v51, %v3059_v40  ;;  %v13072_v51 = vcombine.high %v3080_v43, %v3084_v14 }
 0x2fd   : > { %v13056_v33 = vcombine.high %v3064_v3, %v3068_v4  ;;  %v13055_v25 = vcombine.low %v3064_v3, %v3068_v4  ;;  %v15090_v30 = vpack.c.bf16 %v2407_v23, %v2407_v23  ;;  %v3088_v40 = vld [vmem:[#allocation6 + $0x1488] sm:$0xff] }
 0x2fe   : > { %8802 = vmatpush1.bf16.msra.mxu0 %v13013_v11  ;;  %v3071_v11 = vld [vmem:[#allocation6 + $0x1400] sm:$0xff]  ;;  %v13079_v3 = vcombine.low %v3088_v40, %v3092_v42  ;;  %v3112_v23 = vld [vmem:[#allocation6 + $0x1548] sm:$0xff] }
 0x2ff   : > { %9130 = vmatpush1.bf16.msra.mxu1 %v13015_v16  ;;  %8803 = vmatprep.subr.bf16.mxu0 %v13022_v17  ;;  %v3075_v16 = vld [vmem:[#allocation6 + $0x1420] sm:$0xff]  ;;  %v2313_v17 = vadd.f32 %v15033_v39, %v751_v48 }
 0x300   : > { %9131 = vmatprep.subr.bf16.mxu1 %v13024_v19  ;;  %v3072_v19 = vld [vmem:[#allocation6 + $0x1408] sm:$0xff]  ;;  %v13061_v28 = vcombine.low %v3071_v11, %v3075_v16 }
 0x301   : > { %v13064_v29 = vcombine.high %v3072_v19, %v3076_v21  ;;  %v13063_v39 = vcombine.low %v3072_v19, %v3076_v21  ;;  %v3111_v21 = vld [vmem:[#allocation6 + $0x1540] sm:$0xff] }
 0x302   : > { %8804 = vmatpush1.bf16.msra.mxu0 %v13021_v26  ;;  %v13062_v26 = vcombine.high %v3071_v11, %v3075_v16  ;;  %v13087_v16 = vcombine.low %v3096_v0, %v3100_v2 }
 0x303   : > { %9132 = vmatpush1.bf16.msra.mxu1 %v13023_v57  ;;  %8805 = vmatprep.subr.bf16.mxu0 %v13030_v61  ;;  %v2410_v57 = vmax.f32 %v2313_v17, 0.0  ;;  %v3079_v61 = vld [vmem:[#allocation6 + $0x1440] sm:$0xff] }
 0x304   : > { %9133 = vmatprep.subr.bf16.mxu1 %v13032_v27  ;;  %v3083_v27 = vld [vmem:[#allocation6 + $0x1460] sm:$0xff] }
 0x305   : > { %v13069_v45 = vcombine.low %v3079_v61, %v3083_v27 }
 0x306   : > { %8806 = vmatpush1.bf16.msra.mxu0 %v13029_v32  ;;  %v13070_v32 = vcombine.high %v3079_v61, %v3083_v27  ;;  %v3119_v27 = vld [vmem:[#allocation6 + $0x1580] sm:$0xff] }
 0x307   : > { %9134 = vmatpush1.bf16.msra.mxu1 %v13031_v34  ;;  %8807 = vmatprep.subr.bf16.mxu0 %v13038_v35  ;;  %v3087_v34 = vld [vmem:[#allocation6 + $0x1480] sm:$0xff] }
 0x308   : > { %9135 = vmatprep.subr.bf16.mxu1 %v13040_v1  ;;  %v3091_v35 = vld [vmem:[#allocation6 + $0x14a0] sm:$0xff]  ;;  %v15092_v1 = vpack.c.bf16 %v2410_v57, %v2410_v57 }
 0x309   : > { %v13078_v50 = vcombine.high %v3087_v34, %v3091_v35  ;;  %v13077_v48 = vcombine.low %v3087_v34, %v3091_v35 }
 0x30a   : > { %8808 = vmatpush1.bf16.msra.mxu0 %v13037_v8  ;;  %v13071_v8 = vcombine.low %v3080_v43, %v3084_v14  ;;  %v3120_v43 = vld [vmem:[#allocation6 + $0x1588] sm:$0xff] }
 0x30b   : > { %9136 = vmatpush1.bf16.msra.mxu1 %v13039_v54  ;;  %8809 = vmatprep.subr.bf16.mxu0 %v13046_v58  ;;  %v13080_v54 = vcombine.high %v3088_v40, %v3092_v42  ;;  %v3095_v58 = vld [vmem:[#allocation6 + $0x14c0] sm:$0xff]  ;;  %v3124_v14 = vld [vmem:[#allocation6 + $0x15a8] sm:$0xff] }
 0x30c   : > { %9137 = vmatprep.subr.bf16.mxu1 %v13048_v60  ;;  %v3099_v60 = vld [vmem:[#allocation6 + $0x14e0] sm:$0xff]  ;;  %v13112_v35 = vcombine.high %v3120_v43, %v3124_v14  ;;  %v3128_v42 = vld [vmem:[#allocation6 + $0x15c8] sm:$0xff] }
 0x30d   : > { %v13086_v4 = vcombine.high %v3095_v58, %v3099_v60  ;;  %v13085_v11 = vcombine.low %v3095_v58, %v3099_v60  ;;  %v3131_v40 = vld [vmem:[#allocation6 + $0x15e0] sm:$0xff] }
 0x30e   : > { %8810 = vmatpush1.bf16.msra.mxu0 %v13045_v5  ;;  %v13088_v5 = vcombine.high %v3096_v0, %v3100_v2  ;;  %v3135_v60 = vld [vmem:[#allocation6 + $0x1600] sm:$0xff]  ;;  %v3136_v2 = vld [vmem:[#allocation6 + $0x1608] sm:$0xff] }
 0x30f   : > { %9138 = vmatpush1.bf16.msra.mxu1 %v13047_v7  ;;  %8811 = vmatprep.subr.bf16.mxu0 %v13054_v9  ;;  %v3107_v7 = vld [vmem:[#allocation6 + $0x1520] sm:$0xff]  ;;  %v3104_v9 = vld [vmem:[#allocation6 + $0x1508] sm:$0xff] }
 0x310   : > { %9139 = vmatprep.subr.bf16.mxu1 %v13056_v33  ;;  %v3108_v33 = vld [vmem:[#allocation6 + $0x1528] sm:$0xff]  ;;  %v13094_v17 = vcombine.high %v3103_v6, %v3107_v7  ;;  %v3139_v0 = vld [vmem:[#allocation6 + $0x1620] sm:$0xff] }
 0x311   : > { %v13096_v19 = vcombine.high %v3104_v9, %v3108_v33 }
 0x312   : > { %8812 = vmatpush1.bf16.msra.mxu0 %v13053_v53  ;;  %v3115_v53 = vld [vmem:[#allocation6 + $0x1560] sm:$0xff] }
 0x313   : > { %9140 = vmatpush1.bf16.msra.mxu1 %v13055_v25  ;;  %8822 = vmatprep.subr.bf16.mxu0 %v13062_v26  ;;  %v3116_v25 = vld [vmem:[#allocation6 + $0x1568] sm:$0xff]  ;;  %v13093_v26 = vcombine.low %v3103_v6, %v3107_v7  ;;  %v13102_v57 = vcombine.high %v3111_v21, %v3115_v53  ;;  %v3143_v7 = vld [vmem:[#allocation6 + $0x1640] sm:$0xff] }
 0x314   : > { %9150 = vmatprep.subr.bf16.mxu1 %v13064_v29  ;;  %v13095_v29 = vcombine.low %v3104_v9, %v3108_v33  ;;  %v13104_v61 = vcombine.high %v3112_v23, %v3116_v25  ;;  %v3147_v9 = vld [vmem:[#allocation6 + $0x1660] sm:$0xff]  ;;  %v3144_v33 = vld [vmem:[#allocation6 + $0x1648] sm:$0xff] }
 0x315   : > { %8814 = vmatmul.mubr.bf16.vlgmr.msra.gmra.mrb[16].mxu0 %v15090_v30 }
 0x316   : > { %9142 = vmatmul.mubr.bf16.vlgmr.msra.gmra.mrb[16].mxu1 %v15090_v30  ;;  %8823 = vmatpush1.bf16.msra.mxu0 %v13061_v28  ;;  %v3123_v28 = vld [vmem:[#allocation6 + $0x15a0] sm:$0xff] }
 0x317   : > { %8854 = vmatprep.mubr.bf16.mxu0 %v15092_v1  ;;  %9151 = vmatpush1.bf16.msra.mxu1 %v13063_v39  ;;  %v13101_v39 = vcombine.low %v3111_v21, %v3115_v53  ;;  %v13110_v34 = vcombine.high %v3119_v27, %v3123_v28  ;;  %v3151_v53 = vld [vmem:[#allocation6 + $0x1680] sm:$0xff] }
 0x318   : > { %9182 = vmatprep.mubr.bf16.mxu1 %v15092_v1  ;;  %8824 = vmatprep.subr.bf16.mxu0 %v13070_v32  ;;  %v13103_v32 = vcombine.low %v3112_v23, %v3116_v25  ;;  %v3155_v23 = vld [vmem:[#allocation6 + $0x16a0] sm:$0xff]  ;;  %v3152_v25 = vld [vmem:[#allocation6 + $0x1688] sm:$0xff] }
 0x319   : > { %9152 = vmatprep.subr.bf16.mxu1 %v13072_v51  ;;  %v3127_v51 = vld [vmem:[#allocation6 + $0x15c0] sm:$0xff] }
 0x31a   : > { %8825 = vmatpush1.bf16.msra.mxu0 %v13069_v45  ;;  %v3132_v45 = vld [vmem:[#allocation6 + $0x15e8] sm:$0xff] }
 0x31b   : > { %9153 = vmatpush1.bf16.msra.mxu1 %v13071_v8  ;;  %8826 = vmatprep.subr.bf16.mxu0 %v13078_v50  ;;  %v13109_v8 = vcombine.low %v3119_v27, %v3123_v28  ;;  %v13111_v50 = vcombine.low %v3120_v43, %v3124_v14  ;;  %v13120_v58 = vcombine.high %v3128_v42, %v3132_v45  ;;  %v3159_v28 = vld [vmem:[#allocation6 + $0x16c0] sm:$0xff]  ;;  %v3160_v14 = vld [vmem:[#allocation6 + $0x16c8] sm:$0xff] }
 0x31c   : > { %9154 = vmatprep.subr.bf16.mxu1 %v13080_v54  ;;  %v13118_v54 = vcombine.high %v3127_v51, %v3131_v40  ;;  %v3163_v43 = vld [vmem:[#allocation6 + $0x16e0] sm:$0xff] }
 0x31e   : > { %8827 = vmatpush1.bf16.msra.mxu0 %v13077_v48  ;;  %v3140_v48 = vld [vmem:[#allocation6 + $0x1628] sm:$0xff] }
 0x31f   : > { %9155 = vmatpush1.bf16.msra.mxu1 %v13079_v3  ;;  %8828 = vmatprep.subr.bf16.mxu0 %v13086_v4  ;;  %v13117_v3 = vcombine.low %v3127_v51, %v3131_v40  ;;  %v13119_v4 = vcombine.low %v3128_v42, %v3132_v45  ;;  %v13128_v6 = vcombine.high %v3136_v2, %v3140_v48  ;;  %v3167_v40 = vld [vmem:[#allocation6 + $0x1700] sm:$0xff]  ;;  %v3168_v45 = vld [vmem:[#allocation6 + $0x1708] sm:$0xff] }
 0x320   : > { %9156 = vmatprep.subr.bf16.mxu1 %v13088_v5  ;;  %v13126_v5 = vcombine.high %v3135_v60, %v3139_v0  ;;  %v3171_v42 = vld [vmem:[#allocation6 + $0x1720] sm:$0xff] }
 0x322   : > { %8829 = vmatpush1.bf16.msra.mxu0 %v13085_v11  ;;  %v3148_v11 = vld [vmem:[#allocation6 + $0x1668] sm:$0xff] }
 0x323   : > { %9157 = vmatpush1.bf16.msra.mxu1 %v13087_v16  ;;  %8830 = vmatprep.subr.bf16.mxu0 %v13094_v17  ;;  %v13125_v16 = vcombine.low %v3135_v60, %v3139_v0  ;;  %v13127_v17 = vcombine.low %v3136_v2, %v3140_v48  ;;  %v13136_v21 = vcombine.high %v3144_v33, %v3148_v11  ;;  %v3175_v0 = vld [vmem:[#allocation6 + $0x1740] sm:$0xff]  ;;  %v3176_v48 = vld [vmem:[#allocation6 + $0x1748] sm:$0xff] }
 0x324   : > { %9158 = vmatprep.subr.bf16.mxu1 %v13096_v19  ;;  %v13134_v19 = vcombine.high %v3143_v7, %v3147_v9  ;;  %v3179_v2 = vld [vmem:[#allocation6 + $0x1760] sm:$0xff] }
 0x326   : > { %8831 = vmatpush1.bf16.msra.mxu0 %v13093_v26  ;;  %v3156_v26 = vld [vmem:[#allocation6 + $0x16a8] sm:$0xff] }
 0x327   : > { %9159 = vmatpush1.bf16.msra.mxu1 %v13095_v29  ;;  %8832 = vmatprep.subr.bf16.mxu0 %v13102_v57  ;;  %v13133_v29 = vcombine.low %v3143_v7, %v3147_v9  ;;  %v13135_v57 = vcombine.low %v3144_v33, %v3148_v11  ;;  %v13144_v27 = vcombine.high %v3152_v25, %v3156_v26  ;;  %v3183_v9 = vld [vmem:[#allocation6 + $0x1780] sm:$0xff]  ;;  %v3184_v11 = vld [vmem:[#allocation6 + $0x1788] sm:$0xff] }
 0x328   : > { %9160 = vmatprep.subr.bf16.mxu1 %v13104_v61  ;;  %v13142_v61 = vcombine.high %v3151_v53, %v3155_v23  ;;  %v3187_v33 = vld [vmem:[#allocation6 + $0x17a0] sm:$0xff] }
 0x32a   : > { %8833 = vmatpush1.bf16.msra.mxu0 %v13101_v39  ;;  %v3164_v39 = vld [vmem:[#allocation6 + $0x16e8] sm:$0xff] }
 0x32b   : > { %9161 = vmatpush1.bf16.msra.mxu1 %v13103_v32  ;;  %8834 = vmatprep.subr.bf16.mxu0 %v13110_v34  ;;  %v13141_v32 = vcombine.low %v3151_v53, %v3155_v23  ;;  %v13143_v34 = vcombine.low %v3152_v25, %v3156_v26  ;;  %v13152_v51 = vcombine.high %v3160_v14, %v3164_v39  ;;  %v3191_v25 = vld [vmem:[#allocation6 + $0x17c0] sm:$0xff] }
 0x32c   : > { %9162 = vmatprep.subr.bf16.mxu1 %v13112_v35  ;;  %v13150_v35 = vcombine.high %v3159_v28, %v3163_v43  ;;  %v13174_v53 = vcombine.high %v3183_v9, %v3187_v33  ;;  %v3195_v26 = vld [vmem:[#allocation6 + $0x17e0] sm:$0xff] }
 0x32e   : > { %8835 = vmatpush1.bf16.msra.mxu0 %v13109_v8  ;;  %v3172_v8 = vld [vmem:[#allocation6 + $0x1728] sm:$0xff] }
 0x32f   : > { %9163 = vmatpush1.bf16.msra.mxu1 %v13111_v50  ;;  %8836 = vmatprep.subr.bf16.mxu0 %v13118_v54  ;;  %v13149_v50 = vcombine.low %v3159_v28, %v3163_v43  ;;  %v13151_v54 = vcombine.low %v3160_v14, %v3164_v39  ;;  %v13160_v60 = vcombine.high %v3168_v45, %v3172_v8 }
 0x330   : > { %9164 = vmatprep.subr.bf16.mxu1 %v13120_v58  ;;  %v13158_v58 = vcombine.high %v3167_v40, %v3171_v42  ;;  %v13182_v14 = vcombine.high %v3191_v25, %v3195_v26 }
 0x332   : > { %8837 = vmatpush1.bf16.msra.mxu0 %v13117_v3  ;;  %v3180_v3 = vld [vmem:[#allocation6 + $0x1768] sm:$0xff] }
 0x333   : > { %9165 = vmatpush1.bf16.msra.mxu1 %v13119_v4  ;;  %8838 = vmatprep.subr.bf16.mxu0 %v13126_v5  ;;  %v13157_v4 = vcombine.low %v3167_v40, %v3171_v42  ;;  %v13159_v5 = vcombine.low %v3168_v45, %v3172_v8  ;;  %v13168_v7 = vcombine.high %v3176_v48, %v3180_v3  ;;  %v3204_v40 = vld [vmem:[#allocation6 + $0x1828] sm:$0xff] }
 0x334   : > { %9166 = vmatprep.subr.bf16.mxu1 %v13128_v6  ;;  %v13166_v6 = vcombine.high %v3175_v0, %v3179_v2 }
 0x336   : > { %8839 = vmatpush1.bf16.msra.mxu0 %v13125_v16  ;;  %v3188_v16 = vld [vmem:[#allocation6 + $0x17a8] sm:$0xff] }
 0x337   : > { %9167 = vmatpush1.bf16.msra.mxu1 %v13127_v17  ;;  %8840 = vmatprep.subr.bf16.mxu0 %v13134_v19  ;;  %v13165_v17 = vcombine.low %v3175_v0, %v3179_v2  ;;  %v747_v19 = vrot.slane %v15068_v24, %v15008_v52  ;;  %v13176_v23 = vcombine.high %v3184_v11, %v3188_v16  ;;  %v3208_v0 = vld [vmem:[#allocation6 + $0x1848] sm:$0xff] }
 0x338   : > { %9168 = vmatprep.subr.bf16.mxu1 %v13136_v21  ;;  %v13167_v21 = vcombine.low %v3176_v48, %v3180_v3  ;;  %v13175_v43 = vcombine.low %v3184_v11, %v3188_v16  ;;  %v3212_v2 = vld [vmem:[#allocation6 + $0x1868] sm:$0xff] }
 0x339   : > { %v2311_v28 = vadd.f32 %v15031_v36, %v747_v19  ;;  %v13199_v16 = vcombine.low %v3208_v0, %v3212_v2 }
 0x33a   : > { %8841 = vmatpush1.bf16.msra.mxu0 %v13133_v29  ;;  %v759_v29 = vrot.slane %v15068_v24, %v15011_v63  ;;  %v13181_v24 = vcombine.low %v3191_v25, %v3195_v26  ;;  %v3228_v25 = vld [vmem:[#allocation6 + $0x18e8] sm:$0xff] }
 0x33b   : > { %9169 = vmatpush1.bf16.msra.mxu1 %v13135_v57  ;;  %8842 = vmatprep.subr.bf16.mxu0 %v13142_v61  ;;  %v3192_v57 = vld [vmem:[#allocation6 + $0x17c8] sm:$0xff]  ;;  %v2409_v42 = vmax.f32 %v2311_v28, 0.0  ;;  %v3235_v28 = vld [vmem:[#allocation6 + $0x1920] sm:$0xff] }
 0x33c   : > { %9170 = vmatprep.subr.bf16.mxu1 %v13144_v27  ;;  %v3196_v61 = vld [vmem:[#allocation6 + $0x17e8] sm:$0xff]  ;;  %v13173_v27 = vcombine.low %v3183_v9, %v3187_v33 }
 0x33d   : > { %v13184_v39 = vcombine.high %v3192_v57, %v3196_v61  ;;  %v13183_v45 = vcombine.low %v3192_v57, %v3196_v61  ;;  %v15104_v48 = vpack.c.bf16 %v2409_v42, %v2409_v42  ;;  %v3216_v9 = vld [vmem:[#allocation6 + $0x1888] sm:$0xff] }
 0x33e   : > { %8843 = vmatpush1.bf16.msra.mxu0 %v13141_v32  ;;  %v3199_v32 = vld [vmem:[#allocation6 + $0x1800] sm:$0xff]  ;;  %v3220_v33 = vld [vmem:[#allocation6 + $0x18a8] sm:$0xff] }
 0x33f   : > { %9171 = vmatpush1.bf16.msra.mxu1 %v13143_v34  ;;  %8844 = vmatprep.subr.bf16.mxu0 %v13150_v35  ;;  %v3203_v34 = vld [vmem:[#allocation6 + $0x1820] sm:$0xff]  ;;  %v2354_v35 = vadd.f32 %v15059_v12, %v759_v29  ;;  %v13208_v19 = vcombine.high %v3216_v9, %v3220_v33  ;;  %v13207_v29 = vcombine.low %v3216_v9, %v3220_v33  ;;  %v3244_v42 = vld [vmem:[#allocation6 + $0x1968] sm:$0xff] }
 0x340   : > { %9172 = vmatprep.subr.bf16.mxu1 %v13152_v51  ;;  %v3200_v51 = vld [vmem:[#allocation6 + $0x1808] sm:$0xff]  ;;  %v13190_v8 = vcombine.high %v3199_v32, %v3203_v34 }
 0x341   : > { %v13192_v36 = vcombine.high %v3200_v51, %v3204_v40  ;;  %v13191_v12 = vcombine.low %v3200_v51, %v3204_v40  ;;  %v3239_v51 = vld [vmem:[#allocation6 + $0x1940] sm:$0xff]  ;;  %v3256_v9 = vld [vmem:[#allocation6 + $0x19c8] sm:$0xff] }
 0x342   : > { %8845 = vmatpush1.bf16.msra.mxu0 %v13149_v50  ;;  %v2412_v50 = vmax.f32 %v2354_v35, 0.0  ;;  %v3243_v40 = vld [vmem:[#allocation6 + $0x1960] sm:$0xff]  ;;  %v3260_v33 = vld [vmem:[#allocation6 + $0x19e8] sm:$0xff] }
 0x343   : > { %9173 = vmatpush1.bf16.msra.mxu1 %v13151_v54  ;;  %8846 = vmatprep.subr.bf16.mxu0 %v13158_v58  ;;  %v3207_v54 = vld [vmem:[#allocation6 + $0x1840] sm:$0xff] }
 0x344   : > { %9174 = vmatprep.subr.bf16.mxu1 %v13160_v60  ;;  %v3211_v58 = vld [vmem:[#allocation6 + $0x1860] sm:$0xff]  ;;  %v13189_v60 = vcombine.low %v3199_v32, %v3203_v34 }
 0x345   : > { %v13198_v3 = vcombine.high %v3207_v54, %v3211_v58  ;;  %v13197_v11 = vcombine.low %v3207_v54, %v3211_v58  ;;  %v3247_v54 = vld [vmem:[#allocation6 + $0x1980] sm:$0xff] }
 0x346   : > { %8847 = vmatpush1.bf16.msra.mxu0 %v13157_v4  ;;  %v3215_v4 = vld [vmem:[#allocation6 + $0x1880] sm:$0xff] }
 0x347   : > { %9175 = vmatpush1.bf16.msra.mxu1 %v13159_v5  ;;  %8848 = vmatprep.subr.bf16.mxu0 %v13166_v6  ;;  %v3219_v5 = vld [vmem:[#allocation6 + $0x18a0] sm:$0xff]  ;;  %v15106_v6 = vpack.c.bf16 %v2412_v50, %v2412_v50 }
 0x348   : > { %9176 = vmatprep.subr.bf16.mxu1 %v13168_v7  ;;  %v13200_v7 = vcombine.high %v3208_v0, %v3212_v2  ;;  %v13205_v26 = vcombine.low %v3215_v4, %v3219_v5  ;;  %v3251_v58 = vld [vmem:[#allocation6 + $0x19a0] sm:$0xff]  ;;  %v3252_v0 = vld [vmem:[#allocation6 + $0x19a8] sm:$0xff]  ;;  %v13229_v2 = vcombine.low %v3239_v51, %v3243_v40 }
 0x34a   : > { %8849 = vmatpush1.bf16.msra.mxu0 %v13165_v17  ;;  %v13206_v17 = vcombine.high %v3215_v4, %v3219_v5  ;;  %v3255_v5 = vld [vmem:[#allocation6 + $0x19c0] sm:$0xff] }
 0x34b   : > { %9177 = vmatpush1.bf16.msra.mxu1 %v13167_v21  ;;  %8850 = vmatprep.subr.bf16.mxu0 %v13174_v53  ;;  %v3223_v21 = vld [vmem:[#allocation6 + $0x18c0] sm:$0xff] }
 0x34c   : > { %9178 = vmatprep.subr.bf16.mxu1 %v13176_v23  ;;  %v3227_v53 = vld [vmem:[#allocation6 + $0x18e0] sm:$0xff]  ;;  %v3224_v23 = vld [vmem:[#allocation6 + $0x18c8] sm:$0xff] }
 0x34d   : > { %v13214_v57 = vcombine.high %v3223_v21, %v3227_v53  ;;  %v13216_v61 = vcombine.high %v3224_v23, %v3228_v25  ;;  %v13215_v32 = vcombine.low %v3224_v23, %v3228_v25  ;;  %v3264_v23 = vld [vmem:[#allocation6 + $0x1a08] sm:$0xff] }
 0x34e   : > { %8851 = vmatpush1.bf16.msra.mxu0 %v13173_v27  ;;  %v3231_v27 = vld [vmem:[#allocation6 + $0x1900] sm:$0xff]  ;;  %v3268_v25 = vld [vmem:[#allocation6 + $0x1a28] sm:$0xff] }
 0x34f   : > { %9179 = vmatpush1.bf16.msra.mxu1 %v13175_v43  ;;  %8852 = vmatprep.subr.bf16.mxu0 %v13182_v14  ;;  %v3232_v43 = vld [vmem:[#allocation6 + $0x1908] sm:$0xff]  ;;  %v13222_v34 = vcombine.high %v3231_v27, %v3235_v28 }
 0x350   : > { %9180 = vmatprep.subr.bf16.mxu1 %v13184_v39  ;;  %v3236_v14 = vld [vmem:[#allocation6 + $0x1928] sm:$0xff]  ;;  %v13213_v39 = vcombine.low %v3223_v21, %v3227_v53  ;;  %v3263_v21 = vld [vmem:[#allocation6 + $0x1a00] sm:$0xff] }
 0x351   : > { %v13224_v35 = vcombine.high %v3232_v43, %v3236_v14  ;;  %v3267_v53 = vld [vmem:[#allocation6 + $0x1a20] sm:$0xff] }
 0x352   : > { %8853 = vmatpush1.bf16.msra.mxu0 %v13181_v24  ;;  %v3240_v24 = vld [vmem:[#allocation6 + $0x1948] sm:$0xff] }
 0x353   : > { %9181 = vmatpush1.bf16.msra.mxu1 %v13183_v45  ;;  %8863 = vmatprep.subr.bf16.mxu0 %v13190_v8  ;;  %v13221_v45 = vcombine.low %v3231_v27, %v3235_v28  ;;  %v13223_v8 = vcombine.low %v3232_v43, %v3236_v14  ;;  %v13232_v50 = vcombine.high %v3240_v24, %v3244_v42  ;;  %v3271_v27 = vld [vmem:[#allocation6 + $0x1a40] sm:$0xff]  ;;  %v3272_v43 = vld [vmem:[#allocation6 + $0x1a48] sm:$0xff] }
 0x354   : > { %9191 = vmatprep.subr.bf16.mxu1 %v13192_v36  ;;  %v13230_v36 = vcombine.high %v3239_v51, %v3243_v40  ;;  %v3275_v28 = vld [vmem:[#allocation6 + $0x1a60] sm:$0xff]  ;;  %v3276_v14 = vld [vmem:[#allocation6 + $0x1a68] sm:$0xff] }
 0x355   : > { %8855 = vmatmul.mubr.bf16.vlgmr.msra.gmra.mrb[16].mxu0 %v15104_v48  ;;  %v3279_v51 = vld [vmem:[#allocation6 + $0x1a80] sm:$0xff] }
 0x356   : > { %9183 = vmatmul.mubr.bf16.vlgmr.msra.gmra.mrb[16].mxu1 %v15104_v48  ;;  %8864 = vmatpush1.bf16.msra.mxu0 %v13189_v60  ;;  %v3248_v60 = vld [vmem:[#allocation6 + $0x1988] sm:$0xff]  ;;  %v3283_v40 = vld [vmem:[#allocation6 + $0x1aa0] sm:$0xff] }
 0x357   : > { %8895 = vmatprep.mubr.bf16.mxu0 %v15106_v6  ;;  %9192 = vmatpush1.bf16.msra.mxu1 %v13191_v12  ;;  %v13231_v12 = vcombine.low %v3240_v24, %v3244_v42  ;;  %v13240_v4 = vcombine.high %v3248_v60, %v3252_v0  ;;  %v3280_v24 = vld [vmem:[#allocation6 + $0x1a88] sm:$0xff] }
 0x358   : > { %9223 = vmatprep.mubr.bf16.mxu1 %v15106_v6  ;;  %8865 = vmatprep.subr.bf16.mxu0 %v13198_v3  ;;  %v13238_v3 = vcombine.high %v3247_v54, %v3251_v58  ;;  %v3284_v42 = vld [vmem:[#allocation6 + $0x1aa8] sm:$0xff] }
 0x359   : > { %9193 = vmatprep.subr.bf16.mxu1 %v13200_v7  ;;  %v3259_v7 = vld [vmem:[#allocation6 + $0x19e0] sm:$0xff] }
 0x35a   : > { %8866 = vmatpush1.bf16.msra.mxu0 %v13197_v11  ;;  %v13237_v11 = vcombine.low %v3247_v54, %v3251_v58  ;;  %v3287_v54 = vld [vmem:[#allocation6 + $0x1ac0] sm:$0xff] }
 0x35b   : > { %9194 = vmatpush1.bf16.msra.mxu1 %v13199_v16  ;;  %8867 = vmatprep.subr.bf16.mxu0 %v13206_v17  ;;  %v13239_v16 = vcombine.low %v3248_v60, %v3252_v0  ;;  %v13246_v17 = vcombine.high %v3255_v5, %v3259_v7  ;;  %v3291_v58 = vld [vmem:[#allocation6 + $0x1ae0] sm:$0xff]  ;;  %v3288_v60 = vld [vmem:[#allocation6 + $0x1ac8] sm:$0xff] }
 0x35c   : > { %9195 = vmatprep.subr.bf16.mxu1 %v13208_v19  ;;  %v13248_v19 = vcombine.high %v3256_v9, %v3260_v33  ;;  %v3292_v0 = vld [vmem:[#allocation6 + $0x1ae8] sm:$0xff] }
 0x35e   : > { %8868 = vmatpush1.bf16.msra.mxu0 %v13205_v26  ;;  %v13245_v26 = vcombine.low %v3255_v5, %v3259_v7  ;;  %v3295_v5 = vld [vmem:[#allocation6 + $0x1b00] sm:$0xff] }
 0x35f   : > { %9196 = vmatpush1.bf16.msra.mxu1 %v13207_v29  ;;  %8869 = vmatprep.subr.bf16.mxu0 %v13214_v57  ;;  %v13247_v29 = vcombine.low %v3256_v9, %v3260_v33  ;;  %v13254_v57 = vcombine.high %v3263_v21, %v3267_v53  ;;  %v3299_v7 = vld [vmem:[#allocation6 + $0x1b20] sm:$0xff]  ;;  %v3296_v9 = vld [vmem:[#allocation6 + $0x1b08] sm:$0xff] }
 0x360   : > { %9197 = vmatprep.subr.bf16.mxu1 %v13216_v61  ;;  %v13256_v61 = vcombine.high %v3264_v23, %v3268_v25  ;;  %v3300_v33 = vld [vmem:[#allocation6 + $0x1b28] sm:$0xff] }
 0x362   : > { %8870 = vmatpush1.bf16.msra.mxu0 %v13213_v39  ;;  %v13253_v39 = vcombine.low %v3263_v21, %v3267_v53  ;;  %v3303_v21 = vld [vmem:[#allocation6 + $0x1b40] sm:$0xff] }
 0x363   : > { %9198 = vmatpush1.bf16.msra.mxu1 %v13215_v32  ;;  %8871 = vmatprep.subr.bf16.mxu0 %v13222_v34  ;;  %v13255_v32 = vcombine.low %v3264_v23, %v3268_v25  ;;  %v13262_v34 = vcombine.high %v3271_v27, %v3275_v28  ;;  %v3307_v53 = vld [vmem:[#allocation6 + $0x1b60] sm:$0xff]  ;;  %v3304_v23 = vld [vmem:[#allocation6 + $0x1b48] sm:$0xff] }
 0x364   : > { %9199 = vmatprep.subr.bf16.mxu1 %v13224_v35  ;;  %v13264_v35 = vcombine.high %v3272_v43, %v3276_v14  ;;  %v3308_v25 = vld [vmem:[#allocation6 + $0x1b68] sm:$0xff] }
 0x366   : > { %8872 = vmatpush1.bf16.msra.mxu0 %v13221_v45  ;;  %v13261_v45 = vcombine.low %v3271_v27, %v3275_v28  ;;  %v3311_v27 = vld [vmem:[#allocation6 + $0x1b80] sm:$0xff] }
 0x367   : > { %9200 = vmatpush1.bf16.msra.mxu1 %v13223_v8  ;;  %8873 = vmatprep.subr.bf16.mxu0 %v13230_v36  ;;  %v13263_v8 = vcombine.low %v3272_v43, %v3276_v14  ;;  %v13270_v36 = vcombine.high %v3279_v51, %v3283_v40  ;;  %v3315_v28 = vld [vmem:[#allocation6 + $0x1ba0] sm:$0xff]  ;;  %v3312_v43 = vld [vmem:[#allocation6 + $0x1b88] sm:$0xff] }
 0x368   : > { %9201 = vmatprep.subr.bf16.mxu1 %v13232_v50  ;;  %v13272_v50 = vcombine.high %v3280_v24, %v3284_v42  ;;  %v3316_v14 = vld [vmem:[#allocation6 + $0x1ba8] sm:$0xff] }
 0x36a   : > { %8874 = vmatpush1.bf16.msra.mxu0 %v13229_v2  ;;  %v13269_v2 = vcombine.low %v3279_v51, %v3283_v40  ;;  %v13302_v51 = vcombine.high %v3311_v27, %v3315_v28  ;;  %v13304_v40 = vcombine.high %v3312_v43, %v3316_v14 }
 0x36b   : > { %9202 = vmatpush1.bf16.msra.mxu1 %v13231_v12  ;;  %8875 = vmatprep.subr.bf16.mxu0 %v13238_v3  ;;  %v13271_v12 = vcombine.low %v3280_v24, %v3284_v42  ;;  %v13278_v3 = vcombine.high %v3287_v54, %v3291_v58  ;;  %v3319_v24 = vld [vmem:[#allocation6 + $0x1bc0] sm:$0xff] }
 0x36c   : > { %9203 = vmatprep.subr.bf16.mxu1 %v13240_v4  ;;  %v13280_v4 = vcombine.high %v3288_v60, %v3292_v0  ;;  %v3323_v42 = vld [vmem:[#allocation6 + $0x1be0] sm:$0xff] }
 0x36e   : > { %8876 = vmatpush1.bf16.msra.mxu0 %v13237_v11  ;;  %v13277_v11 = vcombine.low %v3287_v54, %v3291_v58  ;;  %v13303_v58 = vcombine.low %v3312_v43, %v3316_v14  ;;  %v3348_v43 = vld [vmem:[#allocation6 + $0x1ca8] sm:$0xff] }
 0x36f   : > { %9204 = vmatpush1.bf16.msra.mxu1 %v13239_v16  ;;  %8877 = vmatprep.subr.bf16.mxu0 %v13246_v17  ;;  %v13279_v16 = vcombine.low %v3288_v60, %v3292_v0  ;;  %v13286_v17 = vcombine.high %v3295_v5, %v3299_v7  ;;  %v13310_v60 = vcombine.high %v3319_v24, %v3323_v42 }
 0x370   : > { %9205 = vmatprep.subr.bf16.mxu1 %v13248_v19  ;;  %v13288_v19 = vcombine.high %v3296_v9, %v3300_v33 }
 0x372   : > { %8878 = vmatpush1.bf16.msra.mxu0 %v13245_v26  ;;  %v13285_v26 = vcombine.low %v3295_v5, %v3299_v7  ;;  %v3332_v5 = vld [vmem:[#allocation6 + $0x1c28] sm:$0xff]  ;;  %v13309_v7 = vcombine.low %v3319_v24, %v3323_v42 }
 0x373   : > { %9206 = vmatpush1.bf16.msra.mxu1 %v13247_v29  ;;  %8879 = vmatprep.subr.bf16.mxu0 %v13254_v57  ;;  %v13287_v29 = vcombine.low %v3296_v9, %v3300_v33  ;;  %v13294_v57 = vcombine.high %v3303_v21, %v3307_v53  ;;  %v3352_v24 = vld [vmem:[#allocation6 + $0x1cc8] sm:$0xff] }
 0x374   : > { %9207 = vmatprep.subr.bf16.mxu1 %v13256_v61  ;;  %v13296_v61 = vcombine.high %v3304_v23, %v3308_v25  ;;  %v3356_v42 = vld [vmem:[#allocation6 + $0x1ce8] sm:$0xff] }
 0x376   : > { %8880 = vmatpush1.bf16.msra.mxu0 %v13253_v39  ;;  %v13293_v39 = vcombine.low %v3303_v21, %v3307_v53  ;;  %v3336_v53 = vld [vmem:[#allocation6 + $0x1c48] sm:$0xff] }
 0x377   : > { %9208 = vmatpush1.bf16.msra.mxu1 %v13255_v32  ;;  %8881 = vmatprep.subr.bf16.mxu0 %v13262_v34  ;;  %v15112_v32 = vld [vmem:[#allocation4 + $0x8] sm:$0xff] }
 0x378   : > { %9209 = vmatprep.subr.bf16.mxu1 %v13264_v35  ;;  %v755_v34 = vrot.slane %v15112_v32, %v15036_v47  ;;  %v13295_v35 = vcombine.low %v3304_v23, %v3308_v25  ;;  %v3340_v23 = vld [vmem:[#allocation6 + $0x1c68] sm:$0xff] }
 0x37a   : > { %8882 = vmatpush1.bf16.msra.mxu0 %v13261_v45  ;;  %v767_v45 = vrot.slane %v15112_v32, %v15039_v56  ;;  %v2352_v54 = vadd.f32 %v15057_v46, %v755_v34 }
 0x37b   : > { %9210 = vmatpush1.bf16.msra.mxu1 %v13263_v8  ;;  %8883 = vmatprep.subr.bf16.mxu0 %v13270_v36  ;;  %v3320_v8 = vld [vmem:[#allocation6 + $0x1bc8] sm:$0xff] }
 0x37c   : > { %9211 = vmatprep.subr.bf16.mxu1 %v13272_v50  ;;  %v3324_v36 = vld [vmem:[#allocation6 + $0x1be8] sm:$0xff]  ;;  %v13301_v50 = vcombine.low %v3311_v27, %v3315_v28  ;;  %v2411_v9 = vmax.f32 %v2352_v54, 0.0  ;;  %v13328_v27 = vcombine.high %v3336_v53, %v3340_v23  ;;  %v3359_v54 = vld [vmem:[#allocation6 + $0x1d00] sm:$0xff] }
 0x37d   : > { %v13312_v0 = vcombine.high %v3320_v8, %v3324_v36  ;;  %v13311_v33 = vcombine.low %v3320_v8, %v3324_v36  ;;  %v3344_v28 = vld [vmem:[#allocation6 + $0x1c88] sm:$0xff] }
 0x37e   : > { %8884 = vmatpush1.bf16.msra.mxu0 %v13269_v2  ;;  %v3327_v2 = vld [vmem:[#allocation6 + $0x1c00] sm:$0xff]  ;;  %v15120_v25 = vpack.c.bf16 %v2411_v9, %v2411_v9  ;;  %v13335_v8 = vcombine.low %v3344_v28, %v3348_v43  ;;  %v3368_v9 = vld [vmem:[#allocation6 + $0x1d48] sm:$0xff] }
 0x37f   : > { %9212 = vmatpush1.bf16.msra.mxu1 %v13271_v12  ;;  %8885 = vmatprep.subr.bf16.mxu0 %v13278_v3  ;;  %v3331_v12 = vld [vmem:[#allocation6 + $0x1c20] sm:$0xff]  ;;  %v2395_v3 = vadd.f32 %v15063_v20, %v767_v45 }
 0x380   : > { %9213 = vmatprep.subr.bf16.mxu1 %v13280_v4  ;;  %v3328_v4 = vld [vmem:[#allocation6 + $0x1c08] sm:$0xff]  ;;  %v13317_v21 = vcombine.low %v3327_v2, %v3331_v12 }
 0x381   : > { %v13320_v46 = vcombine.high %v3328_v4, %v3332_v5  ;;  %v13319_v20 = vcombine.low %v3328_v4, %v3332_v5  ;;  %v3367_v5 = vld [vmem:[#allocation6 + $0x1d40] sm:$0xff] }
 0x382   : > { %8886 = vmatpush1.bf16.msra.mxu0 %v13277_v11  ;;  %v13318_v11 = vcombine.high %v3327_v2, %v3331_v12  ;;  %v13343_v12 = vcombine.low %v3352_v24, %v3356_v42 }
 0x383   : > { %9214 = vmatpush1.bf16.msra.mxu1 %v13279_v16  ;;  %8887 = vmatprep.subr.bf16.mxu0 %v13286_v17  ;;  %v2414_v16 = vmax.f32 %v2395_v3, 0.0  ;;  %v3335_v17 = vld [vmem:[#allocation6 + $0x1c40] sm:$0xff] }
 0x384   : > { %9215 = vmatprep.subr.bf16.mxu1 %v13288_v19  ;;  %v3339_v19 = vld [vmem:[#allocation6 + $0x1c60] sm:$0xff] }
 0x385   : > { %v13325_v14 = vcombine.low %v3335_v17, %v3339_v19 }
 0x386   : > { %8888 = vmatpush1.bf16.msra.mxu0 %v13285_v26  ;;  %v13326_v26 = vcombine.high %v3335_v17, %v3339_v19  ;;  %v3375_v19 = vld [vmem:[#allocation6 + $0x1d80] sm:$0xff] }
 0x387   : > { %9216 = vmatpush1.bf16.msra.mxu1 %v13287_v29  ;;  %8889 = vmatprep.subr.bf16.mxu0 %v13294_v57  ;;  %v3343_v29 = vld [vmem:[#allocation6 + $0x1c80] sm:$0xff] }
 0x388   : > { %9217 = vmatprep.subr.bf16.mxu1 %v13296_v61  ;;  %v3347_v57 = vld [vmem:[#allocation6 + $0x1ca0] sm:$0xff]  ;;  %v15122_v61 = vpack.c.bf16 %v2414_v16, %v2414_v16 }
 0x389   : > { %v13334_v34 = vcombine.high %v3343_v29, %v3347_v57  ;;  %v13333_v45 = vcombine.low %v3343_v29, %v3347_v57 }
 0x38a   : > { %8890 = vmatpush1.bf16.msra.mxu0 %v13293_v39  ;;  %v13327_v39 = vcombine.low %v3336_v53, %v3340_v23  ;;  %v3376_v53 = vld [vmem:[#allocation6 + $0x1d88] sm:$0xff] }
 0x38b   : > { %9218 = vmatpush1.bf16.msra.mxu1 %v13295_v35  ;;  %8891 = vmatprep.subr.bf16.mxu0 %v13302_v51  ;;  %v13336_v35 = vcombine.high %v3344_v28, %v3348_v43  ;;  %v3351_v51 = vld [vmem:[#allocation6 + $0x1cc0] sm:$0xff]  ;;  %v3380_v23 = vld [vmem:[#allocation6 + $0x1da8] sm:$0xff] }
 0x38c   : > { %9219 = vmatprep.subr.bf16.mxu1 %v13304_v40  ;;  %v3355_v40 = vld [vmem:[#allocation6 + $0x1ce0] sm:$0xff]  ;;  %v13368_v57 = vcombine.high %v3376_v53, %v3380_v23  ;;  %v3384_v43 = vld [vmem:[#allocation6 + $0x1dc8] sm:$0xff] }
 0x38d   : > { %v13342_v36 = vcombine.high %v3351_v51, %v3355_v40  ;;  %v13341_v2 = vcombine.low %v3351_v51, %v3355_v40  ;;  %v3387_v28 = vld [vmem:[#allocation6 + $0x1de0] sm:$0xff] }
 0x38e   : > { %8892 = vmatpush1.bf16.msra.mxu0 %v13301_v50  ;;  %v13344_v50 = vcombine.high %v3352_v24, %v3356_v42  ;;  %v3391_v40 = vld [vmem:[#allocation6 + $0x1e00] sm:$0xff]  ;;  %v3392_v42 = vld [vmem:[#allocation6 + $0x1e08] sm:$0xff] }
 0x38f   : > { %9220 = vmatpush1.bf16.msra.mxu1 %v13303_v58  ;;  %8893 = vmatprep.subr.bf16.mxu0 %v13310_v60  ;;  %v3363_v58 = vld [vmem:[#allocation6 + $0x1d20] sm:$0xff]  ;;  %v3360_v60 = vld [vmem:[#allocation6 + $0x1d08] sm:$0xff] }
 0x390   : > { %9221 = vmatprep.subr.bf16.mxu1 %v13312_v0  ;;  %v3364_v0 = vld [vmem:[#allocation6 + $0x1d28] sm:$0xff]  ;;  %v13350_v3 = vcombine.high %v3359_v54, %v3363_v58  ;;  %v3395_v24 = vld [vmem:[#allocation6 + $0x1e20] sm:$0xff] }
 0x391   : > { %v13352_v4 = vcombine.high %v3360_v60, %v3364_v0 }
 0x392   : > { %8894 = vmatpush1.bf16.msra.mxu0 %v13309_v7  ;;  %v3371_v7 = vld [vmem:[#allocation6 + $0x1d60] sm:$0xff] }
 0x393   : > { %9222 = vmatpush1.bf16.msra.mxu1 %v13311_v33  ;;  %8904 = vmatprep.subr.bf16.mxu0 %v13318_v11  ;;  %v3372_v33 = vld [vmem:[#allocation6 + $0x1d68] sm:$0xff]  ;;  %v13349_v11 = vcombine.low %v3359_v54, %v3363_v58  ;;  %v13358_v16 = vcombine.high %v3367_v5, %v3371_v7  ;;  %v3399_v58 = vld [vmem:[#allocation6 + $0x1e40] sm:$0xff] }
 0x394   : > { %9232 = vmatprep.subr.bf16.mxu1 %v13320_v46  ;;  %v13351_v46 = vcombine.low %v3360_v60, %v3364_v0  ;;  %v13360_v17 = vcombine.high %v3368_v9, %v3372_v33  ;;  %v3403_v60 = vld [vmem:[#allocation6 + $0x1e60] sm:$0xff]  ;;  %v3400_v0 = vld [vmem:[#allocation6 + $0x1e48] sm:$0xff] }
 0x395   : > { %8896 = vmatmul.mubr.bf16.vlgmr.msra.gmra.mrb[16].mxu0 %v15120_v25 }
 0x396   : > { %9224 = vmatmul.mubr.bf16.vlgmr.msra.gmra.mrb[16].mxu1 %v15120_v25  ;;  %8905 = vmatpush1.bf16.msra.mxu0 %v13317_v21  ;;  %v3379_v21 = vld [vmem:[#allocation6 + $0x1da0] sm:$0xff] }
 0x397   : > { %8936 = vmatprep.mubr.bf16.mxu0 %v15122_v61  ;;  %9233 = vmatpush1.bf16.msra.mxu1 %v13319_v20  ;;  %v13357_v20 = vcombine.low %v3367_v5, %v3371_v7  ;;  %v13366_v29 = vcombine.high %v3375_v19, %v3379_v21  ;;  %v3407_v7 = vld [vmem:[#allocation6 + $0x1e80] sm:$0xff] }
 0x398   : > { %9264 = vmatprep.mubr.bf16.mxu1 %v15122_v61  ;;  %8906 = vmatprep.subr.bf16.mxu0 %v13326_v26  ;;  %v13359_v26 = vcombine.low %v3368_v9, %v3372_v33  ;;  %v3411_v9 = vld [vmem:[#allocation6 + $0x1ea0] sm:$0xff]  ;;  %v3408_v33 = vld [vmem:[#allocation6 + $0x1e88] sm:$0xff] }
 0x399   : > { %9234 = vmatprep.subr.bf16.mxu1 %v13328_v27  ;;  %v3383_v27 = vld [vmem:[#allocation6 + $0x1dc0] sm:$0xff] }
 0x39a   : > { %8907 = vmatpush1.bf16.msra.mxu0 %v13325_v14  ;;  %v3388_v14 = vld [vmem:[#allocation6 + $0x1de8] sm:$0xff] }
 0x39b   : > { %9235 = vmatpush1.bf16.msra.mxu1 %v13327_v39  ;;  %8908 = vmatprep.subr.bf16.mxu0 %v13334_v34  ;;  %v13365_v39 = vcombine.low %v3375_v19, %v3379_v21  ;;  %v13367_v34 = vcombine.low %v3376_v53, %v3380_v23  ;;  %v13376_v51 = vcombine.high %v3384_v43, %v3388_v14  ;;  %v3415_v21 = vld [vmem:[#allocation6 + $0x1ec0] sm:$0xff]  ;;  %v3416_v23 = vld [vmem:[#allocation6 + $0x1ec8] sm:$0xff] }
 0x39c   : > { %9236 = vmatprep.subr.bf16.mxu1 %v13336_v35  ;;  %v13374_v35 = vcombine.high %v3383_v27, %v3387_v28  ;;  %v3419_v53 = vld [vmem:[#allocation6 + $0x1ee0] sm:$0xff] }
 0x39e   : > { %8909 = vmatpush1.bf16.msra.mxu0 %v13333_v45  ;;  %v3396_v45 = vld [vmem:[#allocation6 + $0x1e28] sm:$0xff] }
 0x39f   : > { %9237 = vmatpush1.bf16.msra.mxu1 %v13335_v8  ;;  %8910 = vmatprep.subr.bf16.mxu0 %v13342_v36  ;;  %v13373_v8 = vcombine.low %v3383_v27, %v3387_v28  ;;  %v13375_v36 = vcombine.low %v3384_v43, %v3388_v14  ;;  %v13384_v54 = vcombine.high %v3392_v42, %v3396_v45  ;;  %v3423_v28 = vld [vmem:[#allocation6 + $0x1f00] sm:$0xff]  ;;  %v3424_v14 = vld [vmem:[#allocation6 + $0x1f08] sm:$0xff] }
 0x3a0   : > { %9238 = vmatprep.subr.bf16.mxu1 %v13344_v50  ;;  %v13382_v50 = vcombine.high %v3391_v40, %v3395_v24  ;;  %v3427_v43 = vld [vmem:[#allocation6 + $0x1f20] sm:$0xff] }
 0x3a2   : > { %8911 = vmatpush1.bf16.msra.mxu0 %v13341_v2  ;;  %v3404_v2 = vld [vmem:[#allocation6 + $0x1e68] sm:$0xff] }
 0x3a3   : > { %9239 = vmatpush1.bf16.msra.mxu1 %v13343_v12  ;;  %8912 = vmatprep.subr.bf16.mxu0 %v13350_v3  ;;  %v13381_v12 = vcombine.low %v3391_v40, %v3395_v24  ;;  %v13383_v3 = vcombine.low %v3392_v42, %v3396_v45  ;;  %v13392_v5 = vcombine.high %v3400_v0, %v3404_v2  ;;  %v3431_v24 = vld [vmem:[#allocation6 + $0x1f40] sm:$0xff]  ;;  %v3432_v45 = vld [vmem:[#allocation6 + $0x1f48] sm:$0xff] }
 0x3a4   : > { %9240 = vmatprep.subr.bf16.mxu1 %v13352_v4  ;;  %v13390_v4 = vcombine.high %v3399_v58, %v3403_v60  ;;  %v3435_v42 = vld [vmem:[#allocation6 + $0x1f60] sm:$0xff] }
 0x3a6   : > { %8913 = vmatpush1.bf16.msra.mxu0 %v13349_v11  ;;  %v3412_v11 = vld [vmem:[#allocation6 + $0x1ea8] sm:$0xff] }
 0x3a7   : > { %9241 = vmatpush1.bf16.msra.mxu1 %v13351_v46  ;;  %8914 = vmatprep.subr.bf16.mxu0 %v13358_v16  ;;  %v13389_v46 = vcombine.low %v3399_v58, %v3403_v60  ;;  %v13391_v16 = vcombine.low %v3400_v0, %v3404_v2  ;;  %v13400_v19 = vcombine.high %v3408_v33, %v3412_v11  ;;  %v3439_v60 = vld [vmem:[#allocation6 + $0x1f80] sm:$0xff]  ;;  %v3440_v2 = vld [vmem:[#allocation6 + $0x1f88] sm:$0xff] }
 0x3a8   : > { %9242 = vmatprep.subr.bf16.mxu1 %v13360_v17  ;;  %v13398_v17 = vcombine.high %v3407_v7, %v3411_v9  ;;  %v3443_v0 = vld [vmem:[#allocation6 + $0x1fa0] sm:$0xff] }
 0x3aa   : > { %8915 = vmatpush1.bf16.msra.mxu0 %v13357_v20  ;;  %v3420_v20 = vld [vmem:[#allocation6 + $0x1ee8] sm:$0xff] }
 0x3ab   : > { %9243 = vmatpush1.bf16.msra.mxu1 %v13359_v26  ;;  %8916 = vmatprep.subr.bf16.mxu0 %v13366_v29  ;;  %v13397_v26 = vcombine.low %v3407_v7, %v3411_v9  ;;  %v13399_v29 = vcombine.low %v3408_v33, %v3412_v11  ;;  %v13408_v27 = vcombine.high %v3416_v23, %v3420_v20  ;;  %v3447_v33 = vld [vmem:[#allocation6 + $0x1fc0] sm:$0xff] }
 0x3ac   : > { %9244 = vmatprep.subr.bf16.mxu1 %v13368_v57  ;;  %v13406_v57 = vcombine.high %v3415_v21, %v3419_v53  ;;  %v13430_v7 = vcombine.high %v3439_v60, %v3443_v0  ;;  %v3451_v11 = vld [vmem:[#allocation6 + $0x1fe0] sm:$0xff] }
 0x3ae   : > { %8917 = vmatpush1.bf16.msra.mxu0 %v13365_v39  ;;  %v3428_v39 = vld [vmem:[#allocation6 + $0x1f28] sm:$0xff] }
 0x3af   : > { %9245 = vmatpush1.bf16.msra.mxu1 %v13367_v34  ;;  %8918 = vmatprep.subr.bf16.mxu0 %v13374_v35  ;;  %v13405_v34 = vcombine.low %v3415_v21, %v3419_v53  ;;  %v13407_v35 = vcombine.low %v3416_v23, %v3420_v20  ;;  %v13416_v40 = vcombine.high %v3424_v14, %v3428_v39  ;;  %v2433_v23 = vld [vmem:[#allocation6 + $0x10] sm:$0xff] }
 0x3b0   : > { %9246 = vmatprep.subr.bf16.mxu1 %v13376_v51  ;;  %v13414_v51 = vcombine.high %v3423_v28, %v3427_v43  ;;  %v13438_v53 = vcombine.high %v3447_v33, %v3451_v11  ;;  %v2437_v20 = vld [vmem:[#allocation6 + $0x30] sm:$0xff] }
 0x3b2   : > { %8919 = vmatpush1.bf16.msra.mxu0 %v13373_v8  ;;  %v3436_v8 = vld [vmem:[#allocation6 + $0x1f68] sm:$0xff] }
 0x3b3   : > { %9247 = vmatpush1.bf16.msra.mxu1 %v13375_v36  ;;  %8920 = vmatprep.subr.bf16.mxu0 %v13382_v50  ;;  %v13413_v36 = vcombine.low %v3423_v28, %v3427_v43  ;;  %v13415_v50 = vcombine.low %v3424_v14, %v3428_v39  ;;  %v13424_v58 = vcombine.high %v3432_v45, %v3436_v8  ;;  %v2445_v39 = vld [vmem:[#allocation6 + $0x70] sm:$0xff] }
 0x3b4   : > { %9248 = vmatprep.subr.bf16.mxu1 %v13384_v54  ;;  %v13422_v54 = vcombine.high %v3431_v24, %v3435_v42  ;;  %v12426_v43 = vcombine.high %v2433_v23, %v2437_v20 }
 0x3b6   : > { %8921 = vmatpush1.bf16.msra.mxu0 %v13381_v12  ;;  %v3444_v12 = vld [vmem:[#allocation6 + $0x1fa8] sm:$0xff] }
 0x3b7   : > { %9249 = vmatpush1.bf16.msra.mxu1 %v13383_v3  ;;  %8922 = vmatprep.subr.bf16.mxu0 %v13390_v4  ;;  %v13421_v3 = vcombine.low %v3431_v24, %v3435_v42  ;;  %v763_v4 = vrot.slane %v15112_v32, %v15066_v13  ;;  %v13432_v9 = vcombine.high %v3440_v2, %v3444_v12 }
 0x3b8   : > { %9250 = vmatprep.subr.bf16.mxu1 %v13392_v5  ;;  %v13423_v5 = vcombine.low %v3432_v45, %v3436_v8  ;;  %v13431_v21 = vcombine.low %v3440_v2, %v3444_v12  ;;  %v2449_v45 = vld [vmem:[#allocation6 + $0x90] sm:$0xff] }
 0x3b9   : > { %v2453_v8 = vld [vmem:[#allocation6 + $0xb0] sm:$0xff] }
 0x3ba   : > { %8923 = vmatpush1.bf16.msra.mxu0 %v13389_v46  ;;  %v3448_v46 = vld [vmem:[#allocation6 + $0x1fc8] sm:$0xff]  ;;  %v2457_v12 = vld [vmem:[#allocation6 + $0xd0] sm:$0xff] }
 0x3bb   : > { %9251 = vmatpush1.bf16.msra.mxu1 %v13391_v16  ;;  %8924 = vmatprep.subr.bf16.mxu0 %v13398_v17  ;;  %v3452_v16 = vld [vmem:[#allocation6 + $0x1fe8] sm:$0xff]  ;;  %v13429_v17 = vcombine.low %v3439_v60, %v3443_v0  ;;  %v12442_v0 = vcombine.high %v2449_v45, %v2453_v8 }
 0x3bc   : > { %9252 = vmatprep.subr.bf16.mxu1 %v13400_v19  ;;  %v2393_v19 = vadd.f32 %v15061_v49, %v763_v4  ;;  %v13440_v32 = vcombine.high %v3448_v46, %v3452_v16  ;;  %v13439_v28 = vcombine.low %v3448_v46, %v3452_v16  ;;  %v2441_v49 = vld [vmem:[#allocation6 + $0x50] sm:$0xff]  ;;  %v2458_v4 = vld [vmem:[#allocation6 + $0xd8] sm:$0xff] }
 0x3bd   : > { %v12434_v42 = vcombine.high %v2441_v49, %v2445_v39  ;;  %v2465_v46 = vld [vmem:[#allocation6 + $0x110] sm:$0xff] }
 0x3be   : > { %8925 = vmatpush1.bf16.msra.mxu0 %v13397_v26  ;;  %v2434_v26 = vld [vmem:[#allocation6 + $0x18] sm:$0xff]  ;;  %v2469_v16 = vld [vmem:[#allocation6 + $0x130] sm:$0xff] }
 0x3bf   : > { %9253 = vmatpush1.bf16.msra.mxu1 %v13399_v29  ;;  %8926 = vmatprep.subr.bf16.mxu0 %v13406_v57  ;;  %v2438_v29 = vld [vmem:[#allocation6 + $0x38] sm:$0xff]  ;;  %v13437_v57 = vcombine.low %v3447_v33, %v3451_v11 }
 0x3c0   : > { %9254 = vmatprep.subr.bf16.mxu1 %v13408_v27  ;;  %v2413_v27 = vmax.f32 %v2393_v19, 0.0  ;;  %v12428_v14 = vcombine.high %v2434_v26, %v2438_v29  ;;  %v12427_v24 = vcombine.low %v2434_v26, %v2438_v29  ;;  %v2470_v19 = vld [vmem:[#allocation6 + $0x138] sm:$0xff] }
 0x3c1   : > { %v2474_v26 = vld [vmem:[#allocation6 + $0x158] sm:$0xff] }
 0x3c2   : > { %8927 = vmatpush1.bf16.msra.mxu0 %v13405_v34  ;;  %v12425_v34 = vcombine.low %v2433_v23, %v2437_v20  ;;  %v2473_v23 = vld [vmem:[#allocation6 + $0x150] sm:$0xff]  ;;  %v2478_v29 = vld [vmem:[#allocation6 + $0x178] sm:$0xff] }
 0x3c3   : > { %9255 = vmatpush1.bf16.msra.mxu1 %v13407_v35  ;;  %8928 = vmatprep.subr.bf16.mxu0 %v13414_v51  ;;  %v2442_v35 = vld [vmem:[#allocation6 + $0x58] sm:$0xff]  ;;  %v2477_v20 = vld [vmem:[#allocation6 + $0x170] sm:$0xff] }
 0x3c4   : > { %9256 = vmatprep.subr.bf16.mxu1 %v13416_v40  ;;  %v2446_v51 = vld [vmem:[#allocation6 + $0x78] sm:$0xff]  ;;  %v15131_v40 = vpack.c.bf16 %v2413_v27, %v2413_v27 }
 0x3c5   : > { %v12435_v60 = vcombine.low %v2442_v35, %v2446_v51 }
 0x3c6   : > { %8929 = vmatpush1.bf16.msra.mxu0 %v13413_v36  ;;  %v12436_v36 = vcombine.high %v2442_v35, %v2446_v51  ;;  %v12465_v35 = vcombine.low %v2473_v23, %v2477_v20  ;;  %v12467_v51 = vcombine.low %v2474_v26, %v2478_v29 }
 0x3c7   : > { %9257 = vmatpush1.bf16.msra.mxu1 %v13415_v50  ;;  %8930 = vmatprep.subr.bf16.mxu0 %v13422_v54  ;;  %v2450_v50 = vld [vmem:[#allocation6 + $0x98] sm:$0xff] }
 0x3c8   : > { %9258 = vmatprep.subr.bf16.mxu1 %v13424_v58  ;;  %v2454_v54 = vld [vmem:[#allocation6 + $0xb8] sm:$0xff]  ;;  %v12433_v58 = vcombine.low %v2441_v49, %v2445_v39  ;;  %v2485_v49 = vld [vmem:[#allocation6 + $0x1b0] sm:$0xff] }
 0x3c9   : > { %v12444_v2 = vcombine.high %v2450_v50, %v2454_v54  ;;  %v2482_v39 = vld [vmem:[#allocation6 + $0x198] sm:$0xff] }
 0x3ca   : > { %8931 = vmatpush1.bf16.msra.mxu0 %v13421_v3  ;;  %v2461_v3 = vld [vmem:[#allocation6 + $0xf0] sm:$0xff] }
 0x3cb   : > { %9259 = vmatpush1.bf16.msra.mxu1 %v13423_v5  ;;  %8932 = vmatprep.subr.bf16.mxu0 %v13430_v7  ;;  %v2462_v5 = vld [vmem:[#allocation6 + $0xf8] sm:$0xff]  ;;  %v12441_v7 = vcombine.low %v2449_v45, %v2453_v8  ;;  %v12450_v33 = vcombine.high %v2457_v12, %v2461_v3  ;;  %v2489_v45 = vld [vmem:[#allocation6 + $0x1d0] sm:$0xff] }
 0x3cc   : > { %9260 = vmatprep.subr.bf16.mxu1 %v13432_v9  ;;  %v12443_v9 = vcombine.low %v2450_v50, %v2454_v54  ;;  %v12452_v11 = vcombine.high %v2458_v4, %v2462_v5  ;;  %v2493_v8 = vld [vmem:[#allocation6 + $0x1f0] sm:$0xff]  ;;  %v2494_v50 = vld [vmem:[#allocation6 + $0x1f8] sm:$0xff] }
 0x3ce   : > { %8933 = vmatpush1.bf16.msra.mxu0 %v13429_v17  ;;  %v2466_v17 = vld [vmem:[#allocation6 + $0x118] sm:$0xff] }
 0x3cf   : > { %9261 = vmatpush1.bf16.msra.mxu1 %v13431_v21  ;;  %8934 = vmatprep.subr.bf16.mxu0 %v13438_v53  ;;  %v12451_v21 = vcombine.low %v2458_v4, %v2462_v5  ;;  %v12458_v53 = vcombine.high %v2465_v46, %v2469_v16  ;;  %v12459_v27 = vcombine.low %v2466_v17, %v2470_v19  ;;  %v2502_v4 = vld [vmem:[#allocation6 + $0x238] sm:$0xff] }
 0x3d0   : > { %9262 = vmatprep.subr.bf16.mxu1 %v13440_v32  ;;  %v12460_v32 = vcombine.high %v2466_v17, %v2470_v19  ;;  %v12481_v5 = vcombine.low %v2489_v45, %v2493_v8  ;;  %v2510_v17 = vld [vmem:[#allocation6 + $0x278] sm:$0xff] }
 0x3d2   : > { %8935 = vmatpush1.bf16.msra.mxu0 %v13437_v57  ;;  %v12457_v57 = vcombine.low %v2465_v46, %v2469_v16  ;;  %v2509_v46 = vld [vmem:[#allocation6 + $0x270] sm:$0xff]  ;;  %v2506_v16 = vld [vmem:[#allocation6 + $0x258] sm:$0xff] }
 0x3d3   : > { %9263 = vmatpush1.bf16.msra.mxu1 %v13439_v28  ;;  %9273 = vmatprep.subr.bf16.mxu0 %v12426_v43  ;;  %v12466_v28 = vcombine.high %v2473_v23, %v2477_v20  ;;  %v12468_v43 = vcombine.high %v2474_v26, %v2478_v29  ;;  %v2517_v23 = vld [vmem:[#allocation6 + $0x2b0] sm:$0xff]  ;;  %v2514_v20 = vld [vmem:[#allocation6 + $0x298] sm:$0xff] }
 0x3d4   : > { %9601 = vmatprep.subr.bf16.mxu1 %v12428_v14  ;;  %v2481_v14 = vld [vmem:[#allocation6 + $0x190] sm:$0xff]  ;;  %v2518_v26 = vld [vmem:[#allocation6 + $0x2b8] sm:$0xff] }
 0x3d5   : > { %8937 = vmatmul.mubr.bf16.vlgmr.msra.gmra.mrb[16].mxu0 %v15131_v40  ;;  %v12473_v54 = vcombine.low %v2481_v14, %v2485_v49 }
 0x3d6   : > { %9265 = vmatmul.mubr.bf16.vlgmr.msra.gmra.mrb[16].mxu1 %v15131_v40  ;;  %9274 = vmatpush1.bf16.msra.mxu0 %v12425_v34  ;;  %v2486_v34 = vld [vmem:[#allocation6 + $0x1b8] sm:$0xff] }
 0x3d7   : > { %9305 = vmatprep.mubr.bf16.mxu0 %v14975_v31  ;;  %9602 = vmatpush1.bf16.msra.mxu1 %v12427_v24  ;;  %v12474_v24 = vcombine.high %v2481_v14, %v2485_v49  ;;  %v2525_v14 = vld [vmem:[#allocation6 + $0x2f0] sm:$0xff]  ;;  %v2522_v49 = vld [vmem:[#allocation6 + $0x2d8] sm:$0xff] }
 0x3d8   : > { %9633 = vmatprep.mubr.bf16.mxu1 %v14975_v31  ;;  %9275 = vmatprep.subr.bf16.mxu0 %v12434_v42  ;;  %v12449_v31 = vcombine.low %v2457_v12, %v2461_v3  ;;  %v12476_v42 = vcombine.high %v2482_v39, %v2486_v34  ;;  %v2501_v12 = vld [vmem:[#allocation6 + $0x230] sm:$0xff]  ;;  %v2498_v3 = vld [vmem:[#allocation6 + $0x218] sm:$0xff] }
 0x3d9   : > { %9603 = vmatprep.subr.bf16.mxu1 %v12436_v36  ;;  %v2490_v36 = vld [vmem:[#allocation6 + $0x1d8] sm:$0xff] }
 0x3da   : > { %9276 = vmatpush1.bf16.msra.mxu0 %v12433_v58  ;;  %v12475_v58 = vcombine.low %v2482_v39, %v2486_v34  ;;  %v2526_v39 = vld [vmem:[#allocation6 + $0x2f8] sm:$0xff] }
 0x3db   : > { %9604 = vmatpush1.bf16.msra.mxu1 %v12435_v60  ;;  %9277 = vmatprep.subr.bf16.mxu0 %v12442_v0  ;;  %v12482_v60 = vcombine.high %v2489_v45, %v2493_v8  ;;  %v12484_v0 = vcombine.high %v2490_v36, %v2494_v50  ;;  %v2533_v45 = vld [vmem:[#allocation6 + $0x330] sm:$0xff]  ;;  %v2530_v8 = vld [vmem:[#allocation6 + $0x318] sm:$0xff] }
 0x3dc   : > { %9605 = vmatprep.subr.bf16.mxu1 %v12444_v2  ;;  %v2497_v2 = vld [vmem:[#allocation6 + $0x210] sm:$0xff] }
 0x3dd   : > { %v12489_v19 = vcombine.low %v2497_v2, %v2501_v12 }
 0x3de   : > { %9278 = vmatpush1.bf16.msra.mxu0 %v12441_v7  ;;  %v12483_v7 = vcombine.low %v2490_v36, %v2494_v50  ;;  %v2534_v36 = vld [vmem:[#allocation6 + $0x338] sm:$0xff] }
 0x3df   : > { %9606 = vmatpush1.bf16.msra.mxu1 %v12443_v9  ;;  %9279 = vmatprep.subr.bf16.mxu0 %v12450_v33  ;;  %v12490_v9 = vcombine.high %v2497_v2, %v2501_v12  ;;  %v12492_v33 = vcombine.high %v2498_v3, %v2502_v4  ;;  %v2541_v2 = vld [vmem:[#allocation6 + $0x370] sm:$0xff]  ;;  %v2538_v12 = vld [vmem:[#allocation6 + $0x358] sm:$0xff] }
 0x3e0   : > { %9607 = vmatprep.subr.bf16.mxu1 %v12452_v11  ;;  %v2505_v11 = vld [vmem:[#allocation6 + $0x250] sm:$0xff] }
 0x3e1   : > { %v12497_v29 = vcombine.low %v2505_v11, %v2509_v46 }
 0x3e2   : > { %9280 = vmatpush1.bf16.msra.mxu0 %v12449_v31  ;;  %v12491_v31 = vcombine.low %v2498_v3, %v2502_v4  ;;  %v2542_v3 = vld [vmem:[#allocation6 + $0x378] sm:$0xff] }
 0x3e3   : > { %9608 = vmatpush1.bf16.msra.mxu1 %v12451_v21  ;;  %9281 = vmatprep.subr.bf16.mxu0 %v12458_v53  ;;  %v12498_v21 = vcombine.high %v2505_v11, %v2509_v46  ;;  %v12500_v53 = vcombine.high %v2506_v16, %v2510_v17  ;;  %v2549_v11 = vld [vmem:[#allocation6 + $0x3b0] sm:$0xff]  ;;  %v2546_v46 = vld [vmem:[#allocation6 + $0x398] sm:$0xff] }
 0x3e4   : > { %9609 = vmatprep.subr.bf16.mxu1 %v12460_v32  ;;  %v2513_v32 = vld [vmem:[#allocation6 + $0x290] sm:$0xff] }
 0x3e5   : > { %v12505_v34 = vcombine.low %v2513_v32, %v2517_v23 }
 0x3e6   : > { %9282 = vmatpush1.bf16.msra.mxu0 %v12457_v57  ;;  %v12499_v57 = vcombine.low %v2506_v16, %v2510_v17  ;;  %v2550_v16 = vld [vmem:[#allocation6 + $0x3b8] sm:$0xff] }
 0x3e7   : > { %9610 = vmatpush1.bf16.msra.mxu1 %v12459_v27  ;;  %9283 = vmatprep.subr.bf16.mxu0 %v12466_v28  ;;  %v12506_v27 = vcombine.high %v2513_v32, %v2517_v23  ;;  %v12508_v28 = vcombine.high %v2514_v20, %v2518_v26  ;;  %v2557_v32 = vld [vmem:[#allocation6 + $0x3f0] sm:$0xff]  ;;  %v2554_v23 = vld [vmem:[#allocation6 + $0x3d8] sm:$0xff] }
 0x3e8   : > { %9611 = vmatprep.subr.bf16.mxu1 %v12468_v43  ;;  %v2521_v43 = vld [vmem:[#allocation6 + $0x2d0] sm:$0xff] }
 0x3e9   : > { %v12513_v50 = vcombine.low %v2521_v43, %v2525_v14 }
 0x3ea   : > { %9284 = vmatpush1.bf16.msra.mxu0 %v12465_v35  ;;  %v12507_v35 = vcombine.low %v2514_v20, %v2518_v26  ;;  %v2558_v20 = vld [vmem:[#allocation6 + $0x3f8] sm:$0xff] }
 0x3eb   : > { %9612 = vmatpush1.bf16.msra.mxu1 %v12467_v51  ;;  %9285 = vmatprep.subr.bf16.mxu0 %v12474_v24  ;;  %v12514_v51 = vcombine.high %v2521_v43, %v2525_v14  ;;  %v12516_v24 = vcombine.high %v2522_v49, %v2526_v39  ;;  %v2565_v43 = vld [vmem:[#allocation6 + $0x430] sm:$0xff]  ;;  %v2562_v14 = vld [vmem:[#allocation6 + $0x418] sm:$0xff] }
 0x3ec   : > { %9613 = vmatprep.subr.bf16.mxu1 %v12476_v42  ;;  %v2529_v42 = vld [vmem:[#allocation6 + $0x310] sm:$0xff] }
 0x3ed   : > { %v12521_v4 = vcombine.low %v2529_v42, %v2533_v45 }
 0x3ee   : > { %9286 = vmatpush1.bf16.msra.mxu0 %v12473_v54  ;;  %v12515_v54 = vcombine.low %v2522_v49, %v2526_v39  ;;  %v2566_v49 = vld [vmem:[#allocation6 + $0x438] sm:$0xff] }
 0x3ef   : > { %9614 = vmatpush1.bf16.msra.mxu1 %v12475_v58  ;;  %9287 = vmatprep.subr.bf16.mxu0 %v12482_v60  ;;  %v12522_v58 = vcombine.high %v2529_v42, %v2533_v45  ;;  %v12524_v60 = vcombine.high %v2530_v8, %v2534_v36  ;;  %v2573_v42 = vld [vmem:[#allocation6 + $0x470] sm:$0xff] }
 0x3f0   : > { %9615 = vmatprep.subr.bf16.mxu1 %v12484_v0  ;;  %v2537_v0 = vld [vmem:[#allocation6 + $0x350] sm:$0xff] }
 0x3f1   : > { %v12529_v17 = vcombine.low %v2537_v0, %v2541_v2 }
 0x3f2   : > { %9288 = vmatpush1.bf16.msra.mxu0 %v12481_v5  ;;  %v12523_v5 = vcombine.low %v2530_v8, %v2534_v36  ;;  %v2570_v8 = vld [vmem:[#allocation6 + $0x458] sm:$0xff] }
 0x3f3   : > { %9616 = vmatpush1.bf16.msra.mxu1 %v12483_v7  ;;  %9289 = vmatprep.subr.bf16.mxu0 %v12490_v9  ;;  %v12530_v7 = vcombine.high %v2537_v0, %v2541_v2  ;;  %v12532_v9 = vcombine.high %v2538_v12, %v2542_v3  ;;  %v2574_v36 = vld [vmem:[#allocation6 + $0x478] sm:$0xff] }
 0x3f4   : > { %9617 = vmatprep.subr.bf16.mxu1 %v12492_v33  ;;  %v2545_v33 = vld [vmem:[#allocation6 + $0x390] sm:$0xff]  ;;  %v12564_v0 = vcombine.high %v2570_v8, %v2574_v36  ;;  %v2578_v2 = vld [vmem:[#allocation6 + $0x498] sm:$0xff] }
 0x3f5   : > { %v12537_v26 = vcombine.low %v2545_v33, %v2549_v11 }
 0x3f6   : > { %9290 = vmatpush1.bf16.msra.mxu0 %v12489_v19  ;;  %v12531_v19 = vcombine.low %v2538_v12, %v2542_v3  ;;  %v2582_v12 = vld [vmem:[#allocation6 + $0x4b8] sm:$0xff] }
 0x3f7   : > { %9618 = vmatpush1.bf16.msra.mxu1 %v12491_v31  ;;  %9291 = vmatprep.subr.bf16.mxu0 %v12498_v21  ;;  %v12538_v31 = vcombine.high %v2545_v33, %v2549_v11  ;;  %v12540_v21 = vcombine.high %v2546_v46, %v2550_v16  ;;  %v2589_v33 = vld [vmem:[#allocation6 + $0x4f0] sm:$0xff]  ;;  %v2586_v11 = vld [vmem:[#allocation6 + $0x4d8] sm:$0xff] }
 0x3f8   : > { %9619 = vmatprep.subr.bf16.mxu1 %v12500_v53  ;;  %v2553_v53 = vld [vmem:[#allocation6 + $0x3d0] sm:$0xff] }
 0x3f9   : > { %v12545_v39 = vcombine.low %v2553_v53, %v2557_v32 }
 0x3fa   : > { %9292 = vmatpush1.bf16.msra.mxu0 %v12497_v29  ;;  %v12539_v29 = vcombine.low %v2546_v46, %v2550_v16  ;;  %v2590_v46 = vld [vmem:[#allocation6 + $0x4f8] sm:$0xff] }
 0x3fb   : > { %9620 = vmatpush1.bf16.msra.mxu1 %v12499_v57  ;;  %9293 = vmatprep.subr.bf16.mxu0 %v12506_v27  ;;  %v12546_v57 = vcombine.high %v2553_v53, %v2557_v32  ;;  %v12548_v27 = vcombine.high %v2554_v23, %v2558_v20  ;;  %v2594_v53 = vld [vmem:[#allocation6 + $0x518] sm:$0xff] }
 0x3fc   : > { %9621 = vmatprep.subr.bf16.mxu1 %v12508_v28  ;;  %v2561_v28 = vld [vmem:[#allocation6 + $0x410] sm:$0xff]  ;;  %v2598_v32 = vld [vmem:[#allocation6 + $0x538] sm:$0xff] }
 0x3fd   : > { %v12553_v45 = vcombine.low %v2561_v28, %v2565_v43 }
 0x3fe   : > { %9294 = vmatpush1.bf16.msra.mxu0 %v12505_v34  ;;  %v12547_v34 = vcombine.low %v2554_v23, %v2558_v20  ;;  %v12579_v23 = vcombine.low %v2586_v11, %v2590_v46 }
 0x3ff   : > { %9622 = vmatpush1.bf16.msra.mxu1 %v12507_v35  ;;  %9295 = vmatprep.subr.bf16.mxu0 %v12514_v51  ;;  %v12554_v35 = vcombine.high %v2561_v28, %v2565_v43  ;;  %v12556_v51 = vcombine.high %v2562_v14, %v2566_v49  ;;  %v2606_v28 = vld [vmem:[#allocation6 + $0x578] sm:$0xff] }
 0x400   : > { %9623 = vmatprep.subr.bf16.mxu1 %v12516_v24  ;;  %v2569_v24 = vld [vmem:[#allocation6 + $0x450] sm:$0xff] }
 0x401   : > { %v12561_v3 = vcombine.low %v2569_v24, %v2573_v42 }
 0x402   : > { %9296 = vmatpush1.bf16.msra.mxu0 %v12513_v50  ;;  %v12555_v50 = vcombine.low %v2562_v14, %v2566_v49  ;;  %v12587_v14 = vcombine.low %v2594_v53, %v2598_v32 }
 0x403   : > { %9624 = vmatpush1.bf16.msra.mxu1 %v12515_v54  ;;  %9297 = vmatprep.subr.bf16.mxu0 %v12522_v58  ;;  %v12562_v54 = vcombine.high %v2569_v24, %v2573_v42  ;;  %v2577_v58 = vld [vmem:[#allocation6 + $0x490] sm:$0xff]  ;;  %v2614_v24 = vld [vmem:[#allocation6 + $0x5b8] sm:$0xff] }
 0x404   : > { %9625 = vmatprep.subr.bf16.mxu1 %v12524_v60  ;;  %v2581_v60 = vld [vmem:[#allocation6 + $0x4b0] sm:$0xff] }
 0x405   : > { %v12569_v16 = vcombine.low %v2577_v58, %v2581_v60 }
 0x406   : > { %9298 = vmatpush1.bf16.msra.mxu0 %v12521_v4  ;;  %v12563_v4 = vcombine.low %v2570_v8, %v2574_v36 }
 0x407   : > { %9626 = vmatpush1.bf16.msra.mxu1 %v12523_v5  ;;  %9299 = vmatprep.subr.bf16.mxu0 %v12530_v7  ;;  %v12570_v5 = vcombine.high %v2577_v58, %v2581_v60  ;;  %v12572_v7 = vcombine.high %v2578_v2, %v2582_v12  ;;  %v2618_v58 = vld [vmem:[#allocation6 + $0x5d8] sm:$0xff] }
 0x408   : > { %9627 = vmatprep.subr.bf16.mxu1 %v12532_v9  ;;  %v2585_v9 = vld [vmem:[#allocation6 + $0x4d0] sm:$0xff]  ;;  %v2622_v60 = vld [vmem:[#allocation6 + $0x5f8] sm:$0xff] }
 0x40a   : > { %9300 = vmatpush1.bf16.msra.mxu0 %v12529_v17  ;;  %v12578_v17 = vcombine.high %v2585_v9, %v2589_v33 }
 0x40b   : > { %9628 = vmatpush1.bf16.msra.mxu1 %v12531_v19  ;;  %9301 = vmatprep.subr.bf16.mxu0 %v12538_v31  ;;  %v12580_v19 = vcombine.high %v2586_v11, %v2590_v46  ;;  %v2593_v31 = vld [vmem:[#allocation6 + $0x510] sm:$0xff]  ;;  %v12611_v11 = vcombine.low %v2618_v58, %v2622_v60 }
 0x40c   : > { %9629 = vmatprep.subr.bf16.mxu1 %v12540_v21  ;;  %v2597_v21 = vld [vmem:[#allocation6 + $0x530] sm:$0xff] }
 0x40d   : > { %v12586_v20 = vcombine.high %v2593_v31, %v2597_v21  ;;  %v12585_v43 = vcombine.low %v2593_v31, %v2597_v21  ;;  %v2638_v31 = vld [vmem:[#allocation6 + $0x678] sm:$0xff] }
 0x40e   : > { %9302 = vmatpush1.bf16.msra.mxu0 %v12537_v26  ;;  %v12588_v26 = vcombine.high %v2594_v53, %v2598_v32 }
 0x40f   : > { %9630 = vmatpush1.bf16.msra.mxu1 %v12539_v29  ;;  %9303 = vmatprep.subr.bf16.mxu0 %v12546_v57  ;;  %v2601_v29 = vld [vmem:[#allocation6 + $0x550] sm:$0xff] }
 0x410   : > { %9631 = vmatprep.subr.bf16.mxu1 %v12548_v27  ;;  %v2605_v57 = vld [vmem:[#allocation6 + $0x570] sm:$0xff]  ;;  %v2602_v27 = vld [vmem:[#allocation6 + $0x558] sm:$0xff] }
 0x411   : > { %v12594_v49 = vcombine.high %v2601_v29, %v2605_v57  ;;  %v12593_v42 = vcombine.low %v2601_v29, %v2605_v57  ;;  %v2646_v29 = vld [vmem:[#allocation6 + $0x6b8] sm:$0xff] }
 0x412   : > { %9304 = vmatpush1.bf16.msra.mxu0 %v12545_v39  ;;  %v12596_v39 = vcombine.high %v2602_v27, %v2606_v28 }
 0x413   : > { %9632 = vmatpush1.bf16.msra.mxu1 %v12547_v34  ;;  %9314 = vmatprep.subr.bf16.mxu0 %v12554_v35  ;;  %v2609_v34 = vld [vmem:[#allocation6 + $0x590] sm:$0xff] }
 0x414   : > { %9642 = vmatprep.subr.bf16.mxu1 %v12556_v51  ;;  %v2613_v35 = vld [vmem:[#allocation6 + $0x5b0] sm:$0xff]  ;;  %v2610_v51 = vld [vmem:[#allocation6 + $0x598] sm:$0xff] }
 0x415   : > { %9306 = vmatmul.mubr.bf16.vlgmr.msra.gmra.mrb[20].mxu0 %v14991_v55  ;;  %v12602_v8 = vcombine.high %v2609_v34, %v2613_v35  ;;  %v12604_v36 = vcombine.high %v2610_v51, %v2614_v24 }
 0x416   : > { %9634 = vmatmul.mubr.bf16.vlgmr.msra.gmra.mrb[20].mxu1 %v14991_v55  ;;  %9315 = vmatpush1.bf16.msra.mxu0 %v12553_v45  ;;  %v12571_v55 = vcombine.low %v2578_v2, %v2582_v12  ;;  %v12595_v45 = vcombine.low %v2602_v27, %v2606_v28  ;;  %v12603_v2 = vcombine.low %v2610_v51, %v2614_v24 }
 0x417   : > { %9346 = vmatprep.mubr.bf16.mxu0 %v14993_v62  ;;  %9643 = vmatpush1.bf16.msra.mxu1 %v12555_v50  ;;  %v2617_v50 = vld [vmem:[#allocation6 + $0x5d0] sm:$0xff] }
 0x418   : > { %9674 = vmatprep.mubr.bf16.mxu1 %v14993_v62  ;;  %9316 = vmatprep.subr.bf16.mxu0 %v12562_v54  ;;  %v12577_v62 = vcombine.low %v2585_v9, %v2589_v33  ;;  %v2621_v54 = vld [vmem:[#allocation6 + $0x5f0] sm:$0xff]  ;;  %v2630_v9 = vld [vmem:[#allocation6 + $0x638] sm:$0xff] }
 0x419   : > { %9644 = vmatprep.subr.bf16.mxu1 %v12564_v0  ;;  %v12601_v0 = vcombine.low %v2609_v34, %v2613_v35  ;;  %v12610_v12 = vcombine.high %v2617_v50, %v2621_v54  ;;  %v12609_v33 = vcombine.low %v2617_v50, %v2621_v54  ;;  %v2654_v34 = vld [vmem:[#allocation6 + $0x6f8] sm:$0xff] }
 0x41a   : > { %9317 = vmatpush1.bf16.msra.mxu0 %v12561_v3  ;;  %v12612_v3 = vcombine.high %v2618_v58, %v2622_v60  ;;  %v2662_v50 = vld [vmem:[#allocation6 + $0x738] sm:$0xff] }
 0x41b   : > { %9645 = vmatpush1.bf16.msra.mxu1 %v12563_v4  ;;  %9318 = vmatprep.subr.bf16.mxu0 %v12570_v5  ;;  %v2625_v4 = vld [vmem:[#allocation6 + $0x610] sm:$0xff] }
 0x41c   : > { %9646 = vmatprep.subr.bf16.mxu1 %v12572_v7  ;;  %v2629_v5 = vld [vmem:[#allocation6 + $0x630] sm:$0xff]  ;;  %v2626_v7 = vld [vmem:[#allocation6 + $0x618] sm:$0xff] }
 0x41d   : > { %v12618_v46 = vcombine.high %v2625_v4, %v2629_v5  ;;  %v12617_v21 = vcombine.low %v2625_v4, %v2629_v5  ;;  %v12619_v53 = vcombine.low %v2626_v7, %v2630_v9  ;;  %v2670_v4 = vld [vmem:[#allocation6 + $0x778] sm:$0xff] }
 0x41e   : > { %9319 = vmatpush1.bf16.msra.mxu0 %v12569_v16  ;;  %v12620_v16 = vcombine.high %v2626_v7, %v2630_v9 }
 0x41f   : > { %9647 = vmatpush1.bf16.msra.mxu1 %v12571_v55  ;;  %9320 = vmatprep.subr.bf16.mxu0 %v12578_v17  ;;  %v2633_v55 = vld [vmem:[#allocation6 + $0x650] sm:$0xff] }
 0x420   : > { %9648 = vmatprep.subr.bf16.mxu1 %v12580_v19  ;;  %v2637_v17 = vld [vmem:[#allocation6 + $0x670] sm:$0xff]  ;;  %v2634_v19 = vld [vmem:[#allocation6 + $0x658] sm:$0xff] }
 0x421   : > { %v12626_v32 = vcombine.high %v2633_v55, %v2637_v17  ;;  %v12625_v57 = vcombine.low %v2633_v55, %v2637_v17  ;;  %v12627_v27 = vcombine.low %v2634_v19, %v2638_v31  ;;  %v2678_v55 = vld [vmem:[#allocation6 + $0x7b8] sm:$0xff] }
 0x422   : > { %9321 = vmatpush1.bf16.msra.mxu0 %v12577_v62  ;;  %v12628_v62 = vcombine.high %v2634_v19, %v2638_v31 }
 0x423   : > { %9649 = vmatpush1.bf16.msra.mxu1 %v12579_v23  ;;  %9322 = vmatprep.subr.bf16.mxu0 %v12586_v20  ;;  %v2641_v23 = vld [vmem:[#allocation6 + $0x690] sm:$0xff] }
 0x424   : > { %9650 = vmatprep.subr.bf16.mxu1 %v12588_v26  ;;  %v2645_v20 = vld [vmem:[#allocation6 + $0x6b0] sm:$0xff]  ;;  %v2642_v26 = vld [vmem:[#allocation6 + $0x698] sm:$0xff] }
 0x425   : > { %v12634_v28 = vcombine.high %v2641_v23, %v2645_v20  ;;  %v12633_v35 = vcombine.low %v2641_v23, %v2645_v20  ;;  %v12635_v51 = vcombine.low %v2642_v26, %v2646_v29  ;;  %v2686_v23 = vld [vmem:[#allocation6 + $0x7f8] sm:$0xff] }
 0x426   : > { %9323 = vmatpush1.bf16.msra.mxu0 %v12585_v43  ;;  %v12636_v43 = vcombine.high %v2642_v26, %v2646_v29 }
 0x427   : > { %9651 = vmatpush1.bf16.msra.mxu1 %v12587_v14  ;;  %9324 = vmatprep.subr.bf16.mxu0 %v12594_v49  ;;  %v2649_v14 = vld [vmem:[#allocation6 + $0x6d0] sm:$0xff] }
 0x428   : > { %9652 = vmatprep.subr.bf16.mxu1 %v12596_v39  ;;  %v2653_v49 = vld [vmem:[#allocation6 + $0x6f0] sm:$0xff]  ;;  %v2650_v39 = vld [vmem:[#allocation6 + $0x6d8] sm:$0xff] }
 0x429   : > { %v12642_v24 = vcombine.high %v2649_v14, %v2653_v49  ;;  %v12641_v54 = vcombine.low %v2649_v14, %v2653_v49  ;;  %v12643_v58 = vcombine.low %v2650_v39, %v2654_v34  ;;  %v2694_v14 = vld [vmem:[#allocation6 + $0x838] sm:$0xff] }
 0x42a   : > { %9325 = vmatpush1.bf16.msra.mxu0 %v12593_v42  ;;  %v12644_v42 = vcombine.high %v2650_v39, %v2654_v34 }
 0x42b   : > { %9653 = vmatpush1.bf16.msra.mxu1 %v12595_v45  ;;  %9326 = vmatprep.subr.bf16.mxu0 %v12602_v8  ;;  %v2657_v45 = vld [vmem:[#allocation6 + $0x710] sm:$0xff] }
 0x42c   : > { %9654 = vmatprep.subr.bf16.mxu1 %v12604_v36  ;;  %v2661_v8 = vld [vmem:[#allocation6 + $0x730] sm:$0xff]  ;;  %v2658_v36 = vld [vmem:[#allocation6 + $0x718] sm:$0xff] }
 0x42d   : > { %v12650_v60 = vcombine.high %v2657_v45, %v2661_v8  ;;  %v12649_v5 = vcombine.low %v2657_v45, %v2661_v8  ;;  %v12651_v7 = vcombine.low %v2658_v36, %v2662_v50  ;;  %v2698_v45 = vld [vmem:[#allocation6 + $0x858] sm:$0xff] }
 0x42e   : > { %9327 = vmatpush1.bf16.msra.mxu0 %v12601_v0  ;;  %v12652_v0 = vcombine.high %v2658_v36, %v2662_v50  ;;  %v2702_v8 = vld [vmem:[#allocation6 + $0x878] sm:$0xff] }
 0x42f   : > { %9655 = vmatpush1.bf16.msra.mxu1 %v12603_v2  ;;  %9328 = vmatprep.subr.bf16.mxu0 %v12610_v12  ;;  %v2665_v2 = vld [vmem:[#allocation6 + $0x750] sm:$0xff] }
 0x430   : > { %9656 = vmatprep.subr.bf16.mxu1 %v12612_v3  ;;  %v2669_v12 = vld [vmem:[#allocation6 + $0x770] sm:$0xff]  ;;  %v2666_v3 = vld [vmem:[#allocation6 + $0x758] sm:$0xff] }
 0x431   : > { %v12658_v9 = vcombine.high %v2665_v2, %v2669_v12  ;;  %v12657_v17 = vcombine.low %v2665_v2, %v2669_v12  ;;  %v12659_v19 = vcombine.low %v2666_v3, %v2670_v4  ;;  %v2710_v2 = vld [vmem:[#allocation6 + $0x8b8] sm:$0xff] }
 0x432   : > { %9329 = vmatpush1.bf16.msra.mxu0 %v12609_v33  ;;  %v12660_v33 = vcombine.high %v2666_v3, %v2670_v4  ;;  %v12691_v3 = vcombine.low %v2698_v45, %v2702_v8 }
 0x433   : > { %9657 = vmatpush1.bf16.msra.mxu1 %v12611_v11  ;;  %9330 = vmatprep.subr.bf16.mxu0 %v12618_v46  ;;  %v2673_v11 = vld [vmem:[#allocation6 + $0x790] sm:$0xff] }
 0x434   : > { %9658 = vmatprep.subr.bf16.mxu1 %v12620_v16  ;;  %v2677_v46 = vld [vmem:[#allocation6 + $0x7b0] sm:$0xff]  ;;  %v2674_v16 = vld [vmem:[#allocation6 + $0x798] sm:$0xff] }
 0x435   : > { %v12666_v31 = vcombine.high %v2673_v11, %v2677_v46  ;;  %v12665_v20 = vcombine.low %v2673_v11, %v2677_v46  ;;  %v12667_v26 = vcombine.low %v2674_v16, %v2678_v55  ;;  %v2718_v11 = vld [vmem:[#allocation6 + $0x8f8] sm:$0xff] }
 0x436   : > { %9331 = vmatpush1.bf16.msra.mxu0 %v12617_v21  ;;  %v12668_v21 = vcombine.high %v2674_v16, %v2678_v55 }
 0x437   : > { %9659 = vmatpush1.bf16.msra.mxu1 %v12619_v53  ;;  %9332 = vmatprep.subr.bf16.mxu0 %v12626_v32  ;;  %v2681_v53 = vld [vmem:[#allocation6 + $0x7d0] sm:$0xff] }
 0x438   : > { %9660 = vmatprep.subr.bf16.mxu1 %v12628_v62  ;;  %v2685_v32 = vld [vmem:[#allocation6 + $0x7f0] sm:$0xff]  ;;  %v2682_v62 = vld [vmem:[#allocation6 + $0x7d8] sm:$0xff] }
 0x439   : > { %v12674_v29 = vcombine.high %v2681_v53, %v2685_v32  ;;  %v12673_v49 = vcombine.low %v2681_v53, %v2685_v32  ;;  %v12675_v39 = vcombine.low %v2682_v62, %v2686_v23 }
 0x43a   : > { %9333 = vmatpush1.bf16.msra.mxu0 %v12625_v57  ;;  %v12676_v57 = vcombine.high %v2682_v62, %v2686_v23  ;;  %v2729_v23 = vld [vmem:[#allocation6 + $0x950] sm:$0xff] }
 0x43b   : > { %9661 = vmatpush1.bf16.msra.mxu1 %v12627_v27  ;;  %9334 = vmatprep.subr.bf16.mxu0 %v12634_v28  ;;  %v2689_v27 = vld [vmem:[#allocation6 + $0x810] sm:$0xff] }
 0x43c   : > { %9662 = vmatprep.subr.bf16.mxu1 %v12636_v43  ;;  %v2693_v28 = vld [vmem:[#allocation6 + $0x830] sm:$0xff]  ;;  %v2690_v43 = vld [vmem:[#allocation6 + $0x818] sm:$0xff] }
 0x43d   : > { %v12682_v34 = vcombine.high %v2689_v27, %v2693_v28  ;;  %v12683_v36 = vcombine.low %v2690_v43, %v2694_v14 }
 0x43e   : > { %9335 = vmatpush1.bf16.msra.mxu0 %v12633_v35  ;;  %v12684_v35 = vcombine.high %v2690_v43, %v2694_v14  ;;  %v2737_v14 = vld [vmem:[#allocation6 + $0x990] sm:$0xff] }
 0x43f   : > { %9663 = vmatpush1.bf16.msra.mxu1 %v12635_v51  ;;  %9336 = vmatprep.subr.bf16.mxu0 %v12642_v24  ;;  %v2697_v51 = vld [vmem:[#allocation6 + $0x850] sm:$0xff] }
 0x440   : > { %9664 = vmatprep.subr.bf16.mxu1 %v12644_v42  ;;  %v2701_v24 = vld [vmem:[#allocation6 + $0x870] sm:$0xff]  ;;  %v12681_v42 = vcombine.low %v2689_v27, %v2693_v28 }
 0x441   : > { %v12690_v50 = vcombine.high %v2697_v51, %v2701_v24  ;;  %v12689_v12 = vcombine.low %v2697_v51, %v2701_v24 }
 0x442   : > { %9337 = vmatpush1.bf16.msra.mxu0 %v12641_v54  ;;  %v2705_v54 = vld [vmem:[#allocation6 + $0x890] sm:$0xff] }
 0x443   : > { %9665 = vmatpush1.bf16.msra.mxu1 %v12643_v58  ;;  %9338 = vmatprep.subr.bf16.mxu0 %v12650_v60  ;;  %v2709_v58 = vld [vmem:[#allocation6 + $0x8b0] sm:$0xff]  ;;  %v12692_v60 = vcombine.high %v2698_v45, %v2702_v8 }
 0x444   : > { %9666 = vmatprep.subr.bf16.mxu1 %v12652_v0  ;;  %v2706_v0 = vld [vmem:[#allocation6 + $0x898] sm:$0xff]  ;;  %v12698_v4 = vcombine.high %v2705_v54, %v2709_v58  ;;  %v12697_v46 = vcombine.low %v2705_v54, %v2709_v58  ;;  %v2745_v45 = vld [vmem:[#allocation6 + $0x9d0] sm:$0xff] }
 0x445   : > { %v2749_v8 = vld [vmem:[#allocation6 + $0x9f0] sm:$0xff] }
 0x446   : > { %9339 = vmatpush1.bf16.msra.mxu0 %v12649_v5  ;;  %v12700_v5 = vcombine.high %v2706_v0, %v2710_v2 }
 0x447   : > { %9667 = vmatpush1.bf16.msra.mxu1 %v12651_v7  ;;  %9340 = vmatprep.subr.bf16.mxu0 %v12658_v9  ;;  %v2713_v7 = vld [vmem:[#allocation6 + $0x8d0] sm:$0xff] }
 0x448   : > { %9668 = vmatprep.subr.bf16.mxu1 %v12660_v33  ;;  %v2717_v9 = vld [vmem:[#allocation6 + $0x8f0] sm:$0xff]  ;;  %v2714_v33 = vld [vmem:[#allocation6 + $0x8d8] sm:$0xff] }
 0x449   : > { %v12706_v16 = vcombine.high %v2713_v7, %v2717_v9  ;;  %v12708_v55 = vcombine.high %v2714_v33, %v2718_v11  ;;  %v12707_v53 = vcombine.low %v2714_v33, %v2718_v11  ;;  %v2761_v11 = vld [vmem:[#allocation6 + $0xa50] sm:$0xff] }
 0x44a   : > { %9341 = vmatpush1.bf16.msra.mxu0 %v12657_v17  ;;  %v2721_v17 = vld [vmem:[#allocation6 + $0x910] sm:$0xff] }
 0x44b   : > { %9669 = vmatpush1.bf16.msra.mxu1 %v12659_v19  ;;  %9342 = vmatprep.subr.bf16.mxu0 %v12666_v31  ;;  %v2725_v19 = vld [vmem:[#allocation6 + $0x930] sm:$0xff]  ;;  %v2722_v31 = vld [vmem:[#allocation6 + $0x918] sm:$0xff] }
 0x44c   : > { %9670 = vmatprep.subr.bf16.mxu1 %v12668_v21  ;;  %v2726_v21 = vld [vmem:[#allocation6 + $0x938] sm:$0xff]  ;;  %v12714_v32 = vcombine.high %v2721_v17, %v2725_v19 }
 0x44d   : > { %v12716_v62 = vcombine.high %v2722_v31, %v2726_v21  ;;  %v12715_v27 = vcombine.low %v2722_v31, %v2726_v21  ;;  %v2769_v21 = vld [vmem:[#allocation6 + $0xa90] sm:$0xff] }
 0x44e   : > { %9343 = vmatpush1.bf16.msra.mxu0 %v12665_v20  ;;  %v2733_v20 = vld [vmem:[#allocation6 + $0x970] sm:$0xff] }
 0x44f   : > { %9671 = vmatpush1.bf16.msra.mxu1 %v12667_v26  ;;  %9344 = vmatprep.subr.bf16.mxu0 %v12674_v29  ;;  %v2730_v26 = vld [vmem:[#allocation6 + $0x958] sm:$0xff]  ;;  %v12722_v28 = vcombine.high %v2729_v23, %v2733_v20 }
 0x450   : > { %9672 = vmatprep.subr.bf16.mxu1 %v12676_v57  ;;  %v2734_v29 = vld [vmem:[#allocation6 + $0x978] sm:$0xff]  ;;  %v12713_v57 = vcombine.low %v2721_v17, %v2725_v19 }
 0x451   : > { %v12724_v43 = vcombine.high %v2730_v26, %v2734_v29  ;;  %v12723_v51 = vcombine.low %v2730_v26, %v2734_v29  ;;  %v2777_v29 = vld [vmem:[#allocation6 + $0xad0] sm:$0xff] }
 0x452   : > { %9345 = vmatpush1.bf16.msra.mxu0 %v12673_v49  ;;  %v2741_v49 = vld [vmem:[#allocation6 + $0x9b0] sm:$0xff] }
 0x453   : > { %9673 = vmatpush1.bf16.msra.mxu1 %v12675_v39  ;;  %9355 = vmatprep.subr.bf16.mxu0 %v12682_v34  ;;  %v2738_v39 = vld [vmem:[#allocation6 + $0x998] sm:$0xff]  ;;  %v12730_v24 = vcombine.high %v2737_v14, %v2741_v49  ;;  %v12729_v54 = vcombine.low %v2737_v14, %v2741_v49 }
 0x454   : > { %9683 = vmatprep.subr.bf16.mxu1 %v12684_v35  ;;  %v2742_v34 = vld [vmem:[#allocation6 + $0x9b8] sm:$0xff]  ;;  %v12721_v35 = vcombine.low %v2729_v23, %v2733_v20 }
 0x455   : > { %9347 = vmatmul.mubr.bf16.vlgmr.msra.gmra.mrb[20].mxu0 %v15019_v37  ;;  %v12731_v58 = vcombine.low %v2738_v39, %v2742_v34 }
 0x456   : > { %9675 = vmatmul.mubr.bf16.vlgmr.msra.gmra.mrb[20].mxu1 %v15019_v37  ;;  %9356 = vmatpush1.bf16.msra.mxu0 %v12681_v42  ;;  %v12699_v37 = vcombine.low %v2706_v0, %v2710_v2  ;;  %v12732_v42 = vcombine.high %v2738_v39, %v2742_v34  ;;  %v2753_v2 = vld [vmem:[#allocation6 + $0xa10] sm:$0xff] }
 0x457   : > { %9387 = vmatprep.mubr.bf16.mxu0 %v15021_v41  ;;  %9684 = vmatpush1.bf16.msra.mxu1 %v12683_v36  ;;  %v2746_v36 = vld [vmem:[#allocation6 + $0x9d8] sm:$0xff]  ;;  %v2785_v34 = vld [vmem:[#allocation6 + $0xb10] sm:$0xff] }
 0x458   : > { %9715 = vmatprep.mubr.bf16.mxu1 %v15021_v41  ;;  %9357 = vmatprep.subr.bf16.mxu0 %v12690_v50  ;;  %v12705_v41 = vcombine.low %v2713_v7, %v2717_v9  ;;  %v2750_v50 = vld [vmem:[#allocation6 + $0x9f8] sm:$0xff] }
 0x459   : > { %9685 = vmatprep.subr.bf16.mxu1 %v12692_v60  ;;  %v12738_v60 = vcombine.high %v2745_v45, %v2749_v8  ;;  %v12740_v0 = vcombine.high %v2746_v36, %v2750_v50  ;;  %v12739_v7 = vcombine.low %v2746_v36, %v2750_v50  ;;  %v2793_v50 = vld [vmem:[#allocation6 + $0xb50] sm:$0xff] }
 0x45a   : > { %9358 = vmatpush1.bf16.msra.mxu0 %v12689_v12  ;;  %v2757_v12 = vld [vmem:[#allocation6 + $0xa30] sm:$0xff] }
 0x45b   : > { %9686 = vmatpush1.bf16.msra.mxu1 %v12691_v3  ;;  %9359 = vmatprep.subr.bf16.mxu0 %v12698_v4  ;;  %v2754_v3 = vld [vmem:[#allocation6 + $0xa18] sm:$0xff]  ;;  %v12746_v9 = vcombine.high %v2753_v2, %v2757_v12 }
 0x45c   : > { %9687 = vmatprep.subr.bf16.mxu1 %v12700_v5  ;;  %v2758_v4 = vld [vmem:[#allocation6 + $0xa38] sm:$0xff]  ;;  %v12737_v5 = vcombine.low %v2745_v45, %v2749_v8 }
 0x45d   : > { %v12748_v33 = vcombine.high %v2754_v3, %v2758_v4  ;;  %v12747_v17 = vcombine.low %v2754_v3, %v2758_v4  ;;  %v2801_v4 = vld [vmem:[#allocation6 + $0xb90] sm:$0xff] }
 0x45e   : > { %9360 = vmatpush1.bf16.msra.mxu0 %v12697_v46  ;;  %v2765_v46 = vld [vmem:[#allocation6 + $0xa70] sm:$0xff] }
 0x45f   : > { %9688 = vmatpush1.bf16.msra.mxu1 %v12699_v37  ;;  %9361 = vmatprep.subr.bf16.mxu0 %v12706_v16  ;;  %v2762_v37 = vld [vmem:[#allocation6 + $0xa58] sm:$0xff]  ;;  %v12754_v19 = vcombine.high %v2761_v11, %v2765_v46 }
 0x460   : > { %9689 = vmatprep.subr.bf16.mxu1 %v12708_v55  ;;  %v2766_v16 = vld [vmem:[#allocation6 + $0xa78] sm:$0xff]  ;;  %v12745_v55 = vcombine.low %v2753_v2, %v2757_v12 }
 0x461   : > { %v12756_v31 = vcombine.high %v2762_v37, %v2766_v16  ;;  %v12755_v23 = vcombine.low %v2762_v37, %v2766_v16  ;;  %v2809_v16 = vld [vmem:[#allocation6 + $0xbd0] sm:$0xff] }
 0x462   : > { %9362 = vmatpush1.bf16.msra.mxu0 %v12705_v41  ;;  %v2773_v41 = vld [vmem:[#allocation6 + $0xab0] sm:$0xff] }
 0x463   : > { %9690 = vmatpush1.bf16.msra.mxu1 %v12707_v53  ;;  %9363 = vmatprep.subr.bf16.mxu0 %v12714_v32  ;;  %v2770_v53 = vld [vmem:[#allocation6 + $0xa98] sm:$0xff]  ;;  %v12762_v20 = vcombine.high %v2769_v21, %v2773_v41 }
 0x464   : > { %9691 = vmatprep.subr.bf16.mxu1 %v12716_v62  ;;  %v2774_v32 = vld [vmem:[#allocation6 + $0xab8] sm:$0xff]  ;;  %v12753_v62 = vcombine.low %v2761_v11, %v2765_v46 }
 0x465   : > { %v12764_v26 = vcombine.high %v2770_v53, %v2774_v32  ;;  %v12763_v14 = vcombine.low %v2770_v53, %v2774_v32  ;;  %v2817_v32 = vld [vmem:[#allocation6 + $0xc10] sm:$0xff] }
 0x466   : > { %9364 = vmatpush1.bf16.msra.mxu0 %v12713_v57  ;;  %v2781_v57 = vld [vmem:[#allocation6 + $0xaf0] sm:$0xff] }
 0x467   : > { %9692 = vmatpush1.bf16.msra.mxu1 %v12715_v27  ;;  %9365 = vmatprep.subr.bf16.mxu0 %v12722_v28  ;;  %v2778_v27 = vld [vmem:[#allocation6 + $0xad8] sm:$0xff]  ;;  %v12770_v49 = vcombine.high %v2777_v29, %v2781_v57 }
 0x468   : > { %9693 = vmatprep.subr.bf16.mxu1 %v12724_v43  ;;  %v2782_v28 = vld [vmem:[#allocation6 + $0xaf8] sm:$0xff]  ;;  %v12761_v43 = vcombine.low %v2769_v21, %v2773_v41 }
 0x469   : > { %v12772_v39 = vcombine.high %v2778_v27, %v2782_v28  ;;  %v12771_v45 = vcombine.low %v2778_v27, %v2782_v28  ;;  %v2825_v28 = vld [vmem:[#allocation6 + $0xc50] sm:$0xff] }
 0x46a   : > { %9366 = vmatpush1.bf16.msra.mxu0 %v12721_v35  ;;  %v2789_v35 = vld [vmem:[#allocation6 + $0xb30] sm:$0xff] }
 0x46b   : > { %9694 = vmatpush1.bf16.msra.mxu1 %v12723_v51  ;;  %9367 = vmatprep.subr.bf16.mxu0 %v12730_v24  ;;  %v2786_v51 = vld [vmem:[#allocation6 + $0xb18] sm:$0xff]  ;;  %v12778_v8 = vcombine.high %v2785_v34, %v2789_v35 }
 0x46c   : > { %9695 = vmatprep.subr.bf16.mxu1 %v12732_v42  ;;  %v2790_v24 = vld [vmem:[#allocation6 + $0xb38] sm:$0xff]  ;;  %v12769_v42 = vcombine.low %v2777_v29, %v2781_v57 }
 0x46d   : > { %v12780_v36 = vcombine.high %v2786_v51, %v2790_v24  ;;  %v12779_v2 = vcombine.low %v2786_v51, %v2790_v24  ;;  %v2833_v51 = vld [vmem:[#allocation6 + $0xc90] sm:$0xff] }
 0x46e   : > { %9368 = vmatpush1.bf16.msra.mxu0 %v12729_v54  ;;  %v2797_v54 = vld [vmem:[#allocation6 + $0xb70] sm:$0xff] }
 0x46f   : > { %9696 = vmatpush1.bf16.msra.mxu1 %v12731_v58  ;;  %9369 = vmatprep.subr.bf16.mxu0 %v12738_v60  ;;  %v2794_v58 = vld [vmem:[#allocation6 + $0xb58] sm:$0xff]  ;;  %v12786_v12 = vcombine.high %v2793_v50, %v2797_v54  ;;  %v2837_v24 = vld [vmem:[#allocation6 + $0xcb0] sm:$0xff] }
 0x470   : > { %9697 = vmatprep.subr.bf16.mxu1 %v12740_v0  ;;  %v2798_v60 = vld [vmem:[#allocation6 + $0xb78] sm:$0xff]  ;;  %v12777_v0 = vcombine.low %v2785_v34, %v2789_v35 }
 0x471   : > { %v12788_v3 = vcombine.high %v2794_v58, %v2798_v60  ;;  %v12787_v11 = vcombine.low %v2794_v58, %v2798_v60  ;;  %v2841_v60 = vld [vmem:[#allocation6 + $0xcd0] sm:$0xff] }
 0x472   : > { %9370 = vmatpush1.bf16.msra.mxu0 %v12737_v5  ;;  %v2805_v5 = vld [vmem:[#allocation6 + $0xbb0] sm:$0xff] }
 0x473   : > { %9698 = vmatpush1.bf16.msra.mxu1 %v12739_v7  ;;  %9371 = vmatprep.subr.bf16.mxu0 %v12746_v9  ;;  %v2802_v7 = vld [vmem:[#allocation6 + $0xb98] sm:$0xff]  ;;  %v12794_v46 = vcombine.high %v2801_v4, %v2805_v5 }
 0x474   : > { %9699 = vmatprep.subr.bf16.mxu1 %v12748_v33  ;;  %v2806_v9 = vld [vmem:[#allocation6 + $0xbb8] sm:$0xff]  ;;  %v12785_v33 = vcombine.low %v2793_v50, %v2797_v54  ;;  %v12826_v54 = vcombine.high %v2833_v51, %v2837_v24 }
 0x475   : > { %v12796_v37 = vcombine.high %v2802_v7, %v2806_v9  ;;  %v12795_v21 = vcombine.low %v2802_v7, %v2806_v9  ;;  %v2849_v7 = vld [vmem:[#allocation6 + $0xd10] sm:$0xff] }
 0x476   : > { %9372 = vmatpush1.bf16.msra.mxu0 %v12745_v55  ;;  %v2813_v55 = vld [vmem:[#allocation6 + $0xbf0] sm:$0xff] }
 0x477   : > { %9700 = vmatpush1.bf16.msra.mxu1 %v12747_v17  ;;  %9373 = vmatprep.subr.bf16.mxu0 %v12754_v19  ;;  %v2810_v17 = vld [vmem:[#allocation6 + $0xbd8] sm:$0xff]  ;;  %v12802_v41 = vcombine.high %v2809_v16, %v2813_v55  ;;  %v2853_v9 = vld [vmem:[#allocation6 + $0xd30] sm:$0xff] }
 0x478   : > { %9701 = vmatprep.subr.bf16.mxu1 %v12756_v31  ;;  %v2814_v19 = vld [vmem:[#allocation6 + $0xbf8] sm:$0xff]  ;;  %v12793_v31 = vcombine.low %v2801_v4, %v2805_v5 }
 0x479   : > { %v12804_v53 = vcombine.high %v2810_v17, %v2814_v19  ;;  %v12803_v29 = vcombine.low %v2810_v17, %v2814_v19  ;;  %v2861_v17 = vld [vmem:[#allocation6 + $0xd70] sm:$0xff]  ;;  %v2858_v19 = vld [vmem:[#allocation6 + $0xd58] sm:$0xff] }
 0x47a   : > { %9374 = vmatpush1.bf16.msra.mxu0 %v12753_v62  ;;  %v2821_v62 = vld [vmem:[#allocation6 + $0xc30] sm:$0xff] }
 0x47b   : > { %9702 = vmatpush1.bf16.msra.mxu1 %v12755_v23  ;;  %9375 = vmatprep.subr.bf16.mxu0 %v12762_v20  ;;  %v2818_v23 = vld [vmem:[#allocation6 + $0xc18] sm:$0xff]  ;;  %v12810_v57 = vcombine.high %v2817_v32, %v2821_v62 }
 0x47c   : > { %9703 = vmatprep.subr.bf16.mxu1 %v12764_v26  ;;  %v2822_v20 = vld [vmem:[#allocation6 + $0xc38] sm:$0xff]  ;;  %v12801_v26 = vcombine.low %v2809_v16, %v2813_v55  ;;  %v2857_v55 = vld [vmem:[#allocation6 + $0xd50] sm:$0xff] }
 0x47d   : > { %v12812_v27 = vcombine.high %v2818_v23, %v2822_v20  ;;  %v12811_v34 = vcombine.low %v2818_v23, %v2822_v20  ;;  %v2869_v23 = vld [vmem:[#allocation6 + $0xdb0] sm:$0xff]  ;;  %v2866_v20 = vld [vmem:[#allocation6 + $0xd98] sm:$0xff] }
 0x47e   : > { %9376 = vmatpush1.bf16.msra.mxu0 %v12761_v43  ;;  %v2829_v43 = vld [vmem:[#allocation6 + $0xc70] sm:$0xff] }
 0x47f   : > { %9704 = vmatpush1.bf16.msra.mxu1 %v12763_v14  ;;  %9377 = vmatprep.subr.bf16.mxu0 %v12770_v49  ;;  %v12809_v14 = vcombine.low %v2817_v32, %v2821_v62  ;;  %v2826_v49 = vld [vmem:[#allocation6 + $0xc58] sm:$0xff]  ;;  %v12818_v35 = vcombine.high %v2825_v28, %v2829_v43  ;;  %v2865_v62 = vld [vmem:[#allocation6 + $0xd90] sm:$0xff] }
 0x480   : > { %9705 = vmatprep.subr.bf16.mxu1 %v12772_v39  ;;  %v2830_v39 = vld [vmem:[#allocation6 + $0xc78] sm:$0xff] }
 0x481   : > { %v12819_v50 = vcombine.low %v2826_v49, %v2830_v39 }
 0x482   : > { %9378 = vmatpush1.bf16.msra.mxu0 %v12769_v42  ;;  %v12820_v42 = vcombine.high %v2826_v49, %v2830_v39  ;;  %v2877_v49 = vld [vmem:[#allocation6 + $0xdf0] sm:$0xff] }
 0x483   : > { %9706 = vmatpush1.bf16.msra.mxu1 %v12771_v45  ;;  %9379 = vmatprep.subr.bf16.mxu0 %v12778_v8  ;;  %v2834_v45 = vld [vmem:[#allocation6 + $0xc98] sm:$0xff] }
 0x484   : > { %9707 = vmatprep.subr.bf16.mxu1 %v12780_v36  ;;  %v2838_v8 = vld [vmem:[#allocation6 + $0xcb8] sm:$0xff]  ;;  %v12817_v36 = vcombine.low %v2825_v28, %v2829_v43 }
 0x485   : > { %v12828_v58 = vcombine.high %v2834_v45, %v2838_v8 }
 0x486   : > { %9380 = vmatpush1.bf16.msra.mxu0 %v12777_v0  ;;  %v2845_v0 = vld [vmem:[#allocation6 + $0xcf0] sm:$0xff] }
 0x487   : > { %9708 = vmatpush1.bf16.msra.mxu1 %v12779_v2  ;;  %9381 = vmatprep.subr.bf16.mxu0 %v12786_v12  ;;  %v2842_v2 = vld [vmem:[#allocation6 + $0xcd8] sm:$0xff]  ;;  %v12834_v4 = vcombine.high %v2841_v60, %v2845_v0 }
 0x488   : > { %9709 = vmatprep.subr.bf16.mxu1 %v12788_v3  ;;  %v2846_v12 = vld [vmem:[#allocation6 + $0xcf8] sm:$0xff]  ;;  %v12825_v3 = vcombine.low %v2833_v51, %v2837_v24 }
 0x489   : > { %v12836_v5 = vcombine.high %v2842_v2, %v2846_v12  ;;  %v2878_v51 = vld [vmem:[#allocation6 + $0xdf8] sm:$0xff] }
 0x48a   : > { %9382 = vmatpush1.bf16.msra.mxu0 %v12785_v33  ;;  %v2850_v33 = vld [vmem:[#allocation6 + $0xd18] sm:$0xff] }
 0x48b   : > { %9710 = vmatpush1.bf16.msra.mxu1 %v12787_v11  ;;  %9383 = vmatprep.subr.bf16.mxu0 %v12794_v46  ;;  %v2854_v11 = vld [vmem:[#allocation6 + $0xd38] sm:$0xff]  ;;  %v12835_v46 = vcombine.low %v2842_v2, %v2846_v12  ;;  %v2885_v2 = vld [vmem:[#allocation6 + $0xe30] sm:$0xff] }
 0x48c   : > { %9711 = vmatprep.subr.bf16.mxu1 %v12796_v37  ;;  %v12842_v37 = vcombine.high %v2849_v7, %v2853_v9  ;;  %v12844_v16 = vcombine.high %v2850_v33, %v2854_v11  ;;  %v2882_v12 = vld [vmem:[#allocation6 + $0xe18] sm:$0xff] }
 0x48e   : > { %9384 = vmatpush1.bf16.msra.mxu0 %v12793_v31  ;;  %v2862_v31 = vld [vmem:[#allocation6 + $0xd78] sm:$0xff] }
 0x48f   : > { %9712 = vmatpush1.bf16.msra.mxu1 %v12795_v21  ;;  %9385 = vmatprep.subr.bf16.mxu0 %v12802_v41  ;;  %v12841_v21 = vcombine.low %v2849_v7, %v2853_v9  ;;  %v12843_v41 = vcombine.low %v2850_v33, %v2854_v11  ;;  %v12852_v32 = vcombine.high %v2858_v19, %v2862_v31  ;;  %v2889_v9 = vld [vmem:[#allocation6 + $0xe50] sm:$0xff]  ;;  %v2890_v11 = vld [vmem:[#allocation6 + $0xe58] sm:$0xff] }
 0x490   : > { %9713 = vmatprep.subr.bf16.mxu1 %v12804_v53  ;;  %v12850_v53 = vcombine.high %v2857_v55, %v2861_v17  ;;  %v2893_v33 = vld [vmem:[#allocation6 + $0xe70] sm:$0xff] }
 0x492   : > { %9386 = vmatpush1.bf16.msra.mxu0 %v12801_v26  ;;  %v2870_v26 = vld [vmem:[#allocation6 + $0xdb8] sm:$0xff] }
 0x493   : > { %9714 = vmatpush1.bf16.msra.mxu1 %v12803_v29  ;;  %9396 = vmatprep.subr.bf16.mxu0 %v12810_v57  ;;  %v12849_v29 = vcombine.low %v2857_v55, %v2861_v17  ;;  %v12851_v57 = vcombine.low %v2858_v19, %v2862_v31  ;;  %v12860_v43 = vcombine.high %v2866_v20, %v2870_v26  ;;  %v2897_v17 = vld [vmem:[#allocation6 + $0xe90] sm:$0xff]  ;;  %v2898_v31 = vld [vmem:[#allocation6 + $0xe98] sm:$0xff] }
 0x494   : > { %9724 = vmatprep.subr.bf16.mxu1 %v12812_v27  ;;  %v12858_v27 = vcombine.high %v2865_v62, %v2869_v23  ;;  %v2901_v19 = vld [vmem:[#allocation6 + $0xeb0] sm:$0xff] }
 0x495   : > { %9388 = vmatmul.mubr.bf16.vlgmr.msra.gmra.mrb[20].mxu0 %v15049_v38 }
 0x496   : > { %9716 = vmatmul.mubr.bf16.vlgmr.msra.gmra.mrb[20].mxu1 %v15049_v38  ;;  %9397 = vmatpush1.bf16.msra.mxu0 %v12809_v14  ;;  %v12827_v38 = vcombine.low %v2834_v45, %v2838_v8  ;;  %v2873_v14 = vld [vmem:[#allocation6 + $0xdd0] sm:$0xff]  ;;  %v12857_v45 = vcombine.low %v2865_v62, %v2869_v23 }
 0x497   : > { %9428 = vmatprep.mubr.bf16.mxu0 %v15051_v44  ;;  %9725 = vmatpush1.bf16.msra.mxu1 %v12811_v34  ;;  %v2905_v23 = vld [vmem:[#allocation6 + $0xed0] sm:$0xff] }
 0x498   : > { %9756 = vmatprep.mubr.bf16.mxu1 %v15051_v44  ;;  %9398 = vmatprep.subr.bf16.mxu0 %v12818_v35  ;;  %v12833_v44 = vcombine.low %v2841_v60, %v2845_v0  ;;  %v2874_v35 = vld [vmem:[#allocation6 + $0xdd8] sm:$0xff]  ;;  %v2881_v0 = vld [vmem:[#allocation6 + $0xe10] sm:$0xff] }
 0x499   : > { %9726 = vmatprep.subr.bf16.mxu1 %v12820_v42  ;;  %v12868_v60 = vcombine.high %v2874_v35, %v2878_v51 }
 0x49a   : > { %9399 = vmatpush1.bf16.msra.mxu0 %v12817_v36 }
 0x49b   : > { %9727 = vmatpush1.bf16.msra.mxu1 %v12819_v50  ;;  %9400 = vmatprep.subr.bf16.mxu0 %v12826_v54  ;;  %v12859_v50 = vcombine.low %v2866_v20, %v2870_v26  ;;  %v12866_v54 = vcombine.high %v2873_v14, %v2877_v49  ;;  %v2909_v20 = vld [vmem:[#allocation6 + $0xef0] sm:$0xff]  ;;  %v2906_v26 = vld [vmem:[#allocation6 + $0xed8] sm:$0xff] }
 0x49c   : > { %9728 = vmatprep.subr.bf16.mxu1 %v12828_v58 }
 0x49e   : > { %9401 = vmatpush1.bf16.msra.mxu0 %v12825_v3  ;;  %v2886_v3 = vld [vmem:[#allocation6 + $0xe38] sm:$0xff] }
 0x49f   : > { %9729 = vmatpush1.bf16.msra.mxu1 %v12827_v38  ;;  %9402 = vmatprep.subr.bf16.mxu0 %v12834_v4  ;;  %v12865_v38 = vcombine.low %v2873_v14, %v2877_v49  ;;  %v12867_v4 = vcombine.low %v2874_v35, %v2878_v51  ;;  %v12876_v7 = vcombine.high %v2882_v12, %v2886_v3  ;;  %v2913_v49 = vld [vmem:[#allocation6 + $0xf10] sm:$0xff]  ;;  %v2914_v51 = vld [vmem:[#allocation6 + $0xf18] sm:$0xff] }
 0x4a0   : > { %9730 = vmatprep.subr.bf16.mxu1 %v12836_v5  ;;  %v12874_v5 = vcombine.high %v2881_v0, %v2885_v2  ;;  %v2917_v35 = vld [vmem:[#allocation6 + $0xf30] sm:$0xff] }
 0x4a2   : > { %9403 = vmatpush1.bf16.msra.mxu0 %v12833_v44  ;;  %v2894_v44 = vld [vmem:[#allocation6 + $0xe78] sm:$0xff] }
 0x4a3   : > { %9731 = vmatpush1.bf16.msra.mxu1 %v12835_v46  ;;  %9404 = vmatprep.subr.bf16.mxu0 %v12842_v37  ;;  %v12873_v46 = vcombine.low %v2881_v0, %v2885_v2  ;;  %v12875_v37 = vcombine.low %v2882_v12, %v2886_v3  ;;  %v12884_v55 = vcombine.high %v2890_v11, %v2894_v44  ;;  %v2926_v0 = vld [vmem:[#allocation6 + $0xf78] sm:$0xff] }
 0x4a4   : > { %9732 = vmatprep.subr.bf16.mxu1 %v12844_v16  ;;  %v12882_v16 = vcombine.high %v2889_v9, %v2893_v33  ;;  %v12905_v2 = vcombine.low %v2913_v49, %v2917_v35 }
 0x4a6   : > { %9405 = vmatpush1.bf16.msra.mxu0 %v12841_v21  ;;  %v2902_v21 = vld [vmem:[#allocation6 + $0xeb8] sm:$0xff] }
 0x4a7   : > { %9733 = vmatpush1.bf16.msra.mxu1 %v12843_v41  ;;  %9406 = vmatprep.subr.bf16.mxu0 %v12850_v53  ;;  %v12881_v41 = vcombine.low %v2889_v9, %v2893_v33  ;;  %v12883_v53 = vcombine.low %v2890_v11, %v2894_v44  ;;  %v12892_v62 = vcombine.high %v2898_v31, %v2902_v21  ;;  %v2934_v9 = vld [vmem:[#allocation6 + $0xfb8] sm:$0xff] }
 0x4a8   : > { %v15149_v28 = vpop.f32.mrb[16].mxu0  ;;  %9734 = vmatprep.subr.bf16.mxu1 %v12852_v32  ;;  %v12890_v32 = vcombine.high %v2897_v17, %v2901_v19 }
 0x4a9   : > { %v15151_v39 = vpop.f32.mrb[16].mxu1  ;;  %v15153_v34 = vpop.f32.mrb[17].mxu0 }
 0x4aa   : > { %v15155_v24 = vpop.f32.mrb[17].mxu1  ;;  %v8942_v42 = vpop.f32.mrb[18].mxu0  ;;  %9407 = vmatpush1.bf16.msra.mxu0 %v12849_v29  ;;  %v2910_v29 = vld [vmem:[#allocation6 + $0xef8] sm:$0xff] }
 0x4ab   : > { %v9270_v8 = vpop.f32.mrb[18].mxu1  ;;  %9735 = vmatpush1.bf16.msra.mxu1 %v12851_v57  ;;  %v8943_v36 = vpop.f32.mrb[19].mxu0  ;;  %9408 = vmatprep.subr.bf16.mxu0 %v12858_v27  ;;  %v12889_v57 = vcombine.low %v2897_v17, %v2901_v19  ;;  %v12891_v27 = vcombine.low %v2898_v31, %v2902_v21  ;;  %v12900_v14 = vcombine.high %v2906_v26, %v2910_v29  ;;  %v2918_v42 = vld [vmem:[#allocation6 + $0xf38] sm:$0xff] }
 0x4ac   : > { %v9271_v58 = vpop.f32.mrb[19].mxu1  ;;  %9736 = vmatprep.subr.bf16.mxu1 %v12860_v43  ;;  %v12898_v43 = vcombine.high %v2905_v23, %v2909_v20  ;;  %v12899_v8 = vcombine.low %v2906_v26, %v2910_v29  ;;  %v12906_v36 = vcombine.high %v2913_v49, %v2917_v35  ;;  %v12907_v12 = vcombine.low %v2914_v51, %v2918_v42  ;;  %v2942_v17 = vld [vmem:[#allocation6 + $0xff8] sm:$0xff] }
 0x4ad   : > { %v2925_v58 = vld [vmem:[#allocation6 + $0xf70] sm:$0xff]  ;;  %v2954_v49 = vld [vmem:[#allocation6 + $0x1058] sm:$0xff] }
 0x4ae   : > { %9409 = vmatpush1.bf16.msra.mxu0 %v12857_v45  ;;  %v12897_v45 = vcombine.low %v2905_v23, %v2909_v20  ;;  %v2950_v23 = vld [vmem:[#allocation6 + $0x1038] sm:$0xff] }
 0x4af   : > { %9737 = vmatpush1.bf16.msra.mxu1 %v12859_v50  ;;  %9410 = vmatprep.subr.bf16.mxu0 %v12866_v54  ;;  %v12908_v50 = vcombine.high %v2914_v51, %v2918_v42  ;;  %v2921_v54 = vld [vmem:[#allocation6 + $0xf50] sm:$0xff]  ;;  %v2958_v35 = vld [vmem:[#allocation6 + $0x1078] sm:$0xff] }
 0x4b0   : > { %9738 = vmatprep.subr.bf16.mxu1 %v12868_v60  ;;  %v2922_v60 = vld [vmem:[#allocation6 + $0xf58] sm:$0xff]  ;;  %v12914_v3 = vcombine.high %v2921_v54, %v2925_v58  ;;  %v12913_v33 = vcombine.low %v2921_v54, %v2925_v58 }
 0x4b1   : > { %v12915_v11 = vcombine.low %v2922_v60, %v2926_v0  ;;  %v2966_v54 = vld [vmem:[#allocation6 + $0x10b8] sm:$0xff] }
 0x4b2   : > { %9411 = vmatpush1.bf16.msra.mxu0 %v12865_v38  ;;  %v12916_v38 = vcombine.high %v2922_v60, %v2926_v0  ;;  %v12947_v60 = vcombine.low %v2954_v49, %v2958_v35 }
 0x4b3   : > { %9739 = vmatpush1.bf16.msra.mxu1 %v12867_v4  ;;  %9412 = vmatprep.subr.bf16.mxu0 %v12874_v5  ;;  %v2929_v4 = vld [vmem:[#allocation6 + $0xf90] sm:$0xff] }
 0x4b4   : > { %9740 = vmatprep.subr.bf16.mxu1 %v12876_v7  ;;  %v2933_v5 = vld [vmem:[#allocation6 + $0xfb0] sm:$0xff]  ;;  %v2930_v7 = vld [vmem:[#allocation6 + $0xf98] sm:$0xff] }
 0x4b5   : > { %v12922_v44 = vcombine.high %v2929_v4, %v2933_v5  ;;  %v12921_v19 = vcombine.low %v2929_v4, %v2933_v5  ;;  %v12923_v31 = vcombine.low %v2930_v7, %v2934_v9  ;;  %v2974_v4 = vld [vmem:[#allocation6 + $0x10f8] sm:$0xff] }
 0x4b6   : > { %9413 = vmatpush1.bf16.msra.mxu0 %v12873_v46  ;;  %v12924_v46 = vcombine.high %v2930_v7, %v2934_v9 }
 0x4b7   : > { %9741 = vmatpush1.bf16.msra.mxu1 %v12875_v37  ;;  %9414 = vmatprep.subr.bf16.mxu0 %v12882_v16  ;;  %v2937_v37 = vld [vmem:[#allocation6 + $0xfd0] sm:$0xff] }
 0x4b8   : > { %9742 = vmatprep.subr.bf16.mxu1 %v12884_v55  ;;  %v2941_v16 = vld [vmem:[#allocation6 + $0xff0] sm:$0xff]  ;;  %v2938_v55 = vld [vmem:[#allocation6 + $0xfd8] sm:$0xff] }
 0x4b9   : > { %v12930_v21 = vcombine.high %v2937_v37, %v2941_v16  ;;  %v12929_v20 = vcombine.low %v2937_v37, %v2941_v16  ;;  %v12931_v26 = vcombine.low %v2938_v55, %v2942_v17 }
 0x4ba   : > { %9415 = vmatpush1.bf16.msra.mxu0 %v12881_v41  ;;  %v12932_v41 = vcombine.high %v2938_v55, %v2942_v17  ;;  %v2985_v17 = vld [vmem:[#allocation6 + $0x1150] sm:$0xff] }
 0x4bb   : > { %9743 = vmatpush1.bf16.msra.mxu1 %v12883_v53  ;;  %9416 = vmatprep.subr.bf16.mxu0 %v12890_v32  ;;  %v2945_v53 = vld [vmem:[#allocation6 + $0x1010] sm:$0xff] }
 0x4bc   : > { %9744 = vmatprep.subr.bf16.mxu1 %v12892_v62  ;;  %v2949_v32 = vld [vmem:[#allocation6 + $0x1030] sm:$0xff]  ;;  %v2946_v62 = vld [vmem:[#allocation6 + $0x1018] sm:$0xff] }
 0x4bd   : > { %v12938_v29 = vcombine.high %v2945_v53, %v2949_v32  ;;  %v12939_v51 = vcombine.low %v2946_v62, %v2950_v23 }
 0x4be   : > { %9417 = vmatpush1.bf16.msra.mxu0 %v12889_v57  ;;  %v12940_v57 = vcombine.high %v2946_v62, %v2950_v23  ;;  %v2993_v23 = vld [vmem:[#allocation6 + $0x1190] sm:$0xff] }
 0x4bf   : > { %9745 = vmatpush1.bf16.msra.mxu1 %v12891_v27  ;;  %9418 = vmatprep.subr.bf16.mxu0 %v12898_v43  ;;  %v2953_v27 = vld [vmem:[#allocation6 + $0x1050] sm:$0xff] }
 0x4c0   : > { %9746 = vmatprep.subr.bf16.mxu1 %v12900_v14  ;;  %v2957_v43 = vld [vmem:[#allocation6 + $0x1070] sm:$0xff]  ;;  %v12937_v14 = vcombine.low %v2945_v53, %v2949_v32 }
 0x4c1   : > { %v12946_v42 = vcombine.high %v2953_v27, %v2957_v43  ;;  %v12945_v58 = vcombine.low %v2953_v27, %v2957_v43 }
 0x4c2   : > { %9419 = vmatpush1.bf16.msra.mxu0 %v12897_v45  ;;  %v2961_v45 = vld [vmem:[#allocation6 + $0x1090] sm:$0xff] }
 0x4c3   : > { %9747 = vmatpush1.bf16.msra.mxu1 %v12899_v8  ;;  %9420 = vmatprep.subr.bf16.mxu0 %v12906_v36  ;;  %v2965_v8 = vld [vmem:[#allocation6 + $0x10b0] sm:$0xff]  ;;  %v12948_v36 = vcombine.high %v2954_v49, %v2958_v35 }
 0x4c4   : > { %9748 = vmatprep.subr.bf16.mxu1 %v12908_v50  ;;  %v2962_v50 = vld [vmem:[#allocation6 + $0x1098] sm:$0xff]  ;;  %v12954_v0 = vcombine.high %v2961_v45, %v2965_v8  ;;  %v12953_v5 = vcombine.low %v2961_v45, %v2965_v8  ;;  %v3001_v49 = vld [vmem:[#allocation6 + $0x11d0] sm:$0xff] }
 0x4c5   : > { %v3005_v35 = vld [vmem:[#allocation6 + $0x11f0] sm:$0xff] }
 0x4c6   : > { %9421 = vmatpush1.bf16.msra.mxu0 %v12905_v2  ;;  %v12956_v2 = vcombine.high %v2962_v50, %v2966_v54 }
 0x4c7   : > { %9749 = vmatpush1.bf16.msra.mxu1 %v12907_v12  ;;  %9422 = vmatprep.subr.bf16.mxu0 %v12914_v3  ;;  %v2969_v12 = vld [vmem:[#allocation6 + $0x10d0] sm:$0xff] }
 0x4c8   : > { %9750 = vmatprep.subr.bf16.mxu1 %v12916_v38  ;;  %v2973_v3 = vld [vmem:[#allocation6 + $0x10f0] sm:$0xff]  ;;  %v2970_v38 = vld [vmem:[#allocation6 + $0x10d8] sm:$0xff] }
 0x4c9   : > { %v12962_v7 = vcombine.high %v2969_v12, %v2973_v3  ;;  %v12964_v9 = vcombine.high %v2970_v38, %v2974_v4  ;;  %v12963_v37 = vcombine.low %v2970_v38, %v2974_v4  ;;  %v3017_v4 = vld [vmem:[#allocation6 + $0x1250] sm:$0xff] }
 0x4ca   : > { %9423 = vmatpush1.bf16.msra.mxu0 %v12913_v33  ;;  %v2977_v33 = vld [vmem:[#allocation6 + $0x1110] sm:$0xff] }
 0x4cb   : > { %9751 = vmatpush1.bf16.msra.mxu1 %v12915_v11  ;;  %9424 = vmatprep.subr.bf16.mxu0 %v12922_v44  ;;  %v2981_v11 = vld [vmem:[#allocation6 + $0x1130] sm:$0xff]  ;;  %v2978_v44 = vld [vmem:[#allocation6 + $0x1118] sm:$0xff] }
 0x4cc   : > { %9752 = vmatprep.subr.bf16.mxu1 %v12924_v46  ;;  %v2982_v46 = vld [vmem:[#allocation6 + $0x1138] sm:$0xff]  ;;  %v12970_v16 = vcombine.high %v2977_v33, %v2981_v11 }
 0x4cd   : > { %v12972_v55 = vcombine.high %v2978_v44, %v2982_v46  ;;  %v12971_v53 = vcombine.low %v2978_v44, %v2982_v46  ;;  %v3025_v46 = vld [vmem:[#allocation6 + $0x1290] sm:$0xff] }
 0x4ce   : > { %9425 = vmatpush1.bf16.msra.mxu0 %v12921_v19  ;;  %v2989_v19 = vld [vmem:[#allocation6 + $0x1170] sm:$0xff] }
 0x4cf   : > { %9753 = vmatpush1.bf16.msra.mxu1 %v12923_v31  ;;  %9426 = vmatprep.subr.bf16.mxu0 %v12930_v21  ;;  %v2986_v31 = vld [vmem:[#allocation6 + $0x1158] sm:$0xff]  ;;  %v12978_v32 = vcombine.high %v2985_v17, %v2989_v19 }
 0x4d0   : > { %9754 = vmatprep.subr.bf16.mxu1 %v12932_v41  ;;  %v2990_v21 = vld [vmem:[#allocation6 + $0x1178] sm:$0xff]  ;;  %v12969_v41 = vcombine.low %v2977_v33, %v2981_v11 }
 0x4d1   : > { %v12980_v62 = vcombine.high %v2986_v31, %v2990_v21  ;;  %v12979_v27 = vcombine.low %v2986_v31, %v2990_v21  ;;  %v3033_v21 = vld [vmem:[#allocation6 + $0x12d0] sm:$0xff] }
 0x4d2   : > { %9427 = vmatpush1.bf16.msra.mxu0 %v12929_v20  ;;  %v2997_v20 = vld [vmem:[#allocation6 + $0x11b0] sm:$0xff] }
 0x4d3   : > { %9755 = vmatpush1.bf16.msra.mxu1 %v12931_v26  ;;  %9437 = vmatprep.subr.bf16.mxu0 %v12938_v29  ;;  %v2994_v26 = vld [vmem:[#allocation6 + $0x1198] sm:$0xff]  ;;  %v12986_v43 = vcombine.high %v2993_v23, %v2997_v20  ;;  %v12985_v45 = vcombine.low %v2993_v23, %v2997_v20 }
 0x4d4   : > { %9765 = vmatprep.subr.bf16.mxu1 %v12940_v57  ;;  %v2998_v29 = vld [vmem:[#allocation6 + $0x11b8] sm:$0xff]  ;;  %v12977_v57 = vcombine.low %v2985_v17, %v2989_v19 }
 0x4d5   : > { %9429 = vmatmul.mubr.bf16.vlgmr.msra.gmra.mrb[20].mxu0 %v15076_v10  ;;  %v12987_v8 = vcombine.low %v2994_v26, %v2998_v29 }
 0x4d6   : > { %9757 = vmatmul.mubr.bf16.vlgmr.msra.gmra.mrb[20].mxu1 %v15076_v10  ;;  %9438 = vmatpush1.bf16.msra.mxu0 %v12937_v14  ;;  %v12955_v10 = vcombine.low %v2962_v50, %v2966_v54  ;;  %v12988_v14 = vcombine.high %v2994_v26, %v2998_v29  ;;  %v3009_v54 = vld [vmem:[#allocation6 + $0x1210] sm:$0xff] }
 0x4d7   : > { %9469 = vmatprep.mubr.bf16.mxu0 %v15078_v18  ;;  %9766 = vmatpush1.bf16.msra.mxu1 %v12939_v51  ;;  %v3002_v51 = vld [vmem:[#allocation6 + $0x11d8] sm:$0xff]  ;;  %v3041_v29 = vld [vmem:[#allocation6 + $0x1310] sm:$0xff] }
 0x4d8   : > { %9797 = vmatprep.mubr.bf16.mxu1 %v15078_v18  ;;  %9439 = vmatprep.subr.bf16.mxu0 %v12946_v42  ;;  %v12961_v18 = vcombine.low %v2969_v12, %v2973_v3  ;;  %v3006_v42 = vld [vmem:[#allocation6 + $0x11f8] sm:$0xff] }
 0x4d9   : > { %9767 = vmatprep.subr.bf16.mxu1 %v12948_v36  ;;  %v12994_v36 = vcombine.high %v3001_v49, %v3005_v35  ;;  %v12996_v50 = vcombine.high %v3002_v51, %v3006_v42  ;;  %v12995_v12 = vcombine.low %v3002_v51, %v3006_v42  ;;  %v3049_v42 = vld [vmem:[#allocation6 + $0x1350] sm:$0xff] }
 0x4da   : > { %9440 = vmatpush1.bf16.msra.mxu0 %v12945_v58  ;;  %v3013_v58 = vld [vmem:[#allocation6 + $0x1230] sm:$0xff] }
 0x4db   : > { %9768 = vmatpush1.bf16.msra.mxu1 %v12947_v60  ;;  %9441 = vmatprep.subr.bf16.mxu0 %v12954_v0  ;;  %v3010_v60 = vld [vmem:[#allocation6 + $0x1218] sm:$0xff]  ;;  %v13002_v3 = vcombine.high %v3009_v54, %v3013_v58 }
 0x4dc   : > { %9769 = vmatprep.subr.bf16.mxu1 %v12956_v2  ;;  %v3014_v0 = vld [vmem:[#allocation6 + $0x1238] sm:$0xff]  ;;  %v12993_v2 = vcombine.low %v3001_v49, %v3005_v35 }
 0x4dd   : > { %v13004_v38 = vcombine.high %v3010_v60, %v3014_v0  ;;  %v13003_v33 = vcombine.low %v3010_v60, %v3014_v0  ;;  %v3057_v0 = vld [vmem:[#allocation6 + $0x1390] sm:$0xff] }
 0x4de   : > { %9442 = vmatpush1.bf16.msra.mxu0 %v12953_v5  ;;  %v3021_v5 = vld [vmem:[#allocation6 + $0x1270] sm:$0xff] }
 0x4df   : > { %9770 = vmatpush1.bf16.msra.mxu1 %v12955_v10  ;;  %9443 = vmatprep.subr.bf16.mxu0 %v12962_v7  ;;  %v3018_v10 = vld [vmem:[#allocation6 + $0x1258] sm:$0xff]  ;;  %v13010_v11 = vcombine.high %v3017_v4, %v3021_v5 }
 0x4e0   : > { %9771 = vmatprep.subr.bf16.mxu1 %v12964_v9  ;;  %v3022_v7 = vld [vmem:[#allocation6 + $0x1278] sm:$0xff]  ;;  %v13001_v9 = vcombine.low %v3009_v54, %v3013_v58 }
 0x4e1   : > { %v13012_v44 = vcombine.high %v3018_v10, %v3022_v7  ;;  %v13011_v17 = vcombine.low %v3018_v10, %v3022_v7  ;;  %v3065_v7 = vld [vmem:[#allocation6 + $0x13d0] sm:$0xff] }
 0x4e2   : > { %9444 = vmatpush1.bf16.msra.mxu0 %v12961_v18  ;;  %v3029_v18 = vld [vmem:[#allocation6 + $0x12b0] sm:$0xff] }
 0x4e3   : > { %9772 = vmatpush1.bf16.msra.mxu1 %v12963_v37  ;;  %9445 = vmatprep.subr.bf16.mxu0 %v12970_v16  ;;  %v3026_v37 = vld [vmem:[#allocation6 + $0x1298] sm:$0xff]  ;;  %v13018_v19 = vcombine.high %v3025_v46, %v3029_v18 }
 0x4e4   : > { %9773 = vmatprep.subr.bf16.mxu1 %v12972_v55  ;;  %v3030_v16 = vld [vmem:[#allocation6 + $0x12b8] sm:$0xff]  ;;  %v13009_v55 = vcombine.low %v3017_v4, %v3021_v5 }
 0x4e5   : > { %v13020_v31 = vcombine.high %v3026_v37, %v3030_v16  ;;  %v13019_v23 = vcombine.low %v3026_v37, %v3030_v16  ;;  %v3073_v16 = vld [vmem:[#allocation6 + $0x1410] sm:$0xff] }
 0x4e6   : > { %9446 = vmatpush1.bf16.msra.mxu0 %v12969_v41  ;;  %v3037_v41 = vld [vmem:[#allocation6 + $0x12f0] sm:$0xff] }
 0x4e7   : > { %9774 = vmatpush1.bf16.msra.mxu1 %v12971_v53  ;;  %9447 = vmatprep.subr.bf16.mxu0 %v12978_v32  ;;  %v3034_v53 = vld [vmem:[#allocation6 + $0x12d8] sm:$0xff]  ;;  %v13026_v20 = vcombine.high %v3033_v21, %v3037_v41 }
 0x4e8   : > { %9775 = vmatprep.subr.bf16.mxu1 %v12980_v62  ;;  %v3038_v32 = vld [vmem:[#allocation6 + $0x12f8] sm:$0xff]  ;;  %v13017_v62 = vcombine.low %v3025_v46, %v3029_v18 }
 0x4e9   : > { %v13028_v26 = vcombine.high %v3034_v53, %v3038_v32  ;;  %v13027_v49 = vcombine.low %v3034_v53, %v3038_v32  ;;  %v3081_v32 = vld [vmem:[#allocation6 + $0x1450] sm:$0xff] }
 0x4ea   : > { %9448 = vmatpush1.bf16.msra.mxu0 %v12977_v57  ;;  %v3045_v57 = vld [vmem:[#allocation6 + $0x1330] sm:$0xff] }
 0x4eb   : > { %9776 = vmatpush1.bf16.msra.mxu1 %v12979_v27  ;;  %9449 = vmatprep.subr.bf16.mxu0 %v12986_v43  ;;  %v3042_v27 = vld [vmem:[#allocation6 + $0x1318] sm:$0xff]  ;;  %v13034_v35 = vcombine.high %v3041_v29, %v3045_v57 }
 0x4ec   : > { %9777 = vmatprep.subr.bf16.mxu1 %v12988_v14  ;;  %v3046_v43 = vld [vmem:[#allocation6 + $0x1338] sm:$0xff]  ;;  %v13025_v14 = vcombine.low %v3033_v21, %v3037_v41 }
 0x4ed   : > { %v13036_v51 = vcombine.high %v3042_v27, %v3046_v43  ;;  %v13035_v54 = vcombine.low %v3042_v27, %v3046_v43  ;;  %v3089_v27 = vld [vmem:[#allocation6 + $0x1490] sm:$0xff] }
 0x4ee   : > { %9450 = vmatpush1.bf16.msra.mxu0 %v12985_v45  ;;  %v3053_v45 = vld [vmem:[#allocation6 + $0x1370] sm:$0xff] }
 0x4ef   : > { %9778 = vmatpush1.bf16.msra.mxu1 %v12987_v8  ;;  %9451 = vmatprep.subr.bf16.mxu0 %v12994_v36  ;;  %v3050_v8 = vld [vmem:[#allocation6 + $0x1358] sm:$0xff]  ;;  %v13042_v58 = vcombine.high %v3049_v42, %v3053_v45  ;;  %v3093_v43 = vld [vmem:[#allocation6 + $0x14b0] sm:$0xff] }
 0x4f0   : > { %9779 = vmatprep.subr.bf16.mxu1 %v12996_v50  ;;  %v3054_v36 = vld [vmem:[#allocation6 + $0x1378] sm:$0xff]  ;;  %v13033_v50 = vcombine.low %v3041_v29, %v3045_v57 }
 0x4f1   : > { %v13044_v60 = vcombine.high %v3050_v8, %v3054_v36  ;;  %v13043_v4 = vcombine.low %v3050_v8, %v3054_v36  ;;  %v3097_v36 = vld [vmem:[#allocation6 + $0x14d0] sm:$0xff] }
 0x4f2   : > { %9452 = vmatpush1.bf16.msra.mxu0 %v12993_v2  ;;  %v3061_v2 = vld [vmem:[#allocation6 + $0x13b0] sm:$0xff] }
 0x4f3   : > { %9780 = vmatpush1.bf16.msra.mxu1 %v12995_v12  ;;  %9453 = vmatprep.subr.bf16.mxu0 %v13002_v3  ;;  %v3058_v12 = vld [vmem:[#allocation6 + $0x1398] sm:$0xff]  ;;  %v13050_v5 = vcombine.high %v3057_v0, %v3061_v2 }
 0x4f4   : > { %9781 = vmatprep.subr.bf16.mxu1 %v13004_v38  ;;  %v3062_v3 = vld [vmem:[#allocation6 + $0x13b8] sm:$0xff]  ;;  %v13041_v38 = vcombine.low %v3049_v42, %v3053_v45  ;;  %v13082_v45 = vcombine.high %v3089_v27, %v3093_v43 }
 0x4f5   : > { %v13052_v10 = vcombine.high %v3058_v12, %v3062_v3  ;;  %v13051_v46 = vcombine.low %v3058_v12, %v3062_v3  ;;  %v3105_v12 = vld [vmem:[#allocation6 + $0x1510] sm:$0xff] }
 0x4f6   : > { %9454 = vmatpush1.bf16.msra.mxu0 %v13001_v9  ;;  %v3069_v9 = vld [vmem:[#allocation6 + $0x13f0] sm:$0xff] }
 0x4f7   : > { %9782 = vmatpush1.bf16.msra.mxu1 %v13003_v33  ;;  %9455 = vmatprep.subr.bf16.mxu0 %v13010_v11  ;;  %v3066_v33 = vld [vmem:[#allocation6 + $0x13d8] sm:$0xff]  ;;  %v13058_v18 = vcombine.high %v3065_v7, %v3069_v9  ;;  %v3109_v3 = vld [vmem:[#allocation6 + $0x1530] sm:$0xff] }
 0x4f8   : > { %9783 = vmatprep.subr.bf16.mxu1 %v13012_v44  ;;  %v3070_v11 = vld [vmem:[#allocation6 + $0x13f8] sm:$0xff]  ;;  %v13049_v44 = vcombine.low %v3057_v0, %v3061_v2 }
 0x4f9   : > { %v13060_v37 = vcombine.high %v3066_v33, %v3070_v11  ;;  %v13059_v21 = vcombine.low %v3066_v33, %v3070_v11  ;;  %v3117_v33 = vld [vmem:[#allocation6 + $0x1570] sm:$0xff]  ;;  %v3114_v11 = vld [vmem:[#allocation6 + $0x1558] sm:$0xff] }
 0x4fa   : > { %9456 = vmatpush1.bf16.msra.mxu0 %v13009_v55  ;;  %v3077_v55 = vld [vmem:[#allocation6 + $0x1430] sm:$0xff] }
 0x4fb   : > { %9784 = vmatpush1.bf16.msra.mxu1 %v13011_v17  ;;  %9457 = vmatprep.subr.bf16.mxu0 %v13018_v19  ;;  %v3074_v17 = vld [vmem:[#allocation6 + $0x1418] sm:$0xff]  ;;  %v13066_v41 = vcombine.high %v3073_v16, %v3077_v55 }
 0x4fc   : > { %9785 = vmatprep.subr.bf16.mxu1 %v13020_v31  ;;  %v3078_v19 = vld [vmem:[#allocation6 + $0x1438] sm:$0xff]  ;;  %v13057_v31 = vcombine.low %v3065_v7, %v3069_v9  ;;  %v3113_v9 = vld [vmem:[#allocation6 + $0x1550] sm:$0xff] }
 0x4fd   : > { %v13068_v53 = vcombine.high %v3074_v17, %v3078_v19  ;;  %v13067_v29 = vcombine.low %v3074_v17, %v3078_v19  ;;  %v3125_v17 = vld [vmem:[#allocation6 + $0x15b0] sm:$0xff]  ;;  %v3122_v19 = vld [vmem:[#allocation6 + $0x1598] sm:$0xff] }
 0x4fe   : > { %9458 = vmatpush1.bf16.msra.mxu0 %v13017_v62  ;;  %v3085_v62 = vld [vmem:[#allocation6 + $0x1470] sm:$0xff] }
 0x4ff   : > { %9786 = vmatpush1.bf16.msra.mxu1 %v13019_v23  ;;  %9459 = vmatprep.subr.bf16.mxu0 %v13026_v20  ;;  %v13065_v23 = vcombine.low %v3073_v16, %v3077_v55  ;;  %v3082_v20 = vld [vmem:[#allocation6 + $0x1458] sm:$0xff]  ;;  %v13074_v57 = vcombine.high %v3081_v32, %v3085_v62  ;;  %v3121_v55 = vld [vmem:[#allocation6 + $0x1590] sm:$0xff] }
 0x500   : > { %9787 = vmatprep.subr.bf16.mxu1 %v13028_v26  ;;  %v3086_v26 = vld [vmem:[#allocation6 + $0x1478] sm:$0xff] }
 0x501   : > { %v13075_v42 = vcombine.low %v3082_v20, %v3086_v26 }
 0x502   : > { %9460 = vmatpush1.bf16.msra.mxu0 %v13025_v14  ;;  %v13076_v14 = vcombine.high %v3082_v20, %v3086_v26  ;;  %v3130_v20 = vld [vmem:[#allocation6 + $0x15d8] sm:$0xff] }
 0x503   : > { %9788 = vmatpush1.bf16.msra.mxu1 %v13027_v49  ;;  %9461 = vmatprep.subr.bf16.mxu0 %v13034_v35  ;;  %v3090_v49 = vld [vmem:[#allocation6 + $0x1498] sm:$0xff] }
 0x504   : > { %9789 = vmatprep.subr.bf16.mxu1 %v13036_v51  ;;  %v3094_v35 = vld [vmem:[#allocation6 + $0x14b8] sm:$0xff]  ;;  %v13073_v51 = vcombine.low %v3081_v32, %v3085_v62  ;;  %v3129_v62 = vld [vmem:[#allocation6 + $0x15d0] sm:$0xff] }
 0x505   : > { %v13084_v8 = vcombine.high %v3090_v49, %v3094_v35  ;;  %v3134_v26 = vld [vmem:[#allocation6 + $0x15f8] sm:$0xff] }
 0x506   : > { %9462 = vmatpush1.bf16.msra.mxu0 %v13033_v50  ;;  %v3101_v50 = vld [vmem:[#allocation6 + $0x14f0] sm:$0xff] }
 0x507   : > { %9790 = vmatpush1.bf16.msra.mxu1 %v13035_v54  ;;  %9463 = vmatprep.subr.bf16.mxu0 %v13042_v58  ;;  %v3098_v54 = vld [vmem:[#allocation6 + $0x14d8] sm:$0xff]  ;;  %v13090_v0 = vcombine.high %v3097_v36, %v3101_v50 }
 0x508   : > { %9791 = vmatprep.subr.bf16.mxu1 %v13044_v60  ;;  %v3102_v58 = vld [vmem:[#allocation6 + $0x14f8] sm:$0xff]  ;;  %v13081_v60 = vcombine.low %v3089_v27, %v3093_v43  ;;  %v13124_v43 = vcombine.high %v3130_v20, %v3134_v26 }
 0x509   : > { %v13092_v2 = vcombine.high %v3098_v54, %v3102_v58 }
 0x50a   : > { %9464 = vmatpush1.bf16.msra.mxu0 %v13041_v38  ;;  %v3106_v38 = vld [vmem:[#allocation6 + $0x1518] sm:$0xff] }
 0x50b   : > { %9792 = vmatpush1.bf16.msra.mxu1 %v13043_v4  ;;  %9465 = vmatprep.subr.bf16.mxu0 %v13050_v5  ;;  %v3110_v4 = vld [vmem:[#allocation6 + $0x1538] sm:$0xff]  ;;  %v13091_v5 = vcombine.low %v3098_v54, %v3102_v58  ;;  %v3149_v54 = vld [vmem:[#allocation6 + $0x1670] sm:$0xff] }
 0x50c   : > { %9793 = vmatprep.subr.bf16.mxu1 %v13052_v10  ;;  %v13098_v10 = vcombine.high %v3105_v12, %v3109_v3  ;;  %v13100_v7 = vcombine.high %v3106_v38, %v3110_v4  ;;  %v3146_v58 = vld [vmem:[#allocation6 + $0x1658] sm:$0xff] }
 0x50e   : > { %9466 = vmatpush1.bf16.msra.mxu0 %v13049_v44  ;;  %v3118_v44 = vld [vmem:[#allocation6 + $0x1578] sm:$0xff] }
 0x50f   : > { %9794 = vmatpush1.bf16.msra.mxu1 %v13051_v46  ;;  %9467 = vmatprep.subr.bf16.mxu0 %v13058_v18  ;;  %v13097_v46 = vcombine.low %v3105_v12, %v3109_v3  ;;  %v13099_v18 = vcombine.low %v3106_v38, %v3110_v4  ;;  %v13108_v16 = vcombine.high %v3114_v11, %v3118_v44  ;;  %v3153_v3 = vld [vmem:[#allocation6 + $0x1690] sm:$0xff]  ;;  %v3154_v4 = vld [vmem:[#allocation6 + $0x1698] sm:$0xff] }
 0x510   : > { %9795 = vmatprep.subr.bf16.mxu1 %v13060_v37  ;;  %v13106_v37 = vcombine.high %v3113_v9, %v3117_v33  ;;  %v3157_v38 = vld [vmem:[#allocation6 + $0x16b0] sm:$0xff] }
 0x512   : > { %9468 = vmatpush1.bf16.msra.mxu0 %v13057_v31  ;;  %v3126_v31 = vld [vmem:[#allocation6 + $0x15b8] sm:$0xff] }
 0x513   : > { %9796 = vmatpush1.bf16.msra.mxu1 %v13059_v21  ;;  %9478 = vmatprep.subr.bf16.mxu0 %v13066_v41  ;;  %v13105_v21 = vcombine.low %v3113_v9, %v3117_v33  ;;  %v13107_v41 = vcombine.low %v3114_v11, %v3118_v44  ;;  %v13116_v32 = vcombine.high %v3122_v19, %v3126_v31  ;;  %v3161_v33 = vld [vmem:[#allocation6 + $0x16d0] sm:$0xff]  ;;  %v3162_v44 = vld [vmem:[#allocation6 + $0x16d8] sm:$0xff] }
 0x514   : > { %9806 = vmatprep.subr.bf16.mxu1 %v13068_v53  ;;  %v13114_v53 = vcombine.high %v3121_v55, %v3125_v17  ;;  %v3165_v11 = vld [vmem:[#allocation6 + $0x16f0] sm:$0xff] }
 0x515   : > { %9470 = vmatmul.mubr.bf16.vlgmr.msra.gmra.mrb[20].mxu0 %v15090_v30 }
 0x516   : > { %9798 = vmatmul.mubr.bf16.vlgmr.msra.gmra.mrb[20].mxu1 %v15090_v30  ;;  %9479 = vmatpush1.bf16.msra.mxu0 %v13065_v23  ;;  %v13083_v30 = vcombine.low %v3090_v49, %v3094_v35  ;;  %v3133_v23 = vld [vmem:[#allocation6 + $0x15f0] sm:$0xff]  ;;  %v3138_v35 = vld [vmem:[#allocation6 + $0x1618] sm:$0xff] }
 0x517   : > { %9510 = vmatprep.mubr.bf16.mxu0 %v15092_v1  ;;  %9807 = vmatpush1.bf16.msra.mxu1 %v13067_v29  ;;  %v13113_v29 = vcombine.low %v3121_v55, %v3125_v17  ;;  %v13122_v27 = vcombine.high %v3129_v62, %v3133_v23  ;;  %v3141_v49 = vld [vmem:[#allocation6 + $0x1630] sm:$0xff] }
 0x518   : > { %9838 = vmatprep.mubr.bf16.mxu1 %v15092_v1  ;;  %9480 = vmatprep.subr.bf16.mxu0 %v13074_v57  ;;  %v13089_v1 = vcombine.low %v3097_v36, %v3101_v50  ;;  %v13115_v57 = vcombine.low %v3122_v19, %v3126_v31  ;;  %v3145_v50 = vld [vmem:[#allocation6 + $0x1650] sm:$0xff]  ;;  %v3170_v31 = vld [vmem:[#allocation6 + $0x1718] sm:$0xff] }
 0x519   : > { %9808 = vmatprep.subr.bf16.mxu1 %v13076_v14  ;;  %v3137_v14 = vld [vmem:[#allocation6 + $0x1610] sm:$0xff] }
 0x51a   : > { %9481 = vmatpush1.bf16.msra.mxu0 %v13073_v51  ;;  %v3142_v51 = vld [vmem:[#allocation6 + $0x1638] sm:$0xff]  ;;  %v3169_v17 = vld [vmem:[#allocation6 + $0x1710] sm:$0xff] }
 0x51b   : > { %9809 = vmatpush1.bf16.msra.mxu1 %v13075_v42  ;;  %9482 = vmatprep.subr.bf16.mxu0 %v13082_v45  ;;  %v13121_v42 = vcombine.low %v3129_v62, %v3133_v23  ;;  %v13123_v45 = vcombine.low %v3130_v20, %v3134_v26  ;;  %v13132_v36 = vcombine.high %v3138_v35, %v3142_v51  ;;  %v3173_v19 = vld [vmem:[#allocation6 + $0x1730] sm:$0xff]  ;;  %v3178_v26 = vld [vmem:[#allocation6 + $0x1758] sm:$0xff] }
 0x51c   : > { %9810 = vmatprep.subr.bf16.mxu1 %v13084_v8  ;;  %v13130_v8 = vcombine.high %v3137_v14, %v3141_v49  ;;  %v3177_v23 = vld [vmem:[#allocation6 + $0x1750] sm:$0xff] }
 0x51d   : > { %v3181_v20 = vld [vmem:[#allocation6 + $0x1770] sm:$0xff] }
 0x51e   : > { %9483 = vmatpush1.bf16.msra.mxu0 %v13081_v60  ;;  %v3150_v60 = vld [vmem:[#allocation6 + $0x1678] sm:$0xff] }
 0x51f   : > { %9811 = vmatpush1.bf16.msra.mxu1 %v13083_v30  ;;  %9484 = vmatprep.subr.bf16.mxu0 %v13090_v0  ;;  %v13129_v30 = vcombine.low %v3137_v14, %v3141_v49  ;;  %v13131_v0 = vcombine.low %v3138_v35, %v3142_v51  ;;  %v13140_v12 = vcombine.high %v3146_v58, %v3150_v60  ;;  %v3185_v49 = vld [vmem:[#allocation6 + $0x1790] sm:$0xff]  ;;  %v3186_v51 = vld [vmem:[#allocation6 + $0x1798] sm:$0xff] }
 0x520   : > { %9812 = vmatprep.subr.bf16.mxu1 %v13092_v2  ;;  %v13138_v2 = vcombine.high %v3145_v50, %v3149_v54  ;;  %v3189_v35 = vld [vmem:[#allocation6 + $0x17b0] sm:$0xff] }
 0x522   : > { %9485 = vmatpush1.bf16.msra.mxu0 %v13089_v1  ;;  %v3158_v1 = vld [vmem:[#allocation6 + $0x16b8] sm:$0xff] }
 0x523   : > { %9813 = vmatpush1.bf16.msra.mxu1 %v13091_v5  ;;  %9486 = vmatprep.subr.bf16.mxu0 %v13098_v10  ;;  %v13137_v5 = vcombine.low %v3145_v50, %v3149_v54  ;;  %v13139_v10 = vcombine.low %v3146_v58, %v3150_v60  ;;  %v13148_v9 = vcombine.high %v3154_v4, %v3158_v1  ;;  %v3193_v54 = vld [vmem:[#allocation6 + $0x17d0] sm:$0xff]  ;;  %v3194_v60 = vld [vmem:[#allocation6 + $0x17d8] sm:$0xff] }
 0x524   : > { %9814 = vmatprep.subr.bf16.mxu1 %v13100_v7  ;;  %v13146_v7 = vcombine.high %v3153_v3, %v3157_v38  ;;  %v3197_v58 = vld [vmem:[#allocation6 + $0x17f0] sm:$0xff] }
 0x526   : > { %9487 = vmatpush1.bf16.msra.mxu0 %v13097_v46  ;;  %v3166_v46 = vld [vmem:[#allocation6 + $0x16f8] sm:$0xff] }
 0x527   : > { %9815 = vmatpush1.bf16.msra.mxu1 %v13099_v18  ;;  %9488 = vmatprep.subr.bf16.mxu0 %v13106_v37  ;;  %v13145_v18 = vcombine.low %v3153_v3, %v3157_v38  ;;  %v13147_v37 = vcombine.low %v3154_v4, %v3158_v1  ;;  %v13156_v55 = vcombine.high %v3162_v44, %v3166_v46  ;;  %v3201_v38 = vld [vmem:[#allocation6 + $0x1810] sm:$0xff]  ;;  %v3202_v1 = vld [vmem:[#allocation6 + $0x1818] sm:$0xff] }
 0x528   : > { %9816 = vmatprep.subr.bf16.mxu1 %v13108_v16  ;;  %v13154_v16 = vcombine.high %v3161_v33, %v3165_v11  ;;  %v3205_v4 = vld [vmem:[#allocation6 + $0x1830] sm:$0xff] }
 0x52a   : > { %9489 = vmatpush1.bf16.msra.mxu0 %v13105_v21  ;;  %v3174_v21 = vld [vmem:[#allocation6 + $0x1738] sm:$0xff] }
 0x52b   : > { %9817 = vmatpush1.bf16.msra.mxu1 %v13107_v41  ;;  %9490 = vmatprep.subr.bf16.mxu0 %v13114_v53  ;;  %v13153_v41 = vcombine.low %v3161_v33, %v3165_v11  ;;  %v13155_v53 = vcombine.low %v3162_v44, %v3166_v46  ;;  %v13164_v62 = vcombine.high %v3170_v31, %v3174_v21  ;;  %v3209_v11 = vld [vmem:[#allocation6 + $0x1850] sm:$0xff] }
 0x52c   : > { %9818 = vmatprep.subr.bf16.mxu1 %v13116_v32  ;;  %v13162_v32 = vcombine.high %v3169_v17, %v3173_v19  ;;  %v3213_v44 = vld [vmem:[#allocation6 + $0x1870] sm:$0xff]  ;;  %v13193_v46 = vcombine.low %v3201_v38, %v3205_v4 }
 0x52e   : > { %9491 = vmatpush1.bf16.msra.mxu0 %v13113_v29  ;;  %v3182_v29 = vld [vmem:[#allocation6 + $0x1778] sm:$0xff] }
 0x52f   : > { %9819 = vmatpush1.bf16.msra.mxu1 %v13115_v57  ;;  %9492 = vmatprep.subr.bf16.mxu0 %v13122_v27  ;;  %v13161_v57 = vcombine.low %v3169_v17, %v3173_v19  ;;  %v13163_v27 = vcombine.low %v3170_v31, %v3174_v21  ;;  %v13172_v14 = vcombine.high %v3178_v26, %v3182_v29  ;;  %v3217_v17 = vld [vmem:[#allocation6 + $0x1890] sm:$0xff]  ;;  %v3218_v21 = vld [vmem:[#allocation6 + $0x1898] sm:$0xff] }
 0x530   : > { %9820 = vmatprep.subr.bf16.mxu1 %v13124_v43  ;;  %v13170_v43 = vcombine.high %v3177_v23, %v3181_v20  ;;  %v3221_v19 = vld [vmem:[#allocation6 + $0x18b0] sm:$0xff] }
 0x532   : > { %9493 = vmatpush1.bf16.msra.mxu0 %v13121_v42  ;;  %v3190_v42 = vld [vmem:[#allocation6 + $0x17b8] sm:$0xff] }
 0x533   : > { %9821 = vmatpush1.bf16.msra.mxu1 %v13123_v45  ;;  %9494 = vmatprep.subr.bf16.mxu0 %v13130_v8  ;;  %v13169_v45 = vcombine.low %v3177_v23, %v3181_v20  ;;  %v13171_v8 = vcombine.low %v3178_v26, %v3182_v29  ;;  %v13180_v50 = vcombine.high %v3186_v51, %v3190_v42  ;;  %v3225_v20 = vld [vmem:[#allocation6 + $0x18d0] sm:$0xff]  ;;  %v3226_v29 = vld [vmem:[#allocation6 + $0x18d8] sm:$0xff] }
 0x534   : > { %9822 = vmatprep.subr.bf16.mxu1 %v13132_v36  ;;  %v13178_v36 = vcombine.high %v3185_v49, %v3189_v35  ;;  %v3229_v26 = vld [vmem:[#allocation6 + $0x18f0] sm:$0xff] }
 0x536   : > { %9495 = vmatpush1.bf16.msra.mxu0 %v13129_v30  ;;  %v3198_v30 = vld [vmem:[#allocation6 + $0x17f8] sm:$0xff] }
 0x537   : > { %9823 = vmatpush1.bf16.msra.mxu1 %v13131_v0  ;;  %9496 = vmatprep.subr.bf16.mxu0 %v13138_v2  ;;  %v13177_v0 = vcombine.low %v3185_v49, %v3189_v35  ;;  %v13179_v2 = vcombine.low %v3186_v51, %v3190_v42  ;;  %v13188_v3 = vcombine.high %v3194_v60, %v3198_v30  ;;  %v3233_v49 = vld [vmem:[#allocation6 + $0x1910] sm:$0xff]  ;;  %v3234_v51 = vld [vmem:[#allocation6 + $0x1918] sm:$0xff] }
 0x538   : > { %9824 = vmatprep.subr.bf16.mxu1 %v13140_v12  ;;  %v13186_v12 = vcombine.high %v3193_v54, %v3197_v58  ;;  %v3237_v35 = vld [vmem:[#allocation6 + $0x1930] sm:$0xff]  ;;  %v3238_v42 = vld [vmem:[#allocation6 + $0x1938] sm:$0xff] }
 0x53a   : > { %9497 = vmatpush1.bf16.msra.mxu0 %v13137_v5  ;;  %v3206_v5 = vld [vmem:[#allocation6 + $0x1838] sm:$0xff] }
 0x53b   : > { %9825 = vmatpush1.bf16.msra.mxu1 %v13139_v10  ;;  %9498 = vmatprep.subr.bf16.mxu0 %v13146_v7  ;;  %v13185_v10 = vcombine.low %v3193_v54, %v3197_v58  ;;  %v13187_v7 = vcombine.low %v3194_v60, %v3198_v30  ;;  %v13196_v33 = vcombine.high %v3202_v1, %v3206_v5  ;;  %v3245_v54 = vld [vmem:[#allocation6 + $0x1970] sm:$0xff]  ;;  %v3242_v58 = vld [vmem:[#allocation6 + $0x1958] sm:$0xff] }
 0x53c   : > { %9826 = vmatprep.subr.bf16.mxu1 %v13148_v9  ;;  %v13194_v9 = vcombine.high %v3201_v38, %v3205_v4  ;;  %v3246_v60 = vld [vmem:[#allocation6 + $0x1978] sm:$0xff]  ;;  %v13225_v30 = vcombine.low %v3233_v49, %v3237_v35  ;;  %v3253_v38 = vld [vmem:[#allocation6 + $0x19b0] sm:$0xff] }
 0x53d   : > { %v3250_v4 = vld [vmem:[#allocation6 + $0x1998] sm:$0xff] }
 0x53e   : > { %9499 = vmatpush1.bf16.msra.mxu0 %v13145_v18  ;;  %v3210_v18 = vld [vmem:[#allocation6 + $0x1858] sm:$0xff] }
 0x53f   : > { %9827 = vmatpush1.bf16.msra.mxu1 %v13147_v37  ;;  %9500 = vmatprep.subr.bf16.mxu0 %v13154_v16  ;;  %v3214_v37 = vld [vmem:[#allocation6 + $0x1878] sm:$0xff]  ;;  %v13195_v16 = vcombine.low %v3202_v1, %v3206_v5 }
 0x540   : > { %9828 = vmatprep.subr.bf16.mxu1 %v13156_v55  ;;  %v13202_v55 = vcombine.high %v3209_v11, %v3213_v44  ;;  %v13204_v31 = vcombine.high %v3210_v18, %v3214_v37  ;;  %v3254_v1 = vld [vmem:[#allocation6 + $0x19b8] sm:$0xff] }
 0x542   : > { %9501 = vmatpush1.bf16.msra.mxu0 %v13153_v41  ;;  %v3222_v41 = vld [vmem:[#allocation6 + $0x18b8] sm:$0xff] }
 0x543   : > { %9829 = vmatpush1.bf16.msra.mxu1 %v13155_v53  ;;  %9502 = vmatprep.subr.bf16.mxu0 %v13162_v32  ;;  %v13201_v53 = vcombine.low %v3209_v11, %v3213_v44  ;;  %v13203_v32 = vcombine.low %v3210_v18, %v3214_v37  ;;  %v13212_v23 = vcombine.high %v3218_v21, %v3222_v41  ;;  %v3261_v11 = vld [vmem:[#allocation6 + $0x19f0] sm:$0xff]  ;;  %v3258_v44 = vld [vmem:[#allocation6 + $0x19d8] sm:$0xff] }
 0x544   : > { %9830 = vmatprep.subr.bf16.mxu1 %v13164_v62  ;;  %v13210_v62 = vcombine.high %v3217_v17, %v3221_v19  ;;  %v13243_v37 = vcombine.low %v3250_v4, %v3254_v1 }
 0x546   : > { %9503 = vmatpush1.bf16.msra.mxu0 %v13161_v57  ;;  %v3230_v57 = vld [vmem:[#allocation6 + $0x18f8] sm:$0xff] }
 0x547   : > { %9831 = vmatpush1.bf16.msra.mxu1 %v13163_v27  ;;  %9504 = vmatprep.subr.bf16.mxu0 %v13170_v43  ;;  %v13209_v27 = vcombine.low %v3217_v17, %v3221_v19  ;;  %v13218_v43 = vcombine.high %v3225_v20, %v3229_v26  ;;  %v3265_v17 = vld [vmem:[#allocation6 + $0x1a10] sm:$0xff] }
 0x548   : > { %9832 = vmatprep.subr.bf16.mxu1 %v13172_v14  ;;  %v13220_v14 = vcombine.high %v3226_v29, %v3230_v57  ;;  %v3269_v19 = vld [vmem:[#allocation6 + $0x1a30] sm:$0xff] }
 0x54a   : > { %9505 = vmatpush1.bf16.msra.mxu0 %v13169_v45  ;;  %v13219_v45 = vcombine.low %v3226_v29, %v3230_v57  ;;  %v3278_v29 = vld [vmem:[#allocation6 + $0x1a78] sm:$0xff]  ;;  %v13257_v57 = vcombine.low %v3265_v17, %v3269_v19 }
 0x54b   : > { %9833 = vmatpush1.bf16.msra.mxu1 %v13171_v8  ;;  %9506 = vmatprep.subr.bf16.mxu0 %v13178_v36  ;;  %v13226_v8 = vcombine.high %v3233_v49, %v3237_v35  ;;  %v13228_v36 = vcombine.high %v3234_v51, %v3238_v42  ;;  %v3285_v49 = vld [vmem:[#allocation6 + $0x1ab0] sm:$0xff]  ;;  %v3282_v35 = vld [vmem:[#allocation6 + $0x1a98] sm:$0xff] }
 0x54c   : > { %9834 = vmatprep.subr.bf16.mxu1 %v13180_v50  ;;  %v3241_v50 = vld [vmem:[#allocation6 + $0x1950] sm:$0xff] }
 0x54d   : > { %v13233_v5 = vcombine.low %v3241_v50, %v3245_v54 }
 0x54e   : > { %9507 = vmatpush1.bf16.msra.mxu0 %v13177_v0  ;;  %v13227_v0 = vcombine.low %v3234_v51, %v3238_v42  ;;  %v3286_v51 = vld [vmem:[#allocation6 + $0x1ab8] sm:$0xff] }
 0x54f   : > { %9835 = vmatpush1.bf16.msra.mxu1 %v13179_v2  ;;  %9508 = vmatprep.subr.bf16.mxu0 %v13186_v12  ;;  %v13234_v2 = vcombine.high %v3241_v50, %v3245_v54  ;;  %v13236_v12 = vcombine.high %v3242_v58, %v3246_v60  ;;  %v3293_v50 = vld [vmem:[#allocation6 + $0x1af0] sm:$0xff]  ;;  %v3290_v54 = vld [vmem:[#allocation6 + $0x1ad8] sm:$0xff] }
 0x550   : > { %9836 = vmatprep.subr.bf16.mxu1 %v13188_v3  ;;  %v3249_v3 = vld [vmem:[#allocation6 + $0x1990] sm:$0xff] }
 0x551   : > { %v13241_v18 = vcombine.low %v3249_v3, %v3253_v38 }
 0x552   : > { %9509 = vmatpush1.bf16.msra.mxu0 %v13185_v10  ;;  %v13235_v10 = vcombine.low %v3242_v58, %v3246_v60  ;;  %v3294_v58 = vld [vmem:[#allocation6 + $0x1af8] sm:$0xff] }
 0x553   : > { %9837 = vmatpush1.bf16.msra.mxu1 %v13187_v7  ;;  %9519 = vmatprep.subr.bf16.mxu0 %v13194_v9  ;;  %v13242_v7 = vcombine.high %v3249_v3, %v3253_v38  ;;  %v13244_v9 = vcombine.high %v3250_v4, %v3254_v1  ;;  %v3301_v3 = vld [vmem:[#allocation6 + $0x1b30] sm:$0xff]  ;;  %v3298_v38 = vld [vmem:[#allocation6 + $0x1b18] sm:$0xff] }
 0x554   : > { %9847 = vmatprep.subr.bf16.mxu1 %v13196_v33  ;;  %v3257_v33 = vld [vmem:[#allocation6 + $0x19d0] sm:$0xff]  ;;  %v3302_v4 = vld [vmem:[#allocation6 + $0x1b38] sm:$0xff] }
 0x555   : > { %9511 = vmatmul.mubr.bf16.vlgmr.msra.gmra.mrb[20].mxu0 %v15104_v48 }
 0x556   : > { %9839 = vmatmul.mubr.bf16.vlgmr.msra.gmra.mrb[20].mxu1 %v15104_v48  ;;  %9520 = vmatpush1.bf16.msra.mxu0 %v13193_v46  ;;  %v13211_v48 = vcombine.low %v3218_v21, %v3222_v41  ;;  %v3262_v46 = vld [vmem:[#allocation6 + $0x19f8] sm:$0xff]  ;;  %v13249_v41 = vcombine.low %v3257_v33, %v3261_v11 }
 0x557   : > { %9551 = vmatprep.mubr.bf16.mxu0 %v15106_v6  ;;  %9848 = vmatpush1.bf16.msra.mxu1 %v13195_v16  ;;  %v13250_v16 = vcombine.high %v3257_v33, %v3261_v11  ;;  %v3270_v21 = vld [vmem:[#allocation6 + $0x1a38] sm:$0xff]  ;;  %v3309_v33 = vld [vmem:[#allocation6 + $0x1b70] sm:$0xff] }
 0x558   : > { %9879 = vmatprep.mubr.bf16.mxu1 %v15106_v6  ;;  %9521 = vmatprep.subr.bf16.mxu0 %v13202_v55  ;;  %v13217_v6 = vcombine.low %v3225_v20, %v3229_v26  ;;  %v13252_v55 = vcombine.high %v3258_v44, %v3262_v46  ;;  %v3277_v20 = vld [vmem:[#allocation6 + $0x1a70] sm:$0xff]  ;;  %v3274_v26 = vld [vmem:[#allocation6 + $0x1a58] sm:$0xff] }
 0x559   : > { %9849 = vmatprep.subr.bf16.mxu1 %v13204_v31  ;;  %v3266_v31 = vld [vmem:[#allocation6 + $0x1a18] sm:$0xff] }
 0x55a   : > { %9522 = vmatpush1.bf16.msra.mxu0 %v13201_v53  ;;  %v13251_v53 = vcombine.low %v3258_v44, %v3262_v46  ;;  %v3306_v11 = vld [vmem:[#allocation6 + $0x1b58] sm:$0xff] }
 0x55b   : > { %9850 = vmatpush1.bf16.msra.mxu1 %v13203_v32  ;;  %9523 = vmatprep.subr.bf16.mxu0 %v13210_v62  ;;  %v13258_v32 = vcombine.high %v3265_v17, %v3269_v19  ;;  %v13260_v62 = vcombine.high %v3266_v31, %v3270_v21  ;;  %v3310_v44 = vld [vmem:[#allocation6 + $0x1b78] sm:$0xff]  ;;  %v3317_v17 = vld [vmem:[#allocation6 + $0x1bb0] sm:$0xff] }
 0x55c   : > { %9851 = vmatprep.subr.bf16.mxu1 %v13212_v23  ;;  %v3273_v23 = vld [vmem:[#allocation6 + $0x1a50] sm:$0xff]  ;;  %v3314_v19 = vld [vmem:[#allocation6 + $0x1b98] sm:$0xff] }
 0x55d   : > { %v13265_v42 = vcombine.low %v3273_v23, %v3277_v20 }
 0x55e   : > { %9524 = vmatpush1.bf16.msra.mxu0 %v13209_v27  ;;  %v13259_v27 = vcombine.low %v3266_v31, %v3270_v21  ;;  %v3318_v31 = vld [vmem:[#allocation6 + $0x1bb8] sm:$0xff] }
 0x55f   : > { %9852 = vmatpush1.bf16.msra.mxu1 %v13211_v48  ;;  %9525 = vmatprep.subr.bf16.mxu0 %v13218_v43  ;;  %v13266_v48 = vcombine.high %v3273_v23, %v3277_v20  ;;  %v13268_v43 = vcombine.high %v3274_v26, %v3278_v29  ;;  %v3325_v23 = vld [vmem:[#allocation6 + $0x1bf0] sm:$0xff]  ;;  %v3322_v20 = vld [vmem:[#allocation6 + $0x1bd8] sm:$0xff] }
 0x560   : > { %9853 = vmatprep.subr.bf16.mxu1 %v13220_v14  ;;  %v3281_v14 = vld [vmem:[#allocation6 + $0x1a90] sm:$0xff] }
 0x561   : > { %v13273_v60 = vcombine.low %v3281_v14, %v3285_v49 }
 0x562   : > { %9526 = vmatpush1.bf16.msra.mxu0 %v13217_v6  ;;  %v13267_v6 = vcombine.low %v3274_v26, %v3278_v29  ;;  %v3326_v26 = vld [vmem:[#allocation6 + $0x1bf8] sm:$0xff] }
 0x563   : > { %9854 = vmatpush1.bf16.msra.mxu1 %v13219_v45  ;;  %9527 = vmatprep.subr.bf16.mxu0 %v13226_v8  ;;  %v13274_v45 = vcombine.high %v3281_v14, %v3285_v49  ;;  %v13276_v8 = vcombine.high %v3282_v35, %v3286_v51  ;;  %v3333_v14 = vld [vmem:[#allocation6 + $0x1c30] sm:$0xff]  ;;  %v3330_v49 = vld [vmem:[#allocation6 + $0x1c18] sm:$0xff] }
 0x564   : > { %9855 = vmatprep.subr.bf16.mxu1 %v13228_v36  ;;  %v3289_v36 = vld [vmem:[#allocation6 + $0x1ad0] sm:$0xff] }
 0x565   : > { %v13281_v1 = vcombine.low %v3289_v36, %v3293_v50 }
 0x566   : > { %9528 = vmatpush1.bf16.msra.mxu0 %v13225_v30  ;;  %v13275_v30 = vcombine.low %v3282_v35, %v3286_v51  ;;  %v3334_v35 = vld [vmem:[#allocation6 + $0x1c38] sm:$0xff] }
 0x567   : > { %9856 = vmatpush1.bf16.msra.mxu1 %v13227_v0  ;;  %9529 = vmatprep.subr.bf16.mxu0 %v13234_v2  ;;  %v13282_v0 = vcombine.high %v3289_v36, %v3293_v50  ;;  %v13284_v2 = vcombine.high %v3290_v54, %v3294_v58  ;;  %v3341_v36 = vld [vmem:[#allocation6 + $0x1c70] sm:$0xff] }
 0x568   : > { %9857 = vmatprep.subr.bf16.mxu1 %v13236_v12  ;;  %v3297_v12 = vld [vmem:[#allocation6 + $0x1b10] sm:$0xff] }
 0x569   : > { %v13289_v46 = vcombine.low %v3297_v12, %v3301_v3 }
 0x56a   : > { %9530 = vmatpush1.bf16.msra.mxu0 %v13233_v5  ;;  %v13283_v5 = vcombine.low %v3290_v54, %v3294_v58  ;;  %v3338_v54 = vld [vmem:[#allocation6 + $0x1c58] sm:$0xff] }
 0x56b   : > { %9858 = vmatpush1.bf16.msra.mxu1 %v13235_v10  ;;  %9531 = vmatprep.subr.bf16.mxu0 %v13242_v7  ;;  %v13290_v10 = vcombine.high %v3297_v12, %v3301_v3  ;;  %v13292_v7 = vcombine.high %v3298_v38, %v3302_v4  ;;  %v3342_v58 = vld [vmem:[#allocation6 + $0x1c78] sm:$0xff] }
 0x56c   : > { %9859 = vmatprep.subr.bf16.mxu1 %v13244_v9  ;;  %v3305_v9 = vld [vmem:[#allocation6 + $0x1b50] sm:$0xff]  ;;  %v13332_v12 = vcombine.high %v3338_v54, %v3342_v58  ;;  %v3346_v3 = vld [vmem:[#allocation6 + $0x1c98] sm:$0xff] }
 0x56d   : > { %v13297_v21 = vcombine.low %v3305_v9, %v3309_v33 }
 0x56e   : > { %9532 = vmatpush1.bf16.msra.mxu0 %v13241_v18  ;;  %v13291_v18 = vcombine.low %v3298_v38, %v3302_v4  ;;  %v3350_v38 = vld [vmem:[#allocation6 + $0x1cb8] sm:$0xff] }
 0x56f   : > { %9860 = vmatpush1.bf16.msra.mxu1 %v13243_v37  ;;  %9533 = vmatprep.subr.bf16.mxu0 %v13250_v16  ;;  %v13298_v37 = vcombine.high %v3305_v9, %v3309_v33  ;;  %v13300_v16 = vcombine.high %v3306_v11, %v3310_v44  ;;  %v3357_v9 = vld [vmem:[#allocation6 + $0x1cf0] sm:$0xff]  ;;  %v3354_v33 = vld [vmem:[#allocation6 + $0x1cd8] sm:$0xff] }
 0x570   : > { %9861 = vmatprep.subr.bf16.mxu1 %v13252_v55  ;;  %v3313_v55 = vld [vmem:[#allocation6 + $0x1b90] sm:$0xff] }
 0x571   : > { %v13305_v29 = vcombine.low %v3313_v55, %v3317_v17 }
 0x572   : > { %9534 = vmatpush1.bf16.msra.mxu0 %v13249_v41  ;;  %v13299_v41 = vcombine.low %v3306_v11, %v3310_v44  ;;  %v3358_v11 = vld [vmem:[#allocation6 + $0x1cf8] sm:$0xff] }
 0x573   : > { %9862 = vmatpush1.bf16.msra.mxu1 %v13251_v53  ;;  %9535 = vmatprep.subr.bf16.mxu0 %v13258_v32  ;;  %v13306_v53 = vcombine.high %v3313_v55, %v3317_v17  ;;  %v13308_v32 = vcombine.high %v3314_v19, %v3318_v31  ;;  %v3362_v55 = vld [vmem:[#allocation6 + $0x1d18] sm:$0xff] }
 0x574   : > { %9863 = vmatprep.subr.bf16.mxu1 %v13260_v62  ;;  %v3321_v62 = vld [vmem:[#allocation6 + $0x1bd0] sm:$0xff]  ;;  %v3366_v17 = vld [vmem:[#allocation6 + $0x1d38] sm:$0xff] }
 0x575   : > { %v13313_v51 = vcombine.low %v3321_v62, %v3325_v23 }
 0x576   : > { %9536 = vmatpush1.bf16.msra.mxu0 %v13257_v57  ;;  %v13307_v57 = vcombine.low %v3314_v19, %v3318_v31  ;;  %v13347_v19 = vcombine.low %v3354_v33, %v3358_v11 }
 0x577   : > { %9864 = vmatpush1.bf16.msra.mxu1 %v13259_v27  ;;  %9537 = vmatprep.subr.bf16.mxu0 %v13266_v48  ;;  %v13314_v27 = vcombine.high %v3321_v62, %v3325_v23  ;;  %v13316_v48 = vcombine.high %v3322_v20, %v3326_v26  ;;  %v3374_v62 = vld [vmem:[#allocation6 + $0x1d78] sm:$0xff] }
 0x578   : > { %9865 = vmatprep.subr.bf16.mxu1 %v13268_v43  ;;  %v3329_v43 = vld [vmem:[#allocation6 + $0x1c10] sm:$0xff] }
 0x579   : > { %v13321_v50 = vcombine.low %v3329_v43, %v3333_v14 }
 0x57a   : > { %9538 = vmatpush1.bf16.msra.mxu0 %v13265_v42  ;;  %v13315_v42 = vcombine.low %v3322_v20, %v3326_v26  ;;  %v13355_v20 = vcombine.low %v3362_v55, %v3366_v17 }
 0x57b   : > { %9866 = vmatpush1.bf16.msra.mxu1 %v13267_v6  ;;  %9539 = vmatprep.subr.bf16.mxu0 %v13274_v45  ;;  %v13322_v6 = vcombine.high %v3329_v43, %v3333_v14  ;;  %v13324_v45 = vcombine.high %v3330_v49, %v3334_v35  ;;  %v3382_v43 = vld [vmem:[#allocation6 + $0x1db8] sm:$0xff] }
 0x57c   : > { %9867 = vmatprep.subr.bf16.mxu1 %v13276_v8  ;;  %v3337_v8 = vld [vmem:[#allocation6 + $0x1c50] sm:$0xff] }
 0x57d   : > { %v13329_v4 = vcombine.low %v3337_v8, %v3341_v36 }
 0x57e   : > { %9540 = vmatpush1.bf16.msra.mxu0 %v13273_v60  ;;  %v13323_v60 = vcombine.low %v3330_v49, %v3334_v35 }
 0x57f   : > { %9868 = vmatpush1.bf16.msra.mxu1 %v13275_v30  ;;  %9541 = vmatprep.subr.bf16.mxu0 %v13282_v0  ;;  %v13330_v30 = vcombine.high %v3337_v8, %v3341_v36  ;;  %v3345_v0 = vld [vmem:[#allocation6 + $0x1c90] sm:$0xff]  ;;  %v3390_v8 = vld [vmem:[#allocation6 + $0x1df8] sm:$0xff] }
 0x580   : > { %9869 = vmatprep.subr.bf16.mxu1 %v13284_v2  ;;  %v3349_v2 = vld [vmem:[#allocation6 + $0x1cb0] sm:$0xff] }
 0x581   : > { %v13337_v44 = vcombine.low %v3345_v0, %v3349_v2 }
 0x582   : > { %9542 = vmatpush1.bf16.msra.mxu0 %v13281_v1  ;;  %v13331_v1 = vcombine.low %v3338_v54, %v3342_v58 }
 0x583   : > { %9870 = vmatpush1.bf16.msra.mxu1 %v13283_v5  ;;  %9543 = vmatprep.subr.bf16.mxu0 %v13290_v10  ;;  %v13338_v5 = vcombine.high %v3345_v0, %v3349_v2  ;;  %v13340_v10 = vcombine.high %v3346_v3, %v3350_v38  ;;  %v3394_v0 = vld [vmem:[#allocation6 + $0x1e18] sm:$0xff] }
 0x584   : > { %9871 = vmatprep.subr.bf16.mxu1 %v13292_v7  ;;  %v3353_v7 = vld [vmem:[#allocation6 + $0x1cd0] sm:$0xff]  ;;  %v3398_v2 = vld [vmem:[#allocation6 + $0x1e38] sm:$0xff] }
 0x586   : > { %9544 = vmatpush1.bf16.msra.mxu0 %v13289_v46  ;;  %v13346_v46 = vcombine.high %v3353_v7, %v3357_v9 }
 0x587   : > { %9872 = vmatpush1.bf16.msra.mxu1 %v13291_v18  ;;  %9545 = vmatprep.subr.bf16.mxu0 %v13298_v37  ;;  %v13348_v18 = vcombine.high %v3354_v33, %v3358_v11  ;;  %v3361_v37 = vld [vmem:[#allocation6 + $0x1d10] sm:$0xff]  ;;  %v13387_v33 = vcombine.low %v3394_v0, %v3398_v2 }
 0x588   : > { %9873 = vmatprep.subr.bf16.mxu1 %v13300_v16  ;;  %v3365_v16 = vld [vmem:[#allocation6 + $0x1d30] sm:$0xff] }
 0x589   : > { %v13354_v31 = vcombine.high %v3361_v37, %v3365_v16  ;;  %v13353_v23 = vcombine.low %v3361_v37, %v3365_v16  ;;  %v3414_v37 = vld [vmem:[#allocation6 + $0x1eb8] sm:$0xff] }
 0x58a   : > { %9546 = vmatpush1.bf16.msra.mxu0 %v13297_v21  ;;  %v13356_v21 = vcombine.high %v3362_v55, %v3366_v17 }
 0x58b   : > { %9874 = vmatpush1.bf16.msra.mxu1 %v13299_v41  ;;  %9547 = vmatprep.subr.bf16.mxu0 %v13306_v53  ;;  %v3369_v41 = vld [vmem:[#allocation6 + $0x1d50] sm:$0xff] }
 0x58c   : > { %9875 = vmatprep.subr.bf16.mxu1 %v13308_v32  ;;  %v3373_v53 = vld [vmem:[#allocation6 + $0x1d70] sm:$0xff]  ;;  %v3370_v32 = vld [vmem:[#allocation6 + $0x1d58] sm:$0xff] }
 0x58d   : > { %v13362_v26 = vcombine.high %v3369_v41, %v3373_v53  ;;  %v13361_v14 = vcombine.low %v3369_v41, %v3373_v53  ;;  %v13363_v49 = vcombine.low %v3370_v32, %v3374_v62  ;;  %v3422_v41 = vld [vmem:[#allocation6 + $0x1ef8] sm:$0xff] }
 0x58e   : > { %9548 = vmatpush1.bf16.msra.mxu0 %v13305_v29  ;;  %v13364_v29 = vcombine.high %v3370_v32, %v3374_v62 }
 0x58f   : > { %9876 = vmatpush1.bf16.msra.mxu1 %v13307_v57  ;;  %9549 = vmatprep.subr.bf16.mxu0 %v13314_v27  ;;  %v3377_v57 = vld [vmem:[#allocation6 + $0x1d90] sm:$0xff] }
 0x590   : > { %9877 = vmatprep.subr.bf16.mxu1 %v13316_v48  ;;  %v3381_v27 = vld [vmem:[#allocation6 + $0x1db0] sm:$0xff]  ;;  %v3378_v48 = vld [vmem:[#allocation6 + $0x1d98] sm:$0xff] }
 0x591   : > { %v13370_v35 = vcombine.high %v3377_v57, %v3381_v27  ;;  %v13369_v36 = vcombine.low %v3377_v57, %v3381_v27  ;;  %v3430_v57 = vld [vmem:[#allocation6 + $0x1f38] sm:$0xff] }
 0x592   : > { %9550 = vmatpush1.bf16.msra.mxu0 %v13313_v51  ;;  %v13372_v51 = vcombine.high %v3378_v48, %v3382_v43 }
 0x593   : > { %9878 = vmatpush1.bf16.msra.mxu1 %v13315_v42  ;;  %9560 = vmatprep.subr.bf16.mxu0 %v13322_v6  ;;  %v3385_v42 = vld [vmem:[#allocation6 + $0x1dd0] sm:$0xff] }
 0x594   : > { %9888 = vmatprep.subr.bf16.mxu1 %v13324_v45  ;;  %v3389_v6 = vld [vmem:[#allocation6 + $0x1df0] sm:$0xff]  ;;  %v3386_v45 = vld [vmem:[#allocation6 + $0x1dd8] sm:$0xff] }
 0x595   : > { %9552 = vmatmul.mubr.bf16.vlgmr.msra.gmra.mrb[20].mxu0 %v15120_v25  ;;  %v13378_v54 = vcombine.high %v3385_v42, %v3389_v6  ;;  %v13380_v58 = vcombine.high %v3386_v45, %v3390_v8 }
 0x596   : > { %9880 = vmatmul.mubr.bf16.vlgmr.msra.gmra.mrb[20].mxu1 %v15120_v25  ;;  %9561 = vmatpush1.bf16.msra.mxu0 %v13321_v50  ;;  %v13339_v25 = vcombine.low %v3346_v3, %v3350_v38  ;;  %v13371_v50 = vcombine.low %v3378_v48, %v3382_v43  ;;  %v13379_v3 = vcombine.low %v3386_v45, %v3390_v8 }
 0x597   : > { %9592 = vmatprep.mubr.bf16.mxu0 %v15122_v61  ;;  %9889 = vmatpush1.bf16.msra.mxu1 %v13323_v60  ;;  %v3393_v60 = vld [vmem:[#allocation6 + $0x1e10] sm:$0xff] }
 0x598   : > { %9920 = vmatprep.mubr.bf16.mxu1 %v15122_v61  ;;  %9562 = vmatprep.subr.bf16.mxu0 %v13330_v30  ;;  %v13345_v61 = vcombine.low %v3353_v7, %v3357_v9  ;;  %v3397_v30 = vld [vmem:[#allocation6 + $0x1e30] sm:$0xff]  ;;  %v3406_v7 = vld [vmem:[#allocation6 + $0x1e78] sm:$0xff] }
 0x599   : > { %9890 = vmatprep.subr.bf16.mxu1 %v13332_v12  ;;  %v13377_v12 = vcombine.low %v3385_v42, %v3389_v6  ;;  %v13386_v38 = vcombine.high %v3393_v60, %v3397_v30  ;;  %v13385_v9 = vcombine.low %v3393_v60, %v3397_v30  ;;  %v3438_v42 = vld [vmem:[#allocation6 + $0x1f78] sm:$0xff]  ;;  %v15173_v30 = vld [vmem:[#allocation7] sm:$0xff] }
 0x59a   : > { %9563 = vmatpush1.bf16.msra.mxu0 %v13329_v4  ;;  %v13388_v4 = vcombine.high %v3394_v0, %v3398_v2  ;;  %v3446_v60 = vld [vmem:[#allocation6 + $0x1fb8] sm:$0xff] }
 0x59b   : > { %9891 = vmatpush1.bf16.msra.mxu1 %v13331_v1  ;;  %9564 = vmatprep.subr.bf16.mxu0 %v13338_v5  ;;  %v3401_v1 = vld [vmem:[#allocation6 + $0x1e50] sm:$0xff] }
 0x59c   : > { %9892 = vmatprep.subr.bf16.mxu1 %v13340_v10  ;;  %v3405_v5 = vld [vmem:[#allocation6 + $0x1e70] sm:$0xff]  ;;  %v3402_v10 = vld [vmem:[#allocation6 + $0x1e58] sm:$0xff] }
 0x59d   : > { %v13394_v11 = vcombine.high %v3401_v1, %v3405_v5  ;;  %v13393_v16 = vcombine.low %v3401_v1, %v3405_v5  ;;  %v13395_v55 = vcombine.low %v3402_v10, %v3406_v7  ;;  %v3464_v1 = vrot.slane %v15173_v30, %v14963_v59  ;;  %v3450_v5 = vld [vmem:[#allocation6 + $0x1fd8] sm:$0xff] }
 0x59e   : > { %9565 = vmatpush1.bf16.msra.mxu0 %v13337_v44  ;;  %v13396_v44 = vcombine.high %v3402_v10, %v3406_v7  ;;  %v3454_v10 = vld [vmem:[#allocation6 + $0x1ff8] sm:$0xff] }
 0x59f   : > { %9893 = vmatpush1.bf16.msra.mxu1 %v13339_v25  ;;  %9566 = vmatprep.subr.bf16.mxu0 %v13346_v46  ;;  %v3409_v25 = vld [vmem:[#allocation6 + $0x1e90] sm:$0xff] }
 0x5a0   : > { %9894 = vmatprep.subr.bf16.mxu1 %v13348_v18  ;;  %v3413_v46 = vld [vmem:[#allocation6 + $0x1eb0] sm:$0xff]  ;;  %v3410_v18 = vld [vmem:[#allocation6 + $0x1e98] sm:$0xff] }
 0x5a1   : > { %v13402_v17 = vcombine.high %v3409_v25, %v3413_v46  ;;  %v13401_v53 = vcombine.low %v3409_v25, %v3413_v46  ;;  %v13403_v32 = vcombine.low %v3410_v18, %v3414_v37  ;;  %v13443_v46 = vcombine.low %v3450_v5, %v3454_v10 }
 0x5a2   : > { %9567 = vmatpush1.bf16.msra.mxu0 %v13345_v61  ;;  %v13404_v61 = vcombine.high %v3410_v18, %v3414_v37  ;;  %v13971_v18 = vld [vmem:[#allocation9 + $0x4] ss:$16 sps:$4 sm:$0xff]   ;;  %v13974_v37 = vld [vmem:[#allocation9 + $0xc] ss:$16 sps:$4 sm:$0xff]  }
 0x5a3   : > { %9895 = vmatpush1.bf16.msra.mxu1 %v13347_v19  ;;  %9568 = vmatprep.subr.bf16.mxu0 %v13354_v31  ;;  %v3417_v19 = vld [vmem:[#allocation6 + $0x1ed0] sm:$0xff] }
 0x5a4   : > { %9896 = vmatprep.subr.bf16.mxu1 %v13356_v21  ;;  %v3421_v31 = vld [vmem:[#allocation6 + $0x1ef0] sm:$0xff]  ;;  %v3418_v21 = vld [vmem:[#allocation6 + $0x1ed8] sm:$0xff] }
 0x5a5   : > { %v13410_v62 = vcombine.high %v3417_v19, %v3421_v31  ;;  %v13409_v27 = vcombine.low %v3417_v19, %v3421_v31  ;;  %v13411_v48 = vcombine.low %v3418_v21, %v3422_v41  ;;  %v13975_v31 = vld [vmem:[#allocation9 + $0x20] ss:$16 sps:$4 sm:$0xff]  }
 0x5a6   : > { %9569 = vmatpush1.bf16.msra.mxu0 %v13353_v23  ;;  %v13412_v23 = vcombine.high %v3418_v21, %v3422_v41  ;;  %v13978_v21 = vld [vmem:[#allocation9 + $0x28] ss:$16 sps:$4 sm:$0xff]   ;;  %v13983_v41 = vld [vmem:[#allocation9 + $0x44] ss:$16 sps:$4 sm:$0xff]  }
 0x5a7   : > { %9897 = vmatpush1.bf16.msra.mxu1 %v13355_v20  ;;  %9570 = vmatprep.subr.bf16.mxu0 %v13362_v26  ;;  %v3425_v20 = vld [vmem:[#allocation6 + $0x1f10] sm:$0xff] }
 0x5a8   : > { %9898 = vmatprep.subr.bf16.mxu1 %v13364_v29  ;;  %v3429_v26 = vld [vmem:[#allocation6 + $0x1f30] sm:$0xff]  ;;  %v3426_v29 = vld [vmem:[#allocation6 + $0x1f18] sm:$0xff] }
 0x5a9   : > { %v13418_v43 = vcombine.high %v3425_v20, %v3429_v26  ;;  %v13417_v6 = vcombine.low %v3425_v20, %v3429_v26  ;;  %v13419_v45 = vcombine.low %v3426_v29, %v3430_v57  ;;  %v13992_v20 = vld [vmem:[#allocation9 + $0x6c] ss:$16 sps:$4 sm:$0xff]   ;;  %v13990_v26 = vld [vmem:[#allocation9 + $0x68] ss:$16 sps:$4 sm:$0xff]  }
 0x5aa   : > { %9571 = vmatpush1.bf16.msra.mxu0 %v13361_v14  ;;  %v13420_v14 = vcombine.high %v3426_v29, %v3430_v57  ;;  %v13995_v29 = vld [vmem:[#allocation9 + $0x84] ss:$16 sps:$4 sm:$0xff]   ;;  %v13998_v57 = vld [vmem:[#allocation9 + $0x8c] ss:$16 sps:$4 sm:$0xff]  }
 0x5ab   : > { %9899 = vmatpush1.bf16.msra.mxu1 %v13363_v49  ;;  %9572 = vmatprep.subr.bf16.mxu0 %v13370_v35  ;;  %v3433_v49 = vld [vmem:[#allocation6 + $0x1f50] sm:$0xff] }
 0x5ac   : > { %9900 = vmatprep.subr.bf16.mxu1 %v13372_v51  ;;  %v3437_v35 = vld [vmem:[#allocation6 + $0x1f70] sm:$0xff]  ;;  %v3434_v51 = vld [vmem:[#allocation6 + $0x1f58] sm:$0xff] }
 0x5ad   : > { %v13426_v8 = vcombine.high %v3433_v49, %v3437_v35  ;;  %v13425_v0 = vcombine.low %v3433_v49, %v3437_v35  ;;  %v13427_v2 = vcombine.low %v3434_v51, %v3438_v42  ;;  %v13999_v49 = vld [vmem:[#allocation9 + $0xa0] ss:$16 sps:$4 sm:$0xff]   ;;  %v14002_v35 = vld [vmem:[#allocation9 + $0xa8] ss:$16 sps:$4 sm:$0xff]  }
 0x5ae   : > { %9573 = vmatpush1.bf16.msra.mxu0 %v13369_v36  ;;  %v13428_v36 = vcombine.high %v3434_v51, %v3438_v42  ;;  %v14007_v51 = vld [vmem:[#allocation9 + $0xc4] ss:$16 sps:$4 sm:$0xff]   ;;  %v14010_v42 = vld [vmem:[#allocation9 + $0xcc] ss:$16 sps:$4 sm:$0xff]  }
 0x5af   : > { %9901 = vmatpush1.bf16.msra.mxu1 %v13371_v50  ;;  %9574 = vmatprep.subr.bf16.mxu0 %v13378_v54  ;;  %v3441_v50 = vld [vmem:[#allocation6 + $0x1f90] sm:$0xff] }
 0x5b0   : > { %9902 = vmatprep.subr.bf16.mxu1 %v13380_v58  ;;  %v3445_v54 = vld [vmem:[#allocation6 + $0x1fb0] sm:$0xff]  ;;  %v3442_v58 = vld [vmem:[#allocation6 + $0x1f98] sm:$0xff] }
 0x5b1   : > { %v13433_v7 = vcombine.low %v3441_v50, %v3445_v54 }
 0x5b2   : > { %9575 = vmatpush1.bf16.msra.mxu0 %v13377_v12  ;;  %v13434_v12 = vcombine.high %v3441_v50, %v3445_v54  ;;  %v14011_v50 = vld [vmem:[#allocation9 + $0xe0] ss:$16 sps:$4 sm:$0xff]   ;;  %v14014_v54 = vld [vmem:[#allocation9 + $0xe8] ss:$16 sps:$4 sm:$0xff]  }
 0x5b3   : > { %9903 = vmatpush1.bf16.msra.mxu1 %v13379_v3  ;;  %9576 = vmatprep.subr.bf16.mxu0 %v13386_v38  ;;  %v13436_v3 = vcombine.high %v3442_v58, %v3446_v60  ;;  %v3449_v38 = vld [vmem:[#allocation6 + $0x1fd0] sm:$0xff] }
 0x5b4   : > { %9904 = vmatprep.subr.bf16.mxu1 %v13388_v4  ;;  %v3453_v4 = vld [vmem:[#allocation6 + $0x1ff0] sm:$0xff] }
 0x5b5   : > { %v13441_v25 = vcombine.low %v3449_v38, %v3453_v4 }
 0x5b6   : > { %9577 = vmatpush1.bf16.msra.mxu0 %v13385_v9  ;;  %v13435_v9 = vcombine.low %v3442_v58, %v3446_v60  ;;  %v14019_v58 = vld [vmem:[#allocation9 + $0x104] ss:$16 sps:$4 sm:$0xff]   ;;  %v14022_v60 = vld [vmem:[#allocation9 + $0x10c] ss:$16 sps:$4 sm:$0xff]  }
 0x5b7   : > { %9905 = vmatpush1.bf16.msra.mxu1 %v13387_v33  ;;  %9578 = vmatprep.subr.bf16.mxu0 %v13394_v11  ;;  %v13442_v33 = vcombine.high %v3449_v38, %v3453_v4  ;;  %v13444_v11 = vcombine.high %v3450_v5, %v3454_v10  ;;  %v14023_v38 = vld [vmem:[#allocation9 + $0x120] ss:$16 sps:$4 sm:$0xff]   ;;  %v14026_v4 = vld [vmem:[#allocation9 + $0x128] ss:$16 sps:$4 sm:$0xff]   ;;  %v14034_v5 = vld [vmem:[#allocation9 + $0x14c] ss:$16 sps:$4 sm:$0xff]  }
 0x5b8   : > { %9906 = vmatprep.subr.bf16.mxu1 %v13396_v44  ;;  %v13722_v44 = vadd.f32 %v15153_v34, %v3464_v1  ;;  %v13980_v34 = vld [vmem:[#allocation9 + $0x2c] ss:$16 sps:$4 sm:$0xff]   ;;  %v14031_v1 = vld [vmem:[#allocation9 + $0x144] ss:$16 sps:$4 sm:$0xff]   ;;  %v14029_v10 = vld [vmem:[#allocation9 + $0x140] ss:$16 sps:$4 sm:$0xff]  }
 0x5ba   : > { %9579 = vmatpush1.bf16.msra.mxu0 %v13393_v16  ;;  %v9930_v16 = vmax.f32 %v13722_v44, 0.0  ;;  %v14038_v44 = vld [vmem:[#allocation9 + $0x168] ss:$16 sps:$4 sm:$0xff]  }
 0x5bb   : > { %9907 = vmatpush1.bf16.msra.mxu1 %v13395_v55  ;;  %9580 = vmatprep.subr.bf16.mxu0 %v13402_v17  ;;  %v13969_v55 = vld [vmem:[#allocation9] ss:$16 sps:$4 sm:$0xff]   ;;  %v13972_v17 = vld [vmem:[#allocation9 + $0x8] ss:$16 sps:$4 sm:$0xff]  }
 0x5bc   : > { %9908 = vmatprep.subr.bf16.mxu1 %v13404_v61  ;;  %v13977_v61 = vld [vmem:[#allocation9 + $0x24] ss:$16 sps:$4 sm:$0xff]   ;;  %v9938_v19 = vpack.c.bf16 %v9930_v16, %v9930_v16 }
 0x5bd   : > { %v14049_v16 = vld [vmem:[#allocation9 + $0x1a4] ss:$16 sps:$4 sm:$0xff]  }
 0x5be   : > { %9581 = vmatpush1.bf16.msra.mxu0 %v13401_v53  ;;  %v13986_v53 = vld [vmem:[#allocation9 + $0x4c] ss:$16 sps:$4 sm:$0xff]  }
 0x5bf   : > { %9909 = vmatpush1.bf16.msra.mxu1 %v13403_v32  ;;  %9582 = vmatprep.subr.bf16.mxu0 %v13410_v62  ;;  %v13981_v32 = vld [vmem:[#allocation9 + $0x40] ss:$16 sps:$4 sm:$0xff]   ;;  %v13984_v62 = vld [vmem:[#allocation9 + $0x48] ss:$16 sps:$4 sm:$0xff]  }
 0x5c0   : > { %9910 = vmatprep.subr.bf16.mxu1 %v13412_v23  ;;  %v13989_v23 = vld [vmem:[#allocation9 + $0x64] ss:$16 sps:$4 sm:$0xff]  }
 0x5c2   : > { %9583 = vmatpush1.bf16.msra.mxu0 %v13409_v27  ;;  %v13993_v27 = vld [vmem:[#allocation9 + $0x80] ss:$16 sps:$4 sm:$0xff]  }
 0x5c3   : > { %9911 = vmatpush1.bf16.msra.mxu1 %v13411_v48  ;;  %9584 = vmatprep.subr.bf16.mxu0 %v13418_v43  ;;  %v13996_v48 = vld [vmem:[#allocation9 + $0x88] ss:$16 sps:$4 sm:$0xff]   ;;  %v14001_v43 = vld [vmem:[#allocation9 + $0xa4] ss:$16 sps:$4 sm:$0xff]  }
 0x5c4   : > { %9912 = vmatprep.subr.bf16.mxu1 %v13420_v14  ;;  %v14004_v14 = vld [vmem:[#allocation9 + $0xac] ss:$16 sps:$4 sm:$0xff]  }
 0x5c6   : > { %9585 = vmatpush1.bf16.msra.mxu0 %v13417_v6  ;;  %v14005_v6 = vld [vmem:[#allocation9 + $0xc0] ss:$16 sps:$4 sm:$0xff]  }
 0x5c7   : > { %9913 = vmatpush1.bf16.msra.mxu1 %v13419_v45  ;;  %9586 = vmatprep.subr.bf16.mxu0 %v13426_v8  ;;  %v14008_v45 = vld [vmem:[#allocation9 + $0xc8] ss:$16 sps:$4 sm:$0xff]   ;;  %v14013_v8 = vld [vmem:[#allocation9 + $0xe4] ss:$16 sps:$4 sm:$0xff]  }
 0x5c8   : > { %9914 = vmatprep.subr.bf16.mxu1 %v13428_v36  ;;  %v14016_v36 = vld [vmem:[#allocation9 + $0xec] ss:$16 sps:$4 sm:$0xff]  }
 0x5ca   : > { %9587 = vmatpush1.bf16.msra.mxu0 %v13425_v0  ;;  %v14017_v0 = vld [vmem:[#allocation9 + $0x100] ss:$16 sps:$4 sm:$0xff]  }
 0x5cb   : > { %9915 = vmatpush1.bf16.msra.mxu1 %v13427_v2  ;;  %9588 = vmatprep.subr.bf16.mxu0 %v13434_v12  ;;  %v14020_v2 = vld [vmem:[#allocation9 + $0x108] ss:$16 sps:$4 sm:$0xff]   ;;  %v14025_v12 = vld [vmem:[#allocation9 + $0x124] ss:$16 sps:$4 sm:$0xff]  }
 0x5cc   : > { %9916 = vmatprep.subr.bf16.mxu1 %v13436_v3  ;;  %v14028_v3 = vld [vmem:[#allocation9 + $0x12c] ss:$16 sps:$4 sm:$0xff]  }
 0x5ce   : > { %9589 = vmatpush1.bf16.msra.mxu0 %v13433_v7  ;;  %v14032_v7 = vld [vmem:[#allocation9 + $0x148] ss:$16 sps:$4 sm:$0xff]  }
 0x5cf   : > { %9917 = vmatpush1.bf16.msra.mxu1 %v13435_v9  ;;  %9590 = vmatprep.subr.bf16.mxu0 %v13442_v33  ;;  %v14037_v9 = vld [vmem:[#allocation9 + $0x164] ss:$16 sps:$4 sm:$0xff]   ;;  %v14040_v33 = vld [vmem:[#allocation9 + $0x16c] ss:$16 sps:$4 sm:$0xff]  }
 0x5d0   : > { %9918 = vmatprep.subr.bf16.mxu1 %v13444_v11  ;;  %v14035_v11 = vld [vmem:[#allocation9 + $0x160] ss:$16 sps:$4 sm:$0xff]  }
 0x5d2   : > { %9591 = vmatpush1.bf16.msra.mxu0 %v13441_v25  ;;  %v14043_v25 = vld [vmem:[#allocation9 + $0x184] ss:$16 sps:$4 sm:$0xff]  }
 0x5d3   : > { %9919 = vmatpush1.bf16.msra.mxu1 %v13443_v46  ;;  %11503 = vmatprep.subr.bf16.mxu0 %v13971_v18  ;;  %v14046_v46 = vld [vmem:[#allocation9 + $0x18c] ss:$16 sps:$4 sm:$0xff]   ;;  %v14041_v18 = vld [vmem:[#allocation9 + $0x180] ss:$16 sps:$4 sm:$0xff]  }
 0x5d4   : > { %11667 = vmatprep.subr.bf16.mxu1 %v13974_v37  ;;  %v14044_v37 = vld [vmem:[#allocation9 + $0x188] ss:$16 sps:$4 sm:$0xff]  }
 0x5d5   : > { %9593 = vmatmul.mubr.bf16.vlgmr.msra.gmra.mrb[20].mxu0 %v15131_v40 }
 0x5d6   : > { %9921 = vmatmul.mubr.bf16.vlgmr.msra.gmra.mrb[20].mxu1 %v15131_v40  ;;  %11504 = vmatpush1.bf16.msra.mxu0 %v13969_v55  ;;  %v13987_v40 = vld [vmem:[#allocation9 + $0x60] ss:$16 sps:$4 sm:$0xff]   ;;  %v14052_v55 = vld [vmem:[#allocation9 + $0x1ac] ss:$16 sps:$4 sm:$0xff]  }
 0x5d7   : > { %11535 = vmatprep.mubr.bf16.mxu0 %v9938_v19  ;;  %11668 = vmatpush1.bf16.msra.mxu1 %v13972_v17  ;;  %v14047_v17 = vld [vmem:[#allocation9 + $0x1a0] ss:$16 sps:$4 sm:$0xff]  }
 0x5d8   : > { %11699 = vmatprep.mubr.bf16.mxu1 %v9938_v19  ;;  %11505 = vmatprep.subr.bf16.mxu0 %v13977_v61  ;;  %v3460_v61 = vrot.slane %v15173_v30, %v14980_v15  ;;  %v14050_v19 = vld [vmem:[#allocation9 + $0x1a8] ss:$16 sps:$4 sm:$0xff]  }
 0x5d9   : > { %11669 = vmatprep.subr.bf16.mxu1 %v13980_v34  ;;  %v14055_v34 = vld [vmem:[#allocation9 + $0x1c4] ss:$16 sps:$4 sm:$0xff]  }
 0x5da   : > { %11506 = vmatpush1.bf16.msra.mxu0 %v13975_v31  ;;  %v14058_v31 = vld [vmem:[#allocation9 + $0x1cc] ss:$16 sps:$4 sm:$0xff]  }
 0x5db   : > { %11670 = vmatpush1.bf16.msra.mxu1 %v13978_v21  ;;  %11507 = vmatprep.subr.bf16.mxu0 %v13983_v41  ;;  %v3472_v21 = vrot.slane %v15173_v30, %v14983_v22  ;;  %v14053_v41 = vld [vmem:[#allocation9 + $0x1c0] ss:$16 sps:$4 sm:$0xff]  }
 0x5dc   : > { %11671 = vmatprep.subr.bf16.mxu1 %v13986_v53  ;;  %v13721_v53 = vadd.f32 %v15149_v28, %v3460_v61  ;;  %v14065_v28 = vld [vmem:[#allocation9 + $0x200] ss:$16 sps:$4 sm:$0xff]   ;;  %v14124_v61 = vld [vmem:[#allocation9 + $0x32c] ss:$16 sps:$4 sm:$0xff]  }
 0x5de   : > { %11508 = vmatpush1.bf16.msra.mxu0 %v13981_v32  ;;  %v14056_v32 = vld [vmem:[#allocation9 + $0x1c8] ss:$16 sps:$4 sm:$0xff]  }
 0x5df   : > { %11672 = vmatpush1.bf16.msra.mxu1 %v13984_v62  ;;  %11509 = vmatprep.subr.bf16.mxu0 %v13989_v23  ;;  %v14061_v62 = vld [vmem:[#allocation9 + $0x1e4] ss:$16 sps:$4 sm:$0xff]   ;;  %v14064_v23 = vld [vmem:[#allocation9 + $0x1ec] ss:$16 sps:$4 sm:$0xff]  }
 0x5e0   : > { %11673 = vmatprep.subr.bf16.mxu1 %v13992_v20  ;;  %v13724_v20 = vadd.f32 %v15155_v24, %v3472_v21  ;;  %v14076_v24 = vld [vmem:[#allocation9 + $0x22c] ss:$16 sps:$4 sm:$0xff]  }
 0x5e1   : > { %v14130_v21 = vld [vmem:[#allocation9 + $0x34c] ss:$16 sps:$4 sm:$0xff]  }
 0x5e2   : > { %11510 = vmatpush1.bf16.msra.mxu0 %v13987_v40  ;;  %v14059_v40 = vld [vmem:[#allocation9 + $0x1e0] ss:$16 sps:$4 sm:$0xff]  }
 0x5e3   : > { %11674 = vmatpush1.bf16.msra.mxu1 %v13990_v26  ;;  %11511 = vmatprep.subr.bf16.mxu0 %v13995_v29  ;;  %v9929_v26 = vmax.f32 %v13721_v53, 0.0  ;;  %v14062_v29 = vld [vmem:[#allocation9 + $0x1e8] ss:$16 sps:$4 sm:$0xff]  }
 0x5e4   : > { %11675 = vmatprep.subr.bf16.mxu1 %v13998_v57  ;;  %v14067_v57 = vld [vmem:[#allocation9 + $0x204] ss:$16 sps:$4 sm:$0xff]   ;;  %v14128_v53 = vld [vmem:[#allocation9 + $0x348] ss:$16 sps:$4 sm:$0xff]  }
 0x5e6   : > { %11512 = vmatpush1.bf16.msra.mxu0 %v13993_v27  ;;  %v14070_v27 = vld [vmem:[#allocation9 + $0x20c] ss:$16 sps:$4 sm:$0xff]  }
 0x5e7   : > { %11676 = vmatpush1.bf16.msra.mxu1 %v13996_v48  ;;  %11513 = vmatprep.subr.bf16.mxu0 %v14001_v43  ;;  %v9932_v48 = vmax.f32 %v13724_v20, 0.0  ;;  %v9937_v43 = vpack.c.bf16 %v9929_v26, %v9929_v26  ;;  %v14134_v20 = vld [vmem:[#allocation9 + $0x368] ss:$16 sps:$4 sm:$0xff]   ;;  %v14142_v26 = vld [vmem:[#allocation9 + $0x38c] ss:$16 sps:$4 sm:$0xff]  }
 0x5e8   : > { %11677 = vmatprep.subr.bf16.mxu1 %v14004_v14  ;;  %v14068_v14 = vld [vmem:[#allocation9 + $0x208] ss:$16 sps:$4 sm:$0xff]  }
 0x5ea   : > { %11514 = vmatpush1.bf16.msra.mxu0 %v13999_v49  ;;  %v14073_v49 = vld [vmem:[#allocation9 + $0x224] ss:$16 sps:$4 sm:$0xff]  }
 0x5eb   : > { %11678 = vmatpush1.bf16.msra.mxu1 %v14002_v35  ;;  %11515 = vmatprep.subr.bf16.mxu0 %v14007_v51  ;;  %v9940_v35 = vpack.c.bf16 %v9932_v48, %v9932_v48  ;;  %v14071_v51 = vld [vmem:[#allocation9 + $0x220] ss:$16 sps:$4 sm:$0xff]   ;;  %v14148_v48 = vld [vmem:[#allocation9 + $0x3ac] ss:$16 sps:$4 sm:$0xff]  }
 0x5ec   : > { %11679 = vmatprep.subr.bf16.mxu1 %v14010_v42  ;;  %v14074_v42 = vld [vmem:[#allocation9 + $0x228] ss:$16 sps:$4 sm:$0xff]  }
 0x5ee   : > { %11516 = vmatpush1.bf16.msra.mxu0 %v14005_v6  ;;  %v14079_v6 = vld [vmem:[#allocation9 + $0x244] ss:$16 sps:$4 sm:$0xff]  }
 0x5ef   : > { %11680 = vmatpush1.bf16.msra.mxu1 %v14008_v45  ;;  %11517 = vmatprep.subr.bf16.mxu0 %v14013_v8  ;;  %v14082_v45 = vld [vmem:[#allocation9 + $0x24c] ss:$16 sps:$4 sm:$0xff]   ;;  %v14077_v8 = vld [vmem:[#allocation9 + $0x240] ss:$16 sps:$4 sm:$0xff]  }
 0x5f0   : > { %11681 = vmatprep.subr.bf16.mxu1 %v14016_v36  ;;  %v14080_v36 = vld [vmem:[#allocation9 + $0x248] ss:$16 sps:$4 sm:$0xff]  }
 0x5f2   : > { %11518 = vmatpush1.bf16.msra.mxu0 %v14011_v50  ;;  %v14085_v50 = vld [vmem:[#allocation9 + $0x264] ss:$16 sps:$4 sm:$0xff]  }
 0x5f3   : > { %11682 = vmatpush1.bf16.msra.mxu1 %v14014_v54  ;;  %11519 = vmatprep.subr.bf16.mxu0 %v14019_v58  ;;  %v14088_v54 = vld [vmem:[#allocation9 + $0x26c] ss:$16 sps:$4 sm:$0xff]   ;;  %v14083_v58 = vld [vmem:[#allocation9 + $0x260] ss:$16 sps:$4 sm:$0xff]  }
 0x5f4   : > { %11683 = vmatprep.subr.bf16.mxu1 %v14022_v60  ;;  %v14086_v60 = vld [vmem:[#allocation9 + $0x268] ss:$16 sps:$4 sm:$0xff]  }
 0x5f6   : > { %11520 = vmatpush1.bf16.msra.mxu0 %v14017_v0  ;;  %v14091_v0 = vld [vmem:[#allocation9 + $0x284] ss:$16 sps:$4 sm:$0xff]  }
 0x5f7   : > { %11684 = vmatpush1.bf16.msra.mxu1 %v14020_v2  ;;  %11521 = vmatprep.subr.bf16.mxu0 %v14025_v12  ;;  %v14094_v2 = vld [vmem:[#allocation9 + $0x28c] ss:$16 sps:$4 sm:$0xff]   ;;  %v14089_v12 = vld [vmem:[#allocation9 + $0x280] ss:$16 sps:$4 sm:$0xff]  }
 0x5f8   : > { %11685 = vmatprep.subr.bf16.mxu1 %v14028_v3  ;;  %v14092_v3 = vld [vmem:[#allocation9 + $0x288] ss:$16 sps:$4 sm:$0xff]  }
 0x5fa   : > { %11522 = vmatpush1.bf16.msra.mxu0 %v14023_v38  ;;  %v14097_v38 = vld [vmem:[#allocation9 + $0x2a4] ss:$16 sps:$4 sm:$0xff]  }
 0x5fb   : > { %11686 = vmatpush1.bf16.msra.mxu1 %v14026_v4  ;;  %11523 = vmatprep.subr.bf16.mxu0 %v14031_v1  ;;  %v14100_v4 = vld [vmem:[#allocation9 + $0x2ac] ss:$16 sps:$4 sm:$0xff]   ;;  %v14095_v1 = vld [vmem:[#allocation9 + $0x2a0] ss:$16 sps:$4 sm:$0xff]  }
 0x5fc   : > { %11687 = vmatprep.subr.bf16.mxu1 %v14034_v5  ;;  %v14098_v5 = vld [vmem:[#allocation9 + $0x2a8] ss:$16 sps:$4 sm:$0xff]  }
 0x5fe   : > { %11524 = vmatpush1.bf16.msra.mxu0 %v14029_v10  ;;  %v14103_v10 = vld [vmem:[#allocation9 + $0x2c4] ss:$16 sps:$4 sm:$0xff]  }
 0x5ff   : > { %11688 = vmatpush1.bf16.msra.mxu1 %v14032_v7  ;;  %11525 = vmatprep.subr.bf16.mxu0 %v14037_v9  ;;  %v14106_v7 = vld [vmem:[#allocation9 + $0x2cc] ss:$16 sps:$4 sm:$0xff]   ;;  %v14101_v9 = vld [vmem:[#allocation9 + $0x2c0] ss:$16 sps:$4 sm:$0xff]  }
 0x600   : > { %11689 = vmatprep.subr.bf16.mxu1 %v14040_v33  ;;  %v14104_v33 = vld [vmem:[#allocation9 + $0x2c8] ss:$16 sps:$4 sm:$0xff]  }
 0x602   : > { %11526 = vmatpush1.bf16.msra.mxu0 %v14035_v11  ;;  %v14109_v11 = vld [vmem:[#allocation9 + $0x2e4] ss:$16 sps:$4 sm:$0xff]  }
 0x603   : > { %11690 = vmatpush1.bf16.msra.mxu1 %v14038_v44  ;;  %11527 = vmatprep.subr.bf16.mxu0 %v14043_v25  ;;  %v14112_v44 = vld [vmem:[#allocation9 + $0x2ec] ss:$16 sps:$4 sm:$0xff]   ;;  %v14107_v25 = vld [vmem:[#allocation9 + $0x2e0] ss:$16 sps:$4 sm:$0xff]  }
 0x604   : > { %11691 = vmatprep.subr.bf16.mxu1 %v14046_v46  ;;  %v14110_v46 = vld [vmem:[#allocation9 + $0x2e8] ss:$16 sps:$4 sm:$0xff]  }
 0x606   : > { %11528 = vmatpush1.bf16.msra.mxu0 %v14041_v18  ;;  %v14115_v18 = vld [vmem:[#allocation9 + $0x304] ss:$16 sps:$4 sm:$0xff]  }
 0x607   : > { %11692 = vmatpush1.bf16.msra.mxu1 %v14044_v37  ;;  %11529 = vmatprep.subr.bf16.mxu0 %v14049_v16  ;;  %v14118_v37 = vld [vmem:[#allocation9 + $0x30c] ss:$16 sps:$4 sm:$0xff]   ;;  %v14113_v16 = vld [vmem:[#allocation9 + $0x300] ss:$16 sps:$4 sm:$0xff]  }
 0x608   : > { %11693 = vmatprep.subr.bf16.mxu1 %v14052_v55  ;;  %v14116_v55 = vld [vmem:[#allocation9 + $0x308] ss:$16 sps:$4 sm:$0xff]  }
 0x60a   : > { %11530 = vmatpush1.bf16.msra.mxu0 %v14047_v17  ;;  %v14121_v17 = vld [vmem:[#allocation9 + $0x324] ss:$16 sps:$4 sm:$0xff]  }
 0x60b   : > { %11694 = vmatpush1.bf16.msra.mxu1 %v14050_v19  ;;  %11531 = vmatprep.subr.bf16.mxu0 %v14055_v34  ;;  %v14119_v19 = vld [vmem:[#allocation9 + $0x320] ss:$16 sps:$4 sm:$0xff]   ;;  %v14122_v34 = vld [vmem:[#allocation9 + $0x328] ss:$16 sps:$4 sm:$0xff]  }
 0x60c   : > { %11695 = vmatprep.subr.bf16.mxu1 %v14058_v31  ;;  %v14127_v31 = vld [vmem:[#allocation9 + $0x344] ss:$16 sps:$4 sm:$0xff]  }
 0x60e   : > { %11532 = vmatpush1.bf16.msra.mxu0 %v14053_v41  ;;  %v14125_v41 = vld [vmem:[#allocation9 + $0x340] ss:$16 sps:$4 sm:$0xff]  }
 0x60f   : > { %11696 = vmatpush1.bf16.msra.mxu1 %v14056_v32  ;;  %11533 = vmatprep.subr.bf16.mxu0 %v14061_v62  ;;  %v14133_v32 = vld [vmem:[#allocation9 + $0x364] ss:$16 sps:$4 sm:$0xff]   ;;  %v14136_v62 = vld [vmem:[#allocation9 + $0x36c] ss:$16 sps:$4 sm:$0xff]  }
 0x610   : > { %11697 = vmatprep.subr.bf16.mxu1 %v14064_v23  ;;  %v14131_v23 = vld [vmem:[#allocation9 + $0x360] ss:$16 sps:$4 sm:$0xff]  }
 0x612   : > { %11534 = vmatpush1.bf16.msra.mxu0 %v14059_v40  ;;  %v14139_v40 = vld [vmem:[#allocation9 + $0x384] ss:$16 sps:$4 sm:$0xff]  }
 0x613   : > { %11698 = vmatpush1.bf16.msra.mxu1 %v14062_v29  ;;  %11544 = vmatprep.subr.bf16.mxu0 %v14067_v57  ;;  %v14137_v29 = vld [vmem:[#allocation9 + $0x380] ss:$16 sps:$4 sm:$0xff]   ;;  %v14140_v57 = vld [vmem:[#allocation9 + $0x388] ss:$16 sps:$4 sm:$0xff]  }
 0x614   : > { %11708 = vmatprep.subr.bf16.mxu1 %v14070_v27  ;;  %v14145_v27 = vld [vmem:[#allocation9 + $0x3a4] ss:$16 sps:$4 sm:$0xff]  }
 0x615   : > { %11536 = vmatmul.mubr.bf16.vlgmr.msra.gmra.mrb[24].mxu0 %v9937_v43 }
 0x616   : > { %11700 = vmatmul.mubr.bf16.vlgmr.msra.gmra.mrb[24].mxu1 %v9937_v43  ;;  %11545 = vmatpush1.bf16.msra.mxu0 %v14065_v28  ;;  %v14143_v28 = vld [vmem:[#allocation9 + $0x3a0] ss:$16 sps:$4 sm:$0xff]   ;;  %v3468_v43 = vrot.slane %v15173_v30, %v15008_v52 }
 0x617   : > { %11576 = vmatprep.mubr.bf16.mxu0 %v9940_v35  ;;  %11709 = vmatpush1.bf16.msra.mxu1 %v14068_v14  ;;  %v14146_v14 = vld [vmem:[#allocation9 + $0x3a8] ss:$16 sps:$4 sm:$0xff]  }
 0x618   : > { %11740 = vmatprep.mubr.bf16.mxu1 %v9940_v35  ;;  %11546 = vmatprep.subr.bf16.mxu0 %v14073_v49  ;;  %v14151_v49 = vld [vmem:[#allocation9 + $0x3c4] ss:$16 sps:$4 sm:$0xff]   ;;  %v14154_v35 = vld [vmem:[#allocation9 + $0x3cc] ss:$16 sps:$4 sm:$0xff]  }
 0x619   : > { %11710 = vmatprep.subr.bf16.mxu1 %v14076_v24  ;;  %v14149_v24 = vld [vmem:[#allocation9 + $0x3c0] ss:$16 sps:$4 sm:$0xff]  }
 0x61a   : > { %11547 = vmatpush1.bf16.msra.mxu0 %v14071_v51  ;;  %v13723_v51 = vadd.f32 %v15151_v39, %v3468_v43  ;;  %v14164_v39 = vld [vmem:[#allocation9 + $0x408] ss:$16 sps:$4 sm:$0xff]   ;;  %v14221_v43 = vld [vmem:[#allocation9 + $0x540] ss:$16 sps:$4 sm:$0xff]  }
 0x61b   : > { %11711 = vmatpush1.bf16.msra.mxu1 %v14074_v42  ;;  %11548 = vmatprep.subr.bf16.mxu0 %v14079_v6  ;;  %v14152_v42 = vld [vmem:[#allocation9 + $0x3c8] ss:$16 sps:$4 sm:$0xff]   ;;  %v14157_v6 = vld [vmem:[#allocation9 + $0x3e4] ss:$16 sps:$4 sm:$0xff]  }
 0x61c   : > { %11712 = vmatprep.subr.bf16.mxu1 %v14082_v45  ;;  %v14160_v45 = vld [vmem:[#allocation9 + $0x3ec] ss:$16 sps:$4 sm:$0xff]  }
 0x61e   : > { %11549 = vmatpush1.bf16.msra.mxu0 %v14077_v8  ;;  %v14155_v8 = vld [vmem:[#allocation9 + $0x3e0] ss:$16 sps:$4 sm:$0xff]  }
 0x61f   : > { %11713 = vmatpush1.bf16.msra.mxu1 %v14080_v36  ;;  %11550 = vmatprep.subr.bf16.mxu0 %v14085_v50  ;;  %v9931_v36 = vmax.f32 %v13723_v51, 0.0  ;;  %v14158_v50 = vld [vmem:[#allocation9 + $0x3e8] ss:$16 sps:$4 sm:$0xff]  }
 0x620   : > { %11714 = vmatprep.subr.bf16.mxu1 %v14088_v54  ;;  %v14163_v54 = vld [vmem:[#allocation9 + $0x404] ss:$16 sps:$4 sm:$0xff]   ;;  %v14230_v51 = vld [vmem:[#allocation9 + $0x568] ss:$16 sps:$4 sm:$0xff]  }
 0x622   : > { %11551 = vmatpush1.bf16.msra.mxu0 %v14083_v58  ;;  %v14166_v58 = vld [vmem:[#allocation9 + $0x40c] ss:$16 sps:$4 sm:$0xff]  }
 0x623   : > { %11715 = vmatpush1.bf16.msra.mxu1 %v14086_v60  ;;  %11552 = vmatprep.subr.bf16.mxu0 %v14091_v0  ;;  %v14161_v60 = vld [vmem:[#allocation9 + $0x400] ss:$16 sps:$4 sm:$0xff]   ;;  %v9939_v0 = vpack.c.bf16 %v9931_v36, %v9931_v36  ;;  %v14241_v36 = vld [vmem:[#allocation9 + $0x5a4] ss:$16 sps:$4 sm:$0xff]  }
 0x624   : > { %11716 = vmatprep.subr.bf16.mxu1 %v14094_v2  ;;  %v14169_v2 = vld [vmem:[#allocation9 + $0x424] ss:$16 sps:$4 sm:$0xff]  }
 0x626   : > { %11553 = vmatpush1.bf16.msra.mxu0 %v14089_v12  ;;  %v14172_v12 = vld [vmem:[#allocation9 + $0x42c] ss:$16 sps:$4 sm:$0xff]  }
 0x627   : > { %11717 = vmatpush1.bf16.msra.mxu1 %v14092_v3  ;;  %11554 = vmatprep.subr.bf16.mxu0 %v14097_v38  ;;  %v14167_v3 = vld [vmem:[#allocation9 + $0x420] ss:$16 sps:$4 sm:$0xff]   ;;  %v14170_v38 = vld [vmem:[#allocation9 + $0x428] ss:$16 sps:$4 sm:$0xff]  }
 0x628   : > { %11718 = vmatprep.subr.bf16.mxu1 %v14100_v4  ;;  %v14175_v4 = vld [vmem:[#allocation9 + $0x444] ss:$16 sps:$4 sm:$0xff]  }
 0x62a   : > { %11555 = vmatpush1.bf16.msra.mxu0 %v14095_v1  ;;  %v14178_v1 = vld [vmem:[#allocation9 + $0x44c] ss:$16 sps:$4 sm:$0xff]  }
 0x62b   : > { %11719 = vmatpush1.bf16.msra.mxu1 %v14098_v5  ;;  %11556 = vmatprep.subr.bf16.mxu0 %v14103_v10  ;;  %v14173_v5 = vld [vmem:[#allocation9 + $0x440] ss:$16 sps:$4 sm:$0xff]   ;;  %v14176_v10 = vld [vmem:[#allocation9 + $0x448] ss:$16 sps:$4 sm:$0xff]  }
 0x62c   : > { %11720 = vmatprep.subr.bf16.mxu1 %v14106_v7  ;;  %v14181_v7 = vld [vmem:[#allocation9 + $0x464] ss:$16 sps:$4 sm:$0xff]  }
 0x62e   : > { %11557 = vmatpush1.bf16.msra.mxu0 %v14101_v9  ;;  %v14184_v9 = vld [vmem:[#allocation9 + $0x46c] ss:$16 sps:$4 sm:$0xff]  }
 0x62f   : > { %11721 = vmatpush1.bf16.msra.mxu1 %v14104_v33  ;;  %11558 = vmatprep.subr.bf16.mxu0 %v14109_v11  ;;  %v14179_v33 = vld [vmem:[#allocation9 + $0x460] ss:$16 sps:$4 sm:$0xff]   ;;  %v14182_v11 = vld [vmem:[#allocation9 + $0x468] ss:$16 sps:$4 sm:$0xff]  }
 0x630   : > { %11722 = vmatprep.subr.bf16.mxu1 %v14112_v44  ;;  %v14187_v44 = vld [vmem:[#allocation9 + $0x484] ss:$16 sps:$4 sm:$0xff]  }
 0x632   : > { %11559 = vmatpush1.bf16.msra.mxu0 %v14107_v25  ;;  %v14190_v25 = vld [vmem:[#allocation9 + $0x48c] ss:$16 sps:$4 sm:$0xff]  }
 0x633   : > { %11723 = vmatpush1.bf16.msra.mxu1 %v14110_v46  ;;  %11560 = vmatprep.subr.bf16.mxu0 %v14115_v18  ;;  %v14185_v46 = vld [vmem:[#allocation9 + $0x480] ss:$16 sps:$4 sm:$0xff]   ;;  %v14188_v18 = vld [vmem:[#allocation9 + $0x488] ss:$16 sps:$4 sm:$0xff]  }
 0x634   : > { %11724 = vmatprep.subr.bf16.mxu1 %v14118_v37  ;;  %v14193_v37 = vld [vmem:[#allocation9 + $0x4a4] ss:$16 sps:$4 sm:$0xff]  }
 0x636   : > { %11561 = vmatpush1.bf16.msra.mxu0 %v14113_v16  ;;  %v14196_v16 = vld [vmem:[#allocation9 + $0x4ac] ss:$16 sps:$4 sm:$0xff]  }
 0x637   : > { %11725 = vmatpush1.bf16.msra.mxu1 %v14116_v55  ;;  %11562 = vmatprep.subr.bf16.mxu0 %v14121_v17  ;;  %v14191_v55 = vld [vmem:[#allocation9 + $0x4a0] ss:$16 sps:$4 sm:$0xff]   ;;  %v14194_v17 = vld [vmem:[#allocation9 + $0x4a8] ss:$16 sps:$4 sm:$0xff]  }
 0x638   : > { %11726 = vmatprep.subr.bf16.mxu1 %v14124_v61  ;;  %v14199_v61 = vld [vmem:[#allocation9 + $0x4c4] ss:$16 sps:$4 sm:$0xff]  }
 0x63a   : > { %11563 = vmatpush1.bf16.msra.mxu0 %v14119_v19  ;;  %v14202_v19 = vld [vmem:[#allocation9 + $0x4cc] ss:$16 sps:$4 sm:$0xff]  }
 0x63b   : > { %11727 = vmatpush1.bf16.msra.mxu1 %v14122_v34  ;;  %11564 = vmatprep.subr.bf16.mxu0 %v14127_v31  ;;  %v14197_v34 = vld [vmem:[#allocation9 + $0x4c0] ss:$16 sps:$4 sm:$0xff]   ;;  %v14200_v31 = vld [vmem:[#allocation9 + $0x4c8] ss:$16 sps:$4 sm:$0xff]  }
 0x63c   : > { %11728 = vmatprep.subr.bf16.mxu1 %v14130_v21  ;;  %v14205_v21 = vld [vmem:[#allocation9 + $0x4e4] ss:$16 sps:$4 sm:$0xff]  }
 0x63e   : > { %11565 = vmatpush1.bf16.msra.mxu0 %v14125_v41  ;;  %v14208_v41 = vld [vmem:[#allocation9 + $0x4ec] ss:$16 sps:$4 sm:$0xff]  }
 0x63f   : > { %11729 = vmatpush1.bf16.msra.mxu1 %v14128_v53  ;;  %11566 = vmatprep.subr.bf16.mxu0 %v14133_v32  ;;  %v14203_v53 = vld [vmem:[#allocation9 + $0x4e0] ss:$16 sps:$4 sm:$0xff]   ;;  %v14206_v32 = vld [vmem:[#allocation9 + $0x4e8] ss:$16 sps:$4 sm:$0xff]  }
 0x640   : > { %11730 = vmatprep.subr.bf16.mxu1 %v14136_v62  ;;  %v14211_v62 = vld [vmem:[#allocation9 + $0x504] ss:$16 sps:$4 sm:$0xff]  }
 0x642   : > { %11567 = vmatpush1.bf16.msra.mxu0 %v14131_v23  ;;  %v14214_v23 = vld [vmem:[#allocation9 + $0x50c] ss:$16 sps:$4 sm:$0xff]  }
 0x643   : > { %11731 = vmatpush1.bf16.msra.mxu1 %v14134_v20  ;;  %11568 = vmatprep.subr.bf16.mxu0 %v14139_v40  ;;  %v14209_v20 = vld [vmem:[#allocation9 + $0x500] ss:$16 sps:$4 sm:$0xff]   ;;  %v14212_v40 = vld [vmem:[#allocation9 + $0x508] ss:$16 sps:$4 sm:$0xff]  }
 0x644   : > { %11732 = vmatprep.subr.bf16.mxu1 %v14142_v26  ;;  %v14217_v26 = vld [vmem:[#allocation9 + $0x524] ss:$16 sps:$4 sm:$0xff]  }
 0x646   : > { %11569 = vmatpush1.bf16.msra.mxu0 %v14137_v29  ;;  %v14220_v29 = vld [vmem:[#allocation9 + $0x52c] ss:$16 sps:$4 sm:$0xff]  }
 0x647   : > { %11733 = vmatpush1.bf16.msra.mxu1 %v14140_v57  ;;  %11570 = vmatprep.subr.bf16.mxu0 %v14145_v27  ;;  %v14215_v57 = vld [vmem:[#allocation9 + $0x520] ss:$16 sps:$4 sm:$0xff]   ;;  %v14218_v27 = vld [vmem:[#allocation9 + $0x528] ss:$16 sps:$4 sm:$0xff]  }
 0x648   : > { %11734 = vmatprep.subr.bf16.mxu1 %v14148_v48  ;;  %v14223_v48 = vld [vmem:[#allocation9 + $0x544] ss:$16 sps:$4 sm:$0xff]  }
 0x64a   : > { %11571 = vmatpush1.bf16.msra.mxu0 %v14143_v28  ;;  %v14226_v28 = vld [vmem:[#allocation9 + $0x54c] ss:$16 sps:$4 sm:$0xff]  }
 0x64b   : > { %11735 = vmatpush1.bf16.msra.mxu1 %v14146_v14  ;;  %11572 = vmatprep.subr.bf16.mxu0 %v14151_v49  ;;  %v14224_v14 = vld [vmem:[#allocation9 + $0x548] ss:$16 sps:$4 sm:$0xff]   ;;  %v14229_v49 = vld [vmem:[#allocation9 + $0x564] ss:$16 sps:$4 sm:$0xff]  }
 0x64c   : > { %11736 = vmatprep.subr.bf16.mxu1 %v14154_v35  ;;  %v14232_v35 = vld [vmem:[#allocation9 + $0x56c] ss:$16 sps:$4 sm:$0xff]  }
 0x64e   : > { %11573 = vmatpush1.bf16.msra.mxu0 %v14149_v24  ;;  %v14227_v24 = vld [vmem:[#allocation9 + $0x560] ss:$16 sps:$4 sm:$0xff]  }
 0x64f   : > { %11737 = vmatpush1.bf16.msra.mxu1 %v14152_v42  ;;  %11574 = vmatprep.subr.bf16.mxu0 %v14157_v6  ;;  %v14235_v42 = vld [vmem:[#allocation9 + $0x584] ss:$16 sps:$4 sm:$0xff]   ;;  %v14238_v6 = vld [vmem:[#allocation9 + $0x58c] ss:$16 sps:$4 sm:$0xff]  }
 0x650   : > { %11738 = vmatprep.subr.bf16.mxu1 %v14160_v45  ;;  %v14233_v45 = vld [vmem:[#allocation9 + $0x580] ss:$16 sps:$4 sm:$0xff]  }
 0x652   : > { %11575 = vmatpush1.bf16.msra.mxu0 %v14155_v8  ;;  %v14236_v8 = vld [vmem:[#allocation9 + $0x588] ss:$16 sps:$4 sm:$0xff]  }
 0x653   : > { %11739 = vmatpush1.bf16.msra.mxu1 %v14158_v50  ;;  %11585 = vmatprep.subr.bf16.mxu0 %v14163_v54  ;;  %v14244_v50 = vld [vmem:[#allocation9 + $0x5ac] ss:$16 sps:$4 sm:$0xff]   ;;  %v14239_v54 = vld [vmem:[#allocation9 + $0x5a0] ss:$16 sps:$4 sm:$0xff]  }
 0x654   : > { %11749 = vmatprep.subr.bf16.mxu1 %v14166_v58  ;;  %v14242_v58 = vld [vmem:[#allocation9 + $0x5a8] ss:$16 sps:$4 sm:$0xff]  }
 0x655   : > { %11577 = vmatmul.mubr.bf16.vlgmr.msra.gmra.mrb[24].mxu0 %v9939_v0 }
 0x656   : > { %11741 = vmatmul.mubr.bf16.vlgmr.msra.gmra.mrb[24].mxu1 %v9939_v0  ;;  %11586 = vmatpush1.bf16.msra.mxu0 %v14161_v60  ;;  %v14247_v60 = vld [vmem:[#allocation9 + $0x5c4] ss:$16 sps:$4 sm:$0xff]   ;;  %v14250_v0 = vld [vmem:[#allocation9 + $0x5cc] ss:$16 sps:$4 sm:$0xff]  }
 0x657   : > { %11750 = vmatpush1.bf16.msra.mxu1 %v14164_v39  ;;  %11587 = vmatprep.subr.bf16.mxu0 %v14169_v2  ;;  %v14245_v39 = vld [vmem:[#allocation9 + $0x5c0] ss:$16 sps:$4 sm:$0xff]   ;;  %v14248_v2 = vld [vmem:[#allocation9 + $0x5c8] ss:$16 sps:$4 sm:$0xff]  }
 0x658   : > { %11751 = vmatprep.subr.bf16.mxu1 %v14172_v12  ;;  %v14253_v12 = vld [vmem:[#allocation9 + $0x5e4] ss:$16 sps:$4 sm:$0xff]  }
 0x65a   : > { %11588 = vmatpush1.bf16.msra.mxu0 %v14167_v3  ;;  %v14256_v3 = vld [vmem:[#allocation9 + $0x5ec] ss:$16 sps:$4 sm:$0xff]  }
 0x65b   : > { %11752 = vmatpush1.bf16.msra.mxu1 %v14170_v38  ;;  %11589 = vmatprep.subr.bf16.mxu0 %v14175_v4  ;;  %v14251_v38 = vld [vmem:[#allocation9 + $0x5e0] ss:$16 sps:$4 sm:$0xff]   ;;  %v14254_v4 = vld [vmem:[#allocation9 + $0x5e8] ss:$16 sps:$4 sm:$0xff]  }
 0x65c   : > { %11753 = vmatprep.subr.bf16.mxu1 %v14178_v1  ;;  %v14259_v1 = vld [vmem:[#allocation9 + $0x604] ss:$16 sps:$4 sm:$0xff]  }
 0x65e   : > { %11590 = vmatpush1.bf16.msra.mxu0 %v14173_v5  ;;  %v14262_v5 = vld [vmem:[#allocation9 + $0x60c] ss:$16 sps:$4 sm:$0xff]  }
 0x65f   : > { %11754 = vmatpush1.bf16.msra.mxu1 %v14176_v10  ;;  %11591 = vmatprep.subr.bf16.mxu0 %v14181_v7  ;;  %v3476_v10 = vrot.slane %v15173_v30, %v15036_v47  ;;  %v3480_v7 = vrot.slane %v15173_v30, %v15011_v63  ;;  %v14257_v63 = vld [vmem:[#allocation9 + $0x600] ss:$16 sps:$4 sm:$0xff]  }
 0x660   : > { %11755 = vmatprep.subr.bf16.mxu1 %v14184_v9  ;;  %v3488_v9 = vrot.slane %v15173_v30, %v15039_v56  ;;  %v14265_v56 = vld [vmem:[#allocation9 + $0x624] ss:$16 sps:$4 sm:$0xff]   ;;  %v14268_v30 = vld [vmem:[#allocation9 + $0x62c] ss:$16 sps:$4 sm:$0xff]  }
 0x662   : > { %11592 = vmatpush1.bf16.msra.mxu0 %v14179_v33 }
 0x663   : > { %11756 = vmatpush1.bf16.msra.mxu1 %v14182_v11  ;;  %11593 = vmatprep.subr.bf16.mxu0 %v14187_v44 }
 0x664   : > { %11757 = vmatprep.subr.bf16.mxu1 %v14190_v25 }
 0x666   : > { %11594 = vmatpush1.bf16.msra.mxu0 %v14185_v46 }
 0x667   : > { %11758 = vmatpush1.bf16.msra.mxu1 %v14188_v18  ;;  %11595 = vmatprep.subr.bf16.mxu0 %v14193_v37 }
 0x668   : > { %11759 = vmatprep.subr.bf16.mxu1 %v14196_v16 }
 0x66a   : > { %11596 = vmatpush1.bf16.msra.mxu0 %v14191_v55 }
 0x66b   : > { %11760 = vmatpush1.bf16.msra.mxu1 %v14194_v17  ;;  %11597 = vmatprep.subr.bf16.mxu0 %v14199_v61 }
 0x66c   : > { %11761 = vmatprep.subr.bf16.mxu1 %v14202_v19 }
 0x66e   : > { %11598 = vmatpush1.bf16.msra.mxu0 %v14197_v34 }
 0x66f   : > { %11762 = vmatpush1.bf16.msra.mxu1 %v14200_v31  ;;  %11599 = vmatprep.subr.bf16.mxu0 %v14205_v21  ;;  %v14260_v21 = vld [vmem:[#allocation9 + $0x608] ss:$16 sps:$4 sm:$0xff]  }
 0x670   : > { %11763 = vmatprep.subr.bf16.mxu1 %v14208_v41 }
 0x672   : > { %11600 = vmatpush1.bf16.msra.mxu0 %v14203_v53 }
 0x673   : > { %11764 = vmatpush1.bf16.msra.mxu1 %v14206_v32  ;;  %11601 = vmatprep.subr.bf16.mxu0 %v14211_v62  ;;  %v14263_v32 = vld [vmem:[#allocation9 + $0x620] ss:$16 sps:$4 sm:$0xff]   ;;  %v14266_v62 = vld [vmem:[#allocation9 + $0x628] ss:$16 sps:$4 sm:$0xff]  }
 0x674   : > { %11765 = vmatprep.subr.bf16.mxu1 %v14214_v23  ;;  %v14271_v23 = vld [vmem:[#allocation9 + $0x644] ss:$16 sps:$4 sm:$0xff]  }
 0x676   : > { %11602 = vmatpush1.bf16.msra.mxu0 %v14209_v20  ;;  %v14274_v20 = vld [vmem:[#allocation9 + $0x64c] ss:$16 sps:$4 sm:$0xff]  }
 0x677   : > { %11766 = vmatpush1.bf16.msra.mxu1 %v14212_v40  ;;  %11603 = vmatprep.subr.bf16.mxu0 %v14217_v26  ;;  %v14269_v40 = vld [vmem:[#allocation9 + $0x640] ss:$16 sps:$4 sm:$0xff]   ;;  %v14272_v26 = vld [vmem:[#allocation9 + $0x648] ss:$16 sps:$4 sm:$0xff]  }
 0x678   : > { %11767 = vmatprep.subr.bf16.mxu1 %v14220_v29  ;;  %v14277_v29 = vld [vmem:[#allocation9 + $0x664] ss:$16 sps:$4 sm:$0xff]  }
 0x67a   : > { %11604 = vmatpush1.bf16.msra.mxu0 %v14215_v57  ;;  %v14280_v57 = vld [vmem:[#allocation9 + $0x66c] ss:$16 sps:$4 sm:$0xff]  }
 0x67b   : > { %11768 = vmatpush1.bf16.msra.mxu1 %v14218_v27  ;;  %11605 = vmatprep.subr.bf16.mxu0 %v14223_v48  ;;  %v14275_v27 = vld [vmem:[#allocation9 + $0x660] ss:$16 sps:$4 sm:$0xff]   ;;  %v14278_v48 = vld [vmem:[#allocation9 + $0x668] ss:$16 sps:$4 sm:$0xff]  }
 0x67c   : > { %11769 = vmatprep.subr.bf16.mxu1 %v14226_v28  ;;  %v14283_v28 = vld [vmem:[#allocation9 + $0x684] ss:$16 sps:$4 sm:$0xff]  }
 0x67e   : > { %11606 = vmatpush1.bf16.msra.mxu0 %v14221_v43  ;;  %v14286_v43 = vld [vmem:[#allocation9 + $0x68c] ss:$16 sps:$4 sm:$0xff]  }
 0x67f   : > { %11770 = vmatpush1.bf16.msra.mxu1 %v14224_v14  ;;  %11607 = vmatprep.subr.bf16.mxu0 %v14229_v49  ;;  %v14281_v14 = vld [vmem:[#allocation9 + $0x680] ss:$16 sps:$4 sm:$0xff]   ;;  %v14284_v49 = vld [vmem:[#allocation9 + $0x688] ss:$16 sps:$4 sm:$0xff]  }
 0x680   : > { %11771 = vmatprep.subr.bf16.mxu1 %v14232_v35  ;;  %v14289_v35 = vld [vmem:[#allocation9 + $0x6a4] ss:$16 sps:$4 sm:$0xff]  }
 0x682   : > { %11608 = vmatpush1.bf16.msra.mxu0 %v14227_v24  ;;  %v14292_v24 = vld [vmem:[#allocation9 + $0x6ac] ss:$16 sps:$4 sm:$0xff]  }
 0x683   : > { %11772 = vmatpush1.bf16.msra.mxu1 %v14230_v51  ;;  %11609 = vmatprep.subr.bf16.mxu0 %v14235_v42  ;;  %v14287_v51 = vld [vmem:[#allocation9 + $0x6a0] ss:$16 sps:$4 sm:$0xff]   ;;  %v14290_v42 = vld [vmem:[#allocation9 + $0x6a8] ss:$16 sps:$4 sm:$0xff]  }
 0x684   : > { %11773 = vmatprep.subr.bf16.mxu1 %v14238_v6  ;;  %v14295_v6 = vld [vmem:[#allocation9 + $0x6c4] ss:$16 sps:$4 sm:$0xff]  }
 0x686   : > { %11610 = vmatpush1.bf16.msra.mxu0 %v14233_v45  ;;  %v14298_v45 = vld [vmem:[#allocation9 + $0x6cc] ss:$16 sps:$4 sm:$0xff]  }
 0x687   : > { %11774 = vmatpush1.bf16.msra.mxu1 %v14236_v8  ;;  %11611 = vmatprep.subr.bf16.mxu0 %v14241_v36  ;;  %v14293_v8 = vld [vmem:[#allocation9 + $0x6c0] ss:$16 sps:$4 sm:$0xff]   ;;  %v14296_v36 = vld [vmem:[#allocation9 + $0x6c8] ss:$16 sps:$4 sm:$0xff]  }
 0x688   : > { %11775 = vmatprep.subr.bf16.mxu1 %v14244_v50  ;;  %v14301_v50 = vld [vmem:[#allocation9 + $0x6e4] ss:$16 sps:$4 sm:$0xff]  }
 0x68a   : > { %11612 = vmatpush1.bf16.msra.mxu0 %v14239_v54  ;;  %v14304_v54 = vld [vmem:[#allocation9 + $0x6ec] ss:$16 sps:$4 sm:$0xff]  }
 0x68b   : > { %11776 = vmatpush1.bf16.msra.mxu1 %v14242_v58  ;;  %11613 = vmatprep.subr.bf16.mxu0 %v14247_v60  ;;  %v14299_v58 = vld [vmem:[#allocation9 + $0x6e0] ss:$16 sps:$4 sm:$0xff]   ;;  %v14302_v60 = vld [vmem:[#allocation9 + $0x6e8] ss:$16 sps:$4 sm:$0xff]  }
 0x68c   : > { %11777 = vmatprep.subr.bf16.mxu1 %v14250_v0  ;;  %v14307_v0 = vld [vmem:[#allocation9 + $0x704] ss:$16 sps:$4 sm:$0xff]  }
 0x68e   : > { %11614 = vmatpush1.bf16.msra.mxu0 %v14245_v39  ;;  %v14310_v39 = vld [vmem:[#allocation9 + $0x70c] ss:$16 sps:$4 sm:$0xff]  }
 0x68f   : > { %11778 = vmatpush1.bf16.msra.mxu1 %v14248_v2  ;;  %11615 = vmatprep.subr.bf16.mxu0 %v14253_v12  ;;  %v14305_v2 = vld [vmem:[#allocation9 + $0x700] ss:$16 sps:$4 sm:$0xff]   ;;  %v14308_v12 = vld [vmem:[#allocation9 + $0x708] ss:$16 sps:$4 sm:$0xff]  }
 0x690   : > { %11779 = vmatprep.subr.bf16.mxu1 %v14256_v3  ;;  %v14313_v3 = vld [vmem:[#allocation9 + $0x724] ss:$16 sps:$4 sm:$0xff]  }
 0x692   : > { %11616 = vmatpush1.bf16.msra.mxu0 %v14251_v38  ;;  %v14316_v38 = vld [vmem:[#allocation9 + $0x72c] ss:$16 sps:$4 sm:$0xff]  }
 0x693   : > { %11780 = vmatpush1.bf16.msra.mxu1 %v14254_v4  ;;  %11626 = vmatprep.subr.bf16.mxu0 %v14259_v1  ;;  %v14311_v4 = vld [vmem:[#allocation9 + $0x720] ss:$16 sps:$4 sm:$0xff]   ;;  %v14314_v1 = vld [vmem:[#allocation9 + $0x728] ss:$16 sps:$4 sm:$0xff]  }
 0x694   : > { %11790 = vmatprep.subr.bf16.mxu1 %v14262_v5  ;;  %v14319_v5 = vld [vmem:[#allocation9 + $0x744] ss:$16 sps:$4 sm:$0xff]  }
 0x6a8   : > { %v9594_v33 = vpop.f32.mrb[20].mxu0 }
 0x6a9   : > { %v13725_v11 = vadd.f32 %v9594_v33, %v3476_v10  ;;  %v15195_v44 = vpop.f32.mrb[20].mxu1  ;;  %v9596_v25 = vpop.f32.mrb[21].mxu0  ;;  %v14322_v10 = vld [vmem:[#allocation9 + $0x74c] ss:$16 sps:$4 sm:$0xff]   ;;  %v14325_v33 = vld [vmem:[#allocation9 + $0x764] ss:$16 sps:$4 sm:$0xff]  }
 0x6aa   : > { %v13726_v46 = vadd.f32 %v9596_v25, %v3480_v7  ;;  %v9924_v18 = vpop.f32.mrb[21].mxu1  ;;  %v9598_v37 = vpop.f32.mrb[22].mxu0  ;;  %v14317_v7 = vld [vmem:[#allocation9 + $0x740] ss:$16 sps:$4 sm:$0xff]  }
 0x6ab   : > { %v9933_v16 = vmax.f32 %v13725_v11, 0.0  ;;  %v13728_v55 = vadd.f32 %v9924_v18, %v3488_v9  ;;  %v9926_v17 = vpop.f32.mrb[22].mxu1  ;;  %v9599_v61 = vpop.f32.mrb[23].mxu0  ;;  %v14320_v9 = vld [vmem:[#allocation9 + $0x748] ss:$16 sps:$4 sm:$0xff]  }
 0x6ac   : > { %v9934_v19 = vmax.f32 %v13726_v46, 0.0  ;;  %v9927_v47 = vpop.f32.mrb[23].mxu1  ;;  %v14328_v11 = vld [vmem:[#allocation9 + $0x76c] ss:$16 sps:$4 sm:$0xff]   ;;  %v14323_v25 = vld [vmem:[#allocation9 + $0x760] ss:$16 sps:$4 sm:$0xff]  }
 0x6ad   : > { %v9936_v34 = vmax.f32 %v13728_v55, 0.0  ;;  %v9941_v41 = vpack.c.bf16 %v9933_v16, %v9933_v16  ;;  %v14326_v46 = vld [vmem:[#allocation9 + $0x768] ss:$16 sps:$4 sm:$0xff]   ;;  %v14331_v18 = vld [vmem:[#allocation9 + $0x784] ss:$16 sps:$4 sm:$0xff]  }
 0x6ae   : > { %v9942_v31 = vpack.c.bf16 %v9934_v19, %v9934_v19  ;;  %v14334_v37 = vld [vmem:[#allocation9 + $0x78c] ss:$16 sps:$4 sm:$0xff]   ;;  %v14329_v16 = vld [vmem:[#allocation9 + $0x780] ss:$16 sps:$4 sm:$0xff]   ;;  %v14332_v55 = vld [vmem:[#allocation9 + $0x788] ss:$16 sps:$4 sm:$0xff]  }
 0x6af   : > { %v9944_v53 = vpack.c.bf16 %v9936_v34, %v9936_v34  ;;  %v14337_v17 = vld [vmem:[#allocation9 + $0x7a4] ss:$16 sps:$4 sm:$0xff]   ;;  %v14340_v61 = vld [vmem:[#allocation9 + $0x7ac] ss:$16 sps:$4 sm:$0xff]   ;;  %v14335_v19 = vld [vmem:[#allocation9 + $0x7a0] ss:$16 sps:$4 sm:$0xff]  }
 0x6b0   : > { %11617 = vmatprep.mubr.bf16.mxu0 %v9942_v31  ;;  %11781 = vmatprep.mubr.bf16.mxu1 %v9942_v31  ;;  %v14338_v47 = vld [vmem:[#allocation9 + $0x7a8] ss:$16 sps:$4 sm:$0xff]  }
 0x6b1   : > { %11618 = vmatmul.mubr.bf16.vlgmr.msra.gmra.mrb[24].mxu0 %v9941_v41  ;;  %11782 = vmatmul.mubr.bf16.vlgmr.msra.gmra.mrb[24].mxu1 %v9941_v41  ;;  %v14383_v34 = vld [vmem:[#allocation7] sm:$0xff]  ;;  %v14341_v41 = vld [vmem:[#allocation9 + $0x7c0] ss:$16 sps:$4 sm:$0xff]  }
 0x6b2   : > { %11627 = vmatpush1.bf16.msra.mxu0 %v14257_v63  ;;  %11791 = vmatpush1.bf16.msra.mxu1 %v14260_v21  ;;  %v3484_v31 = vrot.slane %v14383_v34, %v15066_v13  ;;  %v14343_v63 = vld [vmem:[#allocation9 + $0x7c4] ss:$16 sps:$4 sm:$0xff]   ;;  %v14346_v21 = vld [vmem:[#allocation9 + $0x7cc] ss:$16 sps:$4 sm:$0xff]   ;;  %v14355_v13 = vld [vmem:[#allocation12 + $0x4] ss:$8 sps:$4 sm:$0xff]  }
 0x6b3   : > { %11658 = vmatprep.mubr.bf16.mxu0 %v9944_v53  ;;  %11822 = vmatprep.mubr.bf16.mxu1 %v9944_v53  ;;  %v14349_v53 = vld [vmem:[#allocation9 + $0x7e4] ss:$16 sps:$4 sm:$0xff]  }
 0x6b4   : > { %11628 = vmatprep.subr.bf16.mxu0 %v14265_v56  ;;  %11792 = vmatprep.subr.bf16.mxu1 %v14268_v30  ;;  %v14344_v56 = vld [vmem:[#allocation9 + $0x7c8] ss:$16 sps:$4 sm:$0xff]   ;;  %v13727_v30 = vadd.f32 %v15195_v44, %v3484_v31  ;;  %v14356_v44 = vld [vmem:[#allocation12 + $0x10] ss:$8 sps:$4 sm:$0xff]  }
 0x6b6   : > { %11629 = vmatpush1.bf16.msra.mxu0 %v14263_v32  ;;  %11793 = vmatpush1.bf16.msra.mxu1 %v14266_v62  ;;  %v14352_v32 = vld [vmem:[#allocation9 + $0x7ec] ss:$16 sps:$4 sm:$0xff]   ;;  %v14347_v62 = vld [vmem:[#allocation9 + $0x7e0] ss:$16 sps:$4 sm:$0xff]  }
 0x6b7   : > { %11630 = vmatprep.subr.bf16.mxu0 %v14271_v23  ;;  %11794 = vmatprep.subr.bf16.mxu1 %v14274_v20  ;;  %v14350_v23 = vld [vmem:[#allocation9 + $0x7e8] ss:$16 sps:$4 sm:$0xff]   ;;  %v9935_v20 = vmax.f32 %v13727_v30, 0.0 }
 0x6ba   : > { %11631 = vmatpush1.bf16.msra.mxu0 %v14269_v40  ;;  %11795 = vmatpush1.bf16.msra.mxu1 %v14272_v26  ;;  %v14353_v40 = vld [vmem:[#allocation12] ss:$8 sps:$4 sm:$0xff]   ;;  %v9943_v26 = vpack.c.bf16 %v9935_v20, %v9935_v20 }
 0x6bb   : > { %11632 = vmatprep.subr.bf16.mxu0 %v14277_v29  ;;  %11796 = vmatprep.subr.bf16.mxu1 %v14280_v57  ;;  %v14358_v29 = vld [vmem:[#allocation12 + $0x14] ss:$8 sps:$4 sm:$0xff]   ;;  %v14361_v57 = vld [vmem:[#allocation12 + $0x24] ss:$8 sps:$4 sm:$0xff]  }
 0x6be   : > { %11633 = vmatpush1.bf16.msra.mxu0 %v14275_v27  ;;  %11797 = vmatpush1.bf16.msra.mxu1 %v14278_v48  ;;  %v14359_v27 = vld [vmem:[#allocation12 + $0x20] ss:$8 sps:$4 sm:$0xff]   ;;  %v14364_v48 = vld [vmem:[#allocation12 + $0x34] ss:$8 sps:$4 sm:$0xff]  }
 0x6bf   : > { %11634 = vmatprep.subr.bf16.mxu0 %v14283_v28  ;;  %11798 = vmatprep.subr.bf16.mxu1 %v14286_v43  ;;  %v14362_v28 = vld [vmem:[#allocation12 + $0x30] ss:$8 sps:$4 sm:$0xff]   ;;  %v14367_v43 = vld [vmem:[#allocation12 + $0x44] ss:$8 sps:$4 sm:$0xff]  }
 0x6c2   : > { %11635 = vmatpush1.bf16.msra.mxu0 %v14281_v14  ;;  %11799 = vmatpush1.bf16.msra.mxu1 %v14284_v49  ;;  %v14365_v14 = vld [vmem:[#allocation12 + $0x40] ss:$8 sps:$4 sm:$0xff]   ;;  %v14370_v49 = vld [vmem:[#allocation12 + $0x54] ss:$8 sps:$4 sm:$0xff]  }
 0x6c3   : > { %11636 = vmatprep.subr.bf16.mxu0 %v14289_v35  ;;  %11800 = vmatprep.subr.bf16.mxu1 %v14292_v24  ;;  %v14368_v35 = vld [vmem:[#allocation12 + $0x50] ss:$8 sps:$4 sm:$0xff]   ;;  %v14373_v24 = vld [vmem:[#allocation12 + $0x64] ss:$8 sps:$4 sm:$0xff]  }
 0x6c6   : > { %11637 = vmatpush1.bf16.msra.mxu0 %v14287_v51  ;;  %11801 = vmatpush1.bf16.msra.mxu1 %v14290_v42  ;;  %v14371_v51 = vld [vmem:[#allocation12 + $0x60] ss:$8 sps:$4 sm:$0xff]   ;;  %v14376_v42 = vld [vmem:[#allocation12 + $0x74] ss:$8 sps:$4 sm:$0xff]  }
 0x6c7   : > { %11638 = vmatprep.subr.bf16.mxu0 %v14295_v6  ;;  %11802 = vmatprep.subr.bf16.mxu1 %v14298_v45  ;;  %v14374_v6 = vld [vmem:[#allocation12 + $0x70] ss:$8 sps:$4 sm:$0xff]   ;;  %v14652_v45 = vmov 0  }
 0x6ca   : > { %11639 = vmatpush1.bf16.msra.mxu0 %v14293_v8  ;;  %11803 = vmatpush1.bf16.msra.mxu1 %v14296_v36  ;;  %v10201_v8 = vld [vmem:[#allocation10] sm:$0xf] }
 0x6cb   : > { %11640 = vmatprep.subr.bf16.mxu0 %v14301_v50  ;;  %11804 = vmatprep.subr.bf16.mxu1 %v14304_v54  ;;  %v10206_v36 = vrot.slane %v10201_v8, %v14980_v15  ;;  %v10214_v50 = vrot.slane %v10201_v8, %v15008_v52  ;;  %v10210_v54 = vrot.slane %v10201_v8, %v14963_v59 }
 0x6ce   : > { %11641 = vmatpush1.bf16.msra.mxu0 %v14299_v58  ;;  %11805 = vmatpush1.bf16.msra.mxu1 %v14302_v60 }
 0x6cf   : > { %11642 = vmatprep.subr.bf16.mxu0 %v14307_v0  ;;  %11806 = vmatprep.subr.bf16.mxu1 %v14310_v39  ;;  %v10218_v0 = vrot.slane %v10201_v8, %v14983_v22 }
 0x6d2   : > { %11643 = vmatpush1.bf16.msra.mxu0 %v14305_v2  ;;  %11807 = vmatpush1.bf16.msra.mxu1 %v14308_v12 }
 0x6d3   : > { %11644 = vmatprep.subr.bf16.mxu0 %v14313_v3  ;;  %11808 = vmatprep.subr.bf16.mxu1 %v14316_v38 }
 0x6d6   : > { %11645 = vmatpush1.bf16.msra.mxu0 %v14311_v4  ;;  %11809 = vmatpush1.bf16.msra.mxu1 %v14314_v1 }
 0x6d7   : > { %11646 = vmatprep.subr.bf16.mxu0 %v14319_v5  ;;  %11810 = vmatprep.subr.bf16.mxu1 %v14322_v10 }
 0x6da   : > { %11647 = vmatpush1.bf16.msra.mxu0 %v14317_v7  ;;  %11811 = vmatpush1.bf16.msra.mxu1 %v14320_v9 }
 0x6db   : > { %11648 = vmatprep.subr.bf16.mxu0 %v14325_v33  ;;  %11812 = vmatprep.subr.bf16.mxu1 %v14328_v11 }
 0x6de   : > { %11649 = vmatpush1.bf16.msra.mxu0 %v14323_v25  ;;  %11813 = vmatpush1.bf16.msra.mxu1 %v14326_v46 }
 0x6df   : > { %11650 = vmatprep.subr.bf16.mxu0 %v14331_v18  ;;  %11814 = vmatprep.subr.bf16.mxu1 %v14334_v37 }
 0x6e2   : > { %11651 = vmatpush1.bf16.msra.mxu0 %v14329_v16  ;;  %11815 = vmatpush1.bf16.msra.mxu1 %v14332_v55  ;;  %v11856_v16 = vld [vmem:[#allocation13] sm:$0x3] }
 0x6e3   : > { %11652 = vmatprep.subr.bf16.mxu0 %v14337_v17  ;;  %11816 = vmatprep.subr.bf16.mxu1 %v14340_v61  ;;  %v11861_v55 = vrot.slane %v11856_v16, %v14980_v15  ;;  %v11865_v17 = vrot.slane %v11856_v16, %v14963_v59 }
 0x6e6   : > { %11653 = vmatpush1.bf16.msra.mxu0 %v14335_v19  ;;  %11817 = vmatpush1.bf16.msra.mxu1 %v14338_v47 }
 0x6e7   : > { %11654 = vmatprep.subr.bf16.mxu0 %v14343_v63  ;;  %11818 = vmatprep.subr.bf16.mxu1 %v14346_v21 }
 0x6ea   : > { %11655 = vmatpush1.bf16.msra.mxu0 %v14341_v41  ;;  %11819 = vmatpush1.bf16.msra.mxu1 %v14344_v56 }
 0x6eb   : > { %11656 = vmatprep.subr.bf16.mxu0 %v14349_v53  ;;  %11820 = vmatprep.subr.bf16.mxu1 %v14352_v32 }
 0x6ee   : > { %11657 = vmatpush1.bf16.msra.mxu0 %v14347_v62  ;;  %11821 = vmatpush1.bf16.msra.mxu1 %v14350_v23 }
 0x6ef   : > { %11948 = vmatprep.subr.bf16.mxu0 %v14355_v13 }
 0x6f1   : > { %11659 = vmatmul.mubr.bf16.vlgmr.msra.gmra.mrb[24].mxu0 %v9943_v26  ;;  %11823 = vmatmul.mubr.bf16.vlgmr.msra.gmra.mrb[24].mxu1 %v9943_v26 }
 0x6f2   : > { %11949 = vmatpush1.bf16.msra.mxu0 %v14353_v40  ;;  %11980 = vmatprep.mubr.bf16.mxu0 %v14652_v45 }
 0x6f3   : > { %11950 = vmatprep.subr.bf16.mxu0 %v14358_v29 }
 0x6f6   : > { %11951 = vmatpush1.bf16.msra.mxu0 %v14356_v44 }
 0x6f7   : > { %11952 = vmatprep.subr.bf16.mxu0 %v14361_v57 }
 0x6fa   : > { %11953 = vmatpush1.bf16.msra.mxu0 %v14359_v27 }
 0x6fb   : > { %11954 = vmatprep.subr.bf16.mxu0 %v14364_v48 }
 0x6fe   : > { %11955 = vmatpush1.bf16.msra.mxu0 %v14362_v28 }
 0x6ff   : > { %11956 = vmatprep.subr.bf16.mxu0 %v14367_v43 }
 0x702   : > { %11957 = vmatpush1.bf16.msra.mxu0 %v14365_v14 }
 0x703   : > { %11958 = vmatprep.subr.bf16.mxu0 %v14370_v49 }
 0x706   : > { %11959 = vmatpush1.bf16.msra.mxu0 %v14368_v35 }
 0x707   : > { %11960 = vmatprep.subr.bf16.mxu0 %v14373_v24 }
 0x70a   : > { %11961 = vmatpush1.bf16.msra.mxu0 %v14371_v51 }
 0x70b   : > { %11962 = vmatprep.subr.bf16.mxu0 %v14376_v42 }
 0x70e   : > { %11963 = vmatpush1.bf16.msra.mxu0 %v14374_v6 }
 0x7c4   : > { %v11660_v58 = vpop.f32.mrb[24].mxu0  ;;  %v11824_v60 = vpop.f32.mrb[24].mxu1 }
 0x7c5   : > { %v13729_v39 = vadd.f32 %v11660_v58, %v10206_v36  ;;  %v11662_v2 = vpop.f32.mrb[25].mxu0  ;;  %v11826_v12 = vpop.f32.mrb[25].mxu1  ;;  %v13731_v3 = vadd.f32 %v11824_v60, %v10214_v50 }
 0x7c6   : > { %v13730_v38 = vadd.f32 %v11662_v2, %v10210_v54  ;;  %v11664_v4 = vpop.f32.mrb[26].mxu0  ;;  %v11828_v1 = vpop.f32.mrb[26].mxu1  ;;  %v13732_v33 = vadd.f32 %v11826_v12, %v10218_v0 }
 0x7c7   : > { %v11831_v5 = vmax.f32 %v13729_v39, 0.0  ;;  %v11665_v10 = vpop.f32.mrb[27].mxu0  ;;  %v11829_v7 = vpop.f32.mrb[27].mxu1  ;;  %v11833_v52 = vmax.f32 %v13731_v3, 0.0 }
 0x7c8   : > { %v11832_v9 = vmax.f32 %v13730_v38, 0.0  ;;  %v11834_v25 = vmax.f32 %v13732_v33, 0.0 }
 0x7ca   : > { %v11835_v11 = vadd.f32 %v11832_v9, %v11831_v5 }
 0x7cc   : > { %v11836_v46 = vadd.f32 %v11835_v11, %v11833_v52 }
 0x7ce   : > { %v11837_v18 = vadd.f32 %v11836_v46, %v11834_v25 }
 0x7d0   : > { %v11838_v37 = vmul.f32 0.25, %v11837_v18 }
 0x7d2   : > { %v11839_v22 = vpack.c.bf16 %v11838_v37, %v11838_v37 }
 0x7d4   : > { %11981 = vmatmul.mubr.bf16.vlgmr.msra.gmra.mrb[28].mxu0 %v11839_v22 }
 0x8a7   : > { %v11982_v61 = vpop.f32.mrb[28].mxu0 }
 0x8a8   : > { %v11983_v19 = vadd.f32 %v11982_v61, %v11861_v55  ;;  %v11984_v47 = vpop.f32.mrb[29].mxu0 }
 0x8a9   : > { %v11985_v34 = vadd.f32 %v11984_v47, %v11865_v17  ;;  %v11986_v31 = vpop.f32.mrb[30].mxu0 }
 0x8aa   : > { %v11987_v63 = vpop.f32.mrb[31].mxu0  ;;  %v11989_v21 = vmul.f32 %v11983_v19, %v11983_v19 }
 0x8ab   : > { %12003 = vst [vmem:[%s441_s14 + $0x8] sm:$0xff] %v11985_v34 }
 0x8ac   : > { %11990 = vadd.xlane.f32.xlu0 %v11989_v21 }
 0x939   : > { %v11991_v41 = vpop.xlane.xlu0 %11990 }
 0x93a   : > { %14377 = vrsqrt.f32 %v11991_v41  ;;  %vm11994_vm0 = vcmp.eq.f32.partialorder %v11991_v41, inf  ;;  %v11997_v30 = vand.u32 2147483648, %v11991_v41  ;;  %vm11996_vm1 = vcmp.eq.f32.partialorder %v11991_v41, 0.0 }
 0x944   : > { %v14378_v56 = vpop.eup %14377 }
 0x945   : > { %v11993_v15 = vmul.f32 %v14378_v56, %v11991_v41 }
 0x947   : > { %v11995_v59 = vsel %vm11994_vm0, %v11991_v41, %v11993_v15 }
 0x948   : > { %v11998_v53 = vsel %vm11996_vm1, %v11997_v30, %v11995_v59 }
 0x949   : > { %v11999_v32 = vmax.f32 %v11998_v53, 1e-12 }
 0x94b   : > { %14379 = vrcp.f32 %v11999_v32 }
 0x955   : > { %v14380_v62 = vpop.eup %14379 }
 0x956   : > { %v12001_v23 = vmul.f32 %v14380_v62, %v11983_v19 }
 0x958   : > { %12002 = vst [vmem:[%s441_s14] sm:$0xff] %v12001_v23 }
 0x959 PF: > { %s24_s30 = sadd.s32 1, %s14634_s30  }
 0x95a   : > { %p21_p13 = scmp.ge.s32.totalorder %s24_s30, 4  }
 0x95c   :  { %23 = sbr.rel (!%p21_p13) target bundleno = 5 (0x5), region = 119 }
 0x963   :  { %12025 = vsyncpa [#allocation3], 1 }
 0x964   :  { %12027 = vsyncpa [#allocation3 + $0x1], 1 }
 0x965   :  { %12028 = vsyncpa [#allocation5], 1 }
 0x966   :  { %12029 = vsyncpa [#allocation8], 1 }
 0x967   :  { %12030 = vsyncpa [#allocation11], 1 }
 0x968   :  { %12031 = vsyncpa [#allocation14], 1 }

</bundles_post_ra>
